<compile_context>
chip_gen: v5e
topology: v5e:2x2
jax: 0.10.0
libtpu: 0.0.40
codegen_flags: <defaults>
</compile_context>

<pallas_src>
import jax
import jax.numpy as jnp
from jax.experimental import pallas as pl
from jax.experimental.pallas import tpu as pltpu

C = 128           # every channel dimension is lane-padded to one full lane tile
R1 = 848          # conv1 im2col rows / sample: 1 leading zero + 28 rows * pitch 30 + 7 slack


# --------------------------------------------------------------------------- kernels
def _features_kernel(x_ref, w1_ref, w2_ref, b2_ref, w3_ref, b3_ref, o_ref,
                     cz1, wq1, a2, cz2, wq2, a3, cz3, wq3):
    """Entire `features` stack for ONE sample, fully VMEM resident."""
    bf16 = jnp.bfloat16
    f32 = jnp.float32

    # ---- helpers -----------------------------------------------------------
    def pool_w(cz_ref, Ho, P):
        # W-direction of MaxPool(3, stride 2, pad 1) on a flat pitch-P layout:
        # index 0 is a zero row, element (r, w) lives at 1 + r*P + w, the gap
        # slots (w >= Wo) are zero.  Window (r, q) taps live at r*P + 2q + k,
        # so 3 stride-2 reads cover the whole stage.  Result slot r*(P//2)+q is
        # valid for q < P//2 - 1 (one junk slot per row, never consumed).
        cnt = Ho * (P // 2)
        t0 = cz_ref[pl.ds(0, cnt, stride=2), :]
        t1 = cz_ref[pl.ds(1, cnt, stride=2), :]
        t2 = cz_ref[pl.ds(2, cnt, stride=2), :]
        return jnp.maximum(jnp.maximum(t0, t1), t2)

    def pool_h(wq_ref, Po, Qw, Qo, emit):
        # H-direction: wq_ref holds one leading all-zero slab (the top padding)
        # followed by Ho slabs of Qw rows (only the first Qo rows are valid).
        for p in range(Po):
            r0 = wq_ref[pl.ds((2 * p + 0) * Qw, Qo), :]
            r1 = wq_ref[pl.ds((2 * p + 1) * Qw, Qo), :]
            r2 = wq_ref[pl.ds((2 * p + 2) * Qw, Qo), :]
            emit(p, jnp.maximum(jnp.maximum(r0, r1), r2))

    def conv3x3(src_ref, w_ref, b_ref, pitch, L):
        # 3x3 conv as 9 shifted-window bf16 matmuls, accumulated in registers.
        acc = None
        for kh in range(3):
            for kw in range(3):
                t = kh * 3 + kw
                d = jnp.dot(src_ref[pl.ds(kh * pitch + kw, L), :],
                            w_ref[pl.ds(t * C, C), :],
                            preferred_element_type=f32)
                acc = d if acc is None else acc + d
        return jnp.maximum(acc + b_ref[...], 0.0)

    def scatter_conv(cz_ref, y, Ho, Wo, P):
        # Store conv output y (L rows at pitch P, finite wrap garbage at w>=Wo)
        # into the pool-input layout: leading zero row + data, then zero the gaps.
        L = (Ho - 1) * P + Wo
        cz_ref[pl.ds(0, 1), :] = jnp.zeros((1, C), f32)
        cz_ref[pl.ds(1, L), :] = y
        zgap = jnp.zeros((P - Wo, C), f32)
        for r in range(Ho):
            cz_ref[pl.ds(1 + r * P + Wo, P - Wo), :] = zgap

    # ---- stage 1: conv1 5x5 (bias folded into the im2col) + ReLU -----------
    # x_ref already carries the pitch-30 / zero-gap / leading-zero-row layout,
    # so one matmul writes the pool-1 input directly (zero patches stay exactly 0).
    cz1[...] = jnp.maximum(
        jnp.dot(x_ref[...], w1_ref[...], preferred_element_type=f32), 0.0)

    # ---- pool 1: 28x28 -> 14x14, stored flat (pitch 14) in a2 --------------
    wq1[pl.ds(0, 15), :] = jnp.zeros((15, C), bf16)
    wq1[pl.ds(15, 420), :] = pool_w(cz1, Ho=28, P=30).astype(bf16)

    def emit_a2(p, v):
        a2[pl.ds(p * 14, 14), :] = v
    pool_h(wq1, Po=14, Qw=15, Qo=14, emit=emit_a2)

    # ---- stage 2: conv2 3x3 (14x14 -> 12x12) + ReLU, pool -> 6x6 -----------
    y2 = conv3x3(a2, w2_ref, b2_ref, pitch=14, L=166)
    scatter_conv(cz2, y2, Ho=12, Wo=12, P=14)

    wq2[pl.ds(0, 7), :] = jnp.zeros((7, C), bf16)
    wq2[pl.ds(7, 84), :] = pool_w(cz2, Ho=12, P=14).astype(bf16)

    a3[...] = jnp.zeros_like(a3)        # zero border realizes conv3's padding=1

    def emit_a3(p, v):
        a3[pl.ds((p + 1) * 8 + 1, 6), :] = v
    pool_h(wq2, Po=6, Qw=7, Qo=6, emit=emit_a3)

    # ---- stage 3: conv3 3x3 pad 1 (6x6 -> 6x6) + ReLU, pool -> 3x3 ---------
    y3 = conv3x3(a3, w3_ref, b3_ref, pitch=8, L=46)
    scatter_conv(cz3, y3, Ho=6, Wo=6, P=8)

    wq3[pl.ds(0, 4), :] = jnp.zeros((4, C), bf16)
    wq3[pl.ds(4, 24), :] = pool_w(cz3, Ho=6, P=8).astype(bf16)

    def emit_out(p, v):
        o_ref[pl.ds(p * 3, 3), :] = v
    pool_h(wq3, Po=3, Qw=4, Qo=3, emit=emit_out)


def _classifier_kernel(x_ref, w1_ref, b1_ref, w2_ref, b2_ref, w3_ref, b3_ref, o_ref):
    f32 = jnp.float32
    h = jnp.dot(x_ref[...], w1_ref[...], preferred_element_type=f32) + b1_ref[...]
    h = jnp.maximum(h, 0.0).astype(jnp.bfloat16)
    h = jnp.dot(h, w2_ref[...], preferred_element_type=f32) + b2_ref[...]
    h = jnp.maximum(h, 0.0).astype(jnp.bfloat16)
    o_ref[...] = jnp.dot(h, w3_ref[...], preferred_element_type=f32) + b3_ref[...]


# --------------------------------------------------------------------------- wrappers
def features(patches, w1, w2, b2, w3, b3):
    n = patches.shape[0]
    flops = 2 * n * C * C * (R1 + 9 * 166 + 9 * 46)
    bytes_accessed = (patches.size * 2 + (w1.size + w2.size + w3.size) * 2
                      + (b2.size + b3.size) * 4 + n * 9 * C * 2)
    return pl.pallas_call(
        _features_kernel,
        out_shape=jax.ShapeDtypeStruct((n, 9, C), jnp.bfloat16),
        grid=(n,),
        in_specs=[
            pl.BlockSpec((None, R1, C), lambda i: (i, 0, 0)),   # conv1 im2col patches
            pl.BlockSpec((C, C), lambda i: (0, 0)),             # w1 (bias folded in)
            pl.BlockSpec((9 * C, C), lambda i: (0, 0)),         # w2
            pl.BlockSpec((1, C), lambda i: (0, 0)),             # b2
            pl.BlockSpec((9 * C, C), lambda i: (0, 0)),         # w3
            pl.BlockSpec((1, C), lambda i: (0, 0)),             # b3
        ],
        out_specs=pl.BlockSpec((None, 9, C), lambda i: (i, 0, 0)),
        scratch_shapes=[
            pltpu.VMEM((R1, C), jnp.float32),     # cz1: conv1 out / pool-1 input (pitch 30)
            pltpu.VMEM((440, C), jnp.bfloat16),   # wq1: pool-1 W-maxima (1+28 slabs of 15)
            pltpu.VMEM((200, C), jnp.bfloat16),   # a2 : 14x14 activation, flat pitch 14
            pltpu.VMEM((176, C), jnp.float32),    # cz2: conv2 out / pool-2 input (pitch 14)
            pltpu.VMEM((96, C), jnp.bfloat16),    # wq2: pool-2 W-maxima (1+12 slabs of 7)
            pltpu.VMEM((64, C), jnp.bfloat16),    # a3 : zero-padded 8x8 conv3 input
            pltpu.VMEM((56, C), jnp.float32),     # cz3: conv3 out / pool-3 input (pitch 8)
            pltpu.VMEM((32, C), jnp.bfloat16),    # wq3: pool-3 W-maxima (1+6 slabs of 4)
        ],
        compiler_params=pltpu.CompilerParams(
            dimension_semantics=("parallel",),
            vmem_limit_bytes=32 * 1024 * 1024),
        cost_estimate=pl.CostEstimate(flops=int(flops), transcendentals=0,
                                      bytes_accessed=int(bytes_accessed)),
    )(patches, w1, w2, b2, w3, b3)


def classifier(x, f1, f1b, f2, f2b, f3, f3b):
    n = x.shape[0]
    bm = n if n < 256 else 256
    flops = 2 * n * (1152 * 512 + 512 * 256 + 256 * C)
    bytes_accessed = x.size * 2 + (f1.size + f2.size + f3.size) * 2 + n * C * 4
    return pl.pallas_call(
        _classifier_kernel,
        out_shape=jax.ShapeDtypeStruct((n, C), jnp.float32),
        grid=(pl.cdiv(n, bm),),
        in_specs=[
            pl.BlockSpec((bm, 1152), lambda i: (i, 0)),
            pl.BlockSpec((1152, 512), lambda i: (0, 0)),
            pl.BlockSpec((1, 512), lambda i: (0, 0)),
            pl.BlockSpec((512, 256), lambda i: (0, 0)),
            pl.BlockSpec((1, 256), lambda i: (0, 0)),
            pl.BlockSpec((256, C), lambda i: (0, 0)),
            pl.BlockSpec((1, C), lambda i: (0, 0)),
        ],
        out_specs=pl.BlockSpec((bm, C), lambda i: (i, 0)),
        compiler_params=pltpu.CompilerParams(
            dimension_semantics=("parallel",),
            vmem_limit_bytes=32 * 1024 * 1024),
        cost_estimate=pl.CostEstimate(flops=int(flops), transcendentals=0,
                                      bytes_accessed=int(bytes_accessed)),
    )(x, f1, f1b, f2, f2b, f3, f3b)


def _im2col_conv1(x_nchw):
    """NCHW f32 -> (N, R1, 128) bf16 conv1 patches in the layout the kernel expects:
    row 1 + r*30 + w (w < 28) holds the 5x5x3 patch for conv1 output pixel (r, w)
    plus a constant-1 bias feature; the 2 gap columns per row, the leading row and
    the trailing slack rows are exact zeros (they double as the pool-1 padding)."""
    n = x_nchw.shape[0]
    x = jnp.transpose(x_nchw, (0, 2, 3, 1))                         # NHWC (N,32,32,3)
    taps = [x[:, kh:kh + 28, kw:kw + 28, :] for kh in range(5) for kw in range(5)]
    pat = jnp.stack(taps, axis=3).reshape(n, 28, 28, 75)            # (kh,kw,cin) features
    pat = jnp.concatenate([pat, jnp.ones((n, 28, 28, 1), jnp.float32)], axis=-1)
    pat = jnp.pad(pat, ((0, 0), (0, 0), (0, 0), (0, C - 76)))       # lane pad 76 -> 128
    pat = jnp.pad(pat, ((0, 0), (0, 0), (0, 2), (0, 0)))            # 2 zero gap columns
    pat = pat.reshape(n, 28 * 30, C)
    pat = jnp.pad(pat, ((0, 0), (1, R1 - 1 - 28 * 30), (0, 0)))     # leading zero + slack
    return pat.astype(jnp.bfloat16)


@jax.jit
def forward(x_nchw, p):
    n = x_nchw.shape[0]
    patches = _im2col_conv1(x_nchw)
    feats = features(patches, p["w1"], p["w2"], p["b2"], p["w3"], p["b3"])
    flat = feats.reshape(n, 9 * C)                                  # (h, w, c) flatten
    logits = classifier(flat, p["f1"], p["f1b"], p["f2"], p["f2b"], p["f3"], p["f3b"])
    return logits[:, :10]                                           # drop fc3 lane padding


# --------------------------------------------------------------------------- params
def init_torch_params(key, num_classes=10):
    """PyTorch-layout parameters (OIHW conv weights, (out,in) linear weights)."""
    ks = jax.random.split(key, 12)

    def u(k, shape, fan_in):
        b = 1.0 / jnp.sqrt(fan_in)
        return jax.random.uniform(k, shape, jnp.float32, -b, b)

    return dict(
        c1_w=u(ks[0], (64, 3, 5, 5), 3 * 25), c1_b=u(ks[1], (64,), 3 * 25),
        c2_w=u(ks[2], (96, 64, 3, 3), 64 * 9), c2_b=u(ks[3], (96,), 64 * 9),
        c3_w=u(ks[4], (128, 96, 3, 3), 96 * 9), c3_b=u(ks[5], (128,), 96 * 9),
        fc1_w=u(ks[6], (512, 1152), 1152), fc1_b=u(ks[7], (512,), 1152),
        fc2_w=u(ks[8], (256, 512), 512), fc2_b=u(ks[9], (256,), 512),
        fc3_w=u(ks[10], (num_classes, 256), 256), fc3_b=u(ks[11], (num_classes,), 256),
    )


def prepare_params(tp):
    """Convert torch-layout params to the lane-padded bf16 layouts the kernels consume."""
    def conv_pack(w, b):                       # w: (Cout, Cin, 3, 3)
        cout, cin, kh, kw = w.shape
        w_hwio = jnp.transpose(w, (2, 3, 1, 0)).reshape(kh * kw, cin, cout)
        wp = jnp.zeros((kh * kw, C, C), jnp.float32).at[:, :cin, :cout].set(w_hwio)
        bp = jnp.zeros((1, C), jnp.float32).at[0, :cout].set(b)
        return wp.reshape(kh * kw * C, C).astype(jnp.bfloat16), bp

    # conv1: im2col weight (128, 128); bias folded in as the constant-1 feature (row 75)
    w1_hwio = jnp.transpose(tp["c1_w"], (2, 3, 1, 0)).reshape(75, 64)
    w1 = (jnp.zeros((C, C), jnp.float32)
          .at[:75, :64].set(w1_hwio)
          .at[75, :64].set(tp["c1_b"])).astype(jnp.bfloat16)

    w2, b2 = conv_pack(tp["c2_w"], tp["c2_b"])
    w3, b3 = conv_pack(tp["c3_w"], tp["c3_b"])

    # fc1 pre-permuted so it consumes the NHWC (h, w, c) flatten directly
    f1 = jnp.transpose(tp["fc1_w"].reshape(512, 128, 3, 3), (2, 3, 1, 0)).reshape(1152, 512)
    f3 = jnp.zeros((256, C), jnp.float32).at[:, :10].set(jnp.transpose(tp["fc3_w"]))
    f3b = jnp.zeros((1, C), jnp.float32).at[0, :10].set(tp["fc3_b"])
    return dict(
        w1=w1, w2=w2, b2=b2, w3=w3, b3=b3,
        f1=f1.astype(jnp.bfloat16), f1b=tp["fc1_b"].reshape(1, 512),
        f2=jnp.transpose(tp["fc2_w"]).astype(jnp.bfloat16), f2b=tp["fc2_b"].reshape(1, 256),
        f3=f3.astype(jnp.bfloat16), f3b=f3b)


# --------------------------------------------------------------------------- reference
def reference_forward(x_nchw, tp):
    hi = jax.lax.Precision.HIGHEST

    def conv(x, w, b, pad):
        y = jax.lax.conv_general_dilated(
            x, w, window_strides=(1, 1), padding=[(pad, pad), (pad, pad)],
            dimension_numbers=("NCHW", "OIHW", "NCHW"), precision=hi)
        return jax.nn.relu(y + b[None, :, None, None])

    def pool(x):
        return jax.lax.reduce_window(
            x, -jnp.inf, jax.lax.max,
            window_dimensions=(1, 1, 3, 3), window_strides=(1, 1, 2, 2),
            padding=((0, 0), (0, 0), (1, 1), (1, 1)))

    x = pool(conv(x_nchw, tp["c1_w"], tp["c1_b"], 0))
    x = pool(conv(x, tp["c2_w"], tp["c2_b"], 0))
    x = pool(conv(x, tp["c3_w"], tp["c3_b"], 1))
    x = x.reshape(x.shape[0], 128 * 3 * 3)
    x = jax.nn.relu(jnp.dot(x, tp["fc1_w"].T, precision=hi) + tp["fc1_b"])
    x = jax.nn.relu(jnp.dot(x, tp["fc2_w"].T, precision=hi) + tp["fc2_b"])
    return jnp.dot(x, tp["fc3_w"].T, precision=hi) + tp["fc3_b"]


# --------------------------------------------------------------------------- main
if __name__ == "__main__":
    key = jax.random.PRNGKey(0)
    kx, kp = jax.random.split(key)
    x = jax.random.normal(kx, (2, 3, 32, 32), jnp.float32)   # NCHW, like PyTorch
    torch_params = init_torch_params(kp)
    params = prepare_params(torch_params)

    logits = jax.block_until_ready(forward(x, params))
    assert logits.shape == (2, 10) and logits.dtype == jnp.float32
    assert bool(jnp.all(jnp.isfinite(logits)))

    ref = jax.block_until_ready(jax.jit(reference_forward)(x, torch_params))
    max_err = float(jnp.max(jnp.abs(logits - ref)))
    # bf16 matmul operands (f32 accumulation) vs f32 HIGHEST reference
    assert bool(jnp.allclose(logits, ref, rtol=2e-2, atol=2e-2)), (
        f"kernel/reference mismatch, max |err| = {max_err}")
    print("KERNEL_OK")
</pallas_src>

<mosaic_0001>
module attributes {stable_mosaic.version = 11 : i64} {
  func.func @_features_kernel(%arg0: i32, %arg1: memref<1x848x128xbf16, #tpu.memory_space<vmem>>, %arg2: memref<128x128xbf16, #tpu.memory_space<vmem>>, %arg3: memref<1152x128xbf16, #tpu.memory_space<vmem>>, %arg4: memref<1x128xf32, #tpu.memory_space<vmem>>, %arg5: memref<1152x128xbf16, #tpu.memory_space<vmem>>, %arg6: memref<1x128xf32, #tpu.memory_space<vmem>>, %arg7: memref<1x9x128xbf16, #tpu.memory_space<vmem>>, %arg8: memref<848x128xf32, #tpu.memory_space<vmem>>, %arg9: memref<440x128xbf16, #tpu.memory_space<vmem>>, %arg10: memref<200x128xbf16, #tpu.memory_space<vmem>>, %arg11: memref<176x128xf32, #tpu.memory_space<vmem>>, %arg12: memref<96x128xbf16, #tpu.memory_space<vmem>>, %arg13: memref<64x128xbf16, #tpu.memory_space<vmem>>, %arg14: memref<56x128xf32, #tpu.memory_space<vmem>>, %arg15: memref<32x128xbf16, #tpu.memory_space<vmem>>) attributes {dimension_semantics = [#tpu.dimension_semantics<parallel>], iteration_bounds = array<i64: 2>, scalar_prefetch = 0 : i64, scratch_operands = 8 : i64, tpu.core_type = #tpu.core_type<tc>, window_params = [{transform_indices = @transform_0, window_bounds = array<i64: 1, 848, 128>}, {pipeline_mode = #tpu.pipeline_mode<synchronous>, transform_indices = @transform_1, window_bounds = array<i64: 128, 128>}, {pipeline_mode = #tpu.pipeline_mode<synchronous>, transform_indices = @transform_2, window_bounds = array<i64: 1152, 128>}, {pipeline_mode = #tpu.pipeline_mode<synchronous>, transform_indices = @transform_3, window_bounds = array<i64: 1, 128>}, {pipeline_mode = #tpu.pipeline_mode<synchronous>, transform_indices = @transform_4, window_bounds = array<i64: 1152, 128>}, {pipeline_mode = #tpu.pipeline_mode<synchronous>, transform_indices = @transform_5, window_bounds = array<i64: 1, 128>}, {transform_indices = @transform_6, window_bounds = array<i64: 1, 9, 128>}]} {
    %c0 = arith.constant 0 : index
    %c0_0 = arith.constant 0 : index
    %c0_1 = arith.constant 0 : index
    %0 = vector.load %arg1[%c0, %c0_0, %c0_1] : memref<1x848x128xbf16, #tpu.memory_space<vmem>>, vector<1x848x128xbf16>
    %1 = vector.shape_cast %0 : vector<1x848x128xbf16> to vector<848x128xbf16>
    %c0_2 = arith.constant 0 : index
    %c0_3 = arith.constant 0 : index
    %2 = vector.load %arg2[%c0_2, %c0_3] : memref<128x128xbf16, #tpu.memory_space<vmem>>, vector<128x128xbf16>
    %cst = arith.constant dense<0.000000e+00> : vector<848x128xf32>
    %3 = tpu.matmul %1, %2, %cst {dimension_numbers = #tpu.dot_dimension_numbers<[1], [0], [0], [1], [0, 0, 1, 1], [], []>} : vector<848x128xbf16>, vector<128x128xbf16>, vector<848x128xf32> -> vector<848x128xf32>
    %cst_4 = arith.constant 0.000000e+00 : f32
    %4 = vector.broadcast %cst_4 : f32 to vector<848x128xf32>
    %5 = arith.maximumf %3, %4 : vector<848x128xf32>
    %c0_5 = arith.constant 0 : index
    %c0_6 = arith.constant 0 : index
    %6 = vector.load %arg8[%c0_5, %c0_6] : memref<848x128xf32, #tpu.memory_space<vmem>>, vector<848x128xf32>
    tpu.vector_store %arg8[%c0_5, %c0_6], %5 {strides = array<i32>} : memref<848x128xf32, #tpu.memory_space<vmem>>, vector<848x128xf32>,
    %cst_7 = arith.constant 0.000000e+00 : bf16
    %7 = vector.broadcast %cst_7 : bf16 to vector<15x128xbf16>
    %c0_8 = arith.constant 0 : index
    %c0_9 = arith.constant 0 : index
    %8 = vector.load %arg9[%c0_8, %c0_9] : memref<440x128xbf16, #tpu.memory_space<vmem>>, vector<15x128xbf16>
    tpu.vector_store %arg9[%c0_8, %c0_9], %7 {strides = array<i32>} : memref<440x128xbf16, #tpu.memory_space<vmem>>, vector<15x128xbf16>,
    %c0_10 = arith.constant 0 : index
    %c0_11 = arith.constant 0 : index
    %9 = tpu.strided_load %arg8[%c0_10, %c0_11] {strides = array<i32: 2, 1>} : memref<848x128xf32, #tpu.memory_space<vmem>>, vector<420x128xf32>
    %c1 = arith.constant 1 : index
    %c0_12 = arith.constant 0 : index
    %10 = tpu.strided_load %arg8[%c1, %c0_12] {strides = array<i32: 2, 1>} : memref<848x128xf32, #tpu.memory_space<vmem>>, vector<420x128xf32>
    %c2 = arith.constant 2 : index
    %c0_13 = arith.constant 0 : index
    %11 = tpu.strided_load %arg8[%c2, %c0_13] {strides = array<i32: 2, 1>} : memref<848x128xf32, #tpu.memory_space<vmem>>, vector<420x128xf32>
    %12 = arith.maximumf %9, %10 : vector<420x128xf32>
    %13 = arith.maximumf %12, %11 : vector<420x128xf32>
    %14 = arith.truncf %13 : vector<420x128xf32> to vector<420x128xbf16>
    %c15 = arith.constant 15 : index
    %c0_14 = arith.constant 0 : index
    %15 = vector.load %arg9[%c15, %c0_14] : memref<440x128xbf16, #tpu.memory_space<vmem>>, vector<420x128xbf16>
    tpu.vector_store %arg9[%c15, %c0_14], %14 {strides = array<i32>} : memref<440x128xbf16, #tpu.memory_space<vmem>>, vector<420x128xbf16>,
    %c0_15 = arith.constant 0 : index
    %c0_16 = arith.constant 0 : index
    %16 = vector.load %arg9[%c0_15, %c0_16] : memref<440x128xbf16, #tpu.memory_space<vmem>>, vector<14x128xbf16>
    %c15_17 = arith.constant 15 : index
    %c0_18 = arith.constant 0 : index
    %17 = vector.load %arg9[%c15_17, %c0_18] : memref<440x128xbf16, #tpu.memory_space<vmem>>, vector<14x128xbf16>
    %c30 = arith.constant 30 : index
    %c0_19 = arith.constant 0 : index
    %18 = vector.load %arg9[%c30, %c0_19] : memref<440x128xbf16, #tpu.memory_space<vmem>>, vector<14x128xbf16>
    %19 = arith.maximumf %16, %17 : vector<14x128xbf16>
    %20 = arith.maximumf %19, %18 : vector<14x128xbf16>
    %c0_20 = arith.constant 0 : index
    %c0_21 = arith.constant 0 : index
    %21 = vector.load %arg10[%c0_20, %c0_21] : memref<200x128xbf16, #tpu.memory_space<vmem>>, vector<14x128xbf16>
    tpu.vector_store %arg10[%c0_20, %c0_21], %20 {strides = array<i32>} : memref<200x128xbf16, #tpu.memory_space<vmem>>, vector<14x128xbf16>,
    %c30_22 = arith.constant 30 : index
    %c0_23 = arith.constant 0 : index
    %22 = vector.load %arg9[%c30_22, %c0_23] : memref<440x128xbf16, #tpu.memory_space<vmem>>, vector<14x128xbf16>
    %c45 = arith.constant 45 : index
    %c0_24 = arith.constant 0 : index
    %23 = vector.load %arg9[%c45, %c0_24] : memref<440x128xbf16, #tpu.memory_space<vmem>>, vector<14x128xbf16>
    %c60 = arith.constant 60 : index
    %c0_25 = arith.constant 0 : index
    %24 = vector.load %arg9[%c60, %c0_25] : memref<440x128xbf16, #tpu.memory_space<vmem>>, vector<14x128xbf16>
    %25 = arith.maximumf %22, %23 : vector<14x128xbf16>
    %26 = arith.maximumf %25, %24 : vector<14x128xbf16>
    %c14 = arith.constant 14 : index
    %c0_26 = arith.constant 0 : index
    %27 = vector.load %arg10[%c14, %c0_26] : memref<200x128xbf16, #tpu.memory_space<vmem>>, vector<14x128xbf16>
    tpu.vector_store %arg10[%c14, %c0_26], %26 {strides = array<i32>} : memref<200x128xbf16, #tpu.memory_space<vmem>>, vector<14x128xbf16>,
    %c60_27 = arith.constant 60 : index
    %c0_28 = arith.constant 0 : index
    %28 = vector.load %arg9[%c60_27, %c0_28] : memref<440x128xbf16, #tpu.memory_space<vmem>>, vector<14x128xbf16>
    %c75 = arith.constant 75 : index
    %c0_29 = arith.constant 0 : index
    %29 = vector.load %arg9[%c75, %c0_29] : memref<440x128xbf16, #tpu.memory_space<vmem>>, vector<14x128xbf16>
    %c90 = arith.constant 90 : index
    %c0_30 = arith.constant 0 : index
    %30 = vector.load %arg9[%c90, %c0_30] : memref<440x128xbf16, #tpu.memory_space<vmem>>, vector<14x128xbf16>
    %31 = arith.maximumf %28, %29 : vector<14x128xbf16>
    %32 = arith.maximumf %31, %30 : vector<14x128xbf16>
    %c28 = arith.constant 28 : index
    %c0_31 = arith.constant 0 : index
    %33 = vector.load %arg10[%c28, %c0_31] : memref<200x128xbf16, #tpu.memory_space<vmem>>, vector<14x128xbf16>
    tpu.vector_store %arg10[%c28, %c0_31], %32 {strides = array<i32>} : memref<200x128xbf16, #tpu.memory_space<vmem>>, vector<14x128xbf16>,
    %c90_32 = arith.constant 90 : index
    %c0_33 = arith.constant 0 : index
    %34 = vector.load %arg9[%c90_32, %c0_33] : memref<440x128xbf16, #tpu.memory_space<vmem>>, vector<14x128xbf16>
    %c105 = arith.constant 105 : index
    %c0_34 = arith.constant 0 : index
    %35 = vector.load %arg9[%c105, %c0_34] : memref<440x128xbf16, #tpu.memory_space<vmem>>, vector<14x128xbf16>
    %c120 = arith.constant 120 : index
    %c0_35 = arith.constant 0 : index
    %36 = vector.load %arg9[%c120, %c0_35] : memref<440x128xbf16, #tpu.memory_space<vmem>>, vector<14x128xbf16>
    %37 = arith.maximumf %34, %35 : vector<14x128xbf16>
    %38 = arith.maximumf %37, %36 : vector<14x128xbf16>
    %c42 = arith.constant 42 : index
    %c0_36 = arith.constant 0 : index
    %39 = vector.load %arg10[%c42, %c0_36] : memref<200x128xbf16, #tpu.memory_space<vmem>>, vector<14x128xbf16>
    tpu.vector_store %arg10[%c42, %c0_36], %38 {strides = array<i32>} : memref<200x128xbf16, #tpu.memory_space<vmem>>, vector<14x128xbf16>,
    %c120_37 = arith.constant 120 : index
    %c0_38 = arith.constant 0 : index
    %40 = vector.load %arg9[%c120_37, %c0_38] : memref<440x128xbf16, #tpu.memory_space<vmem>>, vector<14x128xbf16>
    %c135 = arith.constant 135 : index
    %c0_39 = arith.constant 0 : index
    %41 = vector.load %arg9[%c135, %c0_39] : memref<440x128xbf16, #tpu.memory_space<vmem>>, vector<14x128xbf16>
    %c150 = arith.constant 150 : index
    %c0_40 = arith.constant 0 : index
    %42 = vector.load %arg9[%c150, %c0_40] : memref<440x128xbf16, #tpu.memory_space<vmem>>, vector<14x128xbf16>
    %43 = arith.maximumf %40, %41 : vector<14x128xbf16>
    %44 = arith.maximumf %43, %42 : vector<14x128xbf16>
    %c56 = arith.constant 56 : index
    %c0_41 = arith.constant 0 : index
    %45 = vector.load %arg10[%c56, %c0_41] : memref<200x128xbf16, #tpu.memory_space<vmem>>, vector<14x128xbf16>
    tpu.vector_store %arg10[%c56, %c0_41], %44 {strides = array<i32>} : memref<200x128xbf16, #tpu.memory_space<vmem>>, vector<14x128xbf16>,
    %c150_42 = arith.constant 150 : index
    %c0_43 = arith.constant 0 : index
    %46 = vector.load %arg9[%c150_42, %c0_43] : memref<440x128xbf16, #tpu.memory_space<vmem>>, vector<14x128xbf16>
    %c165 = arith.constant 165 : index
    %c0_44 = arith.constant 0 : index
    %47 = vector.load %arg9[%c165, %c0_44] : memref<440x128xbf16, #tpu.memory_space<vmem>>, vector<14x128xbf16>
    %c180 = arith.constant 180 : index
    %c0_45 = arith.constant 0 : index
    %48 = vector.load %arg9[%c180, %c0_45] : memref<440x128xbf16, #tpu.memory_space<vmem>>, vector<14x128xbf16>
    %49 = arith.maximumf %46, %47 : vector<14x128xbf16>
    %50 = arith.maximumf %49, %48 : vector<14x128xbf16>
    %c70 = arith.constant 70 : index
    %c0_46 = arith.constant 0 : index
    %51 = vector.load %arg10[%c70, %c0_46] : memref<200x128xbf16, #tpu.memory_space<vmem>>, vector<14x128xbf16>
    tpu.vector_store %arg10[%c70, %c0_46], %50 {strides = array<i32>} : memref<200x128xbf16, #tpu.memory_space<vmem>>, vector<14x128xbf16>,
    %c180_47 = arith.constant 180 : index
    %c0_48 = arith.constant 0 : index
    %52 = vector.load %arg9[%c180_47, %c0_48] : memref<440x128xbf16, #tpu.memory_space<vmem>>, vector<14x128xbf16>
    %c195 = arith.constant 195 : index
    %c0_49 = arith.constant 0 : index
    %53 = vector.load %arg9[%c195, %c0_49] : memref<440x128xbf16, #tpu.memory_space<vmem>>, vector<14x128xbf16>
    %c210 = arith.constant 210 : index
    %c0_50 = arith.constant 0 : index
    %54 = vector.load %arg9[%c210, %c0_50] : memref<440x128xbf16, #tpu.memory_space<vmem>>, vector<14x128xbf16>
    %55 = arith.maximumf %52, %53 : vector<14x128xbf16>
    %56 = arith.maximumf %55, %54 : vector<14x128xbf16>
    %c84 = arith.constant 84 : index
    %c0_51 = arith.constant 0 : index
    %57 = vector.load %arg10[%c84, %c0_51] : memref<200x128xbf16, #tpu.memory_space<vmem>>, vector<14x128xbf16>
    tpu.vector_store %arg10[%c84, %c0_51], %56 {strides = array<i32>} : memref<200x128xbf16, #tpu.memory_space<vmem>>, vector<14x128xbf16>,
    %c210_52 = arith.constant 210 : index
    %c0_53 = arith.constant 0 : index
    %58 = vector.load %arg9[%c210_52, %c0_53] : memref<440x128xbf16, #tpu.memory_space<vmem>>, vector<14x128xbf16>
    %c225 = arith.constant 225 : index
    %c0_54 = arith.constant 0 : index
    %59 = vector.load %arg9[%c225, %c0_54] : memref<440x128xbf16, #tpu.memory_space<vmem>>, vector<14x128xbf16>
    %c240 = arith.constant 240 : index
    %c0_55 = arith.constant 0 : index
    %60 = vector.load %arg9[%c240, %c0_55] : memref<440x128xbf16, #tpu.memory_space<vmem>>, vector<14x128xbf16>
    %61 = arith.maximumf %58, %59 : vector<14x128xbf16>
    %62 = arith.maximumf %61, %60 : vector<14x128xbf16>
    %c98 = arith.constant 98 : index
    %c0_56 = arith.constant 0 : index
    %63 = vector.load %arg10[%c98, %c0_56] : memref<200x128xbf16, #tpu.memory_space<vmem>>, vector<14x128xbf16>
    tpu.vector_store %arg10[%c98, %c0_56], %62 {strides = array<i32>} : memref<200x128xbf16, #tpu.memory_space<vmem>>, vector<14x128xbf16>,
    %c240_57 = arith.constant 240 : index
    %c0_58 = arith.constant 0 : index
    %64 = vector.load %arg9[%c240_57, %c0_58] : memref<440x128xbf16, #tpu.memory_space<vmem>>, vector<14x128xbf16>
    %c255 = arith.constant 255 : index
    %c0_59 = arith.constant 0 : index
    %65 = vector.load %arg9[%c255, %c0_59] : memref<440x128xbf16, #tpu.memory_space<vmem>>, vector<14x128xbf16>
    %c270 = arith.constant 270 : index
    %c0_60 = arith.constant 0 : index
    %66 = vector.load %arg9[%c270, %c0_60] : memref<440x128xbf16, #tpu.memory_space<vmem>>, vector<14x128xbf16>
    %67 = arith.maximumf %64, %65 : vector<14x128xbf16>
    %68 = arith.maximumf %67, %66 : vector<14x128xbf16>
    %c112 = arith.constant 112 : index
    %c0_61 = arith.constant 0 : index
    %69 = vector.load %arg10[%c112, %c0_61] : memref<200x128xbf16, #tpu.memory_space<vmem>>, vector<14x128xbf16>
    tpu.vector_store %arg10[%c112, %c0_61], %68 {strides = array<i32>} : memref<200x128xbf16, #tpu.memory_space<vmem>>, vector<14x128xbf16>,
    %c270_62 = arith.constant 270 : index
    %c0_63 = arith.constant 0 : index
    %70 = vector.load %arg9[%c270_62, %c0_63] : memref<440x128xbf16, #tpu.memory_space<vmem>>, vector<14x128xbf16>
    %c285 = arith.constant 285 : index
    %c0_64 = arith.constant 0 : index
    %71 = vector.load %arg9[%c285, %c0_64] : memref<440x128xbf16, #tpu.memory_space<vmem>>, vector<14x128xbf16>
    %c300 = arith.constant 300 : index
    %c0_65 = arith.constant 0 : index
    %72 = vector.load %arg9[%c300, %c0_65] : memref<440x128xbf16, #tpu.memory_space<vmem>>, vector<14x128xbf16>
    %73 = arith.maximumf %70, %71 : vector<14x128xbf16>
    %74 = arith.maximumf %73, %72 : vector<14x128xbf16>
    %c126 = arith.constant 126 : index
    %c0_66 = arith.constant 0 : index
    %75 = vector.load %arg10[%c126, %c0_66] : memref<200x128xbf16, #tpu.memory_space<vmem>>, vector<14x128xbf16>
    tpu.vector_store %arg10[%c126, %c0_66], %74 {strides = array<i32>} : memref<200x128xbf16, #tpu.memory_space<vmem>>, vector<14x128xbf16>,
    %c300_67 = arith.constant 300 : index
    %c0_68 = arith.constant 0 : index
    %76 = vector.load %arg9[%c300_67, %c0_68] : memref<440x128xbf16, #tpu.memory_space<vmem>>, vector<14x128xbf16>
    %c315 = arith.constant 315 : index
    %c0_69 = arith.constant 0 : index
    %77 = vector.load %arg9[%c315, %c0_69] : memref<440x128xbf16, #tpu.memory_space<vmem>>, vector<14x128xbf16>
    %c330 = arith.constant 330 : index
    %c0_70 = arith.constant 0 : index
    %78 = vector.load %arg9[%c330, %c0_70] : memref<440x128xbf16, #tpu.memory_space<vmem>>, vector<14x128xbf16>
    %79 = arith.maximumf %76, %77 : vector<14x128xbf16>
    %80 = arith.maximumf %79, %78 : vector<14x128xbf16>
    %c140 = arith.constant 140 : index
    %c0_71 = arith.constant 0 : index
    %81 = vector.load %arg10[%c140, %c0_71] : memref<200x128xbf16, #tpu.memory_space<vmem>>, vector<14x128xbf16>
    tpu.vector_store %arg10[%c140, %c0_71], %80 {strides = array<i32>} : memref<200x128xbf16, #tpu.memory_space<vmem>>, vector<14x128xbf16>,
    %c330_72 = arith.constant 330 : index
    %c0_73 = arith.constant 0 : index
    %82 = vector.load %arg9[%c330_72, %c0_73] : memref<440x128xbf16, #tpu.memory_space<vmem>>, vector<14x128xbf16>
    %c345 = arith.constant 345 : index
    %c0_74 = arith.constant 0 : index
    %83 = vector.load %arg9[%c345, %c0_74] : memref<440x128xbf16, #tpu.memory_space<vmem>>, vector<14x128xbf16>
    %c360 = arith.constant 360 : index
    %c0_75 = arith.constant 0 : index
    %84 = vector.load %arg9[%c360, %c0_75] : memref<440x128xbf16, #tpu.memory_space<vmem>>, vector<14x128xbf16>
    %85 = arith.maximumf %82, %83 : vector<14x128xbf16>
    %86 = arith.maximumf %85, %84 : vector<14x128xbf16>
    %c154 = arith.constant 154 : index
    %c0_76 = arith.constant 0 : index
    %87 = vector.load %arg10[%c154, %c0_76] : memref<200x128xbf16, #tpu.memory_space<vmem>>, vector<14x128xbf16>
    tpu.vector_store %arg10[%c154, %c0_76], %86 {strides = array<i32>} : memref<200x128xbf16, #tpu.memory_space<vmem>>, vector<14x128xbf16>,
    %c360_77 = arith.constant 360 : index
    %c0_78 = arith.constant 0 : index
    %88 = vector.load %arg9[%c360_77, %c0_78] : memref<440x128xbf16, #tpu.memory_space<vmem>>, vector<14x128xbf16>
    %c375 = arith.constant 375 : index
    %c0_79 = arith.constant 0 : index
    %89 = vector.load %arg9[%c375, %c0_79] : memref<440x128xbf16, #tpu.memory_space<vmem>>, vector<14x128xbf16>
    %c390 = arith.constant 390 : index
    %c0_80 = arith.constant 0 : index
    %90 = vector.load %arg9[%c390, %c0_80] : memref<440x128xbf16, #tpu.memory_space<vmem>>, vector<14x128xbf16>
    %91 = arith.maximumf %88, %89 : vector<14x128xbf16>
    %92 = arith.maximumf %91, %90 : vector<14x128xbf16>
    %c168 = arith.constant 168 : index
    %c0_81 = arith.constant 0 : index
    %93 = vector.load %arg10[%c168, %c0_81] : memref<200x128xbf16, #tpu.memory_space<vmem>>, vector<14x128xbf16>
    tpu.vector_store %arg10[%c168, %c0_81], %92 {strides = array<i32>} : memref<200x128xbf16, #tpu.memory_space<vmem>>, vector<14x128xbf16>,
    %c390_82 = arith.constant 390 : index
    %c0_83 = arith.constant 0 : index
    %94 = vector.load %arg9[%c390_82, %c0_83] : memref<440x128xbf16, #tpu.memory_space<vmem>>, vector<14x128xbf16>
    %c405 = arith.constant 405 : index
    %c0_84 = arith.constant 0 : index
    %95 = vector.load %arg9[%c405, %c0_84] : memref<440x128xbf16, #tpu.memory_space<vmem>>, vector<14x128xbf16>
    %c420 = arith.constant 420 : index
    %c0_85 = arith.constant 0 : index
    %96 = vector.load %arg9[%c420, %c0_85] : memref<440x128xbf16, #tpu.memory_space<vmem>>, vector<14x128xbf16>
    %97 = arith.maximumf %94, %95 : vector<14x128xbf16>
    %98 = arith.maximumf %97, %96 : vector<14x128xbf16>
    %c182 = arith.constant 182 : index
    %c0_86 = arith.constant 0 : index
    %99 = vector.load %arg10[%c182, %c0_86] : memref<200x128xbf16, #tpu.memory_space<vmem>>, vector<14x128xbf16>
    tpu.vector_store %arg10[%c182, %c0_86], %98 {strides = array<i32>} : memref<200x128xbf16, #tpu.memory_space<vmem>>, vector<14x128xbf16>,
    %c0_87 = arith.constant 0 : index
    %c0_88 = arith.constant 0 : index
    %100 = vector.load %arg10[%c0_87, %c0_88] : memref<200x128xbf16, #tpu.memory_space<vmem>>, vector<166x128xbf16>
    %c0_89 = arith.constant 0 : index
    %c0_90 = arith.constant 0 : index
    %101 = vector.load %arg3[%c0_89, %c0_90] : memref<1152x128xbf16, #tpu.memory_space<vmem>>, vector<128x128xbf16>
    %cst_91 = arith.constant dense<0.000000e+00> : vector<166x128xf32>
    %102 = tpu.matmul %100, %101, %cst_91 {dimension_numbers = #tpu.dot_dimension_numbers<[1], [0], [0], [1], [0, 0, 1, 1], [], []>} : vector<166x128xbf16>, vector<128x128xbf16>, vector<166x128xf32> -> vector<166x128xf32>
    %c1_92 = arith.constant 1 : index
    %c0_93 = arith.constant 0 : index
    %103 = vector.load %arg10[%c1_92, %c0_93] : memref<200x128xbf16, #tpu.memory_space<vmem>>, vector<166x128xbf16>
    %c128 = arith.constant 128 : index
    %c0_94 = arith.constant 0 : index
    %104 = vector.load %arg3[%c128, %c0_94] : memref<1152x128xbf16, #tpu.memory_space<vmem>>, vector<128x128xbf16>
    %cst_95 = arith.constant dense<0.000000e+00> : vector<166x128xf32>
    %105 = tpu.matmul %103, %104, %cst_95 {dimension_numbers = #tpu.dot_dimension_numbers<[1], [0], [0], [1], [0, 0, 1, 1], [], []>} : vector<166x128xbf16>, vector<128x128xbf16>, vector<166x128xf32> -> vector<166x128xf32>
    %106 = arith.addf %102, %105 : vector<166x128xf32>
    %c2_96 = arith.constant 2 : index
    %c0_97 = arith.constant 0 : index
    %107 = vector.load %arg10[%c2_96, %c0_97] : memref<200x128xbf16, #tpu.memory_space<vmem>>, vector<166x128xbf16>
    %c256 = arith.constant 256 : index
    %c0_98 = arith.constant 0 : index
    %108 = vector.load %arg3[%c256, %c0_98] : memref<1152x128xbf16, #tpu.memory_space<vmem>>, vector<128x128xbf16>
    %cst_99 = arith.constant dense<0.000000e+00> : vector<166x128xf32>
    %109 = tpu.matmul %107, %108, %cst_99 {dimension_numbers = #tpu.dot_dimension_numbers<[1], [0], [0], [1], [0, 0, 1, 1], [], []>} : vector<166x128xbf16>, vector<128x128xbf16>, vector<166x128xf32> -> vector<166x128xf32>
    %110 = arith.addf %106, %109 : vector<166x128xf32>
    %c14_100 = arith.constant 14 : index
    %c0_101 = arith.constant 0 : index
    %111 = vector.load %arg10[%c14_100, %c0_101] : memref<200x128xbf16, #tpu.memory_space<vmem>>, vector<166x128xbf16>
    %c384 = arith.constant 384 : index
    %c0_102 = arith.constant 0 : index
    %112 = vector.load %arg3[%c384, %c0_102] : memref<1152x128xbf16, #tpu.memory_space<vmem>>, vector<128x128xbf16>
    %cst_103 = arith.constant dense<0.000000e+00> : vector<166x128xf32>
    %113 = tpu.matmul %111, %112, %cst_103 {dimension_numbers = #tpu.dot_dimension_numbers<[1], [0], [0], [1], [0, 0, 1, 1], [], []>} : vector<166x128xbf16>, vector<128x128xbf16>, vector<166x128xf32> -> vector<166x128xf32>
    %114 = arith.addf %110, %113 : vector<166x128xf32>
    %c15_104 = arith.constant 15 : index
    %c0_105 = arith.constant 0 : index
    %115 = vector.load %arg10[%c15_104, %c0_105] : memref<200x128xbf16, #tpu.memory_space<vmem>>, vector<166x128xbf16>
    %c512 = arith.constant 512 : index
    %c0_106 = arith.constant 0 : index
    %116 = vector.load %arg3[%c512, %c0_106] : memref<1152x128xbf16, #tpu.memory_space<vmem>>, vector<128x128xbf16>
    %cst_107 = arith.constant dense<0.000000e+00> : vector<166x128xf32>
    %117 = tpu.matmul %115, %116, %cst_107 {dimension_numbers = #tpu.dot_dimension_numbers<[1], [0], [0], [1], [0, 0, 1, 1], [], []>} : vector<166x128xbf16>, vector<128x128xbf16>, vector<166x128xf32> -> vector<166x128xf32>
    %118 = arith.addf %114, %117 : vector<166x128xf32>
    %c16 = arith.constant 16 : index
    %c0_108 = arith.constant 0 : index
    %119 = vector.load %arg10[%c16, %c0_108] : memref<200x128xbf16, #tpu.memory_space<vmem>>, vector<166x128xbf16>
    %c640 = arith.constant 640 : index
    %c0_109 = arith.constant 0 : index
    %120 = vector.load %arg3[%c640, %c0_109] : memref<1152x128xbf16, #tpu.memory_space<vmem>>, vector<128x128xbf16>
    %cst_110 = arith.constant dense<0.000000e+00> : vector<166x128xf32>
    %121 = tpu.matmul %119, %120, %cst_110 {dimension_numbers = #tpu.dot_dimension_numbers<[1], [0], [0], [1], [0, 0, 1, 1], [], []>} : vector<166x128xbf16>, vector<128x128xbf16>, vector<166x128xf32> -> vector<166x128xf32>
    %122 = arith.addf %118, %121 : vector<166x128xf32>
    %c28_111 = arith.constant 28 : index
    %c0_112 = arith.constant 0 : index
    %123 = vector.load %arg10[%c28_111, %c0_112] : memref<200x128xbf16, #tpu.memory_space<vmem>>, vector<166x128xbf16>
    %c768 = arith.constant 768 : index
    %c0_113 = arith.constant 0 : index
    %124 = vector.load %arg3[%c768, %c0_113] : memref<1152x128xbf16, #tpu.memory_space<vmem>>, vector<128x128xbf16>
    %cst_114 = arith.constant dense<0.000000e+00> : vector<166x128xf32>
    %125 = tpu.matmul %123, %124, %cst_114 {dimension_numbers = #tpu.dot_dimension_numbers<[1], [0], [0], [1], [0, 0, 1, 1], [], []>} : vector<166x128xbf16>, vector<128x128xbf16>, vector<166x128xf32> -> vector<166x128xf32>
    %126 = arith.addf %122, %125 : vector<166x128xf32>
    %c29 = arith.constant 29 : index
    %c0_115 = arith.constant 0 : index
    %127 = vector.load %arg10[%c29, %c0_115] : memref<200x128xbf16, #tpu.memory_space<vmem>>, vector<166x128xbf16>
    %c896 = arith.constant 896 : index
    %c0_116 = arith.constant 0 : index
    %128 = vector.load %arg3[%c896, %c0_116] : memref<1152x128xbf16, #tpu.memory_space<vmem>>, vector<128x128xbf16>
    %cst_117 = arith.constant dense<0.000000e+00> : vector<166x128xf32>
    %129 = tpu.matmul %127, %128, %cst_117 {dimension_numbers = #tpu.dot_dimension_numbers<[1], [0], [0], [1], [0, 0, 1, 1], [], []>} : vector<166x128xbf16>, vector<128x128xbf16>, vector<166x128xf32> -> vector<166x128xf32>
    %130 = arith.addf %126, %129 : vector<166x128xf32>
    %c30_118 = arith.constant 30 : index
    %c0_119 = arith.constant 0 : index
    %131 = vector.load %arg10[%c30_118, %c0_119] : memref<200x128xbf16, #tpu.memory_space<vmem>>, vector<166x128xbf16>
    %c1024 = arith.constant 1024 : index
    %c0_120 = arith.constant 0 : index
    %132 = vector.load %arg3[%c1024, %c0_120] : memref<1152x128xbf16, #tpu.memory_space<vmem>>, vector<128x128xbf16>
    %cst_121 = arith.constant dense<0.000000e+00> : vector<166x128xf32>
    %133 = tpu.matmul %131, %132, %cst_121 {dimension_numbers = #tpu.dot_dimension_numbers<[1], [0], [0], [1], [0, 0, 1, 1], [], []>} : vector<166x128xbf16>, vector<128x128xbf16>, vector<166x128xf32> -> vector<166x128xf32>
    %134 = arith.addf %130, %133 : vector<166x128xf32>
    %c0_122 = arith.constant 0 : index
    %c0_123 = arith.constant 0 : index
    %135 = vector.load %arg4[%c0_122, %c0_123] : memref<1x128xf32, #tpu.memory_space<vmem>>, vector<1x128xf32>
    %136 = vector.broadcast %135 : vector<1x128xf32> to vector<166x128xf32>
    %137 = arith.addf %134, %136 : vector<166x128xf32>
    %cst_124 = arith.constant 0.000000e+00 : f32
    %138 = vector.broadcast %cst_124 : f32 to vector<166x128xf32>
    %139 = arith.maximumf %137, %138 : vector<166x128xf32>
    %cst_125 = arith.constant 0.000000e+00 : f32
    %140 = vector.broadcast %cst_125 : f32 to vector<1x128xf32>
    %c0_126 = arith.constant 0 : index
    %c0_127 = arith.constant 0 : index
    %141 = vector.load %arg11[%c0_126, %c0_127] : memref<176x128xf32, #tpu.memory_space<vmem>>, vector<1x128xf32>
    tpu.vector_store %arg11[%c0_126, %c0_127], %140 {strides = array<i32>} : memref<176x128xf32, #tpu.memory_space<vmem>>, vector<1x128xf32>,
    %c1_128 = arith.constant 1 : index
    %c0_129 = arith.constant 0 : index
    %142 = vector.load %arg11[%c1_128, %c0_129] : memref<176x128xf32, #tpu.memory_space<vmem>>, vector<166x128xf32>
    tpu.vector_store %arg11[%c1_128, %c0_129], %139 {strides = array<i32>} : memref<176x128xf32, #tpu.memory_space<vmem>>, vector<166x128xf32>,
    %cst_130 = arith.constant 0.000000e+00 : f32
    %143 = vector.broadcast %cst_130 : f32 to vector<2x128xf32>
    %c13 = arith.constant 13 : index
    %c0_131 = arith.constant 0 : index
    %144 = vector.load %arg11[%c13, %c0_131] : memref<176x128xf32, #tpu.memory_space<vmem>>, vector<2x128xf32>
    tpu.vector_store %arg11[%c13, %c0_131], %143 {strides = array<i32>} : memref<176x128xf32, #tpu.memory_space<vmem>>, vector<2x128xf32>,
    %c27 = arith.constant 27 : index
    %c0_132 = arith.constant 0 : index
    %145 = vector.load %arg11[%c27, %c0_132] : memref<176x128xf32, #tpu.memory_space<vmem>>, vector<2x128xf32>
    tpu.vector_store %arg11[%c27, %c0_132], %143 {strides = array<i32>} : memref<176x128xf32, #tpu.memory_space<vmem>>, vector<2x128xf32>,
    %c41 = arith.constant 41 : index
    %c0_133 = arith.constant 0 : index
    %146 = vector.load %arg11[%c41, %c0_133] : memref<176x128xf32, #tpu.memory_space<vmem>>, vector<2x128xf32>
    tpu.vector_store %arg11[%c41, %c0_133], %143 {strides = array<i32>} : memref<176x128xf32, #tpu.memory_space<vmem>>, vector<2x128xf32>,
    %c55 = arith.constant 55 : index
    %c0_134 = arith.constant 0 : index
    %147 = vector.load %arg11[%c55, %c0_134] : memref<176x128xf32, #tpu.memory_space<vmem>>, vector<2x128xf32>
    tpu.vector_store %arg11[%c55, %c0_134], %143 {strides = array<i32>} : memref<176x128xf32, #tpu.memory_space<vmem>>, vector<2x128xf32>,
    %c69 = arith.constant 69 : index
    %c0_135 = arith.constant 0 : index
    %148 = vector.load %arg11[%c69, %c0_135] : memref<176x128xf32, #tpu.memory_space<vmem>>, vector<2x128xf32>
    tpu.vector_store %arg11[%c69, %c0_135], %143 {strides = array<i32>} : memref<176x128xf32, #tpu.memory_space<vmem>>, vector<2x128xf32>,
    %c83 = arith.constant 83 : index
    %c0_136 = arith.constant 0 : index
    %149 = vector.load %arg11[%c83, %c0_136] : memref<176x128xf32, #tpu.memory_space<vmem>>, vector<2x128xf32>
    tpu.vector_store %arg11[%c83, %c0_136], %143 {strides = array<i32>} : memref<176x128xf32, #tpu.memory_space<vmem>>, vector<2x128xf32>,
    %c97 = arith.constant 97 : index
    %c0_137 = arith.constant 0 : index
    %150 = vector.load %arg11[%c97, %c0_137] : memref<176x128xf32, #tpu.memory_space<vmem>>, vector<2x128xf32>
    tpu.vector_store %arg11[%c97, %c0_137], %143 {strides = array<i32>} : memref<176x128xf32, #tpu.memory_space<vmem>>, vector<2x128xf32>,
    %c111 = arith.constant 111 : index
    %c0_138 = arith.constant 0 : index
    %151 = vector.load %arg11[%c111, %c0_138] : memref<176x128xf32, #tpu.memory_space<vmem>>, vector<2x128xf32>
    tpu.vector_store %arg11[%c111, %c0_138], %143 {strides = array<i32>} : memref<176x128xf32, #tpu.memory_space<vmem>>, vector<2x128xf32>,
    %c125 = arith.constant 125 : index
    %c0_139 = arith.constant 0 : index
    %152 = vector.load %arg11[%c125, %c0_139] : memref<176x128xf32, #tpu.memory_space<vmem>>, vector<2x128xf32>
    tpu.vector_store %arg11[%c125, %c0_139], %143 {strides = array<i32>} : memref<176x128xf32, #tpu.memory_space<vmem>>, vector<2x128xf32>,
    %c139 = arith.constant 139 : index
    %c0_140 = arith.constant 0 : index
    %153 = vector.load %arg11[%c139, %c0_140] : memref<176x128xf32, #tpu.memory_space<vmem>>, vector<2x128xf32>
    tpu.vector_store %arg11[%c139, %c0_140], %143 {strides = array<i32>} : memref<176x128xf32, #tpu.memory_space<vmem>>, vector<2x128xf32>,
    %c153 = arith.constant 153 : index
    %c0_141 = arith.constant 0 : index
    %154 = vector.load %arg11[%c153, %c0_141] : memref<176x128xf32, #tpu.memory_space<vmem>>, vector<2x128xf32>
    tpu.vector_store %arg11[%c153, %c0_141], %143 {strides = array<i32>} : memref<176x128xf32, #tpu.memory_space<vmem>>, vector<2x128xf32>,
    %c167 = arith.constant 167 : index
    %c0_142 = arith.constant 0 : index
    %155 = vector.load %arg11[%c167, %c0_142] : memref<176x128xf32, #tpu.memory_space<vmem>>, vector<2x128xf32>
    tpu.vector_store %arg11[%c167, %c0_142], %143 {strides = array<i32>} : memref<176x128xf32, #tpu.memory_space<vmem>>, vector<2x128xf32>,
    %cst_143 = arith.constant 0.000000e+00 : bf16
    %156 = vector.broadcast %cst_143 : bf16 to vector<7x128xbf16>
    %c0_144 = arith.constant 0 : index
    %c0_145 = arith.constant 0 : index
    %157 = vector.load %arg12[%c0_144, %c0_145] : memref<96x128xbf16, #tpu.memory_space<vmem>>, vector<7x128xbf16>
    tpu.vector_store %arg12[%c0_144, %c0_145], %156 {strides = array<i32>} : memref<96x128xbf16, #tpu.memory_space<vmem>>, vector<7x128xbf16>,
    %c0_146 = arith.constant 0 : index
    %c0_147 = arith.constant 0 : index
    %158 = tpu.strided_load %arg11[%c0_146, %c0_147] {strides = array<i32: 2, 1>} : memref<176x128xf32, #tpu.memory_space<vmem>>, vector<84x128xf32>
    %c1_148 = arith.constant 1 : index
    %c0_149 = arith.constant 0 : index
    %159 = tpu.strided_load %arg11[%c1_148, %c0_149] {strides = array<i32: 2, 1>} : memref<176x128xf32, #tpu.memory_space<vmem>>, vector<84x128xf32>
    %c2_150 = arith.constant 2 : index
    %c0_151 = arith.constant 0 : index
    %160 = tpu.strided_load %arg11[%c2_150, %c0_151] {strides = array<i32: 2, 1>} : memref<176x128xf32, #tpu.memory_space<vmem>>, vector<84x128xf32>
    %161 = arith.maximumf %158, %159 : vector<84x128xf32>
    %162 = arith.maximumf %161, %160 : vector<84x128xf32>
    %163 = arith.truncf %162 : vector<84x128xf32> to vector<84x128xbf16>
    %c7 = arith.constant 7 : index
    %c0_152 = arith.constant 0 : index
    %164 = vector.load %arg12[%c7, %c0_152] : memref<96x128xbf16, #tpu.memory_space<vmem>>, vector<84x128xbf16>
    tpu.vector_store %arg12[%c7, %c0_152], %163 {strides = array<i32>} : memref<96x128xbf16, #tpu.memory_space<vmem>>, vector<84x128xbf16>,
    %cst_153 = arith.constant 0.000000e+00 : bf16
    %165 = vector.broadcast %cst_153 : bf16 to vector<64x128xbf16>
    %c0_154 = arith.constant 0 : index
    %c0_155 = arith.constant 0 : index
    %166 = vector.load %arg13[%c0_154, %c0_155] : memref<64x128xbf16, #tpu.memory_space<vmem>>, vector<64x128xbf16>
    tpu.vector_store %arg13[%c0_154, %c0_155], %165 {strides = array<i32>} : memref<64x128xbf16, #tpu.memory_space<vmem>>, vector<64x128xbf16>,
    %c0_156 = arith.constant 0 : index
    %c0_157 = arith.constant 0 : index
    %167 = vector.load %arg12[%c0_156, %c0_157] : memref<96x128xbf16, #tpu.memory_space<vmem>>, vector<6x128xbf16>
    %c7_158 = arith.constant 7 : index
    %c0_159 = arith.constant 0 : index
    %168 = vector.load %arg12[%c7_158, %c0_159] : memref<96x128xbf16, #tpu.memory_space<vmem>>, vector<6x128xbf16>
    %c14_160 = arith.constant 14 : index
    %c0_161 = arith.constant 0 : index
    %169 = vector.load %arg12[%c14_160, %c0_161] : memref<96x128xbf16, #tpu.memory_space<vmem>>, vector<6x128xbf16>
    %170 = arith.maximumf %167, %168 : vector<6x128xbf16>
    %171 = arith.maximumf %170, %169 : vector<6x128xbf16>
    %c9 = arith.constant 9 : index
    %c0_162 = arith.constant 0 : index
    %172 = vector.load %arg13[%c9, %c0_162] : memref<64x128xbf16, #tpu.memory_space<vmem>>, vector<6x128xbf16>
    tpu.vector_store %arg13[%c9, %c0_162], %171 {strides = array<i32>} : memref<64x128xbf16, #tpu.memory_space<vmem>>, vector<6x128xbf16>,
    %c14_163 = arith.constant 14 : index
    %c0_164 = arith.constant 0 : index
    %173 = vector.load %arg12[%c14_163, %c0_164] : memref<96x128xbf16, #tpu.memory_space<vmem>>, vector<6x128xbf16>
    %c21 = arith.constant 21 : index
    %c0_165 = arith.constant 0 : index
    %174 = vector.load %arg12[%c21, %c0_165] : memref<96x128xbf16, #tpu.memory_space<vmem>>, vector<6x128xbf16>
    %c28_166 = arith.constant 28 : index
    %c0_167 = arith.constant 0 : index
    %175 = vector.load %arg12[%c28_166, %c0_167] : memref<96x128xbf16, #tpu.memory_space<vmem>>, vector<6x128xbf16>
    %176 = arith.maximumf %173, %174 : vector<6x128xbf16>
    %177 = arith.maximumf %176, %175 : vector<6x128xbf16>
    %c17 = arith.constant 17 : index
    %c0_168 = arith.constant 0 : index
    %178 = vector.load %arg13[%c17, %c0_168] : memref<64x128xbf16, #tpu.memory_space<vmem>>, vector<6x128xbf16>
    tpu.vector_store %arg13[%c17, %c0_168], %177 {strides = array<i32>} : memref<64x128xbf16, #tpu.memory_space<vmem>>, vector<6x128xbf16>,
    %c28_169 = arith.constant 28 : index
    %c0_170 = arith.constant 0 : index
    %179 = vector.load %arg12[%c28_169, %c0_170] : memref<96x128xbf16, #tpu.memory_space<vmem>>, vector<6x128xbf16>
    %c35 = arith.constant 35 : index
    %c0_171 = arith.constant 0 : index
    %180 = vector.load %arg12[%c35, %c0_171] : memref<96x128xbf16, #tpu.memory_space<vmem>>, vector<6x128xbf16>
    %c42_172 = arith.constant 42 : index
    %c0_173 = arith.constant 0 : index
    %181 = vector.load %arg12[%c42_172, %c0_173] : memref<96x128xbf16, #tpu.memory_space<vmem>>, vector<6x128xbf16>
    %182 = arith.maximumf %179, %180 : vector<6x128xbf16>
    %183 = arith.maximumf %182, %181 : vector<6x128xbf16>
    %c25 = arith.constant 25 : index
    %c0_174 = arith.constant 0 : index
    %184 = vector.load %arg13[%c25, %c0_174] : memref<64x128xbf16, #tpu.memory_space<vmem>>, vector<6x128xbf16>
    tpu.vector_store %arg13[%c25, %c0_174], %183 {strides = array<i32>} : memref<64x128xbf16, #tpu.memory_space<vmem>>, vector<6x128xbf16>,
    %c42_175 = arith.constant 42 : index
    %c0_176 = arith.constant 0 : index
    %185 = vector.load %arg12[%c42_175, %c0_176] : memref<96x128xbf16, #tpu.memory_space<vmem>>, vector<6x128xbf16>
    %c49 = arith.constant 49 : index
    %c0_177 = arith.constant 0 : index
    %186 = vector.load %arg12[%c49, %c0_177] : memref<96x128xbf16, #tpu.memory_space<vmem>>, vector<6x128xbf16>
    %c56_178 = arith.constant 56 : index
    %c0_179 = arith.constant 0 : index
    %187 = vector.load %arg12[%c56_178, %c0_179] : memref<96x128xbf16, #tpu.memory_space<vmem>>, vector<6x128xbf16>
    %188 = arith.maximumf %185, %186 : vector<6x128xbf16>
    %189 = arith.maximumf %188, %187 : vector<6x128xbf16>
    %c33 = arith.constant 33 : index
    %c0_180 = arith.constant 0 : index
    %190 = vector.load %arg13[%c33, %c0_180] : memref<64x128xbf16, #tpu.memory_space<vmem>>, vector<6x128xbf16>
    tpu.vector_store %arg13[%c33, %c0_180], %189 {strides = array<i32>} : memref<64x128xbf16, #tpu.memory_space<vmem>>, vector<6x128xbf16>,
    %c56_181 = arith.constant 56 : index
    %c0_182 = arith.constant 0 : index
    %191 = vector.load %arg12[%c56_181, %c0_182] : memref<96x128xbf16, #tpu.memory_space<vmem>>, vector<6x128xbf16>
    %c63 = arith.constant 63 : index
    %c0_183 = arith.constant 0 : index
    %192 = vector.load %arg12[%c63, %c0_183] : memref<96x128xbf16, #tpu.memory_space<vmem>>, vector<6x128xbf16>
    %c70_184 = arith.constant 70 : index
    %c0_185 = arith.constant 0 : index
    %193 = vector.load %arg12[%c70_184, %c0_185] : memref<96x128xbf16, #tpu.memory_space<vmem>>, vector<6x128xbf16>
    %194 = arith.maximumf %191, %192 : vector<6x128xbf16>
    %195 = arith.maximumf %194, %193 : vector<6x128xbf16>
    %c41_186 = arith.constant 41 : index
    %c0_187 = arith.constant 0 : index
    %196 = vector.load %arg13[%c41_186, %c0_187] : memref<64x128xbf16, #tpu.memory_space<vmem>>, vector<6x128xbf16>
    tpu.vector_store %arg13[%c41_186, %c0_187], %195 {strides = array<i32>} : memref<64x128xbf16, #tpu.memory_space<vmem>>, vector<6x128xbf16>,
    %c70_188 = arith.constant 70 : index
    %c0_189 = arith.constant 0 : index
    %197 = vector.load %arg12[%c70_188, %c0_189] : memref<96x128xbf16, #tpu.memory_space<vmem>>, vector<6x128xbf16>
    %c77 = arith.constant 77 : index
    %c0_190 = arith.constant 0 : index
    %198 = vector.load %arg12[%c77, %c0_190] : memref<96x128xbf16, #tpu.memory_space<vmem>>, vector<6x128xbf16>
    %c84_191 = arith.constant 84 : index
    %c0_192 = arith.constant 0 : index
    %199 = vector.load %arg12[%c84_191, %c0_192] : memref<96x128xbf16, #tpu.memory_space<vmem>>, vector<6x128xbf16>
    %200 = arith.maximumf %197, %198 : vector<6x128xbf16>
    %201 = arith.maximumf %200, %199 : vector<6x128xbf16>
    %c49_193 = arith.constant 49 : index
    %c0_194 = arith.constant 0 : index
    %202 = vector.load %arg13[%c49_193, %c0_194] : memref<64x128xbf16, #tpu.memory_space<vmem>>, vector<6x128xbf16>
    tpu.vector_store %arg13[%c49_193, %c0_194], %201 {strides = array<i32>} : memref<64x128xbf16, #tpu.memory_space<vmem>>, vector<6x128xbf16>,
    %c0_195 = arith.constant 0 : index
    %c0_196 = arith.constant 0 : index
    %203 = vector.load %arg13[%c0_195, %c0_196] : memref<64x128xbf16, #tpu.memory_space<vmem>>, vector<46x128xbf16>
    %c0_197 = arith.constant 0 : index
    %c0_198 = arith.constant 0 : index
    %204 = vector.load %arg5[%c0_197, %c0_198] : memref<1152x128xbf16, #tpu.memory_space<vmem>>, vector<128x128xbf16>
    %cst_199 = arith.constant dense<0.000000e+00> : vector<46x128xf32>
    %205 = tpu.matmul %203, %204, %cst_199 {dimension_numbers = #tpu.dot_dimension_numbers<[1], [0], [0], [1], [0, 0, 1, 1], [], []>} : vector<46x128xbf16>, vector<128x128xbf16>, vector<46x128xf32> -> vector<46x128xf32>
    %c1_200 = arith.constant 1 : index
    %c0_201 = arith.constant 0 : index
    %206 = vector.load %arg13[%c1_200, %c0_201] : memref<64x128xbf16, #tpu.memory_space<vmem>>, vector<46x128xbf16>
    %c128_202 = arith.constant 128 : index
    %c0_203 = arith.constant 0 : index
    %207 = vector.load %arg5[%c128_202, %c0_203] : memref<1152x128xbf16, #tpu.memory_space<vmem>>, vector<128x128xbf16>
    %cst_204 = arith.constant dense<0.000000e+00> : vector<46x128xf32>
    %208 = tpu.matmul %206, %207, %cst_204 {dimension_numbers = #tpu.dot_dimension_numbers<[1], [0], [0], [1], [0, 0, 1, 1], [], []>} : vector<46x128xbf16>, vector<128x128xbf16>, vector<46x128xf32> -> vector<46x128xf32>
    %209 = arith.addf %205, %208 : vector<46x128xf32>
    %c2_205 = arith.constant 2 : index
    %c0_206 = arith.constant 0 : index
    %210 = vector.load %arg13[%c2_205, %c0_206] : memref<64x128xbf16, #tpu.memory_space<vmem>>, vector<46x128xbf16>
    %c256_207 = arith.constant 256 : index
    %c0_208 = arith.constant 0 : index
    %211 = vector.load %arg5[%c256_207, %c0_208] : memref<1152x128xbf16, #tpu.memory_space<vmem>>, vector<128x128xbf16>
    %cst_209 = arith.constant dense<0.000000e+00> : vector<46x128xf32>
    %212 = tpu.matmul %210, %211, %cst_209 {dimension_numbers = #tpu.dot_dimension_numbers<[1], [0], [0], [1], [0, 0, 1, 1], [], []>} : vector<46x128xbf16>, vector<128x128xbf16>, vector<46x128xf32> -> vector<46x128xf32>
    %213 = arith.addf %209, %212 : vector<46x128xf32>
    %c8 = arith.constant 8 : index
    %c0_210 = arith.constant 0 : index
    %214 = vector.load %arg13[%c8, %c0_210] : memref<64x128xbf16, #tpu.memory_space<vmem>>, vector<46x128xbf16>
    %c384_211 = arith.constant 384 : index
    %c0_212 = arith.constant 0 : index
    %215 = vector.load %arg5[%c384_211, %c0_212] : memref<1152x128xbf16, #tpu.memory_space<vmem>>, vector<128x128xbf16>
    %cst_213 = arith.constant dense<0.000000e+00> : vector<46x128xf32>
    %216 = tpu.matmul %214, %215, %cst_213 {dimension_numbers = #tpu.dot_dimension_numbers<[1], [0], [0], [1], [0, 0, 1, 1], [], []>} : vector<46x128xbf16>, vector<128x128xbf16>, vector<46x128xf32> -> vector<46x128xf32>
    %217 = arith.addf %213, %216 : vector<46x128xf32>
    %c9_214 = arith.constant 9 : index
    %c0_215 = arith.constant 0 : index
    %218 = vector.load %arg13[%c9_214, %c0_215] : memref<64x128xbf16, #tpu.memory_space<vmem>>, vector<46x128xbf16>
    %c512_216 = arith.constant 512 : index
    %c0_217 = arith.constant 0 : index
    %219 = vector.load %arg5[%c512_216, %c0_217] : memref<1152x128xbf16, #tpu.memory_space<vmem>>, vector<128x128xbf16>
    %cst_218 = arith.constant dense<0.000000e+00> : vector<46x128xf32>
    %220 = tpu.matmul %218, %219, %cst_218 {dimension_numbers = #tpu.dot_dimension_numbers<[1], [0], [0], [1], [0, 0, 1, 1], [], []>} : vector<46x128xbf16>, vector<128x128xbf16>, vector<46x128xf32> -> vector<46x128xf32>
    %221 = arith.addf %217, %220 : vector<46x128xf32>
    %c10 = arith.constant 10 : index
    %c0_219 = arith.constant 0 : index
    %222 = vector.load %arg13[%c10, %c0_219] : memref<64x128xbf16, #tpu.memory_space<vmem>>, vector<46x128xbf16>
    %c640_220 = arith.constant 640 : index
    %c0_221 = arith.constant 0 : index
    %223 = vector.load %arg5[%c640_220, %c0_221] : memref<1152x128xbf16, #tpu.memory_space<vmem>>, vector<128x128xbf16>
    %cst_222 = arith.constant dense<0.000000e+00> : vector<46x128xf32>
    %224 = tpu.matmul %222, %223, %cst_222 {dimension_numbers = #tpu.dot_dimension_numbers<[1], [0], [0], [1], [0, 0, 1, 1], [], []>} : vector<46x128xbf16>, vector<128x128xbf16>, vector<46x128xf32> -> vector<46x128xf32>
    %225 = arith.addf %221, %224 : vector<46x128xf32>
    %c16_223 = arith.constant 16 : index
    %c0_224 = arith.constant 0 : index
    %226 = vector.load %arg13[%c16_223, %c0_224] : memref<64x128xbf16, #tpu.memory_space<vmem>>, vector<46x128xbf16>
    %c768_225 = arith.constant 768 : index
    %c0_226 = arith.constant 0 : index
    %227 = vector.load %arg5[%c768_225, %c0_226] : memref<1152x128xbf16, #tpu.memory_space<vmem>>, vector<128x128xbf16>
    %cst_227 = arith.constant dense<0.000000e+00> : vector<46x128xf32>
    %228 = tpu.matmul %226, %227, %cst_227 {dimension_numbers = #tpu.dot_dimension_numbers<[1], [0], [0], [1], [0, 0, 1, 1], [], []>} : vector<46x128xbf16>, vector<128x128xbf16>, vector<46x128xf32> -> vector<46x128xf32>
    %229 = arith.addf %225, %228 : vector<46x128xf32>
    %c17_228 = arith.constant 17 : index
    %c0_229 = arith.constant 0 : index
    %230 = vector.load %arg13[%c17_228, %c0_229] : memref<64x128xbf16, #tpu.memory_space<vmem>>, vector<46x128xbf16>
    %c896_230 = arith.constant 896 : index
    %c0_231 = arith.constant 0 : index
    %231 = vector.load %arg5[%c896_230, %c0_231] : memref<1152x128xbf16, #tpu.memory_space<vmem>>, vector<128x128xbf16>
    %cst_232 = arith.constant dense<0.000000e+00> : vector<46x128xf32>
    %232 = tpu.matmul %230, %231, %cst_232 {dimension_numbers = #tpu.dot_dimension_numbers<[1], [0], [0], [1], [0, 0, 1, 1], [], []>} : vector<46x128xbf16>, vector<128x128xbf16>, vector<46x128xf32> -> vector<46x128xf32>
    %233 = arith.addf %229, %232 : vector<46x128xf32>
    %c18 = arith.constant 18 : index
    %c0_233 = arith.constant 0 : index
    %234 = vector.load %arg13[%c18, %c0_233] : memref<64x128xbf16, #tpu.memory_space<vmem>>, vector<46x128xbf16>
    %c1024_234 = arith.constant 1024 : index
    %c0_235 = arith.constant 0 : index
    %235 = vector.load %arg5[%c1024_234, %c0_235] : memref<1152x128xbf16, #tpu.memory_space<vmem>>, vector<128x128xbf16>
    %cst_236 = arith.constant dense<0.000000e+00> : vector<46x128xf32>
    %236 = tpu.matmul %234, %235, %cst_236 {dimension_numbers = #tpu.dot_dimension_numbers<[1], [0], [0], [1], [0, 0, 1, 1], [], []>} : vector<46x128xbf16>, vector<128x128xbf16>, vector<46x128xf32> -> vector<46x128xf32>
    %237 = arith.addf %233, %236 : vector<46x128xf32>
    %c0_237 = arith.constant 0 : index
    %c0_238 = arith.constant 0 : index
    %238 = vector.load %arg6[%c0_237, %c0_238] : memref<1x128xf32, #tpu.memory_space<vmem>>, vector<1x128xf32>
    %239 = vector.broadcast %238 : vector<1x128xf32> to vector<46x128xf32>
    %240 = arith.addf %237, %239 : vector<46x128xf32>
    %cst_239 = arith.constant 0.000000e+00 : f32
    %241 = vector.broadcast %cst_239 : f32 to vector<46x128xf32>
    %242 = arith.maximumf %240, %241 : vector<46x128xf32>
    %cst_240 = arith.constant 0.000000e+00 : f32
    %243 = vector.broadcast %cst_240 : f32 to vector<1x128xf32>
    %c0_241 = arith.constant 0 : index
    %c0_242 = arith.constant 0 : index
    %244 = vector.load %arg14[%c0_241, %c0_242] : memref<56x128xf32, #tpu.memory_space<vmem>>, vector<1x128xf32>
    tpu.vector_store %arg14[%c0_241, %c0_242], %243 {strides = array<i32>} : memref<56x128xf32, #tpu.memory_space<vmem>>, vector<1x128xf32>,
    %c1_243 = arith.constant 1 : index
    %c0_244 = arith.constant 0 : index
    %245 = vector.load %arg14[%c1_243, %c0_244] : memref<56x128xf32, #tpu.memory_space<vmem>>, vector<46x128xf32>
    tpu.vector_store %arg14[%c1_243, %c0_244], %242 {strides = array<i32>} : memref<56x128xf32, #tpu.memory_space<vmem>>, vector<46x128xf32>,
    %cst_245 = arith.constant 0.000000e+00 : f32
    %246 = vector.broadcast %cst_245 : f32 to vector<2x128xf32>
    %c7_246 = arith.constant 7 : index
    %c0_247 = arith.constant 0 : index
    %247 = vector.load %arg14[%c7_246, %c0_247] : memref<56x128xf32, #tpu.memory_space<vmem>>, vector<2x128xf32>
    tpu.vector_store %arg14[%c7_246, %c0_247], %246 {strides = array<i32>} : memref<56x128xf32, #tpu.memory_space<vmem>>, vector<2x128xf32>,
    %c15_248 = arith.constant 15 : index
    %c0_249 = arith.constant 0 : index
    %248 = vector.load %arg14[%c15_248, %c0_249] : memref<56x128xf32, #tpu.memory_space<vmem>>, vector<2x128xf32>
    tpu.vector_store %arg14[%c15_248, %c0_249], %246 {strides = array<i32>} : memref<56x128xf32, #tpu.memory_space<vmem>>, vector<2x128xf32>,
    %c23 = arith.constant 23 : index
    %c0_250 = arith.constant 0 : index
    %249 = vector.load %arg14[%c23, %c0_250] : memref<56x128xf32, #tpu.memory_space<vmem>>, vector<2x128xf32>
    tpu.vector_store %arg14[%c23, %c0_250], %246 {strides = array<i32>} : memref<56x128xf32, #tpu.memory_space<vmem>>, vector<2x128xf32>,
    %c31 = arith.constant 31 : index
    %c0_251 = arith.constant 0 : index
    %250 = vector.load %arg14[%c31, %c0_251] : memref<56x128xf32, #tpu.memory_space<vmem>>, vector<2x128xf32>
    tpu.vector_store %arg14[%c31, %c0_251], %246 {strides = array<i32>} : memref<56x128xf32, #tpu.memory_space<vmem>>, vector<2x128xf32>,
    %c39 = arith.constant 39 : index
    %c0_252 = arith.constant 0 : index
    %251 = vector.load %arg14[%c39, %c0_252] : memref<56x128xf32, #tpu.memory_space<vmem>>, vector<2x128xf32>
    tpu.vector_store %arg14[%c39, %c0_252], %246 {strides = array<i32>} : memref<56x128xf32, #tpu.memory_space<vmem>>, vector<2x128xf32>,
    %c47 = arith.constant 47 : index
    %c0_253 = arith.constant 0 : index
    %252 = vector.load %arg14[%c47, %c0_253] : memref<56x128xf32, #tpu.memory_space<vmem>>, vector<2x128xf32>
    tpu.vector_store %arg14[%c47, %c0_253], %246 {strides = array<i32>} : memref<56x128xf32, #tpu.memory_space<vmem>>, vector<2x128xf32>,
    %cst_254 = arith.constant 0.000000e+00 : bf16
    %253 = vector.broadcast %cst_254 : bf16 to vector<4x128xbf16>
    %c0_255 = arith.constant 0 : index
    %c0_256 = arith.constant 0 : index
    %254 = vector.load %arg15[%c0_255, %c0_256] : memref<32x128xbf16, #tpu.memory_space<vmem>>, vector<4x128xbf16>
    tpu.vector_store %arg15[%c0_255, %c0_256], %253 {strides = array<i32>} : memref<32x128xbf16, #tpu.memory_space<vmem>>, vector<4x128xbf16>,
    %c0_257 = arith.constant 0 : index
    %c0_258 = arith.constant 0 : index
    %255 = tpu.strided_load %arg14[%c0_257, %c0_258] {strides = array<i32: 2, 1>} : memref<56x128xf32, #tpu.memory_space<vmem>>, vector<24x128xf32>
    %c1_259 = arith.constant 1 : index
    %c0_260 = arith.constant 0 : index
    %256 = tpu.strided_load %arg14[%c1_259, %c0_260] {strides = array<i32: 2, 1>} : memref<56x128xf32, #tpu.memory_space<vmem>>, vector<24x128xf32>
    %c2_261 = arith.constant 2 : index
    %c0_262 = arith.constant 0 : index
    %257 = tpu.strided_load %arg14[%c2_261, %c0_262] {strides = array<i32: 2, 1>} : memref<56x128xf32, #tpu.memory_space<vmem>>, vector<24x128xf32>
    %258 = arith.maximumf %255, %256 : vector<24x128xf32>
    %259 = arith.maximumf %258, %257 : vector<24x128xf32>
    %260 = arith.truncf %259 : vector<24x128xf32> to vector<24x128xbf16>
    %c4 = arith.constant 4 : index
    %c0_263 = arith.constant 0 : index
    %261 = vector.load %arg15[%c4, %c0_263] : memref<32x128xbf16, #tpu.memory_space<vmem>>, vector<24x128xbf16>
    tpu.vector_store %arg15[%c4, %c0_263], %260 {strides = array<i32>} : memref<32x128xbf16, #tpu.memory_space<vmem>>, vector<24x128xbf16>,
    %c0_264 = arith.constant 0 : index
    %c0_265 = arith.constant 0 : index
    %262 = vector.load %arg15[%c0_264, %c0_265] : memref<32x128xbf16, #tpu.memory_space<vmem>>, vector<3x128xbf16>
    %c4_266 = arith.constant 4 : index
    %c0_267 = arith.constant 0 : index
    %263 = vector.load %arg15[%c4_266, %c0_267] : memref<32x128xbf16, #tpu.memory_space<vmem>>, vector<3x128xbf16>
    %c8_268 = arith.constant 8 : index
    %c0_269 = arith.constant 0 : index
    %264 = vector.load %arg15[%c8_268, %c0_269] : memref<32x128xbf16, #tpu.memory_space<vmem>>, vector<3x128xbf16>
    %265 = arith.maximumf %262, %263 : vector<3x128xbf16>
    %266 = arith.maximumf %265, %264 : vector<3x128xbf16>
    %c0_270 = arith.constant 0 : index
    %c0_271 = arith.constant 0 : index
    %c0_272 = arith.constant 0 : index
    %267 = vector.load %arg7[%c0_270, %c0_271, %c0_272] : memref<1x9x128xbf16, #tpu.memory_space<vmem>>, vector<1x3x128xbf16>
    %268 = vector.shape_cast %267 : vector<1x3x128xbf16> to vector<3x128xbf16>
    %269 = vector.shape_cast %266 : vector<3x128xbf16> to vector<1x3x128xbf16>
    tpu.vector_store %arg7[%c0_270, %c0_271, %c0_272], %269 {strides = array<i32>} : memref<1x9x128xbf16, #tpu.memory_space<vmem>>, vector<1x3x128xbf16>,
    %c8_273 = arith.constant 8 : index
    %c0_274 = arith.constant 0 : index
    %270 = vector.load %arg15[%c8_273, %c0_274] : memref<32x128xbf16, #tpu.memory_space<vmem>>, vector<3x128xbf16>
    %c12 = arith.constant 12 : index
    %c0_275 = arith.constant 0 : index
    %271 = vector.load %arg15[%c12, %c0_275] : memref<32x128xbf16, #tpu.memory_space<vmem>>, vector<3x128xbf16>
    %c16_276 = arith.constant 16 : index
    %c0_277 = arith.constant 0 : index
    %272 = vector.load %arg15[%c16_276, %c0_277] : memref<32x128xbf16, #tpu.memory_space<vmem>>, vector<3x128xbf16>
    %273 = arith.maximumf %270, %271 : vector<3x128xbf16>
    %274 = arith.maximumf %273, %272 : vector<3x128xbf16>
    %c0_278 = arith.constant 0 : index
    %c3 = arith.constant 3 : index
    %c0_279 = arith.constant 0 : index
    %275 = vector.load %arg7[%c0_278, %c3, %c0_279] : memref<1x9x128xbf16, #tpu.memory_space<vmem>>, vector<1x3x128xbf16>
    %276 = vector.shape_cast %275 : vector<1x3x128xbf16> to vector<3x128xbf16>
    %277 = vector.shape_cast %274 : vector<3x128xbf16> to vector<1x3x128xbf16>
    tpu.vector_store %arg7[%c0_278, %c3, %c0_279], %277 {strides = array<i32>} : memref<1x9x128xbf16, #tpu.memory_space<vmem>>, vector<1x3x128xbf16>,
    %c16_280 = arith.constant 16 : index
    %c0_281 = arith.constant 0 : index
    %278 = vector.load %arg15[%c16_280, %c0_281] : memref<32x128xbf16, #tpu.memory_space<vmem>>, vector<3x128xbf16>
    %c20 = arith.constant 20 : index
    %c0_282 = arith.constant 0 : index
    %279 = vector.load %arg15[%c20, %c0_282] : memref<32x128xbf16, #tpu.memory_space<vmem>>, vector<3x128xbf16>
    %c24 = arith.constant 24 : index
    %c0_283 = arith.constant 0 : index
    %280 = vector.load %arg15[%c24, %c0_283] : memref<32x128xbf16, #tpu.memory_space<vmem>>, vector<3x128xbf16>
    %281 = arith.maximumf %278, %279 : vector<3x128xbf16>
    %282 = arith.maximumf %281, %280 : vector<3x128xbf16>
    %c0_284 = arith.constant 0 : index
    %c6 = arith.constant 6 : index
    %c0_285 = arith.constant 0 : index
    %283 = vector.load %arg7[%c0_284, %c6, %c0_285] : memref<1x9x128xbf16, #tpu.memory_space<vmem>>, vector<1x3x128xbf16>
    %284 = vector.shape_cast %283 : vector<1x3x128xbf16> to vector<3x128xbf16>
    %285 = vector.shape_cast %282 : vector<3x128xbf16> to vector<1x3x128xbf16>
    tpu.vector_store %arg7[%c0_284, %c6, %c0_285], %285 {strides = array<i32>} : memref<1x9x128xbf16, #tpu.memory_space<vmem>>, vector<1x3x128xbf16>,
    return
  }
  func.func @transform_0(%arg0: i32) -> (i32, i32, i32) {
    %c0_i32 = arith.constant 0 : i32
    %c0_i32_0 = arith.constant 0 : i32
    %c0_i32_1 = arith.constant 0 : i32
    return %arg0, %c0_i32, %c0_i32_0 : i32, i32, i32
  }
  func.func @transform_1(%arg0: i32) -> (i32, i32) {
    %c0_i32 = arith.constant 0 : i32
    %c0_i32_0 = arith.constant 0 : i32
    %c0_i32_1 = arith.constant 0 : i32
    return %c0_i32, %c0_i32_0 : i32, i32
  }
  func.func @transform_2(%arg0: i32) -> (i32, i32) {
    %c0_i32 = arith.constant 0 : i32
    %c0_i32_0 = arith.constant 0 : i32
    %c0_i32_1 = arith.constant 0 : i32
    return %c0_i32, %c0_i32_0 : i32, i32
  }
  func.func @transform_3(%arg0: i32) -> (i32, i32) {
    %c0_i32 = arith.constant 0 : i32
    %c0_i32_0 = arith.constant 0 : i32
    %c0_i32_1 = arith.constant 0 : i32
    return %c0_i32, %c0_i32_0 : i32, i32
  }
  func.func @transform_4(%arg0: i32) -> (i32, i32) {
    %c0_i32 = arith.constant 0 : i32
    %c0_i32_0 = arith.constant 0 : i32
    %c0_i32_1 = arith.constant 0 : i32
    return %c0_i32, %c0_i32_0 : i32, i32
  }
  func.func @transform_5(%arg0: i32) -> (i32, i32) {
    %c0_i32 = arith.constant 0 : i32
    %c0_i32_0 = arith.constant 0 : i32
    %c0_i32_1 = arith.constant 0 : i32
    return %c0_i32, %c0_i32_0 : i32, i32
  }
  func.func @transform_6(%arg0: i32) -> (i32, i32, i32) {
    %c0_i32 = arith.constant 0 : i32
    %c0_i32_0 = arith.constant 0 : i32
    %c0_i32_1 = arith.constant 0 : i32
    return %arg0, %c0_i32, %c0_i32_0 : i32, i32, i32
  }
}

module attributes {stable_mosaic.version = 11 : i64} {
  func.func @_classifier_kernel(%arg0: i32, %arg1: memref<2x1152xbf16, #tpu.memory_space<vmem>>, %arg2: memref<1152x512xbf16, #tpu.memory_space<vmem>>, %arg3: memref<1x512xf32, #tpu.memory_space<vmem>>, %arg4: memref<512x256xbf16, #tpu.memory_space<vmem>>, %arg5: memref<1x256xf32, #tpu.memory_space<vmem>>, %arg6: memref<256x128xbf16, #tpu.memory_space<vmem>>, %arg7: memref<1x128xf32, #tpu.memory_space<vmem>>, %arg8: memref<2x128xf32, #tpu.memory_space<vmem>>) attributes {dimension_semantics = [#tpu.dimension_semantics<parallel>], iteration_bounds = array<i64: 1>, scalar_prefetch = 0 : i64, scratch_operands = 0 : i64, tpu.core_type = #tpu.core_type<tc>, window_params = [{transform_indices = @transform_0, window_bounds = array<i64: 2, 1152>}, {pipeline_mode = #tpu.pipeline_mode<synchronous>, transform_indices = @transform_1, window_bounds = array<i64: 1152, 512>}, {pipeline_mode = #tpu.pipeline_mode<synchronous>, transform_indices = @transform_2, window_bounds = array<i64: 1, 512>}, {pipeline_mode = #tpu.pipeline_mode<synchronous>, transform_indices = @transform_3, window_bounds = array<i64: 512, 256>}, {pipeline_mode = #tpu.pipeline_mode<synchronous>, transform_indices = @transform_4, window_bounds = array<i64: 1, 256>}, {pipeline_mode = #tpu.pipeline_mode<synchronous>, transform_indices = @transform_5, window_bounds = array<i64: 256, 128>}, {pipeline_mode = #tpu.pipeline_mode<synchronous>, transform_indices = @transform_6, window_bounds = array<i64: 1, 128>}, {transform_indices = @transform_7, window_bounds = array<i64: 2, 128>}]} {
    %c0 = arith.constant 0 : index
    %c0_0 = arith.constant 0 : index
    %0 = vector.load %arg1[%c0, %c0_0] : memref<2x1152xbf16, #tpu.memory_space<vmem>>, vector<2x1152xbf16>
    %c0_1 = arith.constant 0 : index
    %c0_2 = arith.constant 0 : index
    %1 = vector.load %arg2[%c0_1, %c0_2] : memref<1152x512xbf16, #tpu.memory_space<vmem>>, vector<1152x512xbf16>
    %cst = arith.constant dense<0.000000e+00> : vector<2x512xf32>
    %2 = tpu.matmul %0, %1, %cst {dimension_numbers = #tpu.dot_dimension_numbers<[1], [0], [0], [1], [0, 0, 1, 1], [], []>} : vector<2x1152xbf16>, vector<1152x512xbf16>, vector<2x512xf32> -> vector<2x512xf32>
    %c0_3 = arith.constant 0 : index
    %c0_4 = arith.constant 0 : index
    %3 = vector.load %arg3[%c0_3, %c0_4] : memref<1x512xf32, #tpu.memory_space<vmem>>, vector<1x512xf32>
    %4 = vector.broadcast %3 : vector<1x512xf32> to vector<2x512xf32>
    %5 = arith.addf %2, %4 : vector<2x512xf32>
    %cst_5 = arith.constant 0.000000e+00 : f32
    %6 = vector.broadcast %cst_5 : f32 to vector<2x512xf32>
    %7 = arith.maximumf %5, %6 : vector<2x512xf32>
    %8 = arith.truncf %7 : vector<2x512xf32> to vector<2x512xbf16>
    %c0_6 = arith.constant 0 : index
    %c0_7 = arith.constant 0 : index
    %9 = vector.load %arg4[%c0_6, %c0_7] : memref<512x256xbf16, #tpu.memory_space<vmem>>, vector<512x256xbf16>
    %cst_8 = arith.constant dense<0.000000e+00> : vector<2x256xf32>
    %10 = tpu.matmul %8, %9, %cst_8 {dimension_numbers = #tpu.dot_dimension_numbers<[1], [0], [0], [1], [0, 0, 1, 1], [], []>} : vector<2x512xbf16>, vector<512x256xbf16>, vector<2x256xf32> -> vector<2x256xf32>
    %c0_9 = arith.constant 0 : index
    %c0_10 = arith.constant 0 : index
    %11 = vector.load %arg5[%c0_9, %c0_10] : memref<1x256xf32, #tpu.memory_space<vmem>>, vector<1x256xf32>
    %12 = vector.broadcast %11 : vector<1x256xf32> to vector<2x256xf32>
    %13 = arith.addf %10, %12 : vector<2x256xf32>
    %cst_11 = arith.constant 0.000000e+00 : f32
    %14 = vector.broadcast %cst_11 : f32 to vector<2x256xf32>
    %15 = arith.maximumf %13, %14 : vector<2x256xf32>
    %16 = arith.truncf %15 : vector<2x256xf32> to vector<2x256xbf16>
    %c0_12 = arith.constant 0 : index
    %c0_13 = arith.constant 0 : index
    %17 = vector.load %arg6[%c0_12, %c0_13] : memref<256x128xbf16, #tpu.memory_space<vmem>>, vector<256x128xbf16>
    %cst_14 = arith.constant dense<0.000000e+00> : vector<2x128xf32>
    %18 = tpu.matmul %16, %17, %cst_14 {dimension_numbers = #tpu.dot_dimension_numbers<[1], [0], [0], [1], [0, 0, 1, 1], [], []>} : vector<2x256xbf16>, vector<256x128xbf16>, vector<2x128xf32> -> vector<2x128xf32>
    %c0_15 = arith.constant 0 : index
    %c0_16 = arith.constant 0 : index
    %19 = vector.load %arg7[%c0_15, %c0_16] : memref<1x128xf32, #tpu.memory_space<vmem>>, vector<1x128xf32>
    %20 = vector.broadcast %19 : vector<1x128xf32> to vector<2x128xf32>
    %21 = arith.addf %18, %20 : vector<2x128xf32>
    %c0_17 = arith.constant 0 : index
    %c0_18 = arith.constant 0 : index
    %22 = vector.load %arg8[%c0_17, %c0_18] : memref<2x128xf32, #tpu.memory_space<vmem>>, vector<2x128xf32>
    tpu.vector_store %arg8[%c0_17, %c0_18], %21 {strides = array<i32>} : memref<2x128xf32, #tpu.memory_space<vmem>>, vector<2x128xf32>,
    return
  }
  func.func @transform_0(%arg0: i32) -> (i32, i32) {
    %c0_i32 = arith.constant 0 : i32
    %c0_i32_0 = arith.constant 0 : i32
    return %arg0, %c0_i32 : i32, i32
  }
  func.func @transform_1(%arg0: i32) -> (i32, i32) {
    %c0_i32 = arith.constant 0 : i32
    %c0_i32_0 = arith.constant 0 : i32
    %c0_i32_1 = arith.constant 0 : i32
    return %c0_i32, %c0_i32_0 : i32, i32
  }
  func.func @transform_2(%arg0: i32) -> (i32, i32) {
    %c0_i32 = arith.constant 0 : i32
    %c0_i32_0 = arith.constant 0 : i32
    %c0_i32_1 = arith.constant 0 : i32
    return %c0_i32, %c0_i32_0 : i32, i32
  }
  func.func @transform_3(%arg0: i32) -> (i32, i32) {
    %c0_i32 = arith.constant 0 : i32
    %c0_i32_0 = arith.constant 0 : i32
    %c0_i32_1 = arith.constant 0 : i32
    return %c0_i32, %c0_i32_0 : i32, i32
  }
  func.func @transform_4(%arg0: i32) -> (i32, i32) {
    %c0_i32 = arith.constant 0 : i32
    %c0_i32_0 = arith.constant 0 : i32
    %c0_i32_1 = arith.constant 0 : i32
    return %c0_i32, %c0_i32_0 : i32, i32
  }
  func.func @transform_5(%arg0: i32) -> (i32, i32) {
    %c0_i32 = arith.constant 0 : i32
    %c0_i32_0 = arith.constant 0 : i32
    %c0_i32_1 = arith.constant 0 : i32
    return %c0_i32, %c0_i32_0 : i32, i32
  }
  func.func @transform_6(%arg0: i32) -> (i32, i32) {
    %c0_i32 = arith.constant 0 : i32
    %c0_i32_0 = arith.constant 0 : i32
    %c0_i32_1 = arith.constant 0 : i32
    return %c0_i32, %c0_i32_0 : i32, i32
  }
  func.func @transform_7(%arg0: i32) -> (i32, i32) {
    %c0_i32 = arith.constant 0 : i32
    %c0_i32_0 = arith.constant 0 : i32
    return %arg0, %c0_i32 : i32, i32
  }
}

</mosaic_0001>

<bundles_post_ra>
// kernel: forward.3
= control target key start
LH: loop header
LB: loop body
LE: loop exit
PB: predicated region body
PF: predicated region fallthrough
CT: control target
= control target key end

     0   :  { %s7141_s0 = inlined_call_operand.vmem [shape: bf16[2,1152], index: 0, kind: input, shape index: {}]   ;;  %s7142_s1 = inlined_call_operand.vmem [shape: bf16[1152,512], index: 1, kind: input, shape index: {}]   ;;  %s7143_s2 = inlined_call_operand.vmem [shape: f32[1,512], index: 2, kind: input, shape index: {}]   ;;  %s7144_s3 = inlined_call_operand.vmem [shape: bf16[512,256], index: 3, kind: input, shape index: {}]   ;;  %s7145_s4 = inlined_call_operand.vmem [shape: f32[1,256], index: 4, kind: input, shape index: {}]   ;;  %s7146_s5 = inlined_call_operand.vmem [shape: bf16[256,128], index: 5, kind: input, shape index: {}]   ;;  %s7147_s6 = inlined_call_operand.vmem [shape: f32[1,128], index: 6, kind: input, shape index: {}]   ;;  %s7148_s7 = inlined_call_operand.hbm [shape: f32[2,128], index: 7, kind: output, shape index: {}]  }
   0x1   :  { %v3052_v0 = vld [vmem:[%s7142_s1 + $0xe0] sm:$0xf]  ;;  %v4440_v1 = vld [vmem:[%s7142_s1 + $0xec] sm:$0xf0] }
   0x2   :  { %v3180_v2 = vld [vmem:[%s7142_s1 + $0x1e0] sm:$0xf]  ;;  %v3053_v3 = vor.u32 %v4440_v1, %v3052_v0  ;;  %v4472_v4 = vld [vmem:[%s7142_s1 + $0x1ec] sm:$0xf0] }
   0x3   :  { %v3308_v5 = vld [vmem:[%s7142_s1 + $0x2e0] sm:$0xf]  ;;  %v4504_v6 = vld [vmem:[%s7142_s1 + $0x2ec] sm:$0xf0]  ;;  %v3181_v7 = vor.u32 %v4472_v4, %v3180_v2 }
   0x4   :  { %v3309_v8 = vor.u32 %v4504_v6, %v3308_v5  ;;  %v3436_v9 = vld [vmem:[%s7142_s1 + $0x3e0] sm:$0xf]  ;;  %v4536_v10 = vld [vmem:[%s7142_s1 + $0x3ec] sm:$0xf0]  ;;  %1789 = vmatpush.bf16.msra.mxu0 %v3053_v3 }
   0x5   :  { %v3036_v11 = vld [vmem:[%s7142_s1 + $0xc0] sm:$0xf]  ;;  %v3437_v12 = vor.u32 %v4536_v10, %v3436_v9  ;;  %v4436_v13 = vld [vmem:[%s7142_s1 + $0xcc] sm:$0xf0]  ;;  %1802 = vmatpush.bf16.msra.mxu1 %v3181_v7 }
   0x6   :  { %v3164_v14 = vld [vmem:[%s7142_s1 + $0x1c0] sm:$0xf]  ;;  %v4468_v15 = vld [vmem:[%s7142_s1 + $0x1cc] sm:$0xf0]  ;;  %1815 = vmatpush.bf16.msra.mxu2 %v3309_v8  ;;  %v3037_v16 = vor.u32 %v4436_v13, %v3036_v11 }
   0x7   :  { %v3165_v17 = vor.u32 %v4468_v15, %v3164_v14  ;;  %v3292_v18 = vld [vmem:[%s7142_s1 + $0x2c0] sm:$0xf]  ;;  %v4500_v19 = vld [vmem:[%s7142_s1 + $0x2cc] sm:$0xf0]  ;;  %1828 = vmatpush.bf16.msra.mxu3 %v3437_v12 }
   0x8   :  { %v3420_v20 = vld [vmem:[%s7142_s1 + $0x3c0] sm:$0xf]  ;;  %v3293_v21 = vor.u32 %v4500_v19, %v3292_v18  ;;  %v4532_v22 = vld [vmem:[%s7142_s1 + $0x3cc] sm:$0xf0]  ;;  %1790 = vmatpush.bf16.msra.mxu0 %v3037_v16 }
   0x9   :  { %v3020_v23 = vld [vmem:[%s7142_s1 + $0xa0] sm:$0xf]  ;;  %v4432_v24 = vld [vmem:[%s7142_s1 + $0xac] sm:$0xf0]  ;;  %v3421_v25 = vor.u32 %v4532_v22, %v3420_v20  ;;  %1803 = vmatpush.bf16.msra.mxu1 %v3165_v17 }
   0xa   :  { %v3148_v26 = vld [vmem:[%s7142_s1 + $0x1a0] sm:$0xf]  ;;  %v4464_v27 = vld [vmem:[%s7142_s1 + $0x1ac] sm:$0xf0]  ;;  %v3021_v29 = vor.u32 %v4432_v24, %v3020_v23  ;;  %1816 = vmatpush.bf16.msra.mxu2 %v3293_v21 }
   0xb   :  { %v3276_v28 = vld [vmem:[%s7142_s1 + $0x2a0] sm:$0xf]  ;;  %v4496_v30 = vld [vmem:[%s7142_s1 + $0x2ac] sm:$0xf0]  ;;  %v3149_v33 = vor.u32 %v4464_v27, %v3148_v26  ;;  %1829 = vmatpush.bf16.msra.mxu3 %v3421_v25 }
   0xc   :  { %v3404_v31 = vld [vmem:[%s7142_s1 + $0x3a0] sm:$0xf]  ;;  %v4528_v32 = vld [vmem:[%s7142_s1 + $0x3ac] sm:$0xf0]  ;;  %v3277_v34 = vor.u32 %v4496_v30, %v3276_v28  ;;  %1791 = vmatpush.bf16.msra.mxu0 %v3021_v29 }
   0xd   :  { %v3004_v35 = vld [vmem:[%s7142_s1 + $0x80] sm:$0xf]  ;;  %v4428_v36 = vld [vmem:[%s7142_s1 + $0x8c] sm:$0xf0]  ;;  %v3405_v38 = vor.u32 %v4528_v32, %v3404_v31  ;;  %1804 = vmatpush.bf16.msra.mxu1 %v3149_v33 }
   0xe   :  { %v3132_v37 = vld [vmem:[%s7142_s1 + $0x180] sm:$0xf]  ;;  %v4460_v39 = vld [vmem:[%s7142_s1 + $0x18c] sm:$0xf0]  ;;  %v3005_v44 = vor.u32 %v4428_v36, %v3004_v35  ;;  %1817 = vmatpush.bf16.msra.mxu2 %v3277_v34 }
   0xf   :  { %v3260_v40 = vld [vmem:[%s7142_s1 + $0x280] sm:$0xf]  ;;  %v4492_v41 = vld [vmem:[%s7142_s1 + $0x28c] sm:$0xf0]  ;;  %v3133_v45 = vor.u32 %v4460_v39, %v3132_v37  ;;  %1830 = vmatpush.bf16.msra.mxu3 %v3405_v38 }
  0x10   :  { %v3388_v42 = vld [vmem:[%s7142_s1 + $0x380] sm:$0xf]  ;;  %v4524_v43 = vld [vmem:[%s7142_s1 + $0x38c] sm:$0xf0]  ;;  %v3261_v46 = vor.u32 %v4492_v41, %v3260_v40  ;;  %1792 = vmatpush.bf16.msra.mxu0 %v3005_v44 }
  0x11   :  { %v2988_v47 = vld [vmem:[%s7142_s1 + $0x60] sm:$0xf]  ;;  %v4424_v48 = vld [vmem:[%s7142_s1 + $0x6c] sm:$0xf0]  ;;  %v3389_v50 = vor.u32 %v4524_v43, %v3388_v42  ;;  %1805 = vmatpush.bf16.msra.mxu1 %v3133_v45 }
  0x12   :  { %v3116_v49 = vld [vmem:[%s7142_s1 + $0x160] sm:$0xf]  ;;  %v4456_v51 = vld [vmem:[%s7142_s1 + $0x16c] sm:$0xf0]  ;;  %v2989_v56 = vor.u32 %v4424_v48, %v2988_v47  ;;  %1818 = vmatpush.bf16.msra.mxu2 %v3261_v46 }
  0x13   :  { %v3244_v52 = vld [vmem:[%s7142_s1 + $0x260] sm:$0xf]  ;;  %v4488_v53 = vld [vmem:[%s7142_s1 + $0x26c] sm:$0xf0]  ;;  %v3117_v57 = vor.u32 %v4456_v51, %v3116_v49  ;;  %1831 = vmatpush.bf16.msra.mxu3 %v3389_v50 }
  0x14   :  { %v3372_v54 = vld [vmem:[%s7142_s1 + $0x360] sm:$0xf]  ;;  %v4520_v55 = vld [vmem:[%s7142_s1 + $0x36c] sm:$0xf0]  ;;  %v3245_v58 = vor.u32 %v4488_v53, %v3244_v52  ;;  %1793 = vmatpush.bf16.msra.mxu0 %v2989_v56 }
  0x15   :  { %v2972_v59 = vld [vmem:[%s7142_s1 + $0x40] sm:$0xf]  ;;  %v4420_v60 = vld [vmem:[%s7142_s1 + $0x4c] sm:$0xf0]  ;;  %v3373_v62 = vor.u32 %v4520_v55, %v3372_v54  ;;  %1806 = vmatpush.bf16.msra.mxu1 %v3117_v57 }
  0x16   :  { %v3100_v61 = vld [vmem:[%s7142_s1 + $0x140] sm:$0xf]  ;;  %v4452_v63 = vld [vmem:[%s7142_s1 + $0x14c] sm:$0xf0]  ;;  %v2973_v4 = vor.u32 %v4420_v60, %v2972_v59  ;;  %1819 = vmatpush.bf16.msra.mxu2 %v3245_v58 }
  0x17   :  { %v3228_v0 = vld [vmem:[%s7142_s1 + $0x240] sm:$0xf]  ;;  %v4484_v1 = vld [vmem:[%s7142_s1 + $0x24c] sm:$0xf0]  ;;  %v3101_v5 = vor.u32 %v4452_v63, %v3100_v61  ;;  %1832 = vmatpush.bf16.msra.mxu3 %v3373_v62 }
  0x18   :  { %v3356_v2 = vld [vmem:[%s7142_s1 + $0x340] sm:$0xf]  ;;  %v4516_v3 = vld [vmem:[%s7142_s1 + $0x34c] sm:$0xf0]  ;;  %v3229_v6 = vor.u32 %v4484_v1, %v3228_v0  ;;  %1794 = vmatpush.bf16.msra.mxu0 %v2973_v4 }
  0x19   :  { %v2956_v7 = vld [vmem:[%s7142_s1 + $0x20] sm:$0xf]  ;;  %v4416_v8 = vld [vmem:[%s7142_s1 + $0x2c] sm:$0xf0]  ;;  %v3357_v10 = vor.u32 %v4516_v3, %v3356_v2  ;;  %1807 = vmatpush.bf16.msra.mxu1 %v3101_v5 }
  0x1a   :  { %v3084_v9 = vld [vmem:[%s7142_s1 + $0x120] sm:$0xf]  ;;  %v4448_v11 = vld [vmem:[%s7142_s1 + $0x12c] sm:$0xf0]  ;;  %v2957_v16 = vor.u32 %v4416_v8, %v2956_v7  ;;  %1820 = vmatpush.bf16.msra.mxu2 %v3229_v6 }
  0x1b   :  { %v3212_v12 = vld [vmem:[%s7142_s1 + $0x220] sm:$0xf]  ;;  %v4480_v13 = vld [vmem:[%s7142_s1 + $0x22c] sm:$0xf0]  ;;  %v3085_v19 = vor.u32 %v4448_v11, %v3084_v9  ;;  %1833 = vmatpush.bf16.msra.mxu3 %v3357_v10 }
  0x1c   :  { %v3340_v14 = vld [vmem:[%s7142_s1 + $0x320] sm:$0xf]  ;;  %v4512_v15 = vld [vmem:[%s7142_s1 + $0x32c] sm:$0xf0]  ;;  %v3213_v20 = vor.u32 %v4480_v13, %v3212_v12  ;;  %1795 = vmatpush.bf16.msra.mxu0 %v2957_v16 }
  0x1d   :  { %v2940_v17 = vld [vmem:[%s7142_s1] sm:$0xf]  ;;  %v4412_v18 = vld [vmem:[%s7142_s1 + $0xc] sm:$0xf0]  ;;  %v3341_v24 = vor.u32 %v4512_v15, %v3340_v14  ;;  %1808 = vmatpush.bf16.msra.mxu1 %v3085_v19 }
  0x1e   :  { %v3068_v21 = vld [vmem:[%s7142_s1 + $0x100] sm:$0xf]  ;;  %v4444_v22 = vld [vmem:[%s7142_s1 + $0x10c] sm:$0xf0]  ;;  %v2941_v31 = vor.u32 %v4412_v18, %v2940_v17  ;;  %1821 = vmatpush.bf16.msra.mxu2 %v3213_v20 }
  0x1f   :  { %v3196_v23 = vld [vmem:[%s7142_s1 + $0x200] sm:$0xf]  ;;  %v4476_v25 = vld [vmem:[%s7142_s1 + $0x20c] sm:$0xf0]  ;;  %v3069_v35 = vor.u32 %v4444_v22, %v3068_v21  ;;  %1834 = vmatpush.bf16.msra.mxu3 %v3341_v24 }
  0x20   :  { %v3324_v26 = vld [vmem:[%s7142_s1 + $0x300] sm:$0xf]  ;;  %v4508_v27 = vld [vmem:[%s7142_s1 + $0x30c] sm:$0xf0]  ;;  %v3197_v36 = vor.u32 %v4476_v25, %v3196_v23  ;;  %1796 = vmatpush.bf16.msra.mxu0 %v2941_v31 }
  0x21   :  { %v3564_v28 = vld [vmem:[%s7142_s1 + $0x4e0] sm:$0xf]  ;;  %v4568_v29 = vld [vmem:[%s7142_s1 + $0x4ec] sm:$0xf0]  ;;  %v3325_v39 = vor.u32 %v4508_v27, %v3324_v26  ;;  %1809 = vmatpush.bf16.msra.mxu1 %v3069_v35 }
  0x22   :  { %v3692_v30 = vld [vmem:[%s7142_s1 + $0x5e0] sm:$0xf]  ;;  %v4600_v32 = vld [vmem:[%s7142_s1 + $0x5ec] sm:$0xf0]  ;;  %v3565_v40 = vor.u32 %v4568_v29, %v3564_v28  ;;  %1822 = vmatpush.bf16.msra.mxu2 %v3197_v36 }
  0x23   :  { %v3820_v33 = vld [vmem:[%s7142_s1 + $0x6e0] sm:$0xf]  ;;  %v4632_v34 = vld [vmem:[%s7142_s1 + $0x6ec] sm:$0xf0]  ;;  %v3693_v41 = vor.u32 %v4600_v32, %v3692_v30  ;;  %1835 = vmatpush.bf16.msra.mxu3 %v3325_v39 }
  0x24   :  { %v3948_v37 = vld [vmem:[%s7142_s1 + $0x7e0] sm:$0xf]  ;;  %v4664_v38 = vld [vmem:[%s7142_s1 + $0x7ec] sm:$0xf0]  ;;  %v3821_v42 = vor.u32 %v4632_v34, %v3820_v33  ;;  %1841 = vmatpush.bf16.msrb.mxu0 %v3565_v40 }
  0x25   :  { %v3548_v43 = vld [vmem:[%s7142_s1 + $0x4c0] sm:$0xf]  ;;  %v4564_v44 = vld [vmem:[%s7142_s1 + $0x4cc] sm:$0xf0]  ;;  %v3949_v46 = vor.u32 %v4664_v38, %v3948_v37  ;;  %1854 = vmatpush.bf16.msrb.mxu1 %v3693_v41 }
  0x26   :  { %v3676_v45 = vld [vmem:[%s7142_s1 + $0x5c0] sm:$0xf]  ;;  %v4596_v47 = vld [vmem:[%s7142_s1 + $0x5cc] sm:$0xf0]  ;;  %v3549_v52 = vor.u32 %v4564_v44, %v3548_v43  ;;  %1867 = vmatpush.bf16.msrb.mxu2 %v3821_v42 }
  0x27   :  { %v3804_v48 = vld [vmem:[%s7142_s1 + $0x6c0] sm:$0xf]  ;;  %v4628_v49 = vld [vmem:[%s7142_s1 + $0x6cc] sm:$0xf0]  ;;  %v3677_v53 = vor.u32 %v4596_v47, %v3676_v45  ;;  %1880 = vmatpush.bf16.msrb.mxu3 %v3949_v46 }
  0x28   :  { %v3932_v50 = vld [vmem:[%s7142_s1 + $0x7c0] sm:$0xf]  ;;  %v4660_v51 = vld [vmem:[%s7142_s1 + $0x7cc] sm:$0xf0]  ;;  %v3805_v54 = vor.u32 %v4628_v49, %v3804_v48  ;;  %1842 = vmatpush.bf16.msrb.mxu0 %v3549_v52 }
  0x29   :  { %v3532_v55 = vld [vmem:[%s7142_s1 + $0x4a0] sm:$0xf]  ;;  %v4560_v56 = vld [vmem:[%s7142_s1 + $0x4ac] sm:$0xf0]  ;;  %v3933_v58 = vor.u32 %v4660_v51, %v3932_v50  ;;  %1855 = vmatpush.bf16.msrb.mxu1 %v3677_v53 }
  0x2a   :  { %v3660_v57 = vld [vmem:[%s7142_s1 + $0x5a0] sm:$0xf]  ;;  %v4592_v59 = vld [vmem:[%s7142_s1 + $0x5ac] sm:$0xf0]  ;;  %v3533_v0 = vor.u32 %v4560_v56, %v3532_v55  ;;  %1868 = vmatpush.bf16.msrb.mxu2 %v3805_v54 }
  0x2b   :  { %v3788_v60 = vld [vmem:[%s7142_s1 + $0x6a0] sm:$0xf]  ;;  %v4624_v61 = vld [vmem:[%s7142_s1 + $0x6ac] sm:$0xf0]  ;;  %v3661_v3 = vor.u32 %v4592_v59, %v3660_v57  ;;  %1881 = vmatpush.bf16.msrb.mxu3 %v3933_v58 }
  0x2c   :  { %v3916_v62 = vld [vmem:[%s7142_s1 + $0x7a0] sm:$0xf]  ;;  %v4656_v63 = vld [vmem:[%s7142_s1 + $0x7ac] sm:$0xf0]  ;;  %v3789_v4 = vor.u32 %v4624_v61, %v3788_v60  ;;  %1843 = vmatpush.bf16.msrb.mxu0 %v3533_v0  ;;  %v28_v61 = vld [vmem:[%s7141_s0 + $0x8] sm:$0x1] }
  0x2d   :  { %v3516_v1 = vld [vmem:[%s7142_s1 + $0x480] sm:$0xf]  ;;  %v4556_v5 = vld [vmem:[%s7142_s1 + $0x48c] sm:$0xf0]  ;;  %v3917_v7 = vor.u32 %v4656_v63, %v3916_v62  ;;  %1856 = vmatpush.bf16.msrb.mxu1 %v3661_v3 }
  0x2e   :  { %v27_v2 = vld [vmem:[%s7141_s0] sm:$0xff]  ;;  %v4588_v8 = vld [vmem:[%s7142_s1 + $0x58c] sm:$0xf0]  ;;  %v3517_v13 = vor.u32 %v4556_v5, %v3516_v1  ;;  %1869 = vmatpush.bf16.msrb.mxu2 %v3789_v4 }
  0x2f   :  { %v3644_v6 = vld [vmem:[%s7142_s1 + $0x580] sm:$0xf]  ;;  %328 = vst [vmem:[#allocation1] ss:$9 sm:$0xff] %v27_v2  ;;  %v4620_v10 = vld [vmem:[%s7142_s1 + $0x68c] sm:$0xf0]  ;;  %1882 = vmatpush.bf16.msrb.mxu3 %v3917_v7 }
  0x30   :  { %v3772_v9 = vld [vmem:[%s7142_s1 + $0x680] sm:$0xf]  ;;  %v4652_v12 = vld [vmem:[%s7142_s1 + $0x78c] sm:$0xf0]  ;;  %v3645_v14 = vor.u32 %v4588_v8, %v3644_v6  ;;  %1844 = vmatpush.bf16.msrb.mxu0 %v3517_v13  ;;  %v4438_v8 = vld [vmem:[%s7142_s1 + $0xe4] sm:$0xf] }
  0x31   :  { %v3900_v11 = vld [vmem:[%s7142_s1 + $0x780] sm:$0xf]  ;;  %v3773_v15 = vor.u32 %v4620_v10, %v3772_v9  ;;  %v4552_v17 = vld [vmem:[%s7142_s1 + $0x46c] sm:$0xf0]  ;;  %v3054_v10 = vld [vmem:[%s7142_s1 + $0xf0] sm:$0xf0] }
  0x32   :  { %v3500_v16 = vld [vmem:[%s7142_s1 + $0x460] sm:$0xf]  ;;  %v3901_v19 = vor.u32 %v4652_v12, %v3900_v11  ;;  %v4584_v20 = vld [vmem:[%s7142_s1 + $0x56c] sm:$0xf0]  ;;  %1857 = vmatpush.bf16.msrb.mxu1 %v3645_v14  ;;  %v4470_v11 = vld [vmem:[%s7142_s1 + $0x1e4] sm:$0xf] }
  0x33   :  { %v3628_v18 = vld [vmem:[%s7142_s1 + $0x560] sm:$0xf]  ;;  %v4616_v22 = vld [vmem:[%s7142_s1 + $0x66c] sm:$0xf0]  ;;  %v3501_v26 = vor.u32 %v4552_v17, %v3500_v16  ;;  %1870 = vmatpush.bf16.msrb.mxu2 %v3773_v15  ;;  %v3182_v12 = vld [vmem:[%s7142_s1 + $0x1f0] sm:$0xf0] }
  0x34   :  { %v3756_v21 = vld [vmem:[%s7142_s1 + $0x660] sm:$0xf]  ;;  %v4648_v24 = vld [vmem:[%s7142_s1 + $0x76c] sm:$0xf0]  ;;  %v3629_v30 = vor.u32 %v4584_v20, %v3628_v18  ;;  %1883 = vmatpush.bf16.msrb.mxu3 %v3901_v19  ;;  %v4502_v15 = vld [vmem:[%s7142_s1 + $0x2e4] sm:$0xf]  ;;  %v3057_v19 = vor.u32 %v4438_v8, %v3054_v10  ;;  %v3185_v20 = vor.u32 %v4470_v11, %v3182_v12 }
  0x35   :  { %v3884_v23 = vld [vmem:[%s7142_s1 + $0x760] sm:$0xf]  ;;  %v3757_v31 = vor.u32 %v4616_v22, %v3756_v21  ;;  %v4548_v32 = vld [vmem:[%s7142_s1 + $0x44c] sm:$0xf0]  ;;  %1845 = vmatpush.bf16.msrb.mxu0 %v3501_v26  ;;  %v3310_v16 = vld [vmem:[%s7142_s1 + $0x2f0] sm:$0xf0] }
  0x36   :  { %v3484_v25 = vld [vmem:[%s7142_s1 + $0x440] sm:$0xf]  ;;  %v5167_v27 = vld [vmem:[#allocation1 + $0x12] sm:$0xff]  ;;  %v5179_v34 = vld [vmem:[#allocation1 + $0x9] sm:$0xff]  ;;  %v3885_v35 = vor.u32 %v4648_v24, %v3884_v23  ;;  %1858 = vmatpush.bf16.msrb.mxu1 %v3629_v30  ;;  %v3313_v24 = vor.u32 %v4502_v15, %v3310_v16 }
  0x37   :  { %v5169_v28 = vld [vmem:[#allocation1] sm:$0xff]  ;;  %v4580_v36 = vld [vmem:[%s7142_s1 + $0x54c] sm:$0xf0]  ;;  %1823 = vmatmul.bf16.vlgmr.msra.gmra.mxu2 %v5167_v27  ;;  %v3485_v41 = vor.u32 %v4548_v32, %v3484_v25  ;;  %1810 = vmatmul.bf16.vlgmr.msra.gmra.mxu1 %v5179_v34  ;;  %v5242_v60 = vld [vmem:[#allocation1 + $0x36] sm:$0xff] }
  0x38   :  { %v5171_v29 = vld [vmem:[#allocation1 + $0x1b] sm:$0xff]  ;;  %v4612_v38 = vld [vmem:[%s7142_s1 + $0x64c] sm:$0xf0]  ;;  %1797 = vmatmul.bf16.vlgmr.msra.gmra.mxu0 %v5169_v28  ;;  %1871 = vmatpush.bf16.msrb.mxu2 %v3757_v31  ;;  %v5247_v0 = vld [vmem:[#allocation1 + $0x24] sm:$0xff] }
  0x39   :  { %v3612_v33 = vld [vmem:[%s7142_s1 + $0x540] sm:$0xf]  ;;  %v4644_v40 = vld [vmem:[%s7142_s1 + $0x74c] sm:$0xf0]  ;;  %1836 = vmatmul.bf16.vlgmr.msra.gmra.mxu3 %v5171_v29  ;;  %1846 = vmatpush.bf16.msrb.mxu0 %v3485_v41  ;;  %v4434_v23 = vld [vmem:[%s7142_s1 + $0xc4] sm:$0xf] }
  0x3a   :  { %v3740_v37 = vld [vmem:[%s7142_s1 + $0x640] sm:$0xf]  ;;  %v3613_v43 = vor.u32 %v4580_v36, %v3612_v33  ;;  %v4544_v45 = vld [vmem:[%s7142_s1 + $0x42c] sm:$0xf0]  ;;  %1884 = vmatpush.bf16.msrb.mxu3 %v3885_v35  ;;  %v3038_v25 = vld [vmem:[%s7142_s1 + $0xd0] sm:$0xf0] }
  0x3b   :  { %v3868_v39 = vld [vmem:[%s7142_s1 + $0x740] sm:$0xf]  ;;  %v3741_v44 = vor.u32 %v4612_v38, %v3740_v37  ;;  %v4576_v47 = vld [vmem:[%s7142_s1 + $0x52c] sm:$0xf0]  ;;  %v4466_v26 = vld [vmem:[%s7142_s1 + $0x1c4] sm:$0xf]  ;;  %v3041_v35 = vor.u32 %v4434_v23, %v3038_v25 }
  0x3c   :  { %v3468_v42 = vld [vmem:[%s7142_s1 + $0x420] sm:$0xf]  ;;  %v3869_v48 = vor.u32 %v4644_v40, %v3868_v39  ;;  %v4608_v50 = vld [vmem:[%s7142_s1 + $0x62c] sm:$0xf0]  ;;  %1859 = vmatpush.bf16.msrb.mxu1 %v3613_v43  ;;  %v3166_v30 = vld [vmem:[%s7142_s1 + $0x1d0] sm:$0xf0] }
  0x3d   :  { %v3596_v46 = vld [vmem:[%s7142_s1 + $0x520] sm:$0xf]  ;;  %v4640_v52 = vld [vmem:[%s7142_s1 + $0x72c] sm:$0xf0]  ;;  %v3469_v55 = vor.u32 %v4544_v45, %v3468_v42  ;;  %1872 = vmatpush.bf16.msrb.mxu2 %v3741_v44  ;;  %v4498_v31 = vld [vmem:[%s7142_s1 + $0x2c4] sm:$0xf]  ;;  %v3169_v36 = vor.u32 %v4466_v26, %v3166_v30 }
  0x3e   :  { %v3724_v49 = vld [vmem:[%s7142_s1 + $0x620] sm:$0xf]  ;;  %v4540_v54 = vld [vmem:[%s7142_s1 + $0x40c] sm:$0xf0]  ;;  %v3597_v62 = vor.u32 %v4576_v47, %v3596_v46  ;;  %1885 = vmatpush.bf16.msrb.mxu3 %v3869_v48  ;;  %v3294_v32 = vld [vmem:[%s7142_s1 + $0x2d0] sm:$0xf0] }
  0x3f   :  { %v3852_v51 = vld [vmem:[%s7142_s1 + $0x720] sm:$0xf]  ;;  %v4572_v57 = vld [vmem:[%s7142_s1 + $0x50c] sm:$0xf0]  ;;  %v3725_v63 = vor.u32 %v4608_v50, %v3724_v49  ;;  %1847 = vmatpush.bf16.msrb.mxu0 %v3469_v55  ;;  %v4430_v39 = vld [vmem:[%s7142_s1 + $0xa4] sm:$0xf]  ;;  %v3297_v40 = vor.u32 %v4498_v31, %v3294_v32 }
  0x40   :  { %v3452_v53 = vld [vmem:[%s7142_s1 + $0x400] sm:$0xf]  ;;  %v4604_v59 = vld [vmem:[%s7142_s1 + $0x60c] sm:$0xf0]  ;;  %v3853_v3 = vor.u32 %v4640_v52, %v3852_v51  ;;  %1860 = vmatpush.bf16.msrb.mxu1 %v3597_v62  ;;  %v3022_v41 = vld [vmem:[%s7142_s1 + $0xb0] sm:$0xf0] }
  0x41   :  { %v3580_v56 = vld [vmem:[%s7142_s1 + $0x500] sm:$0xf]  ;;  %v5251_v2 = vld [vmem:[#allocation1 + $0x2d] sm:$0xff]  ;;  %v3453_v9 = vor.u32 %v4540_v54, %v3452_v53  ;;  %1873 = vmatpush.bf16.msrb.mxu2 %v3725_v63  ;;  %v4462_v42 = vld [vmem:[%s7142_s1 + $0x1a4] sm:$0xf]  ;;  %v3025_v47 = vor.u32 %v4430_v39, %v3022_v41 }
  0x42   :  { %v3708_v58 = vld [vmem:[%s7142_s1 + $0x600] sm:$0xf]  ;;  %v4636_v5 = vld [vmem:[%s7142_s1 + $0x70c] sm:$0xf0]  ;;  %v3581_v13 = vor.u32 %v4572_v57, %v3580_v56  ;;  %1886 = vmatpush.bf16.msrb.mxu3 %v3853_v3  ;;  %v3150_v43 = vld [vmem:[%s7142_s1 + $0x1b0] sm:$0xf0] }
  0x43   :  { %v5249_v1 = vld [vmem:[#allocation1 + $0x3f] sm:$0xff]  ;;  %v4696_v7 = vld [vmem:[%s7142_s1 + $0x8ec] sm:$0xf0]  ;;  %v3709_v14 = vor.u32 %v4604_v59, %v3708_v58  ;;  %1848 = vmatpush.bf16.msrb.mxu0 %v3453_v9  ;;  %v3278_v45 = vld [vmem:[%s7142_s1 + $0x2b0] sm:$0xf0]  ;;  %v3153_v48 = vor.u32 %v4462_v42, %v3150_v43 }
  0x44   :  { %v3836_v4 = vld [vmem:[%s7142_s1 + $0x700] sm:$0xf]  ;;  %338 = vst [vmem:[#allocation1] ss:$9 sm:$0xff] %v28_v61  ;;  %v4692_v22 = vld [vmem:[%s7142_s1 + $0x8cc] sm:$0xf0]  ;;  %1861 = vmatpush.bf16.msrb.mxu1 %v3581_v13 }
  0x45   :  { %v4076_v6 = vld [vmem:[%s7142_s1 + $0x8e0] sm:$0xf]  ;;  %v3837_v17 = vor.u32 %v4636_v5, %v3836_v4  ;;  %1874 = vmatpush.bf16.msrb.mxu2 %v3709_v14  ;;  %v4688_v38 = vld [vmem:[%s7142_s1 + $0x8ac] sm:$0xf0]  ;;  %v4494_v44 = vld [vmem:[%s7142_s1 + $0x2a4] sm:$0xf] }
  0x46   :  { %v4077_v18 = vor.u32 %v4696_v7, %v4076_v6  ;;  %v4060_v21 = vld [vmem:[%s7142_s1 + $0x8c0] sm:$0xf]  ;;  %v4684_v50 = vld [vmem:[%s7142_s1 + $0x88c] sm:$0xf0]  ;;  %v4426_v51 = vld [vmem:[%s7142_s1 + $0x84] sm:$0xf]  ;;  %v3281_v52 = vor.u32 %v4494_v44, %v3278_v45 }
  0x47   :  { %1887 = vmatpush.bf16.msrb.mxu3 %v3837_v17  ;;  %v4061_v33 = vor.u32 %v4692_v22, %v4060_v21  ;;  %v4044_v37 = vld [vmem:[%s7142_s1 + $0x8a0] sm:$0xf]  ;;  %1862 = vmatmul.bf16.vlgmr.msrb.gmra.mxu1 %v5251_v2  ;;  %v3006_v53 = vld [vmem:[%s7142_s1 + $0x90] sm:$0xf0]  ;;  %v4458_v54 = vld [vmem:[%s7142_s1 + $0x184] sm:$0xf] }
  0x48   :  { %1893 = vmatpush.bf16.msra.mxu0 %v4077_v18  ;;  %1906 = vmatpush.bf16.msra.mxu1 %v3057_v19  ;;  %v4045_v46 = vor.u32 %v4688_v38, %v4044_v37  ;;  %v4028_v49 = vld [vmem:[%s7142_s1 + $0x880] sm:$0xf]  ;;  %v3134_v55 = vld [vmem:[%s7142_s1 + $0x190] sm:$0xf0]  ;;  %v4490_v56 = vld [vmem:[%s7142_s1 + $0x284] sm:$0xf]  ;;  %v3009_v59 = vor.u32 %v4426_v51, %v3006_v53 }
  0x49   :  { %1919 = vmatpush.bf16.msra.mxu2 %v3185_v20  ;;  %1849 = vmatmul.bf16.vlgmr.msrb.gmra.mxu0 %v5247_v0  ;;  %v3262_v57 = vld [vmem:[%s7142_s1 + $0x290] sm:$0xf0]  ;;  %v4029_v58 = vor.u32 %v4684_v50, %v4028_v49  ;;  %v3137_v61 = vor.u32 %v4458_v54, %v3134_v55  ;;  %v4012_v62 = vld [vmem:[%s7142_s1 + $0x860] sm:$0xf]  ;;  %v4680_v63 = vld [vmem:[%s7142_s1 + $0x86c] sm:$0xf0] }
  0x4a   :  { %1875 = vmatmul.bf16.vlgmr.msrb.gmra.mxu2 %v5242_v60  ;;  %1888 = vmatmul.bf16.vlgmr.msrb.gmra.mxu3 %v5249_v1  ;;  %v4422_v3 = vld [vmem:[%s7142_s1 + $0x64] sm:$0xf]  ;;  %v3265_v4 = vor.u32 %v4490_v56, %v3262_v57  ;;  %v2990_v5 = vld [vmem:[%s7142_s1 + $0x70] sm:$0xf0]  ;;  %v4013_v10 = vor.u32 %v4680_v63, %v4012_v62  ;;  %v3996_v13 = vld [vmem:[%s7142_s1 + $0x840] sm:$0xf] }
  0x4b   :  { %1932 = vmatpush.bf16.msra.mxu3 %v3313_v24  ;;  %v4454_v6 = vld [vmem:[%s7142_s1 + $0x164] sm:$0xf]  ;;  %v3118_v7 = vld [vmem:[%s7142_s1 + $0x170] sm:$0xf0]  ;;  %v2993_v11 = vor.u32 %v4422_v3, %v2990_v5  ;;  %v4676_v14 = vld [vmem:[%s7142_s1 + $0x84c] sm:$0xf0] }
  0x4c   :  { %1894 = vmatpush.bf16.msra.mxu0 %v4061_v33  ;;  %1907 = vmatpush.bf16.msra.mxu1 %v3041_v35  ;;  %v4486_v8 = vld [vmem:[%s7142_s1 + $0x264] sm:$0xf]  ;;  %v3246_v9 = vld [vmem:[%s7142_s1 + $0x270] sm:$0xf0]  ;;  %v3121_v12 = vor.u32 %v4454_v6, %v3118_v7  ;;  %v3997_v22 = vor.u32 %v4676_v14, %v3996_v13  ;;  %v3980_v25 = vld [vmem:[%s7142_s1 + $0x820] sm:$0xf] }
  0x4d   :  { %1920 = vmatpush.bf16.msra.mxu2 %v3169_v36  ;;  %v4418_v15 = vld [vmem:[%s7142_s1 + $0x44] sm:$0xf]  ;;  %v3249_v16 = vor.u32 %v4486_v8, %v3246_v9  ;;  %v2974_v17 = vld [vmem:[%s7142_s1 + $0x50] sm:$0xf0]  ;;  %v4672_v26 = vld [vmem:[%s7142_s1 + $0x82c] sm:$0xf0] }
  0x4e   :  { %v4450_v18 = vld [vmem:[%s7142_s1 + $0x144] sm:$0xf]  ;;  %v3102_v19 = vld [vmem:[%s7142_s1 + $0x150] sm:$0xf0]  ;;  %v2977_v23 = vor.u32 %v4418_v15, %v2974_v17  ;;  %v3981_v38 = vor.u32 %v4672_v26, %v3980_v25  ;;  %v3964_v39 = vld [vmem:[%s7142_s1 + $0x800] sm:$0xf] }
  0x4f   :  { %1933 = vmatpush.bf16.msra.mxu3 %v3297_v40  ;;  %v4482_v20 = vld [vmem:[%s7142_s1 + $0x244] sm:$0xf]  ;;  %v3230_v21 = vld [vmem:[%s7142_s1 + $0x250] sm:$0xf0]  ;;  %v3105_v24 = vor.u32 %v4450_v18, %v3102_v19  ;;  %v4668_v40 = vld [vmem:[%s7142_s1 + $0x80c] sm:$0xf0] }
  0x50   :  { %1895 = vmatpush.bf16.msra.mxu0 %v4045_v46  ;;  %1908 = vmatpush.bf16.msra.mxu1 %v3025_v47  ;;  %v4414_v30 = vld [vmem:[%s7142_s1 + $0x24] sm:$0xf]  ;;  %v3233_v31 = vor.u32 %v4482_v20, %v3230_v21  ;;  %v2958_v32 = vld [vmem:[%s7142_s1 + $0x30] sm:$0xf0]  ;;  %v3965_v54 = vor.u32 %v4668_v40, %v3964_v39 }
  0x51   :  { %1921 = vmatpush.bf16.msra.mxu2 %v3153_v48  ;;  %v4446_v33 = vld [vmem:[%s7142_s1 + $0x124] sm:$0xf]  ;;  %v3086_v35 = vld [vmem:[%s7142_s1 + $0x130] sm:$0xf0]  ;;  %v2961_v42 = vor.u32 %v4414_v30, %v2958_v32 }
  0x52   :  { %v4478_v36 = vld [vmem:[%s7142_s1 + $0x224] sm:$0xf]  ;;  %v3214_v37 = vld [vmem:[%s7142_s1 + $0x230] sm:$0xf0]  ;;  %v3089_v43 = vor.u32 %v4446_v33, %v3086_v35 }
  0x53   :  { %1934 = vmatpush.bf16.msra.mxu3 %v3281_v52  ;;  %v4410_v41 = vld [vmem:[%s7142_s1 + $0x4] sm:$0xf]  ;;  %v2942_v44 = vld [vmem:[%s7142_s1 + $0x10] sm:$0xf0]  ;;  %v3217_v47 = vor.u32 %v4478_v36, %v3214_v37 }
  0x54   :  { %1896 = vmatpush.bf16.msra.mxu0 %v4029_v58  ;;  %1909 = vmatpush.bf16.msra.mxu1 %v3009_v59  ;;  %v4442_v45 = vld [vmem:[%s7142_s1 + $0x104] sm:$0xf]  ;;  %v3070_v46 = vld [vmem:[%s7142_s1 + $0x110] sm:$0xf0]  ;;  %v2945_v57 = vor.u32 %v4410_v41, %v2942_v44 }
  0x55   :  { %1922 = vmatpush.bf16.msra.mxu2 %v3137_v61  ;;  %v4474_v48 = vld [vmem:[%s7142_s1 + $0x204] sm:$0xf]  ;;  %v3198_v49 = vld [vmem:[%s7142_s1 + $0x210] sm:$0xf0]  ;;  %v3073_v58 = vor.u32 %v4442_v45, %v3070_v46 }
  0x56   :  { %v4534_v50 = vld [vmem:[%s7142_s1 + $0x3e4] sm:$0xf]  ;;  %v3438_v51 = vld [vmem:[%s7142_s1 + $0x3f0] sm:$0xf0]  ;;  %v3201_v62 = vor.u32 %v4474_v48, %v3198_v49 }
  0x57   :  { %1935 = vmatpush.bf16.msra.mxu3 %v3265_v4  ;;  %v4566_v52 = vld [vmem:[%s7142_s1 + $0x4e4] sm:$0xf]  ;;  %v3566_v53 = vld [vmem:[%s7142_s1 + $0x4f0] sm:$0xf0]  ;;  %v3441_v63 = vor.u32 %v4534_v50, %v3438_v51 }
  0x58   :  { %1897 = vmatpush.bf16.msra.mxu0 %v4013_v10  ;;  %1910 = vmatpush.bf16.msra.mxu1 %v2993_v11  ;;  %v4598_v55 = vld [vmem:[%s7142_s1 + $0x5e4] sm:$0xf]  ;;  %v3694_v56 = vld [vmem:[%s7142_s1 + $0x5f0] sm:$0xf0]  ;;  %v3569_v3 = vor.u32 %v4566_v52, %v3566_v53 }
  0x59   :  { %1923 = vmatpush.bf16.msra.mxu2 %v3121_v12  ;;  %v4630_v59 = vld [vmem:[%s7142_s1 + $0x6e4] sm:$0xf]  ;;  %v3822_v61 = vld [vmem:[%s7142_s1 + $0x6f0] sm:$0xf0]  ;;  %v3697_v4 = vor.u32 %v4598_v55, %v3694_v56 }
  0x5a   :  { %v5479_v5 = vld [vmem:[#allocation1] sm:$0xff]  ;;  %v3422_v7 = vld [vmem:[%s7142_s1 + $0x3d0] sm:$0xf0]  ;;  %v3825_v9 = vor.u32 %v4630_v59, %v3822_v61 }
  0x5b   :  { %1936 = vmatpush.bf16.msra.mxu3 %v3249_v16  ;;  %v4530_v6 = vld [vmem:[%s7142_s1 + $0x3c4] sm:$0xf]  ;;  %v3550_v10 = vld [vmem:[%s7142_s1 + $0x4d0] sm:$0xf0] }
  0x5c   :  { %1898 = vmatpush.bf16.msra.mxu0 %v3997_v22  ;;  %1911 = vmatpush.bf16.msra.mxu1 %v2977_v23  ;;  %v4562_v8 = vld [vmem:[%s7142_s1 + $0x4c4] sm:$0xf]  ;;  %v3678_v12 = vld [vmem:[%s7142_s1 + $0x5d0] sm:$0xf0] }
  0x5d   :  { %1924 = vmatpush.bf16.msra.mxu2 %v3105_v24  ;;  %v4594_v11 = vld [vmem:[%s7142_s1 + $0x5c4] sm:$0xf]  ;;  %v3806_v14 = vld [vmem:[%s7142_s1 + $0x6d0] sm:$0xf0] }
  0x5e   :  { %v4626_v13 = vld [vmem:[%s7142_s1 + $0x6c4] sm:$0xf] }
  0x5f   :  { %1937 = vmatpush.bf16.msra.mxu3 %v3233_v31 }
  0x60   :  { %1899 = vmatpush.bf16.msra.mxu0 %v3981_v38  ;;  %1912 = vmatpush.bf16.msra.mxu1 %v2961_v42 }
  0x61   :  { %1925 = vmatpush.bf16.msra.mxu2 %v3089_v43 }
  0x63   :  { %1938 = vmatpush.bf16.msra.mxu3 %v3217_v47 }
  0x64   :  { %1900 = vmatpush.bf16.msra.mxu0 %v3965_v54  ;;  %1913 = vmatpush.bf16.msra.mxu1 %v2945_v57 }
  0x65   :  { %1926 = vmatpush.bf16.msra.mxu2 %v3073_v58 }
  0x66   :  { %12 = vsyncpa [#allocation3], 0  ;;  %v3425_v15 = vor.u32 %v4530_v6, %v3422_v7  ;;  %v3553_v16 = vor.u32 %v4562_v8, %v3550_v10  ;;  %v3681_v17 = vor.u32 %v4594_v11, %v3678_v12  ;;  %v4526_v18 = vld [vmem:[%s7142_s1 + $0x3a4] sm:$0xf]  ;;  %v3406_v19 = vld [vmem:[%s7142_s1 + $0x3b0] sm:$0xf0]  ;;  %v3809_v21 = vor.u32 %v4626_v13, %v3806_v14 }
  0x67   :  { %1939 = vmatpush.bf16.msra.mxu3 %v3201_v62  ;;  %v4558_v20 = vld [vmem:[%s7142_s1 + $0x4a4] sm:$0xf]  ;;  %1901 = vmatmul.bf16.vlgmr.msra.gmra.mxu0 %v5479_v5  ;;  %v3534_v22 = vld [vmem:[%s7142_s1 + $0x4b0] sm:$0xf0]  ;;  %v3409_v30 = vor.u32 %v4526_v18, %v3406_v19  ;;  %s2929_s28 = sshll.u32 %s7148_s7, 4  ;;  %s2930_s28 = int_to_ptr.hbm [resolvable:$true] %s2929_s28 }
  0x68   :  { %1945 = vmatpush.bf16.msrb.mxu0 %v3441_v63  ;;  %1958 = vmatpush.bf16.msrb.mxu1 %v3569_v3  ;;  %v4590_v23 = vld [vmem:[%s7142_s1 + $0x5a4] sm:$0xf]  ;;  %v3662_v24 = vld [vmem:[%s7142_s1 + $0x5b0] sm:$0xf0]  ;;  %v3537_v31 = vor.u32 %v4558_v20, %v3534_v22 }
  0x69   :  { %1971 = vmatpush.bf16.msrb.mxu2 %v3697_v4  ;;  %v4622_v25 = vld [vmem:[%s7142_s1 + $0x6a4] sm:$0xf]  ;;  %v3790_v26 = vld [vmem:[%s7142_s1 + $0x6b0] sm:$0xf0]  ;;  %1914 = vmatmul.bf16.vlgmr.msra.gmra.mxu1 %v5169_v28  ;;  %v3665_v32 = vor.u32 %v4590_v23, %v3662_v24 }
  0x6a   :  { %1927 = vmatmul.bf16.vlgmr.msra.gmra.mxu2 %v5179_v34  ;;  %1940 = vmatmul.bf16.vlgmr.msra.gmra.mxu3 %v5167_v27  ;;  %v4522_v33 = vld [vmem:[%s7142_s1 + $0x384] sm:$0xf]  ;;  %v3390_v35 = vld [vmem:[%s7142_s1 + $0x390] sm:$0xf0]  ;;  %v3793_v37 = vor.u32 %v4622_v25, %v3790_v26 }
  0x6b   :  { %1984 = vmatpush.bf16.msrb.mxu3 %v3825_v9  ;;  %v4554_v36 = vld [vmem:[%s7142_s1 + $0x484] sm:$0xf]  ;;  %v3518_v38 = vld [vmem:[%s7142_s1 + $0x490] sm:$0xf0]  ;;  %v3393_v43 = vor.u32 %v4522_v33, %v3390_v35 }
  0x6c   :  { %1946 = vmatpush.bf16.msrb.mxu0 %v3425_v15  ;;  %1959 = vmatpush.bf16.msrb.mxu1 %v3553_v16  ;;  %v4586_v39 = vld [vmem:[%s7142_s1 + $0x584] sm:$0xf]  ;;  %v3646_v40 = vld [vmem:[%s7142_s1 + $0x590] sm:$0xf0]  ;;  %v3521_v44 = vor.u32 %v4554_v36, %v3518_v38 }
  0x6d   :  { %1972 = vmatpush.bf16.msrb.mxu2 %v3681_v17  ;;  %v4618_v41 = vld [vmem:[%s7142_s1 + $0x684] sm:$0xf]  ;;  %v3774_v42 = vld [vmem:[%s7142_s1 + $0x690] sm:$0xf0]  ;;  %v3649_v45 = vor.u32 %v4586_v39, %v3646_v40 }
  0x6e   :  { %v4518_v46 = vld [vmem:[%s7142_s1 + $0x364] sm:$0xf]  ;;  %v3374_v47 = vld [vmem:[%s7142_s1 + $0x370] sm:$0xf0]  ;;  %v3777_v49 = vor.u32 %v4618_v41, %v3774_v42  ;;  %v3060_v41 = vld [vmem:[%s7142_s1 + $0xe8] sm:$0xf] }
  0x6f   :  { %1985 = vmatpush.bf16.msrb.mxu3 %v3809_v21  ;;  %v4550_v48 = vld [vmem:[%s7142_s1 + $0x464] sm:$0xf]  ;;  %v3502_v50 = vld [vmem:[%s7142_s1 + $0x470] sm:$0xf0]  ;;  %v3377_v55 = vor.u32 %v4518_v46, %v3374_v47  ;;  %v4441_v42 = vld [vmem:[%s7142_s1 + $0xf4] sm:$0xf0] }
  0x70   :  { %1947 = vmatpush.bf16.msrb.mxu0 %v3409_v30  ;;  %1960 = vmatpush.bf16.msrb.mxu1 %v3537_v31  ;;  %v4582_v51 = vld [vmem:[%s7142_s1 + $0x564] sm:$0xf]  ;;  %v3630_v52 = vld [vmem:[%s7142_s1 + $0x570] sm:$0xf0]  ;;  %v3505_v56 = vor.u32 %v4550_v48, %v3502_v50  ;;  %v4473_v46 = vld [vmem:[%s7142_s1 + $0x1f4] sm:$0xf0]  ;;  %v3061_v50 = vor.u32 %v4441_v42, %v3060_v41 }
  0x71   :  { %1973 = vmatpush.bf16.msrb.mxu2 %v3665_v32  ;;  %v4614_v53 = vld [vmem:[%s7142_s1 + $0x664] sm:$0xf]  ;;  %v3758_v54 = vld [vmem:[%s7142_s1 + $0x670] sm:$0xf0]  ;;  %v3633_v57 = vor.u32 %v4582_v51, %v3630_v52 }
  0x72   :  { %v4514_v58 = vld [vmem:[%s7142_s1 + $0x344] sm:$0xf]  ;;  %v3358_v59 = vld [vmem:[%s7142_s1 + $0x350] sm:$0xf0]  ;;  %v3761_v62 = vor.u32 %v4614_v53, %v3758_v54 }
  0x73   :  { %1986 = vmatpush.bf16.msrb.mxu3 %v3793_v37  ;;  %v4546_v61 = vld [vmem:[%s7142_s1 + $0x444] sm:$0xf]  ;;  %v3486_v63 = vld [vmem:[%s7142_s1 + $0x450] sm:$0xf0]  ;;  %v3361_v8 = vor.u32 %v4514_v58, %v3358_v59  ;;  %v3172_v58 = vld [vmem:[%s7142_s1 + $0x1c8] sm:$0xf] }
  0x74   :  { %1948 = vmatpush.bf16.msrb.mxu0 %v3393_v43  ;;  %1961 = vmatpush.bf16.msrb.mxu1 %v3521_v44  ;;  %v4578_v3 = vld [vmem:[%s7142_s1 + $0x544] sm:$0xf]  ;;  %v3614_v4 = vld [vmem:[%s7142_s1 + $0x550] sm:$0xf0]  ;;  %v3489_v9 = vor.u32 %v4546_v61, %v3486_v63  ;;  %v4469_v59 = vld [vmem:[%s7142_s1 + $0x1d4] sm:$0xf0] }
  0x75   :  { %1974 = vmatpush.bf16.msrb.mxu2 %v3649_v45  ;;  %v4610_v6 = vld [vmem:[%s7142_s1 + $0x644] sm:$0xf]  ;;  %v3742_v7 = vld [vmem:[%s7142_s1 + $0x650] sm:$0xf0]  ;;  %v3617_v10 = vor.u32 %v4578_v3, %v3614_v4  ;;  %v3188_v45 = vld [vmem:[%s7142_s1 + $0x1e8] sm:$0xf] }
  0x76   :  { %v4510_v11 = vld [vmem:[%s7142_s1 + $0x324] sm:$0xf]  ;;  %v3342_v12 = vld [vmem:[%s7142_s1 + $0x330] sm:$0xf0]  ;;  %v3745_v14 = vor.u32 %v4610_v6, %v3742_v7  ;;  %v3189_v54 = vor.u32 %v4473_v46, %v3188_v45  ;;  %v3173_v7 = vor.u32 %v4469_v59, %v3172_v58 }
  0x77   :  { %1987 = vmatpush.bf16.msrb.mxu3 %v3777_v49  ;;  %v4542_v13 = vld [vmem:[%s7142_s1 + $0x424] sm:$0xf]  ;;  %v3470_v15 = vld [vmem:[%s7142_s1 + $0x430] sm:$0xf0]  ;;  %v3345_v20 = vor.u32 %v4510_v11, %v3342_v12  ;;  %v3156_v11 = vld [vmem:[%s7142_s1 + $0x1a8] sm:$0xf] }
  0x78   :  { %1949 = vmatpush.bf16.msrb.mxu0 %v3377_v55  ;;  %1962 = vmatpush.bf16.msrb.mxu1 %v3505_v56  ;;  %v4574_v16 = vld [vmem:[%s7142_s1 + $0x524] sm:$0xf]  ;;  %v3598_v17 = vld [vmem:[%s7142_s1 + $0x530] sm:$0xf0]  ;;  %v3473_v23 = vor.u32 %v4542_v13, %v3470_v15  ;;  %v3044_v56 = vld [vmem:[%s7142_s1 + $0xc8] sm:$0xf] }
  0x79   :  { %1975 = vmatpush.bf16.msrb.mxu2 %v3633_v57  ;;  %v4606_v18 = vld [vmem:[%s7142_s1 + $0x624] sm:$0xf]  ;;  %v3726_v19 = vld [vmem:[%s7142_s1 + $0x630] sm:$0xf0]  ;;  %v3601_v24 = vor.u32 %v4574_v16, %v3598_v17  ;;  %v4437_v57 = vld [vmem:[%s7142_s1 + $0xd4] sm:$0xf0] }
  0x7a   :  { %v4506_v21 = vld [vmem:[%s7142_s1 + $0x304] sm:$0xf]  ;;  %v3326_v22 = vld [vmem:[%s7142_s1 + $0x310] sm:$0xf0]  ;;  %v3729_v31 = vor.u32 %v4606_v18, %v3726_v19  ;;  %v3045_v63 = vor.u32 %v4437_v57, %v3044_v56  ;;  %v4465_v12 = vld [vmem:[%s7142_s1 + $0x1b4] sm:$0xf0] }
  0x7b   :  { %1988 = vmatpush.bf16.msrb.mxu3 %v3761_v62  ;;  %v4538_v25 = vld [vmem:[%s7142_s1 + $0x404] sm:$0xf]  ;;  %v3454_v26 = vld [vmem:[%s7142_s1 + $0x410] sm:$0xf0]  ;;  %v3329_v39 = vor.u32 %v4506_v21, %v3326_v22  ;;  %v3157_v19 = vor.u32 %v4465_v12, %v3156_v11  ;;  %v3012_v21 = vld [vmem:[%s7142_s1 + $0x88] sm:$0xf] }
  0x7c   :  { %1950 = vmatpush.bf16.msrb.mxu0 %v3361_v8  ;;  %1963 = vmatpush.bf16.msrb.mxu1 %v3489_v9  ;;  %v4570_v30 = vld [vmem:[%s7142_s1 + $0x504] sm:$0xf]  ;;  %v3582_v32 = vld [vmem:[%s7142_s1 + $0x510] sm:$0xf0]  ;;  %v3457_v43 = vor.u32 %v4538_v25, %v3454_v26  ;;  %v3028_v9 = vld [vmem:[%s7142_s1 + $0xa8] sm:$0xf] }
  0x7d   :  { %1976 = vmatpush.bf16.msrb.mxu2 %v3617_v10  ;;  %v4602_v33 = vld [vmem:[%s7142_s1 + $0x604] sm:$0xf]  ;;  %v3710_v35 = vld [vmem:[%s7142_s1 + $0x610] sm:$0xf0]  ;;  %v3585_v44 = vor.u32 %v4570_v30, %v3582_v32  ;;  %v4433_v10 = vld [vmem:[%s7142_s1 + $0xb4] sm:$0xf0] }
  0x7e   :  { %v4662_v36 = vld [vmem:[%s7142_s1 + $0x7e4] sm:$0xf]  ;;  %v3950_v37 = vld [vmem:[%s7142_s1 + $0x7f0] sm:$0xf0]  ;;  %v3713_v47 = vor.u32 %v4602_v33, %v3710_v35  ;;  %v3029_v15 = vor.u32 %v4433_v10, %v3028_v9  ;;  %v4429_v22 = vld [vmem:[%s7142_s1 + $0x94] sm:$0xf0] }
  0x7f   :  { %1989 = vmatpush.bf16.msrb.mxu3 %v3745_v14  ;;  %v4694_v38 = vld [vmem:[%s7142_s1 + $0x8e4] sm:$0xf]  ;;  %v4078_v40 = vld [vmem:[%s7142_s1 + $0x8f0] sm:$0xf0]  ;;  %v3953_v48 = vor.u32 %v4662_v36, %v3950_v37  ;;  %v3013_v30 = vor.u32 %v4429_v22, %v3012_v21  ;;  %v2996_v37 = vld [vmem:[%s7142_s1 + $0x68] sm:$0xf] }
  0x80   :  { %1951 = vmatpush.bf16.msrb.mxu0 %v3345_v20  ;;  %1964 = vmatpush.bf16.msrb.mxu1 %v3473_v23  ;;  %v4081_v49 = vor.u32 %v4694_v38, %v4078_v40  ;;  %v4658_v51 = vld [vmem:[%s7142_s1 + $0x7c4] sm:$0xf]  ;;  %v3934_v52 = vld [vmem:[%s7142_s1 + $0x7d0] sm:$0xf0]  ;;  %v3140_v23 = vld [vmem:[%s7142_s1 + $0x188] sm:$0xf] }
  0x81   :  { %1977 = vmatpush.bf16.msrb.mxu2 %v3601_v24  ;;  %v4690_v53 = vld [vmem:[%s7142_s1 + $0x8c4] sm:$0xf]  ;;  %v4062_v55 = vld [vmem:[%s7142_s1 + $0x8d0] sm:$0xf0]  ;;  %v3937_v61 = vor.u32 %v4658_v51, %v3934_v52  ;;  %v4461_v24 = vld [vmem:[%s7142_s1 + $0x194] sm:$0xf0] }
  0x82   :  { %v4065_v62 = vor.u32 %v4690_v53, %v4062_v55  ;;  %v4654_v3 = vld [vmem:[%s7142_s1 + $0x7a4] sm:$0xf]  ;;  %v3918_v4 = vld [vmem:[%s7142_s1 + $0x7b0] sm:$0xf0]  ;;  %v3141_v35 = vor.u32 %v4461_v24, %v3140_v23  ;;  %v4425_v38 = vld [vmem:[%s7142_s1 + $0x74] sm:$0xf0] }
  0x83   :  { %1990 = vmatpush.bf16.msrb.mxu3 %v3729_v31  ;;  %v4686_v6 = vld [vmem:[%s7142_s1 + $0x8a4] sm:$0xf]  ;;  %v4046_v8 = vld [vmem:[%s7142_s1 + $0x8b0] sm:$0xf0]  ;;  %v3921_v13 = vor.u32 %v4654_v3, %v3918_v4  ;;  %v4457_v40 = vld [vmem:[%s7142_s1 + $0x174] sm:$0xf0] }
  0x84   :  { %1952 = vmatpush.bf16.msrb.mxu0 %v3329_v39  ;;  %1965 = vmatpush.bf16.msrb.mxu1 %v3457_v43  ;;  %v4049_v14 = vor.u32 %v4686_v6, %v4046_v8  ;;  %v4650_v16 = vld [vmem:[%s7142_s1 + $0x784] sm:$0xf]  ;;  %v3902_v17 = vld [vmem:[%s7142_s1 + $0x790] sm:$0xf0]  ;;  %v3124_v39 = vld [vmem:[%s7142_s1 + $0x168] sm:$0xf]  ;;  %v2997_v43 = vor.u32 %v4425_v38, %v2996_v37 }
  0x85   :  { %1978 = vmatpush.bf16.msrb.mxu2 %v3585_v44  ;;  %v4682_v18 = vld [vmem:[%s7142_s1 + $0x884] sm:$0xf]  ;;  %v4030_v20 = vld [vmem:[%s7142_s1 + $0x890] sm:$0xf0]  ;;  %v3905_v25 = vor.u32 %v4650_v16, %v3902_v17  ;;  %v3108_v51 = vld [vmem:[%s7142_s1 + $0x148] sm:$0xf] }
  0x86   :  { %v4033_v26 = vor.u32 %v4682_v18, %v4030_v20  ;;  %v4646_v31 = vld [vmem:[%s7142_s1 + $0x764] sm:$0xf]  ;;  %v3886_v32 = vld [vmem:[%s7142_s1 + $0x770] sm:$0xf0]  ;;  %v4453_v52 = vld [vmem:[%s7142_s1 + $0x154] sm:$0xf0] }
  0x87   :  { %1991 = vmatpush.bf16.msrb.mxu3 %v3713_v47  ;;  %1953 = vmatmul.bf16.vlgmr.msrb.gmra.mxu0 %v5171_v29  ;;  %v4678_v33 = vld [vmem:[%s7142_s1 + $0x864] sm:$0xf]  ;;  %v4014_v36 = vld [vmem:[%s7142_s1 + $0x870] sm:$0xf0]  ;;  %v3889_v41 = vor.u32 %v4646_v31, %v3886_v32  ;;  %v3125_v47 = vor.u32 %v4457_v40, %v3124_v39  ;;  %v3109_v59 = vor.u32 %v4453_v52, %v3108_v51  ;;  %v3092_v3 = vld [vmem:[%s7142_s1 + $0x128] sm:$0xf] }
  0x88   :  { %1997 = vmatpush.bf16.msra.mxu0 %v3953_v48  ;;  %2010 = vmatpush.bf16.msra.mxu1 %v4081_v49  ;;  %v4017_v42 = vor.u32 %v4678_v33, %v4014_v36  ;;  %v4642_v44 = vld [vmem:[%s7142_s1 + $0x744] sm:$0xf]  ;;  %v3870_v45 = vld [vmem:[%s7142_s1 + $0x750] sm:$0xf0]  ;;  %v2980_v49 = vld [vmem:[%s7142_s1 + $0x48] sm:$0xf] }
  0x89   :  { %2023 = vmatpush.bf16.msra.mxu2 %v3061_v50  ;;  %1966 = vmatmul.bf16.vlgmr.msrb.gmra.mxu1 %v5247_v0  ;;  %v4674_v46 = vld [vmem:[%s7142_s1 + $0x844] sm:$0xf]  ;;  %v3998_v48 = vld [vmem:[%s7142_s1 + $0x850] sm:$0xf0]  ;;  %v4421_v50 = vld [vmem:[%s7142_s1 + $0x54] sm:$0xf0]  ;;  %v3873_v53 = vor.u32 %v4642_v44, %v3870_v45 }
  0x8a   :  { %1979 = vmatmul.bf16.vlgmr.msrb.gmra.mxu2 %v5251_v2  ;;  %1992 = vmatmul.bf16.vlgmr.msrb.gmra.mxu3 %v5242_v60  ;;  %v2981_v55 = vor.u32 %v4421_v50, %v2980_v49  ;;  %v4638_v56 = vld [vmem:[%s7142_s1 + $0x724] sm:$0xf]  ;;  %v3854_v57 = vld [vmem:[%s7142_s1 + $0x730] sm:$0xf0]  ;;  %v4449_v4 = vld [vmem:[%s7142_s1 + $0x134] sm:$0xf0] }
  0x8b   :  { %2036 = vmatpush.bf16.msra.mxu3 %v3189_v54  ;;  %v4001_v54 = vor.u32 %v4674_v46, %v3998_v48  ;;  %v4670_v58 = vld [vmem:[%s7142_s1 + $0x824] sm:$0xf]  ;;  %v3857_v6 = vor.u32 %v4638_v56, %v3854_v57  ;;  %v3838_v8 = vld [vmem:[%s7142_s1 + $0x710] sm:$0xf0]  ;;  %v3076_v16 = vld [vmem:[%s7142_s1 + $0x108] sm:$0xf] }
  0x8c   :  { %1998 = vmatpush.bf16.msra.mxu0 %v3937_v61  ;;  %2011 = vmatpush.bf16.msra.mxu1 %v4065_v62  ;;  %v3982_v61 = vld [vmem:[%s7142_s1 + $0x830] sm:$0xf0]  ;;  %v2964_v62 = vld [vmem:[%s7142_s1 + $0x28] sm:$0xf]  ;;  %v4666_v11 = vld [vmem:[%s7142_s1 + $0x804] sm:$0xf] }
  0x8d   :  { %2024 = vmatpush.bf16.msra.mxu2 %v3045_v63  ;;  %v4417_v63 = vld [vmem:[%s7142_s1 + $0x34] sm:$0xf0]  ;;  %v3985_v9 = vor.u32 %v4670_v58, %v3982_v61  ;;  %v3966_v12 = vld [vmem:[%s7142_s1 + $0x810] sm:$0xf0]  ;;  %v3316_v18 = vld [vmem:[%s7142_s1 + $0x2e8] sm:$0xf] }
  0x8e   :  { %v2965_v10 = vor.u32 %v4417_v63, %v2964_v62  ;;  %v4445_v17 = vld [vmem:[%s7142_s1 + $0x114] sm:$0xf0]  ;;  %v3444_v20 = vld [vmem:[%s7142_s1 + $0x3e8] sm:$0xf] }
  0x8f   :  { %2037 = vmatpush.bf16.msra.mxu3 %v3173_v7  ;;  %v4634_v7 = vld [vmem:[%s7142_s1 + $0x704] sm:$0xf]  ;;  %v4537_v22 = vld [vmem:[%s7142_s1 + $0x3f4] sm:$0xf0]  ;;  %v3572_v23 = vld [vmem:[%s7142_s1 + $0x4e8] sm:$0xf]  ;;  %v3077_v32 = vor.u32 %v4445_v17, %v3076_v16 }
  0x90   :  { %1999 = vmatpush.bf16.msra.mxu0 %v3921_v13  ;;  %2012 = vmatpush.bf16.msra.mxu1 %v4049_v14  ;;  %v2948_v13 = vld [vmem:[%s7142_s1 + $0x8] sm:$0xf]  ;;  %v3093_v14 = vor.u32 %v4449_v4, %v3092_v3  ;;  %v3841_v21 = vor.u32 %v4634_v7, %v3838_v8  ;;  %v4569_v24 = vld [vmem:[%s7142_s1 + $0x4f4] sm:$0xf0] }
  0x91   :  { %2025 = vmatpush.bf16.msra.mxu2 %v3029_v15  ;;  %v4413_v15 = vld [vmem:[%s7142_s1 + $0x14] sm:$0xf0]  ;;  %v3573_v36 = vor.u32 %v4569_v24, %v3572_v23  ;;  %v3300_v37 = vld [vmem:[%s7142_s1 + $0x2c8] sm:$0xf] }
  0x92   :  { %v4601_v31 = vld [vmem:[%s7142_s1 + $0x5f4] sm:$0xf0]  ;;  %v3428_v39 = vld [vmem:[%s7142_s1 + $0x3c8] sm:$0xf] }
  0x93   :  { %2038 = vmatpush.bf16.msra.mxu3 %v3157_v19  ;;  %v4505_v19 = vld [vmem:[%s7142_s1 + $0x2f4] sm:$0xf0]  ;;  %v3684_v44 = vld [vmem:[%s7142_s1 + $0x5c8] sm:$0xf] }
  0x94   :  { %2000 = vmatpush.bf16.msra.mxu0 %v3905_v25  ;;  %2013 = vmatpush.bf16.msra.mxu1 %v4033_v26  ;;  %v3969_v25 = vor.u32 %v4666_v11, %v3966_v12  ;;  %v2949_v26 = vor.u32 %v4413_v15, %v2948_v13  ;;  %v3317_v33 = vor.u32 %v4505_v19, %v3316_v18  ;;  %v4501_v38 = vld [vmem:[%s7142_s1 + $0x2d4] sm:$0xf0]  ;;  %v3284_v49 = vld [vmem:[%s7142_s1 + $0x2a8] sm:$0xf] }
  0x95   :  { %2026 = vmatpush.bf16.msra.mxu2 %v3013_v30  ;;  %v3700_v30 = vld [vmem:[%s7142_s1 + $0x5e8] sm:$0xf]  ;;  %v4597_v45 = vld [vmem:[%s7142_s1 + $0x5d4] sm:$0xf0]  ;;  %v3301_v46 = vor.u32 %v4501_v38, %v3300_v37 }
  0x96   :  { %v3701_v40 = vor.u32 %v4601_v31, %v3700_v30  ;;  %v4497_v50 = vld [vmem:[%s7142_s1 + $0x2b4] sm:$0xf0]  ;;  %v3412_v51 = vld [vmem:[%s7142_s1 + $0x3a8] sm:$0xf]  ;;  %v3685_v52 = vor.u32 %v4597_v45, %v3684_v44 }
  0x97   :  { %2039 = vmatpush.bf16.msra.mxu3 %v3141_v35  ;;  %v3445_v35 = vor.u32 %v4537_v22, %v3444_v20  ;;  %v3668_v56 = vld [vmem:[%s7142_s1 + $0x5a8] sm:$0xf]  ;;  %v4593_v57 = vld [vmem:[%s7142_s1 + $0x5b4] sm:$0xf0]  ;;  %v3285_v58 = vor.u32 %v4497_v50, %v3284_v49 }
  0x98   :  { %2001 = vmatpush.bf16.msra.mxu0 %v3889_v41  ;;  %2014 = vmatpush.bf16.msra.mxu1 %v4017_v42  ;;  %v4533_v41 = vld [vmem:[%s7142_s1 + $0x3d4] sm:$0xf0]  ;;  %v3556_v42 = vld [vmem:[%s7142_s1 + $0x4c8] sm:$0xf]  ;;  %v3669_v3 = vor.u32 %v4593_v57, %v3668_v56 }
  0x99   :  { %2027 = vmatpush.bf16.msra.mxu2 %v2997_v43  ;;  %v4565_v43 = vld [vmem:[%s7142_s1 + $0x4d4] sm:$0xf0]  ;;  %v3396_v63 = vld [vmem:[%s7142_s1 + $0x388] sm:$0xf] }
  0x9a   :  { %v3557_v48 = vor.u32 %v4565_v43, %v3556_v42  ;;  %v4493_v62 = vld [vmem:[%s7142_s1 + $0x294] sm:$0xf0]  ;;  %v3652_v8 = vld [vmem:[%s7142_s1 + $0x588] sm:$0xf] }
  0x9b   :  { %2040 = vmatpush.bf16.msra.mxu3 %v3125_v47  ;;  %v3429_v47 = vor.u32 %v4533_v41, %v3428_v39  ;;  %v4525_v4 = vld [vmem:[%s7142_s1 + $0x394] sm:$0xf0]  ;;  %v3252_v13 = vld [vmem:[%s7142_s1 + $0x268] sm:$0xf] }
  0x9c   :  { %2002 = vmatpush.bf16.msra.mxu0 %v3873_v53  ;;  %2015 = vmatpush.bf16.msra.mxu1 %v4001_v54  ;;  %v4529_v53 = vld [vmem:[%s7142_s1 + $0x3b4] sm:$0xf0]  ;;  %v3540_v54 = vld [vmem:[%s7142_s1 + $0x4a8] sm:$0xf]  ;;  %v3397_v11 = vor.u32 %v4525_v4, %v3396_v63 }
  0x9d   :  { %2028 = vmatpush.bf16.msra.mxu2 %v2981_v55  ;;  %v4561_v55 = vld [vmem:[%s7142_s1 + $0x4b4] sm:$0xf0]  ;;  %v3380_v15 = vld [vmem:[%s7142_s1 + $0x368] sm:$0xf] }
  0x9e   :  { %v3541_v61 = vor.u32 %v4561_v55, %v3540_v54  ;;  %v4557_v7 = vld [vmem:[%s7142_s1 + $0x494] sm:$0xf0]  ;;  %v3508_v18 = vld [vmem:[%s7142_s1 + $0x468] sm:$0xf] }
  0x9f   :  { %2041 = vmatpush.bf16.msra.mxu3 %v3109_v59  ;;  %v3413_v59 = vor.u32 %v4529_v53, %v3412_v51  ;;  %v4521_v17 = vld [vmem:[%s7142_s1 + $0x374] sm:$0xf0]  ;;  %v3636_v20 = vld [vmem:[%s7142_s1 + $0x568] sm:$0xf] }
  0xa0   :  { %2003 = vmatpush.bf16.msra.mxu0 %v3857_v6  ;;  %2016 = vmatpush.bf16.msra.mxu1 %v3985_v9  ;;  %v3524_v6 = vld [vmem:[%s7142_s1 + $0x488] sm:$0xf]  ;;  %v4589_v9 = vld [vmem:[%s7142_s1 + $0x594] sm:$0xf0]  ;;  %v3381_v24 = vor.u32 %v4521_v17, %v3380_v15  ;;  %v4439_v17 = vld [vmem:[%s7142_s1 + $0xec] sm:$0xf] }
  0xa1   :  { %2029 = vmatpush.bf16.msra.mxu2 %v2965_v10  ;;  %v3525_v12 = vor.u32 %v4557_v7, %v3524_v6  ;;  %v3653_v16 = vor.u32 %v4589_v9, %v3652_v8  ;;  %v4553_v19 = vld [vmem:[%s7142_s1 + $0x474] sm:$0xf0]  ;;  %v3236_v23 = vld [vmem:[%s7142_s1 + $0x248] sm:$0xf] }
  0xa2   :  { %v3364_v30 = vld [vmem:[%s7142_s1 + $0x348] sm:$0xf]  ;;  %v4517_v31 = vld [vmem:[%s7142_s1 + $0x354] sm:$0xf0] }
  0xa3   :  { %2042 = vmatpush.bf16.msra.mxu3 %v3093_v14  ;;  %v4489_v14 = vld [vmem:[%s7142_s1 + $0x274] sm:$0xf0]  ;;  %v3620_v37 = vld [vmem:[%s7142_s1 + $0x548] sm:$0xf]  ;;  %v3365_v41 = vor.u32 %v4517_v31, %v3364_v30 }
  0xa4   :  { %2004 = vmatpush.bf16.msra.mxu0 %v3841_v21  ;;  %2017 = vmatpush.bf16.msra.mxu1 %v3969_v25  ;;  %v4585_v21 = vld [vmem:[%s7142_s1 + $0x574] sm:$0xf0]  ;;  %v3253_v22 = vor.u32 %v4489_v14, %v3252_v13  ;;  %v3509_v25 = vor.u32 %v4553_v19, %v3508_v18  ;;  %v3348_v44 = vld [vmem:[%s7142_s1 + $0x328] sm:$0xf]  ;;  %v3062_v18 = vld [vmem:[%s7142_s1 + $0xf8] sm:$0xf0] }
  0xa5   :  { %2030 = vmatpush.bf16.msra.mxu2 %v2949_v26  ;;  %v4485_v26 = vld [vmem:[%s7142_s1 + $0x254] sm:$0xf0]  ;;  %v3604_v50 = vld [vmem:[%s7142_s1 + $0x528] sm:$0xf] }
  0xa6   :  { %v4581_v38 = vld [vmem:[%s7142_s1 + $0x554] sm:$0xf0]  ;;  %v3237_v39 = vor.u32 %v4485_v26, %v3236_v23  ;;  %v3204_v53 = vld [vmem:[%s7142_s1 + $0x208] sm:$0xf] }
  0xa7   :  { %2043 = vmatpush.bf16.msra.mxu3 %v3077_v32  ;;  %2005 = vmatmul.bf16.vlgmr.msra.gmra.mxu0 %v5249_v1  ;;  %v3637_v32 = vor.u32 %v4585_v21, %v3636_v20  ;;  %v4481_v43 = vld [vmem:[%s7142_s1 + $0x234] sm:$0xf0]  ;;  %v3588_v4 = vld [vmem:[%s7142_s1 + $0x508] sm:$0xf] }
  0xa8   :  { %2049 = vmatpush.bf16.msrb.mxu0 %v3317_v33  ;;  %2062 = vmatpush.bf16.msrb.mxu1 %v3445_v35  ;;  %v3492_v33 = vld [vmem:[%s7142_s1 + $0x448] sm:$0xf]  ;;  %v4549_v35 = vld [vmem:[%s7142_s1 + $0x454] sm:$0xf0] }
  0xa9   :  { %2075 = vmatpush.bf16.msrb.mxu2 %v3573_v36  ;;  %2018 = vmatmul.bf16.vlgmr.msra.gmra.mxu1 %v5479_v5  ;;  %v3268_v5 = vld [vmem:[%s7142_s1 + $0x288] sm:$0xf]  ;;  %v5994_v36 = vld [vmem:[%s7143_s2] sm:$0xf]  ;;  %v3493_v42 = vor.u32 %v4549_v35, %v3492_v33  ;;  %v4545_v49 = vld [vmem:[%s7142_s1 + $0x434] sm:$0xf0] }
  0xaa   :  { %2031 = vmatmul.bf16.vlgmr.msra.gmra.mxu2 %v5169_v28  ;;  %2044 = vmatmul.bf16.vlgmr.msra.gmra.mxu3 %v5179_v34  ;;  %v3269_v10 = vor.u32 %v4493_v62, %v3268_v5  ;;  %v319_v45 = vperm.slane %v5994_v36, 0  ;;  %v4577_v51 = vld [vmem:[%s7142_s1 + $0x534] sm:$0xf0]  ;;  %v3828_v7 = vld [vmem:[%s7142_s1 + $0x6e8] sm:$0xf] }
  0xab   :  { %2088 = vmatpush.bf16.msrb.mxu3 %v3701_v40  ;;  %v3220_v40 = vld [vmem:[%s7142_s1 + $0x228] sm:$0xf]  ;;  %v4477_v54 = vld [vmem:[%s7142_s1 + $0x214] sm:$0xf0]  ;;  %v3605_v63 = vor.u32 %v4577_v51, %v3604_v50 }
  0xac   :  { %2050 = vmatpush.bf16.msrb.mxu0 %v3301_v46  ;;  %2063 = vmatpush.bf16.msrb.mxu1 %v3429_v47  ;;  %v3621_v46 = vor.u32 %v4581_v38, %v3620_v37  ;;  %v4513_v47 = vld [vmem:[%s7142_s1 + $0x334] sm:$0xf0]  ;;  %v3956_v9 = vld [vmem:[%s7142_s1 + $0x7e8] sm:$0xf] }
  0xad   :  { %2076 = vmatpush.bf16.msrb.mxu2 %v3557_v48  ;;  %v3476_v48 = vld [vmem:[%s7142_s1 + $0x428] sm:$0xf]  ;;  %v3349_v56 = vor.u32 %v4513_v47, %v3348_v44  ;;  %v4573_v6 = vld [vmem:[%s7142_s1 + $0x514] sm:$0xf0] }
  0xae   :  { %v3477_v57 = vor.u32 %v4545_v49, %v3476_v48  ;;  %v4633_v8 = vld [vmem:[%s7142_s1 + $0x6f4] sm:$0xf0]  ;;  %v4084_v13 = vld [vmem:[%s7142_s1 + $0x8e8] sm:$0xf]  ;;  %v3589_v20 = vor.u32 %v4573_v6, %v3588_v4 }
  0xaf   :  { %2089 = vmatpush.bf16.msrb.mxu3 %v3685_v52  ;;  %v3221_v52 = vor.u32 %v4481_v43, %v3220_v40  ;;  %v4697_v14 = vld [vmem:[%s7142_s1 + $0x8f4] sm:$0xf0]  ;;  %v3829_v21 = vor.u32 %v4633_v8, %v3828_v7  ;;  %v3812_v26 = vld [vmem:[%s7142_s1 + $0x6c8] sm:$0xf]  ;;  %v4435_v40 = vld [vmem:[%s7142_s1 + $0xcc] sm:$0xf] }
  0xb0   :  { %2051 = vmatpush.bf16.msrb.mxu0 %v3285_v58  ;;  %2064 = vmatpush.bf16.msrb.mxu1 %v3413_v59  ;;  %v3332_v58 = vld [vmem:[%s7142_s1 + $0x308] sm:$0xf]  ;;  %v4509_v59 = vld [vmem:[%s7142_s1 + $0x314] sm:$0xf0]  ;;  %v4427_v7 = vld [vmem:[%s7142_s1 + $0x8c] sm:$0xf] }
  0xb1   :  { %2077 = vmatpush.bf16.msrb.mxu2 %v3541_v61  ;;  %v3460_v61 = vld [vmem:[%s7142_s1 + $0x408] sm:$0xf]  ;;  %v3333_v15 = vor.u32 %v4509_v59, %v3332_v58  ;;  %v4629_v30 = vld [vmem:[%s7142_s1 + $0x6d4] sm:$0xf0]  ;;  %v3014_v8 = vld [vmem:[%s7142_s1 + $0x98] sm:$0xf0] }
  0xb2   :  { %v3940_v31 = vld [vmem:[%s7142_s1 + $0x7c8] sm:$0xf]  ;;  %v4661_v33 = vld [vmem:[%s7142_s1 + $0x7d4] sm:$0xf0]  ;;  %v3813_v43 = vor.u32 %v4629_v30, %v3812_v26 }
  0xb3   :  { %2090 = vmatpush.bf16.msrb.mxu3 %v3669_v3  ;;  %v4541_v3 = vld [vmem:[%s7142_s1 + $0x414] sm:$0xf0]  ;;  %v4068_v35 = vld [vmem:[%s7142_s1 + $0x8c8] sm:$0xf]  ;;  %v3941_v44 = vor.u32 %v4661_v33, %v3940_v31 }
  0xb4   :  { %2052 = vmatpush.bf16.msrb.mxu0 %v3269_v10  ;;  %2065 = vmatpush.bf16.msrb.mxu1 %v3397_v11  ;;  %v1811_v62 = vpop.f32.mrf.mxu1  ;;  %v3205_v11 = vor.u32 %v4477_v54, %v3204_v53  ;;  %v4693_v37 = vld [vmem:[%s7142_s1 + $0x8d4] sm:$0xf0]  ;;  %v3924_v48 = vld [vmem:[%s7142_s1 + $0x7a8] sm:$0xf]  ;;  %v4431_v53 = vld [vmem:[%s7142_s1 + $0xac] sm:$0xf] }
  0xb5   :  { %2078 = vmatpush.bf16.msrb.mxu2 %v3525_v12  ;;  %v1798_v55 = vpop.f32.mrf.mxu0  ;;  %v4665_v12 = vld [vmem:[%s7142_s1 + $0x7f4] sm:$0xf0]  ;;  %v4052_v51 = vld [vmem:[%s7142_s1 + $0x8a8] sm:$0xf]  ;;  %v3030_v54 = vld [vmem:[%s7142_s1 + $0xb8] sm:$0xf0] }
  0xb6   :  { %v1799_v5 = vadd.f32 %v1798_v55, %v319_v45  ;;  %v4069_v45 = vor.u32 %v4693_v37, %v4068_v35  ;;  %v4625_v47 = vld [vmem:[%s7142_s1 + $0x6b4] sm:$0xf0]  ;;  %v4036_v4 = vld [vmem:[%s7142_s1 + $0x888] sm:$0xf] }
  0xb7   :  { %2091 = vmatpush.bf16.msrb.mxu3 %v3653_v16  ;;  %v3461_v16 = vor.u32 %v4541_v3, %v3460_v61  ;;  %v4657_v50 = vld [vmem:[%s7142_s1 + $0x7b4] sm:$0xf0]  ;;  %v3780_v61 = vld [vmem:[%s7142_s1 + $0x688] sm:$0xf] }
  0xb8   :  { %2053 = vmatpush.bf16.msrb.mxu0 %v3253_v22  ;;  %2066 = vmatpush.bf16.msrb.mxu1 %v3381_v24  ;;  %v1812_v10 = vadd.f32 %v1811_v62, %v1799_v5  ;;  %v3957_v24 = vor.u32 %v4665_v12, %v3956_v9  ;;  %v3925_v58 = vor.u32 %v4657_v50, %v3924_v48  ;;  %v4621_v5 = vld [vmem:[%s7142_s1 + $0x694] sm:$0xf0]  ;;  %v3908_v62 = vld [vmem:[%s7142_s1 + $0x788] sm:$0xf] }
  0xb9   :  { %2079 = vmatpush.bf16.msrb.mxu2 %v3509_v25  ;;  %v4085_v25 = vor.u32 %v4697_v14, %v4084_v13  ;;  %v4653_v3 = vld [vmem:[%s7142_s1 + $0x794] sm:$0xf0]  ;;  %v3781_v9 = vor.u32 %v4621_v5, %v3780_v61  ;;  %v3764_v13 = vld [vmem:[%s7142_s1 + $0x668] sm:$0xf] }
  0xba   :  { %v1824_v19 = vpop.f32.mrf.mxu2  ;;  %v4685_v6 = vld [vmem:[%s7142_s1 + $0x894] sm:$0xf0]  ;;  %v3748_v31 = vld [vmem:[%s7142_s1 + $0x648] sm:$0xf] }
  0xbb   :  { %2092 = vmatpush.bf16.msrb.mxu3 %v3637_v32  ;;  %v1825_v22 = vadd.f32 %v1824_v19, %v1812_v10  ;;  %v3065_v32 = vor.u32 %v4439_v17, %v3062_v18  ;;  %v4037_v12 = vor.u32 %v4685_v6, %v4036_v4  ;;  %v4617_v14 = vld [vmem:[%s7142_s1 + $0x674] sm:$0xf0]  ;;  %v3017_v18 = vor.u32 %v4427_v7, %v3014_v8  ;;  %v3876_v33 = vld [vmem:[%s7142_s1 + $0x748] sm:$0xf] }
  0xbc   :  { %2054 = vmatpush.bf16.msrb.mxu0 %v3237_v39  ;;  %2067 = vmatpush.bf16.msrb.mxu1 %v3365_v41  ;;  %v1837_v23 = vpop.f32.mrf.mxu3  ;;  %v3046_v41 = vld [vmem:[%s7142_s1 + $0xd8] sm:$0xf0]  ;;  %v4649_v19 = vld [vmem:[%s7142_s1 + $0x774] sm:$0xf0]  ;;  %v3732_v50 = vld [vmem:[%s7142_s1 + $0x628] sm:$0xf] }
  0xbd   :  { %2080 = vmatpush.bf16.msrb.mxu2 %v3493_v42  ;;  %v1838_v38 = vadd.f32 %v1837_v23, %v1825_v22  ;;  %v1800_v39 = vpop.f32.mrf.mxu0  ;;  %v1813_v42 = vpop.f32.mrf.mxu1  ;;  %v3049_v49 = vor.u32 %v4435_v40, %v3046_v41  ;;  %v4423_v22 = vld [vmem:[%s7142_s1 + $0x6c] sm:$0xf]  ;;  %v2998_v23 = vld [vmem:[%s7142_s1 + $0x78] sm:$0xf0]  ;;  %v4677_v40 = vld [vmem:[%s7142_s1 + $0x854] sm:$0xf0] }
  0xbe   :  { %v3001_v37 = vor.u32 %v4423_v22, %v2998_v23  ;;  %v4004_v39 = vld [vmem:[%s7142_s1 + $0x848] sm:$0xf]  ;;  %v4637_v6 = vld [vmem:[%s7142_s1 + $0x714] sm:$0xf0]  ;;  %v4567_v23 = vld [vmem:[%s7142_s1 + $0x4ec] sm:$0xf] }
  0xbf   :  { %2093 = vmatpush.bf16.msrb.mxu3 %v3621_v46  ;;  %v3796_v46 = vld [vmem:[%s7142_s1 + $0x6a8] sm:$0xf] }
  0xc0   :  { %2055 = vmatpush.bf16.msrb.mxu0 %v3221_v52  ;;  %2068 = vmatpush.bf16.msrb.mxu1 %v3349_v56  ;;  %v4689_v52 = vld [vmem:[%s7142_s1 + $0x8b4] sm:$0xf0]  ;;  %v3797_v56 = vor.u32 %v4625_v47, %v3796_v46  ;;  %v3716_v5 = vld [vmem:[%s7142_s1 + $0x608] sm:$0xf] }
  0xc1   :  { %2081 = vmatpush.bf16.msrb.mxu2 %v3477_v57  ;;  %v4053_v59 = vor.u32 %v4689_v52, %v4052_v51  ;;  %v4609_v51 = vld [vmem:[%s7142_s1 + $0x634] sm:$0xf0]  ;;  %v3860_v52 = vld [vmem:[%s7142_s1 + $0x728] sm:$0xf] }
  0xc2   :  { %v1826_v55 = vpop.f32.mrf.mxu2  ;;  %v3733_v61 = vor.u32 %v4609_v51, %v3732_v50  ;;  %v3844_v4 = vld [vmem:[%s7142_s1 + $0x708] sm:$0xf]  ;;  %v3286_v51 = vld [vmem:[%s7142_s1 + $0x2b8] sm:$0xf0] }
  0xc3   :  { %2094 = vmatpush.bf16.msrb.mxu3 %v3605_v63  ;;  %v3033_v63 = vor.u32 %v4431_v53, %v3030_v54  ;;  %v4641_v55 = vld [vmem:[%s7142_s1 + $0x734] sm:$0xf0]  ;;  %v3972_v7 = vld [vmem:[%s7142_s1 + $0x808] sm:$0xf] }
  0xc4   :  { %2056 = vmatpush.bf16.msrb.mxu0 %v3205_v11  ;;  %2069 = vmatpush.bf16.msrb.mxu1 %v3333_v15  ;;  %v1839_v57 = vpop.f32.mrf.mxu3  ;;  %v3909_v11 = vor.u32 %v4653_v3, %v3908_v62  ;;  %v3892_v15 = vld [vmem:[%s7142_s1 + $0x768] sm:$0xf]  ;;  %v4605_v62 = vld [vmem:[%s7142_s1 + $0x614] sm:$0xf0] }
  0xc5   :  { %2082 = vmatpush.bf16.msrb.mxu2 %v3461_v16  ;;  %v1863_v17 = vpop.f32.mrf.mxu1  ;;  %v3893_v26 = vor.u32 %v4649_v19, %v3892_v15  ;;  %v4673_v57 = vld [vmem:[%s7142_s1 + $0x834] sm:$0xf0]  ;;  %v3190_v15 = vld [vmem:[%s7142_s1 + $0x1f8] sm:$0xf0]  ;;  %v4535_v19 = vld [vmem:[%s7142_s1 + $0x3ec] sm:$0xf] }
  0xc6   :  { %v1850_v10 = vpop.f32.mrf.mxu0 }
  0xc7   :  { %2095 = vmatpush.bf16.msrb.mxu3 %v3589_v20  ;;  %2057 = vmatmul.bf16.vlgmr.msrb.gmra.mxu0 %v5167_v27  ;;  %v1851_v16 = vadd.f32 %v1850_v10, %v1838_v38  ;;  %v4020_v20 = vld [vmem:[%s7142_s1 + $0x868] sm:$0xf]  ;;  %v4645_v38 = vld [vmem:[%s7142_s1 + $0x754] sm:$0xf0] }
  0xc8   :  { %2101 = vmatpush.bf16.msra.mxu0 %v3829_v21  ;;  %2114 = vmatpush.bf16.msra.mxu1 %v3957_v24  ;;  %v4681_v21 = vld [vmem:[%s7142_s1 + $0x874] sm:$0xf0]  ;;  %v3877_v48 = vor.u32 %v4645_v38, %v3876_v33  ;;  %v3174_v33 = vld [vmem:[%s7142_s1 + $0x1d8] sm:$0xf0] }
  0xc9   :  { %2127 = vmatpush.bf16.msra.mxu2 %v4085_v25  ;;  %2070 = vmatmul.bf16.vlgmr.msrb.gmra.mxu1 %v5171_v29  ;;  %v1864_v24 = vadd.f32 %v1863_v17, %v1851_v16  ;;  %v3765_v25 = vor.u32 %v4617_v14, %v3764_v13  ;;  %v4021_v30 = vor.u32 %v4681_v21, %v4020_v20  ;;  %v4669_v10 = vld [vmem:[%s7142_s1 + $0x814] sm:$0xf0]  ;;  %v4471_v14 = vld [vmem:[%s7142_s1 + $0x1ec] sm:$0xf]  ;;  %v3446_v20 = vld [vmem:[%s7142_s1 + $0x3f8] sm:$0xf0] }
  0xca   :  { %2083 = vmatmul.bf16.vlgmr.msrb.gmra.mxu2 %v5247_v0  ;;  %2096 = vmatmul.bf16.vlgmr.msrb.gmra.mxu3 %v5251_v2  ;;  %v4503_v16 = vld [vmem:[%s7142_s1 + $0x2ec] sm:$0xf]  ;;  %v3717_v17 = vor.u32 %v4605_v62, %v3716_v5  ;;  %v3845_v21 = vor.u32 %v4637_v6, %v3844_v4  ;;  %v3973_v22 = vor.u32 %v4669_v10, %v3972_v7  ;;  %v3302_v38 = vld [vmem:[%s7142_s1 + $0x2d8] sm:$0xf0] }
  0xcb   :  { %2140 = vmatpush.bf16.msra.mxu3 %v3065_v32  ;;  %v4613_v32 = vld [vmem:[%s7142_s1 + $0x654] sm:$0xf0]  ;;  %v3142_v5 = vld [vmem:[%s7142_s1 + $0x198] sm:$0xf0]  ;;  %v4491_v62 = vld [vmem:[%s7142_s1 + $0x28c] sm:$0xf] }
  0xcc   :  { %2102 = vmatpush.bf16.msra.mxu0 %v3813_v43  ;;  %2115 = vmatpush.bf16.msra.mxu1 %v3941_v44  ;;  %v4419_v43 = vld [vmem:[%s7142_s1 + $0x4c] sm:$0xf]  ;;  %v2982_v44 = vld [vmem:[%s7142_s1 + $0x58] sm:$0xf0] }
  0xcd   :  { %2128 = vmatpush.bf16.msra.mxu2 %v4069_v45  ;;  %v1876_v35 = vpop.f32.mrf.mxu2  ;;  %v1889_v42 = vpop.f32.mrf.mxu3  ;;  %v3749_v45 = vor.u32 %v4613_v32, %v3748_v31  ;;  %v2985_v54 = vor.u32 %v4419_v43, %v2982_v44  ;;  %v3449_v31 = vor.u32 %v4535_v19, %v3446_v20  ;;  %v4467_v32 = vld [vmem:[%s7142_s1 + $0x1cc] sm:$0xf]  ;;  %v3398_v4 = vld [vmem:[%s7142_s1 + $0x398] sm:$0xf0] }
  0xce   :  { %v1877_v41 = vadd.f32 %v1876_v35, %v1864_v24  ;;  %v1852_v47 = vpop.f32.mrf.mxu0  ;;  %v1865_v53 = vpop.f32.mrf.mxu1  ;;  %v3574_v24 = vld [vmem:[%s7142_s1 + $0x4f8] sm:$0xf0]  ;;  %v4499_v35 = vld [vmem:[%s7142_s1 + $0x2cc] sm:$0xf]  ;;  %v3177_v43 = vor.u32 %v4467_v32, %v3174_v33 }
  0xcf   :  { %2141 = vmatpush.bf16.msra.mxu3 %v3049_v49  ;;  %v4005_v49 = vor.u32 %v4677_v40, %v4004_v39  ;;  %v4531_v39 = vld [vmem:[%s7142_s1 + $0x3cc] sm:$0xf]  ;;  %v3430_v40 = vld [vmem:[%s7142_s1 + $0x3d8] sm:$0xf0]  ;;  %v3305_v44 = vor.u32 %v4499_v35, %v3302_v38 }
  0xd0   :  { %2103 = vmatpush.bf16.msra.mxu0 %v3797_v56  ;;  %2116 = vmatpush.bf16.msra.mxu1 %v3925_v58  ;;  %v6199_v46 = vadd.f32 %v1889_v42, %v1877_v41  ;;  %v3988_v56 = vld [vmem:[%s7142_s1 + $0x828] sm:$0xf]  ;;  %v4415_v58 = vld [vmem:[%s7142_s1 + $0x2c] sm:$0xf]  ;;  %v3558_v42 = vld [vmem:[%s7142_s1 + $0x4d8] sm:$0xf0] }
  0xd1   :  { %2129 = vmatpush.bf16.msra.mxu2 %v4053_v59  ;;  %v2966_v59 = vld [vmem:[%s7142_s1 + $0x38] sm:$0xf0]  ;;  %v3989_v3 = vor.u32 %v4673_v57, %v3988_v56  ;;  %v4563_v41 = vld [vmem:[%s7142_s1 + $0x4cc] sm:$0xf] }
  0xd2   :  { %v4463_v47 = vld [vmem:[%s7142_s1 + $0x1ac] sm:$0xf]  ;;  %v3561_v50 = vor.u32 %v4563_v41, %v3558_v42  ;;  %v3414_v53 = vld [vmem:[%s7142_s1 + $0x3b8] sm:$0xf0] }
  0xd3   :  { %2142 = vmatpush.bf16.msra.mxu3 %v3033_v63  ;;  %v3861_v63 = vor.u32 %v4641_v55, %v3860_v52  ;;  %v4527_v52 = vld [vmem:[%s7142_s1 + $0x3ac] sm:$0xf]  ;;  %v3542_v56 = vld [vmem:[%s7142_s1 + $0x4b8] sm:$0xf0] }
  0xd4   :  { %2104 = vmatpush.bf16.msra.mxu0 %v3781_v9  ;;  %2117 = vmatpush.bf16.msra.mxu1 %v3909_v11  ;;  %v2969_v9 = vor.u32 %v4415_v58, %v2966_v59  ;;  %v4411_v11 = vld [vmem:[%s7142_s1 + $0xc] sm:$0xf]  ;;  %v3417_v59 = vor.u32 %v4527_v52, %v3414_v53  ;;  %v3382_v19 = vld [vmem:[%s7142_s1 + $0x378] sm:$0xf0] }
  0xd5   :  { %2130 = vmatpush.bf16.msra.mxu2 %v4037_v12  ;;  %v1878_v8 = vpop.f32.mrf.mxu2  ;;  %v2950_v12 = vld [vmem:[%s7142_s1 + $0x18] sm:$0xf0]  ;;  %v1891_v13 = vpop.f32.mrf.mxu3  ;;  %v4559_v55 = vld [vmem:[%s7142_s1 + $0x4ac] sm:$0xf] }
  0xd6   :  { %v4555_v7 = vld [vmem:[%s7142_s1 + $0x48c] sm:$0xf]  ;;  %v3526_v8 = vld [vmem:[%s7142_s1 + $0x498] sm:$0xf0] }
  0xd7   :  { %2143 = vmatpush.bf16.msra.mxu3 %v3017_v18  ;;  %v3318_v18 = vld [vmem:[%s7142_s1 + $0x2f8] sm:$0xf0]  ;;  %v4455_v13 = vld [vmem:[%s7142_s1 + $0x16c] sm:$0xf] }
  0xd8   :  { %2105 = vmatpush.bf16.msra.mxu0 %v3765_v25  ;;  %2118 = vmatpush.bf16.msra.mxu1 %v3893_v26  ;;  %v2953_v25 = vor.u32 %v4411_v11, %v2950_v12  ;;  %v3193_v26 = vor.u32 %v4471_v14, %v3190_v15  ;;  %v3126_v14 = vld [vmem:[%s7142_s1 + $0x178] sm:$0xf0]  ;;  %v4487_v15 = vld [vmem:[%s7142_s1 + $0x26c] sm:$0xf] }
  0xd9   :  { %2131 = vmatpush.bf16.msra.mxu2 %v4021_v30  ;;  %v3321_v30 = vor.u32 %v4503_v16, %v3318_v18  ;;  %v4519_v18 = vld [vmem:[%s7142_s1 + $0x36c] sm:$0xf]  ;;  %v3238_v32 = vld [vmem:[%s7142_s1 + $0x258] sm:$0xf0] }
  0xda   :  { %v4551_v20 = vld [vmem:[%s7142_s1 + $0x46c] sm:$0xf]  ;;  %v3366_v35 = vld [vmem:[%s7142_s1 + $0x358] sm:$0xf0] }
  0xdb   :  { %2144 = vmatpush.bf16.msra.mxu3 %v3001_v37  ;;  %v3577_v37 = vor.u32 %v4567_v23, %v3574_v24  ;;  %v3385_v24 = vor.u32 %v4519_v18, %v3382_v19  ;;  %v4515_v33 = vld [vmem:[%s7142_s1 + $0x34c] sm:$0xf]  ;;  %v3350_v53 = vld [vmem:[%s7142_s1 + $0x338] sm:$0xf0] }
  0xdc   :  { %2106 = vmatpush.bf16.msra.mxu0 %v3749_v45  ;;  %2119 = vmatpush.bf16.msra.mxu1 %v3877_v48  ;;  %v3433_v45 = vor.u32 %v4531_v39, %v3430_v40  ;;  %v3158_v48 = vld [vmem:[%s7142_s1 + $0x1b8] sm:$0xf0]  ;;  %v4547_v39 = vld [vmem:[%s7142_s1 + $0x44c] sm:$0xf] }
  0xdd   :  { %2132 = vmatpush.bf16.msra.mxu2 %v4005_v49  ;;  %v4495_v49 = vld [vmem:[%s7142_s1 + $0x2ac] sm:$0xf]  ;;  %v3161_v57 = vor.u32 %v4463_v47, %v3158_v48  ;;  %v3494_v40 = vld [vmem:[%s7142_s1 + $0x458] sm:$0xf0] }
  0xde   :  { %v3289_v58 = vor.u32 %v4495_v49, %v3286_v51  ;;  %v3094_v47 = vld [vmem:[%s7142_s1 + $0x138] sm:$0xf0]  ;;  %v4479_v48 = vld [vmem:[%s7142_s1 + $0x22c] sm:$0xf] }
  0xdf   :  { %2145 = vmatpush.bf16.msra.mxu3 %v2985_v54  ;;  %v6316_v54 = vld [vmem:[#allocation1] sm:$0xff]  ;;  %v3222_v51 = vld [vmem:[%s7142_s1 + $0x238] sm:$0xf0]  ;;  %v4511_v52 = vld [vmem:[%s7142_s1 + $0x32c] sm:$0xf] }
  0xe0   :  { %2107 = vmatpush.bf16.msra.mxu0 %v3733_v61  ;;  %2120 = vmatpush.bf16.msra.mxu1 %v3861_v63  ;;  %v4459_v61 = vld [vmem:[%s7142_s1 + $0x18c] sm:$0xf]  ;;  %v3545_v63 = vor.u32 %v4559_v55, %v3542_v56  ;;  %v3478_v56 = vld [vmem:[%s7142_s1 + $0x438] sm:$0xf0] }
  0xe1   :  { %2133 = vmatpush.bf16.msra.mxu2 %v3989_v3  ;;  %v4523_v3 = vld [vmem:[%s7142_s1 + $0x38c] sm:$0xf]  ;;  %v3145_v10 = vor.u32 %v4459_v61, %v3142_v5  ;;  %v3225_v61 = vor.u32 %v4479_v48, %v3222_v51  ;;  %v3353_v5 = vor.u32 %v4511_v52, %v3350_v53  ;;  %v3926_v52 = vld [vmem:[%s7142_s1 + $0x7b8] sm:$0xf0] }
  0xe2   :  { %v3401_v12 = vor.u32 %v4523_v3, %v3398_v4  ;;  %v4543_v55 = vld [vmem:[%s7142_s1 + $0x42c] sm:$0xf]  ;;  %v3334_v4 = vld [vmem:[%s7142_s1 + $0x318] sm:$0xf0] }
  0xe3   :  { %2146 = vmatpush.bf16.msra.mxu3 %v2969_v9  ;;  %v3481_v3 = vor.u32 %v4543_v55, %v3478_v56  ;;  %v4623_v48 = vld [vmem:[%s7142_s1 + $0x6ac] sm:$0xf] }
  0xe4   :  { %2108 = vmatpush.bf16.msra.mxu0 %v3717_v17  ;;  %2121 = vmatpush.bf16.msra.mxu1 %v3845_v21  ;;  %v1902_v6 = vpop.f32.mrf.mxu0  ;;  %v3254_v17 = vld [vmem:[%s7142_s1 + $0x278] sm:$0xf0]  ;;  %v4655_v51 = vld [vmem:[%s7142_s1 + $0x7ac] sm:$0xf] }
  0xe5   :  { %2134 = vmatpush.bf16.msra.mxu2 %v3973_v22  ;;  %v6352_v9 = vadd.f32 %v1902_v6, %v6199_v46  ;;  %v3529_v46 = vor.u32 %v4555_v7, %v3526_v8  ;;  %v3510_v21 = vld [vmem:[%s7142_s1 + $0x478] sm:$0xf0]  ;;  %v3129_v22 = vor.u32 %v4455_v13, %v3126_v14  ;;  %v3257_v23 = vor.u32 %v4487_v15, %v3254_v17  ;;  %v4539_v6 = vld [vmem:[%s7142_s1 + $0x40c] sm:$0xf] }
  0xe6   :  { %v6363_v16 = vpop.f32.mrf.mxu1  ;;  %v3462_v7 = vld [vmem:[%s7142_s1 + $0x418] sm:$0xf0]  ;;  %v4631_v13 = vld [vmem:[%s7142_s1 + $0x6ec] sm:$0xf] }
  0xe7   :  { %2147 = vmatpush.bf16.msra.mxu3 %v2953_v25  ;;  %2109 = vmatmul.bf16.vlgmr.msra.gmra.mxu0 %v5242_v60  ;;  %v4451_v25 = vld [vmem:[%s7142_s1 + $0x14c] sm:$0xf]  ;;  %v3830_v15 = vld [vmem:[%s7142_s1 + $0x6f8] sm:$0xf0] }
  0xe8   :  { %2153 = vmatpush.bf16.msrb.mxu0 %v3193_v26  ;;  %2166 = vmatpush.bf16.msrb.mxu1 %v3321_v30  ;;  %v3110_v26 = vld [vmem:[%s7142_s1 + $0x158] sm:$0xf0]  ;;  %v4483_v30 = vld [vmem:[%s7142_s1 + $0x24c] sm:$0xf] }
  0xe9   :  { %2179 = vmatpush.bf16.msrb.mxu2 %v3449_v31  ;;  %2122 = vmatmul.bf16.vlgmr.msra.gmra.mxu1 %v5249_v1  ;;  %v3513_v31 = vor.u32 %v4551_v20, %v3510_v21  ;;  %v3113_v42 = vor.u32 %v4451_v25, %v3110_v26  ;;  %v3958_v17 = vld [vmem:[%s7142_s1 + $0x7f8] sm:$0xf0]  ;;  %v4695_v20 = vld [vmem:[%s7142_s1 + $0x8ec] sm:$0xf] }
  0xea   :  { %2135 = vmatmul.bf16.vlgmr.msra.gmra.mxu2 %v6316_v54  ;;  %2148 = vmatmul.bf16.vlgmr.msra.gmra.mxu3 %v5169_v28  ;;  %v3270_v28 = vld [vmem:[%s7142_s1 + $0x298] sm:$0xf0]  ;;  %v4595_v26 = vld [vmem:[%s7142_s1 + $0x5cc] sm:$0xf] }
  0xeb   :  { %2192 = vmatpush.bf16.msrb.mxu3 %v3577_v37  ;;  %v3273_v11 = vor.u32 %v4491_v62, %v3270_v28  ;;  %v4475_v62 = vld [vmem:[%s7142_s1 + $0x20c] sm:$0xf]  ;;  %v4086_v21 = vld [vmem:[%s7142_s1 + $0x8f8] sm:$0xf0] }
  0xec   :  { %2154 = vmatpush.bf16.msrb.mxu0 %v3177_v43  ;;  %2167 = vmatpush.bf16.msrb.mxu1 %v3305_v44  ;;  %v1904_v41 = vpop.f32.mrf.mxu0  ;;  %v3241_v43 = vor.u32 %v4483_v30, %v3238_v32  ;;  %v3369_v44 = vor.u32 %v4515_v33, %v3366_v35  ;;  %v4507_v28 = vld [vmem:[%s7142_s1 + $0x30c] sm:$0xf]  ;;  %v3686_v30 = vld [vmem:[%s7142_s1 + $0x5d8] sm:$0xf0]  ;;  %v4089_v32 = vor.u32 %v4695_v20, %v4086_v21 }
  0xed   :  { %2180 = vmatpush.bf16.msrb.mxu2 %v3433_v45  ;;  %v6398_v37 = vpop.f32.mrf.mxu2  ;;  %v6400_v38 = vpop.f32.mrf.mxu3  ;;  %v4447_v45 = vld [vmem:[%s7142_s1 + $0x12c] sm:$0xf]  ;;  %v3337_v19 = vor.u32 %v4507_v28, %v3334_v4  ;;  %v3814_v33 = vld [vmem:[%s7142_s1 + $0x6d8] sm:$0xf0] }
  0xee   :  { %v1917_v49 = vpop.f32.mrf.mxu1  ;;  %v4659_v35 = vld [vmem:[%s7142_s1 + $0x7cc] sm:$0xf]  ;;  %v4070_v41 = vld [vmem:[%s7142_s1 + $0x8d8] sm:$0xf0] }
  0xef   :  { %2193 = vmatpush.bf16.msrb.mxu3 %v3561_v50  ;;  %v3497_v50 = vor.u32 %v4547_v39, %v3494_v40  ;;  %v3942_v39 = vld [vmem:[%s7142_s1 + $0x7d8] sm:$0xf0]  ;;  %v4691_v40 = vld [vmem:[%s7142_s1 + $0x8cc] sm:$0xf] }
  0xf0   :  { %2155 = vmatpush.bf16.msrb.mxu0 %v3161_v57  ;;  %2168 = vmatpush.bf16.msrb.mxu1 %v3289_v58  ;;  %v3097_v57 = vor.u32 %v4447_v45, %v3094_v47  ;;  %v4443_v58 = vld [vmem:[%s7142_s1 + $0x10c] sm:$0xf]  ;;  %v3670_v47 = vld [vmem:[%s7142_s1 + $0x5b8] sm:$0xf0]  ;;  %v4073_v49 = vor.u32 %v4691_v40, %v4070_v41 }
  0xf1   :  { %2181 = vmatpush.bf16.msrb.mxu2 %v3417_v59  ;;  %v3078_v59 = vld [vmem:[%s7142_s1 + $0x118] sm:$0xf0]  ;;  %v4591_v45 = vld [vmem:[%s7142_s1 + $0x5ac] sm:$0xf] }
  0xf2   :  { %v3081_v14 = vor.u32 %v4443_v58, %v3078_v59  ;;  %v4687_v53 = vld [vmem:[%s7142_s1 + $0x8ac] sm:$0xf]  ;;  %v3673_v55 = vor.u32 %v4591_v45, %v3670_v47  ;;  %v3654_v59 = vld [vmem:[%s7142_s1 + $0x598] sm:$0xf0] }
  0xf3   :  { %2194 = vmatpush.bf16.msrb.mxu3 %v3545_v63  ;;  %v3206_v63 = vld [vmem:[%s7142_s1 + $0x218] sm:$0xf0]  ;;  %v4587_v58 = vld [vmem:[%s7142_s1 + $0x58c] sm:$0xf] }
  0xf4   :  { %2156 = vmatpush.bf16.msrb.mxu0 %v3145_v10  ;;  %2169 = vmatpush.bf16.msrb.mxu1 %v3273_v11  ;;  %v4599_v11 = vld [vmem:[%s7142_s1 + $0x5ec] sm:$0xf]  ;;  %v3209_v18 = vor.u32 %v4475_v62, %v3206_v63  ;;  %v4038_v63 = vld [vmem:[%s7142_s1 + $0x898] sm:$0xf0]  ;;  %v3657_v28 = vor.u32 %v4587_v58, %v3654_v59 }
  0xf5   :  { %2182 = vmatpush.bf16.msrb.mxu2 %v3401_v12  ;;  %v1930_v8 = vpop.f32.mrf.mxu2  ;;  %v1943_v10 = vpop.f32.mrf.mxu3  ;;  %v3702_v12 = vld [vmem:[%s7142_s1 + $0x5f8] sm:$0xf0]  ;;  %v4683_v62 = vld [vmem:[%s7142_s1 + $0x88c] sm:$0xf] }
  0xf6   :  { %v3638_v8 = vld [vmem:[%s7142_s1 + $0x578] sm:$0xf0]  ;;  %v4615_v10 = vld [vmem:[%s7142_s1 + $0x66c] sm:$0xf] }
  0xf7   :  { %2195 = vmatpush.bf16.msrb.mxu3 %v3529_v46  ;;  %v4663_v46 = vld [vmem:[%s7142_s1 + $0x7ec] sm:$0xf]  ;;  %v3606_v45 = vld [vmem:[%s7142_s1 + $0x538] sm:$0xf0] }
  0xf8   :  { %2157 = vmatpush.bf16.msrb.mxu0 %v3129_v22  ;;  %2170 = vmatpush.bf16.msrb.mxu1 %v3257_v23  ;;  %v3465_v22 = vor.u32 %v4539_v6, %v3462_v7  ;;  %v3705_v23 = vor.u32 %v4599_v11, %v3702_v12  ;;  %v3961_v25 = vor.u32 %v4663_v46, %v3958_v17  ;;  %v4583_v7 = vld [vmem:[%s7142_s1 + $0x56c] sm:$0xf]  ;;  %v4022_v17 = vld [vmem:[%s7142_s1 + $0x878] sm:$0xf0] }
  0xf9   :  { %2183 = vmatpush.bf16.msrb.mxu2 %v3385_v24  ;;  %v3833_v24 = vor.u32 %v4631_v13, %v3830_v15  ;;  %v4041_v12 = vor.u32 %v4683_v62, %v4038_v63  ;;  %v3766_v13 = vld [vmem:[%s7142_s1 + $0x678] sm:$0xf0]  ;;  %v4679_v46 = vld [vmem:[%s7142_s1 + $0x86c] sm:$0xf] }
  0xfa   :  { %v3894_v15 = vld [vmem:[%s7142_s1 + $0x778] sm:$0xf0]  ;;  %v4579_v21 = vld [vmem:[%s7142_s1 + $0x54c] sm:$0xf] }
  0xfb   :  { %2196 = vmatpush.bf16.msrb.mxu3 %v3513_v31  ;;  %v4627_v31 = vld [vmem:[%s7142_s1 + $0x6cc] sm:$0xf]  ;;  %v3590_v58 = vld [vmem:[%s7142_s1 + $0x518] sm:$0xf0] }
  0xfc   :  { %2158 = vmatpush.bf16.msrb.mxu0 %v3113_v42  ;;  %2171 = vmatpush.bf16.msrb.mxu1 %v3241_v43  ;;  %v3689_v42 = vor.u32 %v4595_v26, %v3686_v30  ;;  %v3817_v43 = vor.u32 %v4627_v31, %v3814_v33  ;;  %v3750_v26 = vld [vmem:[%s7142_s1 + $0x658] sm:$0xf0]  ;;  %v4643_v30 = vld [vmem:[%s7142_s1 + $0x74c] sm:$0xf] }
  0xfd   :  { %2184 = vmatpush.bf16.msrb.mxu2 %v3369_v44  ;;  %v3945_v44 = vor.u32 %v4659_v35, %v3942_v39  ;;  %v3878_v31 = vld [vmem:[%s7142_s1 + $0x758] sm:$0xf0]  ;;  %v4675_v33 = vld [vmem:[%s7142_s1 + $0x84c] sm:$0xf]  ;;  %v320_v39 = vperm.slane %v5994_v36, 1 }
  0xfe   :  { %v4006_v35 = vld [vmem:[%s7142_s1 + $0x858] sm:$0xf0]  ;;  %v4607_v47 = vld [vmem:[%s7142_s1 + $0x62c] sm:$0xf] }
  0xff   :  { %2197 = vmatpush.bf16.msrb.mxu3 %v3497_v50  ;;  %v3798_v50 = vld [vmem:[%s7142_s1 + $0x6b8] sm:$0xf0]  ;;  %v4603_v59 = vld [vmem:[%s7142_s1 + $0x60c] sm:$0xf] }
 0x100   :  { %2159 = vmatpush.bf16.msrb.mxu0 %v3097_v57  ;;  %2172 = vmatpush.bf16.msrb.mxu1 %v3225_v61  ;;  %v3801_v56 = vor.u32 %v4623_v48, %v3798_v50  ;;  %v3929_v57 = vor.u32 %v4655_v51, %v3926_v52  ;;  %v4651_v61 = vld [vmem:[%s7142_s1 + $0x78c] sm:$0xf]  ;;  %v4009_v48 = vor.u32 %v4675_v33, %v4006_v35  ;;  %v3862_v51 = vld [vmem:[%s7142_s1 + $0x738] sm:$0xf0]  ;;  %v4124_v35 = vld [vmem:[%s7144_s3 + $0x40] sm:$0xf] }
 0x101   :  { %2185 = vmatpush.bf16.msrb.mxu2 %v3353_v5  ;;  %v3910_v5 = vld [vmem:[%s7142_s1 + $0x798] sm:$0xf0]  ;;  %v4639_v50 = vld [vmem:[%s7142_s1 + $0x72c] sm:$0xf] }
 0x102   :  { %v3913_v6 = vor.u32 %v4651_v61, %v3910_v5  ;;  %v4671_v52 = vld [vmem:[%s7142_s1 + $0x82c] sm:$0xf]  ;;  %v3846_v62 = vld [vmem:[%s7142_s1 + $0x718] sm:$0xf0] }
 0x103   :  { %2198 = vmatpush.bf16.msrb.mxu3 %v3481_v3  ;;  %v4635_v5 = vld [vmem:[%s7142_s1 + $0x70c] sm:$0xf] }
 0x104   :  { %2160 = vmatpush.bf16.msrb.mxu0 %v3081_v14  ;;  %2173 = vmatpush.bf16.msrb.mxu1 %v3209_v18  ;;  %v6556_v3 = vpop.f32.mrf.mxu0  ;;  %v4647_v14 = vld [vmem:[%s7142_s1 + $0x76c] sm:$0xf]  ;;  %v3641_v18 = vor.u32 %v4583_v7, %v3638_v8  ;;  %v4212_v8 = vld [vmem:[%s7144_s3 + $0xf0] sm:$0xf] }
 0x105   :  { %2186 = vmatpush.bf16.msrb.mxu2 %v3337_v19  ;;  %v3769_v19 = vor.u32 %v4615_v10, %v3766_v13  ;;  %v3897_v20 = vor.u32 %v4647_v14, %v3894_v15  ;;  %v4667_v63 = vld [vmem:[%s7142_s1 + $0x80c] sm:$0xf]  ;;  %v4729_v10 = vld [vmem:[%s7144_s3 + $0xf4] sm:$0xf0]  ;;  %v3849_v13 = vor.u32 %v4635_v5, %v3846_v62 }
 0x106   :  { %v6567_v11 = vpop.f32.mrf.mxu1 }
 0x107   :  { %2199 = vmatpush.bf16.msrb.mxu3 %v3465_v22  ;;  %2161 = vmatmul.bf16.vlgmr.msrb.gmra.mxu0 %v5179_v34  ;;  %v4619_v34 = vld [vmem:[%s7142_s1 + $0x68c] sm:$0xf]  ;;  %v3622_v22 = vld [vmem:[%s7142_s1 + $0x558] sm:$0xf0] }
 0x108   :  { %2205 = vmatpush.bf16.msra.mxu0 %v3705_v23  ;;  %2218 = vmatpush.bf16.msra.mxu1 %v3833_v24  ;;  %v4611_v23 = vld [vmem:[%s7142_s1 + $0x64c] sm:$0xf]  ;;  %v3625_v40 = vor.u32 %v4579_v21, %v3622_v22 }
 0x109   :  { %2231 = vmatpush.bf16.msra.mxu2 %v3961_v25  ;;  %2174 = vmatmul.bf16.vlgmr.msrb.gmra.mxu1 %v5167_v27  ;;  %v3782_v27 = vld [vmem:[%s7142_s1 + $0x698] sm:$0xf0]  ;;  %v4025_v25 = vor.u32 %v4679_v46, %v4022_v17  ;;  %v4213_v17 = vor.u32 %v4729_v10, %v4212_v8  ;;  %v4164_v10 = vld [vmem:[%s7144_s3 + $0x90] sm:$0xf] }
 0x10a   :  { %2187 = vmatmul.bf16.vlgmr.msrb.gmra.mxu2 %v5171_v29  ;;  %v4054_v29 = vld [vmem:[%s7142_s1 + $0x8b8] sm:$0xf0]  ;;  %2200 = vmatmul.bf16.vlgmr.msrb.gmra.mxu3 %v5247_v0  ;;  %v3785_v4 = vor.u32 %v4619_v34, %v3782_v27  ;;  %v1916_v27 = vadd.f32 %v6363_v16, %v320_v39  ;;  %v4148_v16 = vld [vmem:[%s7144_s3 + $0x70] sm:$0xf]  ;;  %v4188_v39 = vld [vmem:[%s7144_s3 + $0xc0] sm:$0xf] }
 0x10b   :  { %2244 = vmatpush.bf16.msra.mxu3 %v4089_v32  ;;  %v4057_v0 = vor.u32 %v4687_v53, %v4054_v29  ;;  %v3990_v53 = vld [vmem:[%s7142_s1 + $0x838] sm:$0xf0] }
 0x10c   :  { %2206 = vmatpush.bf16.msra.mxu0 %v3689_v42  ;;  %2219 = vmatpush.bf16.msra.mxu1 %v3817_v43  ;;  %v1956_v41 = vpop.f32.mrf.mxu0  ;;  %v3753_v42 = vor.u32 %v4611_v23, %v3750_v26  ;;  %v3881_v43 = vor.u32 %v4643_v30, %v3878_v31  ;;  %v3718_v34 = vld [vmem:[%s7142_s1 + $0x618] sm:$0xf0]  ;;  %v3993_v61 = vor.u32 %v4671_v52, %v3990_v53  ;;  %v4709_v26 = vld [vmem:[%s7144_s3 + $0x54] sm:$0xf0] }
 0x10d   :  { %2232 = vmatpush.bf16.msra.mxu2 %v3945_v44  ;;  %v6593_v24 = vpop.f32.mrf.mxu2  ;;  %v6604_v32 = vpop.f32.mrf.mxu3  ;;  %v4575_v44 = vld [vmem:[%s7142_s1 + $0x52c] sm:$0xf]  ;;  %v1929_v14 = vadd.f32 %v6398_v37, %v1916_v27  ;;  %v4727_v37 = vld [vmem:[%s7144_s3 + $0xe4] sm:$0xf0] }
 0x10e   :  { %v1969_v36 = vpop.f32.mrf.mxu1  ;;  %v3609_v29 = vor.u32 %v4575_v44, %v3606_v45  ;;  %v4268_v45 = vld [vmem:[%s7144_s3 + $0x160] sm:$0xf] }
 0x10f   :  { %2245 = vmatpush.bf16.msra.mxu3 %v4073_v49  ;;  %v3734_v49 = vld [vmem:[%s7142_s1 + $0x638] sm:$0xf0]  ;;  %v1942_v21 = vadd.f32 %v6400_v38, %v1929_v14  ;;  %v4196_v38 = vld [vmem:[%s7144_s3 + $0xd0] sm:$0xf] }
 0x110   :  { %2207 = vmatpush.bf16.msra.mxu0 %v3673_v55  ;;  %2220 = vmatpush.bf16.msra.mxu1 %v3801_v56  ;;  %v4571_v55 = vld [vmem:[%s7142_s1 + $0x50c] sm:$0xf]  ;;  %v3737_v56 = vor.u32 %v4607_v47, %v3734_v49  ;;  %v4743_v47 = vld [vmem:[%s7144_s3 + $0x164] sm:$0xf0]  ;;  %v4244_v14 = vld [vmem:[%s7144_s3 + $0x130] sm:$0xf] }
 0x111   :  { %2233 = vmatpush.bf16.msra.mxu2 %v3929_v57  ;;  %v3865_v57 = vor.u32 %v4639_v50, %v3862_v51  ;;  %v3593_v7 = vor.u32 %v4571_v55, %v3590_v58  ;;  %v1955_v30 = vadd.f32 %v6556_v3, %v1942_v21  ;;  %v4269_v49 = vor.u32 %v4743_v47, %v4268_v45  ;;  %v4180_v50 = vld [vmem:[%s7144_s3 + $0xb0] sm:$0xf]  ;;  %v4721_v51 = vld [vmem:[%s7144_s3 + $0xb4] sm:$0xf0]  ;;  %v4715_v21 = vld [vmem:[%s7144_s3 + $0x84] sm:$0xf0] }
 0x112   :  { %v4741_v55 = vld [vmem:[%s7144_s3 + $0x154] sm:$0xf0] }
 0x113   :  { %2246 = vmatpush.bf16.msra.mxu3 %v4057_v0 }
 0x114   :  { %2208 = vmatpush.bf16.msra.mxu0 %v3657_v28  ;;  %2221 = vmatpush.bf16.msra.mxu1 %v3785_v4  ;;  %v3974_v4 = vld [vmem:[%s7142_s1 + $0x818] sm:$0xf0] }
 0x115   :  { %2234 = vmatpush.bf16.msra.mxu2 %v3913_v6  ;;  %v1982_v0 = vpop.f32.mrf.mxu2  ;;  %v1995_v28 = vpop.f32.mrf.mxu3  ;;  %v4713_v6 = vld [vmem:[%s7144_s3 + $0x74] sm:$0xf0]  ;;  %v3977_v15 = vor.u32 %v4667_v63, %v3974_v4  ;;  %v4739_v4 = vld [vmem:[%s7144_s3 + $0x144] sm:$0xf0] }
 0x116   :  { %v4149_v46 = vor.u32 %v4713_v6, %v4148_v16  ;;  %v4252_v28 = vld [vmem:[%s7144_s3 + $0x140] sm:$0xf]  ;;  %v4100_v6 = vld [vmem:[%s7144_s3 + $0x10] sm:$0xf] }
 0x117   :  { %2247 = vmatpush.bf16.msra.mxu3 %v4041_v12  ;;  %v3721_v12 = vor.u32 %v4603_v59, %v3718_v34  ;;  %v4172_v59 = vld [vmem:[%s7144_s3 + $0xa0] sm:$0xf]  ;;  %v4719_v34 = vld [vmem:[%s7144_s3 + $0xa4] sm:$0xf0] }
 0x118   :  { %2209 = vmatpush.bf16.msra.mxu0 %v3641_v18  ;;  %2222 = vmatpush.bf16.msra.mxu1 %v3769_v19  ;;  %v4140_v18 = vld [vmem:[%s7144_s3 + $0x60] sm:$0xf]  ;;  %v4711_v19 = vld [vmem:[%s7144_s3 + $0x64] sm:$0xf0]  ;;  %v4173_v16 = vor.u32 %v4719_v34, %v4172_v59  ;;  %v4706_v34 = vld [vmem:[%s7144_s3 + $0x44] sm:$0xf] }
 0x119   :  { %2235 = vmatpush.bf16.msra.mxu2 %v3897_v20  ;;  %v4204_v20 = vld [vmem:[%s7144_s3 + $0xe0] sm:$0xf]  ;;  %v4141_v22 = vor.u32 %v4711_v19, %v4140_v18  ;;  %v4699_v18 = vld [vmem:[%s7144_s3 + $0x4] sm:$0xf0] }
 0x11a   :  { %v4205_v23 = vor.u32 %v4727_v37, %v4204_v20  ;;  %v4156_v19 = vld [vmem:[%s7144_s3 + $0x80] sm:$0xf] }
 0x11b   :  { %2248 = vmatpush.bf16.msra.mxu3 %v4025_v25  ;;  %v4132_v25 = vld [vmem:[%s7144_s3 + $0x50] sm:$0xf] }
 0x11c   :  { %2210 = vmatpush.bf16.msra.mxu0 %v3625_v40  ;;  %2223 = vmatpush.bf16.msra.mxu1 %v3753_v42  ;;  %v4133_v31 = vor.u32 %v4709_v26, %v4132_v25  ;;  %v4723_v40 = vld [vmem:[%s7144_s3 + $0xc4] sm:$0xf0]  ;;  %v1968_v42 = vadd.f32 %v6567_v11, %v1955_v30  ;;  %v4705_v11 = vld [vmem:[%s7144_s3 + $0x34] sm:$0xf0]  ;;  %v4728_v26 = vld [vmem:[%s7144_s3 + $0xf4] sm:$0xf] }
 0x11d   :  { %2236 = vmatpush.bf16.msra.mxu2 %v3881_v43  ;;  %v4189_v36 = vor.u32 %v4723_v40, %v4188_v39  ;;  %v4710_v40 = vld [vmem:[%s7144_s3 + $0x64] sm:$0xf] }
 0x11e   :  { %v1981_v52 = vadd.f32 %v6593_v24, %v1968_v42  ;;  %v4703_v24 = vld [vmem:[%s7144_s3 + $0x24] sm:$0xf0]  ;;  %v4726_v42 = vld [vmem:[%s7144_s3 + $0xe4] sm:$0xf] }
 0x11f   :  { %2249 = vmatpush.bf16.msra.mxu3 %v4009_v48  ;;  %v4116_v48 = vld [vmem:[%s7144_s3 + $0x30] sm:$0xf] }
 0x120   :  { %2211 = vmatpush.bf16.msra.mxu0 %v3609_v29  ;;  %2224 = vmatpush.bf16.msra.mxu1 %v3737_v56  ;;  %v4117_v53 = vor.u32 %v4705_v11, %v4116_v48  ;;  %v4260_v29 = vld [vmem:[%s7144_s3 + $0x150] sm:$0xf]  ;;  %v4181_v56 = vor.u32 %v4721_v51, %v4180_v50  ;;  %v1994_v5 = vadd.f32 %v6604_v32, %v1981_v52  ;;  %v4701_v32 = vld [vmem:[%s7144_s3 + $0x14] sm:$0xf0]  ;;  %v4220_v48 = vld [vmem:[%s7144_s3 + $0x100] sm:$0xf] }
 0x121   :  { %2237 = vmatpush.bf16.msra.mxu2 %v3865_v57  ;;  %v4108_v57 = vld [vmem:[%s7144_s3 + $0x20] sm:$0xf]  ;;  %v4261_v58 = vor.u32 %v4741_v55, %v4260_v29  ;;  %v4731_v11 = vld [vmem:[%s7144_s3 + $0x104] sm:$0xf0]  ;;  %v4708_v52 = vld [vmem:[%s7144_s3 + $0x54] sm:$0xf] }
 0x122   :  { %v4109_v62 = vor.u32 %v4703_v24, %v4108_v57  ;;  %v4278_v29 = vld [vmem:[%s7144_s3 + $0x178] sm:$0xf0]  ;;  %v4724_v55 = vld [vmem:[%s7144_s3 + $0xd4] sm:$0xf]  ;;  %v4221_v57 = vor.u32 %v4731_v11, %v4220_v48  ;;  %v4238_v48 = vld [vmem:[%s7144_s3 + $0x128] sm:$0xf0] }
 0x123   :  { %2250 = vmatpush.bf16.msra.mxu3 %v3993_v61 }
 0x124   :  { %2212 = vmatpush.bf16.msra.mxu0 %v3593_v7  ;;  %2225 = vmatpush.bf16.msra.mxu1 %v3721_v12  ;;  %v2006_v41 = vpop.f32.mrf.mxu0  ;;  %v4253_v7 = vor.u32 %v4739_v4, %v4252_v28  ;;  %v4717_v12 = vld [vmem:[%s7144_s3 + $0x94] sm:$0xf0]  ;;  %v4742_v28 = vld [vmem:[%s7144_s3 + $0x164] sm:$0xf]  ;;  %v4270_v4 = vld [vmem:[%s7144_s3 + $0x168] sm:$0xf0] }
 0x125   :  { %2238 = vmatpush.bf16.msra.mxu2 %v3849_v13  ;;  %v2007_v8 = vadd.f32 %v2006_v41, %v1994_v5  ;;  %v4101_v13 = vor.u32 %v4701_v32, %v4100_v6  ;;  %v4142_v41 = vld [vmem:[%s7144_s3 + $0x68] sm:$0xf0]  ;;  %v4722_v5 = vld [vmem:[%s7144_s3 + $0xc4] sm:$0xf]  ;;  %v4704_v6 = vld [vmem:[%s7144_s3 + $0x34] sm:$0xf] }
 0x126   :  { %v2019_v44 = vpop.f32.mrf.mxu1  ;;  %v4145_v47 = vor.u32 %v4710_v40, %v4142_v41  ;;  %v4118_v32 = vld [vmem:[%s7144_s3 + $0x38] sm:$0xf0] }
 0x127   :  { %2251 = vmatpush.bf16.msra.mxu3 %v3977_v15  ;;  %2213 = vmatmul.bf16.vlgmr.msra.gmra.mxu0 %v5251_v2  ;;  %v4725_v2 = vld [vmem:[%s7144_s3 + $0xd4] sm:$0xf0]  ;;  %v2020_v37 = vadd.f32 %v2019_v44, %v2007_v8  ;;  %v4273_v8 = vor.u32 %v4742_v28, %v4270_v4 }
 0x128   :  { %2655 = vmatpush.bf16.msrb.mxu0 %v4149_v46  ;;  %2668 = vmatpush.bf16.msrb.mxu1 %v4213_v17  ;;  %v4197_v33 = vor.u32 %v4725_v2, %v4196_v38  ;;  %v4737_v15 = vld [vmem:[%s7144_s3 + $0x134] sm:$0xf0]  ;;  %v4165_v46 = vor.u32 %v4717_v12, %v4164_v10  ;;  %v4092_v17 = vld [vmem:[%s7144_s3] sm:$0xf]  ;;  %v4214_v38 = vld [vmem:[%s7144_s3 + $0xf8] sm:$0xf0] }
 0x129   :  { %2226 = vmatmul.bf16.vlgmr.msra.gmra.mxu1 %v5242_v60  ;;  %2239 = vmatmul.bf16.vlgmr.msra.gmra.mxu2 %v5249_v1  ;;  %v4276_v60 = vld [vmem:[%s7144_s3 + $0x170] sm:$0xf]  ;;  %v4745_v1 = vld [vmem:[%s7144_s3 + $0x174] sm:$0xf0]  ;;  %v4245_v20 = vor.u32 %v4737_v15, %v4244_v14  ;;  %v4093_v30 = vor.u32 %v4699_v18, %v4092_v17  ;;  %v4217_v39 = vor.u32 %v4728_v26, %v4214_v38  ;;  %v4720_v10 = vld [vmem:[%s7144_s3 + $0xb4] sm:$0xf] }
 0x12a   :  { %2252 = vmatmul.bf16.vlgmr.msra.gmra.mxu3 %v6316_v54  ;;  %v4707_v54 = vld [vmem:[%s7144_s3 + $0x44] sm:$0xf0]  ;;  %v4277_v3 = vor.u32 %v4745_v1, %v4276_v60  ;;  %v2257_v1 = vmax.f32 %v6352_v9, 0.0  ;;  %v4206_v9 = vld [vmem:[%s7144_s3 + $0xe8] sm:$0xf0]  ;;  %v4121_v14 = vor.u32 %v4704_v6, %v4118_v32 }
 0x12b   :  { %v4125_v43 = vor.u32 %v4707_v54, %v4124_v35  ;;  %v4735_v60 = vld [vmem:[%s7144_s3 + $0x124] sm:$0xf0]  ;;  %v4733_v44 = vld [vmem:[%s7144_s3 + $0x114] sm:$0xf0]  ;;  %v4209_v51 = vor.u32 %v4726_v42, %v4206_v9  ;;  %v4182_v12 = vld [vmem:[%s7144_s3 + $0xb8] sm:$0xf0] }
 0x12c   :  { %2656 = vmatpush.bf16.msrb.mxu0 %v4141_v22  ;;  %2669 = vmatpush.bf16.msrb.mxu1 %v4205_v23  ;;  %v2008_v61 = vpop.f32.mrf.mxu0  ;;  %v4712_v22 = vld [vmem:[%s7144_s3 + $0x74] sm:$0xf]  ;;  %v4150_v23 = vld [vmem:[%s7144_s3 + $0x78] sm:$0xf0]  ;;  %v6839_v45 = vpack.c.bf16 %v2257_v1, %v2257_v1  ;;  %v4185_v17 = vor.u32 %v4720_v10, %v4182_v12  ;;  %v4702_v18 = vld [vmem:[%s7144_s3 + $0x24] sm:$0xf] }
 0x12d   :  { %2681 = vmatpush.bf16.msrb.mxu2 %v4277_v3  ;;  %v6761_v0 = vpop.f32.mrf.mxu2  ;;  %v6763_v27 = vpop.f32.mrf.mxu3  ;;  %v4153_v35 = vor.u32 %v4712_v22, %v4150_v23  ;;  %v2258_v3 = vmax.f32 %v2020_v37, 0.0  ;;  %v4126_v61 = vld [vmem:[%s7144_s3 + $0x48] sm:$0xf0]  ;;  %v4740_v15 = vld [vmem:[%s7144_s3 + $0x154] sm:$0xf] }
 0x12e   :  { %v2021_v63 = vpop.f32.mrf.mxu1  ;;  %v6918_v37 = vld [vmem:[%s7143_s2] sm:$0xf]  ;;  %v4718_v22 = vld [vmem:[%s7144_s3 + $0xa4] sm:$0xf]  ;;  %v4174_v23 = vld [vmem:[%s7144_s3 + $0xa8] sm:$0xf0] }
 0x12f   :  { %v6850_v50 = vpack.c.bf16 %v2258_v3, %v2258_v3  ;;  %v4129_v63 = vor.u32 %v4706_v34, %v4126_v61  ;;  %v4102_v1 = vld [vmem:[%s7144_s3 + $0x18] sm:$0xf0]  ;;  %v4716_v3 = vld [vmem:[%s7144_s3 + $0x94] sm:$0xf]  ;;  %v4734_v9 = vld [vmem:[%s7144_s3 + $0x124] sm:$0xf] }
 0x130   :  { %2657 = vmatpush.bf16.msrb.mxu0 %v4133_v31  ;;  %2670 = vmatpush.bf16.msrb.mxu1 %v4197_v33  ;;  %v4236_v31 = vld [vmem:[%s7144_s3 + $0x120] sm:$0xf]  ;;  %v4157_v33 = vor.u32 %v4715_v21, %v4156_v19  ;;  %v4110_v19 = vld [vmem:[%s7144_s3 + $0x28] sm:$0xf0]  ;;  %v321_v21 = vperm.slane %v6918_v37, 2 }
 0x131   :  { %2682 = vmatpush.bf16.msrb.mxu2 %v4269_v49  ;;  %v4237_v54 = vor.u32 %v4735_v60, %v4236_v31  ;;  %v4744_v49 = vld [vmem:[%s7144_s3 + $0x174] sm:$0xf]  ;;  %v4113_v38 = vor.u32 %v4702_v18, %v4110_v19  ;;  %v4177_v31 = vor.u32 %v4718_v22, %v4174_v23  ;;  %v4759_v6 = vld [vmem:[%s7144_s3 + $0x1e4] sm:$0xf0]  ;;  %v4308_v19 = vld [vmem:[%s7144_s3 + $0x1b0] sm:$0xf] }
 0x132   :  { %v4281_v24 = vor.u32 %v4744_v49, %v4278_v29  ;;  %v4700_v60 = vld [vmem:[%s7144_s3 + $0x14] sm:$0xf]  ;;  %v4714_v49 = vld [vmem:[%s7144_s3 + $0x84] sm:$0xf]  ;;  %v4241_v29 = vor.u32 %v4734_v9, %v4238_v48 }
 0x133   :  { %v4105_v41 = vor.u32 %v4700_v60, %v4102_v1  ;;  %v4736_v42 = vld [vmem:[%s7144_s3 + $0x134] sm:$0xf]  ;;  %v4292_v1 = vld [vmem:[%s7144_s3 + $0x190] sm:$0xf] }
 0x134   :  { %2658 = vmatpush.bf16.msrb.mxu0 %v4125_v43  ;;  %2671 = vmatpush.bf16.msrb.mxu1 %v4189_v36  ;;  %v4228_v43 = vld [vmem:[%s7144_s3 + $0x110] sm:$0xf] }
 0x135   :  { %2683 = vmatpush.bf16.msrb.mxu2 %v4261_v58  ;;  %v2034_v25 = vpop.f32.mrf.mxu2  ;;  %v2047_v2 = vpop.f32.mrf.mxu3  ;;  %v4229_v36 = vor.u32 %v4733_v44, %v4228_v43  ;;  %v4698_v44 = vld [vmem:[%s7144_s3 + $0x4] sm:$0xf] }
 0x136   :  { %v4738_v2 = vld [vmem:[%s7144_s3 + $0x144] sm:$0xf] }
 0x138   :  { %2659 = vmatpush.bf16.msrb.mxu0 %v4117_v53  ;;  %2672 = vmatpush.bf16.msrb.mxu1 %v4181_v56  ;;  %v4134_v53 = vld [vmem:[%s7144_s3 + $0x58] sm:$0xf0] }
 0x139   :  { %2684 = vmatpush.bf16.msrb.mxu2 %v4253_v7  ;;  %v4198_v56 = vld [vmem:[%s7144_s3 + $0xd8] sm:$0xf0]  ;;  %v4137_v58 = vor.u32 %v4708_v52, %v4134_v53 }
 0x13a   :  { %v4201_v59 = vor.u32 %v4724_v55, %v4198_v56  ;;  %v4340_v55 = vld [vmem:[%s7144_s3 + $0x1f0] sm:$0xf] }
 0x13c   :  { %2660 = vmatpush.bf16.msrb.mxu0 %v4109_v62  ;;  %2673 = vmatpush.bf16.msrb.mxu1 %v4173_v16  ;;  %v4190_v62 = vld [vmem:[%s7144_s3 + $0xc8] sm:$0xf0] }
 0x13d   :  { %2685 = vmatpush.bf16.msrb.mxu2 %v4245_v20  ;;  %v4193_v16 = vor.u32 %v4722_v5, %v4190_v62  ;;  %v4730_v5 = vld [vmem:[%s7144_s3 + $0x104] sm:$0xf]  ;;  %v4222_v62 = vld [vmem:[%s7144_s3 + $0x108] sm:$0xf0] }
 0x13e   :  { %v4225_v28 = vor.u32 %v4730_v5, %v4222_v62  ;;  %v4750_v5 = vld [vmem:[%s7144_s3 + $0x1a4] sm:$0xf] }
 0x140   :  { %2661 = vmatpush.bf16.msrb.mxu0 %v4101_v13  ;;  %2674 = vmatpush.bf16.msrb.mxu1 %v4165_v46  ;;  %v4262_v46 = vld [vmem:[%s7144_s3 + $0x158] sm:$0xf0] }
 0x141   :  { %2686 = vmatpush.bf16.msrb.mxu2 %v4237_v54  ;;  %v4265_v20 = vor.u32 %v4740_v15, %v4262_v46  ;;  %v2033_v54 = vadd.f32 %v6761_v0, %v321_v21  ;;  %v4246_v0 = vld [vmem:[%s7144_s3 + $0x138] sm:$0xf0]  ;;  %v4755_v15 = vld [vmem:[%s7144_s3 + $0x1c4] sm:$0xf0] }
 0x143   :  { %v2046_v11 = vadd.f32 %v6763_v27, %v2033_v54  ;;  %v4761_v27 = vld [vmem:[%s7144_s3 + $0x1f4] sm:$0xf0] }
 0x144   :  { %2662 = vmatpush.bf16.msrb.mxu0 %v4093_v30  ;;  %2675 = vmatpush.bf16.msrb.mxu1 %v4157_v33  ;;  %v6893_v7 = vpop.f32.mrf.mxu0  ;;  %v4254_v30 = vld [vmem:[%s7144_s3 + $0x148] sm:$0xf0] }
 0x145   :  { %2687 = vmatpush.bf16.msrb.mxu2 %v4229_v36  ;;  %v4249_v36 = vor.u32 %v4736_v42, %v4246_v0  ;;  %v2059_v34 = vadd.f32 %v6893_v7, %v2046_v11  ;;  %v4760_v42 = vld [vmem:[%s7144_s3 + $0x1f4] sm:$0xf]  ;;  %v4342_v0 = vld [vmem:[%s7144_s3 + $0x1f8] sm:$0xf0] }
 0x146   :  { %v6901_v13 = vpop.f32.mrf.mxu1  ;;  %v4345_v9 = vor.u32 %v4760_v42, %v4342_v0  ;;  %v4756_v11 = vld [vmem:[%s7144_s3 + $0x1d4] sm:$0xf] }
 0x147   :  { %2663 = vmatmul.bf16.vlgmr.msrb.gmra.mxu0 %v6839_v45  ;;  %2676 = vmatmul.bf16.vlgmr.msrb.gmra.mxu1 %v6850_v50 }
 0x148   :  { %2707 = vmatpush.bf16.msra.mxu0 %v4153_v35  ;;  %2720 = vmatpush.bf16.msra.mxu1 %v4217_v39  ;;  %v4257_v35 = vor.u32 %v4738_v2, %v4254_v30  ;;  %v4166_v39 = vld [vmem:[%s7144_s3 + $0x98] sm:$0xf0]  ;;  %v4300_v30 = vld [vmem:[%s7144_s3 + $0x1a0] sm:$0xf] }
 0x149   :  { %2688 = vmatpush.bf16.msrb.mxu2 %v4221_v57  ;;  %v4169_v43 = vor.u32 %v4716_v3, %v4166_v39  ;;  %v4732_v57 = vld [vmem:[%s7144_s3 + $0x114] sm:$0xf]  ;;  %v4284_v39 = vld [vmem:[%s7144_s3 + $0x180] sm:$0xf] }
 0x14c   :  { %2708 = vmatpush.bf16.msra.mxu0 %v4145_v47  ;;  %2721 = vmatpush.bf16.msra.mxu1 %v4209_v51  ;;  %v2060_v33 = vpop.f32.mrf.mxu0  ;;  %v4094_v47 = vld [vmem:[%s7144_s3 + $0x8] sm:$0xf0] }
 0x14d   :  { %2733 = vmatpush.bf16.msra.mxu2 %v4281_v24  ;;  %v2084_v25 = vpop.f32.mrf.mxu2  ;;  %v2097_v26 = vpop.f32.mrf.mxu3  ;;  %v4158_v51 = vld [vmem:[%s7144_s3 + $0x88] sm:$0xf0]  ;;  %v4097_v56 = vor.u32 %v4698_v44, %v4094_v47  ;;  %v4230_v24 = vld [vmem:[%s7144_s3 + $0x118] sm:$0xf0]  ;;  %v4749_v33 = vld [vmem:[%s7144_s3 + $0x194] sm:$0xf0] }
 0x14e   :  { %v2073_v40 = vpop.f32.mrf.mxu1  ;;  %v4233_v61 = vor.u32 %v4732_v57, %v4230_v24  ;;  %v4293_v3 = vor.u32 %v4749_v33, %v4292_v1  ;;  %v4334_v44 = vld [vmem:[%s7144_s3 + $0x1e8] sm:$0xf0] }
 0x14f   :  { %v4747_v40 = vld [vmem:[%s7144_s3 + $0x184] sm:$0xf0] }
 0x150   :  { %2709 = vmatpush.bf16.msra.mxu0 %v4137_v58  ;;  %2722 = vmatpush.bf16.msra.mxu1 %v4201_v59  ;;  %v4341_v58 = vor.u32 %v4761_v27, %v4340_v55  ;;  %v4161_v59 = vor.u32 %v4714_v49, %v4158_v51  ;;  %v4326_v49 = vld [vmem:[%s7144_s3 + $0x1d8] sm:$0xf0]  ;;  %v4318_v55 = vld [vmem:[%s7144_s3 + $0x1c8] sm:$0xf0]  ;;  %v322_v27 = vperm.slane %v6918_v37, 3 }
 0x151   :  { %2734 = vmatpush.bf16.msra.mxu2 %v4273_v8  ;;  %v4329_v51 = vor.u32 %v4756_v11, %v4326_v49  ;;  %v4302_v37 = vld [vmem:[%s7144_s3 + $0x1a8] sm:$0xf0]  ;;  %v4766_v49 = vld [vmem:[%s7146_s5 + $0x20] sm:$0xff] }
 0x152   :  { %2694 = vmatpush.bf16.msrb.mxu3 %v4341_v58  ;;  %v4752_v58 = vld [vmem:[%s7144_s3 + $0x1b4] sm:$0xf] }
 0x154   :  { %2710 = vmatpush.bf16.msra.mxu0 %v4129_v63  ;;  %2723 = vmatpush.bf16.msra.mxu1 %v4193_v16  ;;  %v2072_v63 = vadd.f32 %v6901_v13, %v2059_v34  ;;  %v4332_v16 = vld [vmem:[%s7144_s3 + $0x1e0] sm:$0xf] }
 0x155   :  { %2735 = vmatpush.bf16.msra.mxu2 %v4265_v20  ;;  %v2086_v52 = vpop.f32.mrf.mxu2  ;;  %v2099_v53 = vpop.f32.mrf.mxu3  ;;  %v4333_v32 = vor.u32 %v4759_v6, %v4332_v16  ;;  %v4753_v20 = vld [vmem:[%s7144_s3 + $0x1b4] sm:$0xf0]  ;;  %v4294_v16 = vld [vmem:[%s7144_s3 + $0x198] sm:$0xf0] }
 0x156   :  { %v2085_v4 = vadd.f32 %v2084_v25, %v2072_v63 }
 0x157   :  { %2695 = vmatpush.bf16.msrb.mxu3 %v4333_v32 }
 0x158   :  { %2711 = vmatpush.bf16.msra.mxu0 %v4121_v14  ;;  %2724 = vmatpush.bf16.msra.mxu1 %v4185_v17  ;;  %v2098_v7 = vadd.f32 %v2097_v26, %v2085_v4  ;;  %v4316_v14 = vld [vmem:[%s7144_s3 + $0x1c0] sm:$0xf]  ;;  %v4309_v26 = vor.u32 %v4753_v20, %v4308_v19  ;;  %v4748_v4 = vld [vmem:[%s7144_s3 + $0x194] sm:$0xf] }
 0x159   :  { %2736 = vmatpush.bf16.msra.mxu2 %v4257_v35  ;;  %v4317_v17 = vor.u32 %v4755_v15, %v4316_v14  ;;  %v4297_v32 = vor.u32 %v4748_v4, %v4294_v16 }
 0x15c   :  { %2712 = vmatpush.bf16.msra.mxu0 %v4113_v38  ;;  %2725 = vmatpush.bf16.msra.mxu1 %v4177_v31  ;;  %v4751_v31 = vld [vmem:[%s7144_s3 + $0x1a4] sm:$0xf0] }
 0x15d   :  { %2737 = vmatpush.bf16.msra.mxu2 %v4249_v36  ;;  %v4301_v60 = vor.u32 %v4751_v31, %v4300_v30 }
 0x160   :  { %2713 = vmatpush.bf16.msra.mxu0 %v4105_v41  ;;  %2726 = vmatpush.bf16.msra.mxu1 %v4169_v43  ;;  %v4285_v41 = vor.u32 %v4747_v40, %v4284_v39  ;;  %v4758_v43 = vld [vmem:[%s7144_s3 + $0x1e4] sm:$0xf] }
 0x161   :  { %2738 = vmatpush.bf16.msra.mxu2 %v4241_v29  ;;  %v4337_v36 = vor.u32 %v4758_v43, %v4334_v44  ;;  %v4754_v29 = vld [vmem:[%s7144_s3 + $0x1c4] sm:$0xf]  ;;  %v4769_v43 = vld [vmem:[%s7146_s5 + $0x38] sm:$0xff] }
 0x162   :  { %v4321_v57 = vor.u32 %v4754_v29, %v4318_v55  ;;  %v4777_v44 = vld [vmem:[%s7146_s5 + $0x78] sm:$0xff] }
 0x164   :  { %2714 = vmatpush.bf16.msra.mxu0 %v4097_v56  ;;  %2727 = vmatpush.bf16.msra.mxu1 %v4161_v59  ;;  %v2110_v8 = vpop.f32.mrf.mxu0  ;;  %v4310_v59 = vld [vmem:[%s7144_s3 + $0x1b8] sm:$0xf0] }
 0x165   :  { %2739 = vmatpush.bf16.msra.mxu2 %v4233_v61  ;;  %v2111_v13 = vadd.f32 %v2110_v8, %v2098_v7  ;;  %v4313_v61 = vor.u32 %v4752_v58, %v4310_v59  ;;  %v4746_v7 = vld [vmem:[%s7144_s3 + $0x184] sm:$0xf]  ;;  %v4286_v8 = vld [vmem:[%s7144_s3 + $0x188] sm:$0xf0]  ;;  %v4773_v58 = vld [vmem:[%s7146_s5 + $0x58] sm:$0xff] }
 0x166   :  { %v2123_v10 = vpop.f32.mrf.mxu1  ;;  %v4772_v59 = vld [vmem:[%s7146_s5 + $0x50] sm:$0xff] }
 0x167   :  { %2715 = vmatmul.bf16.vlgmr.msra.gmra.mxu0 %v6839_v45  ;;  %2728 = vmatmul.bf16.vlgmr.msra.gmra.mxu1 %v6850_v50  ;;  %v4324_v45 = vld [vmem:[%s7144_s3 + $0x1d0] sm:$0xf]  ;;  %v4757_v50 = vld [vmem:[%s7144_s3 + $0x1d4] sm:$0xf0]  ;;  %v2124_v46 = vadd.f32 %v2123_v10, %v2111_v13 }
 0x168   :  { %v4325_v12 = vor.u32 %v4757_v50, %v4324_v45  ;;  %v4289_v50 = vor.u32 %v4746_v7, %v4286_v8  ;;  %2895 = vmatpush.bf16.msrb.mxu0 %v4769_v43  ;;  %2908 = vmatpush.bf16.msrb.mxu1 %v4777_v44 }
 0x169   :  { %2740 = vmatpush.bf16.msra.mxu2 %v4225_v28  ;;  %v4305_v28 = vor.u32 %v4750_v5, %v4302_v37 }
 0x16a   :  { %2696 = vmatpush.bf16.msrb.mxu3 %v4325_v12 }
 0x16c   :  { %v2112_v23 = vpop.f32.mrf.mxu0 }
 0x16d   :  { %v2136_v18 = vpop.f32.mrf.mxu2  ;;  %v2149_v22 = vpop.f32.mrf.mxu3 }
 0x16e   :  { %v2137_v21 = vadd.f32 %v2136_v18, %v2124_v46  ;;  %v2125_v25 = vpop.f32.mrf.mxu1  ;;  %2697 = vmatpush.bf16.msrb.mxu3 %v4317_v17  ;;  %v2150_v34 = vadd.f32 %v2149_v22, %v322_v27  ;;  %v4763_v27 = vld [vmem:[%s7146_s5 + $0x8] sm:$0xff] }
 0x170   :  { %v2259_v38 = vmax.f32 %v2137_v21, 0.0 }
 0x172   :  { %v2263_v2 = vpack.c.bf16 %v2259_v38, %v2259_v38  ;;  %2698 = vmatpush.bf16.msrb.mxu3 %v4309_v26 }
 0x174   :  { %2689 = vmatmul.bf16.vlgmr.msrb.gmra.mxu2 %v2263_v2 }
 0x175   :  { %v2138_v35 = vpop.f32.mrf.mxu2  ;;  %v2151_v54 = vpop.f32.mrf.mxu3 }
 0x176   :  { %2699 = vmatpush.bf16.msrb.mxu3 %v4301_v60 }
 0x17a   :  { %2700 = vmatpush.bf16.msrb.mxu3 %v4293_v3 }
 0x17e   :  { %2701 = vmatpush.bf16.msrb.mxu3 %v4285_v41 }
 0x182   :  { %2746 = vmatpush.bf16.msra.mxu3 %v4345_v9 }
 0x184   :  { %2741 = vmatmul.bf16.vlgmr.msra.gmra.mxu2 %v2263_v2  ;;  %v2162_v47 = vpop.f32.mrf.mxu0  ;;  %v2329_v2 = vld [vmem:[%s7145_s4] sm:$0x3] }
 0x185   :  { %v2163_v6 = vadd.f32 %v2162_v47, %v2150_v34  ;;  %v2331_v30 = vperm.slane %v2329_v2, 0  ;;  %v2332_v3 = vperm.slane %v2329_v2, 1  ;;  %v4768_v47 = vld [vmem:[%s7146_s5 + $0x30] sm:$0xff]  ;;  %v4771_v34 = vld [vmem:[%s7146_s5 + $0x48] sm:$0xff] }
 0x186   :  { %v2175_v48 = vpop.f32.mrf.mxu1  ;;  %2747 = vmatpush.bf16.msra.mxu3 %v4337_v36  ;;  %v4776_v36 = vld [vmem:[%s7146_s5 + $0x70] sm:$0xff]  ;;  %2896 = vmatpush.bf16.msrb.mxu0 %v4768_v47 }
 0x187   :  { %v2176_v45 = vadd.f32 %v2175_v48, %v2163_v6  ;;  %v4767_v48 = vld [vmem:[%s7146_s5 + $0x28] sm:$0xff]  ;;  %2909 = vmatpush.bf16.msrb.mxu1 %v4776_v36 }
 0x18a   :  { %2748 = vmatpush.bf16.msra.mxu3 %v4329_v51  ;;  %2897 = vmatpush.bf16.msrb.mxu0 %v4767_v48  ;;  %v4765_v51 = vld [vmem:[%s7146_s5 + $0x18] sm:$0xff] }
 0x18c   :  { %v2164_v56 = vpop.f32.mrf.mxu0 }
 0x18d   :  { %v2188_v52 = vpop.f32.mrf.mxu2  ;;  %v2201_v53 = vpop.f32.mrf.mxu3  ;;  %v4775_v56 = vld [vmem:[%s7146_s5 + $0x68] sm:$0xff] }
 0x18e   :  { %v2177_v24 = vpop.f32.mrf.mxu1  ;;  %2749 = vmatpush.bf16.msra.mxu3 %v4321_v57  ;;  %v2189_v10 = vadd.f32 %v2188_v52, %v2176_v45  ;;  %2898 = vmatpush.bf16.msrb.mxu0 %v4766_v49  ;;  %v4762_v57 = vld [vmem:[%s7146_s5] sm:$0xff] }
 0x18f   :  { %2910 = vmatpush.bf16.msrb.mxu1 %v4775_v56  ;;  %v4774_v24 = vld [vmem:[%s7146_s5 + $0x60] sm:$0xff] }
 0x190   :  { %v2202_v12 = vadd.f32 %v2201_v53, %v2189_v10  ;;  %v4764_v53 = vld [vmem:[%s7146_s5 + $0x10] sm:$0xff] }
 0x192   :  { %2750 = vmatpush.bf16.msra.mxu3 %v4313_v61  ;;  %2899 = vmatpush.bf16.msrb.mxu0 %v4765_v51  ;;  %v4770_v61 = vld [vmem:[%s7146_s5 + $0x40] sm:$0xff]  ;;  %s4808_s5 = smov [#allocation2]  }
 0x193   :  { %2911 = vmatpush.bf16.msrb.mxu1 %v4774_v24  ;;  %s2927_s2 = sshll.u32 %s4808_s5, 4  ;;  %s2928_s2 = int_to_ptr.vmem [resolvable:$true] %s2927_s2 }
 0x195   :  { %v2190_v62 = vpop.f32.mrf.mxu2  ;;  %v2203_v63 = vpop.f32.mrf.mxu3 }
 0x196   :  { %2751 = vmatpush.bf16.msra.mxu3 %v4305_v28  ;;  %2900 = vmatpush.bf16.msrb.mxu0 %v4764_v53 }
 0x197   :  { %2912 = vmatpush.bf16.msrb.mxu1 %v4773_v58 }
 0x19a   :  { %2752 = vmatpush.bf16.msra.mxu3 %v4297_v32  ;;  %2901 = vmatpush.bf16.msrb.mxu0 %v4763_v27 }
 0x19b   :  { %2913 = vmatpush.bf16.msrb.mxu1 %v4772_v59 }
 0x19e   :  { %2753 = vmatpush.bf16.msra.mxu3 %v4289_v50  ;;  %2902 = vmatpush.bf16.msrb.mxu0 %v4762_v57 }
 0x19f   :  { %2914 = vmatpush.bf16.msrb.mxu1 %v4771_v34 }
 0x1a3   :  { %2915 = vmatpush.bf16.msrb.mxu1 %v4770_v61 }
 0x1a4   :  { %v2214_v13 = vpop.f32.mrf.mxu0 }
 0x1a5   :  { %v2215_v15 = vadd.f32 %v2214_v13, %v2202_v12  ;;  %v4779_v12 = vld [vmem:[%s7147_s6] ss:$0 sm:$0xff] }
 0x1a6   :  { %v2227_v14 = vpop.f32.mrf.mxu1 }
 0x1a7   :  { %v2228_v46 = vadd.f32 %v2227_v14, %v2215_v15 }
 0x1ac   :  { %v2240_v17 = vpop.f32.mrf.mxu2  ;;  %v2216_v20 = vpop.f32.mrf.mxu0 }
 0x1ad   :  { %v2241_v18 = vadd.f32 %v2240_v17, %v2228_v46  ;;  %v2253_v19 = vpop.f32.mrf.mxu3 }
 0x1ae   :  { %v2229_v21 = vpop.f32.mrf.mxu1 }
 0x1af   :  { %v2254_v22 = vadd.f32 %v2253_v19, %v2241_v18 }
 0x1b1   :  { %v2260_v23 = vmax.f32 %v2254_v22, 0.0 }
 0x1b3   :  { %v2264_v25 = vpack.c.bf16 %v2260_v23, %v2260_v23 }
 0x1b4   :  { %v2242_v26 = vpop.f32.mrf.mxu2 }
 0x1b5   :  { %v2255_v38 = vpop.f32.mrf.mxu3  ;;  %2702 = vmatmul.bf16.vlgmr.msrb.gmra.mxu3 %v2264_v25 }
 0x1c4   :  { %v2664_v31 = vpop.f32.mrf.mxu0  ;;  %v2677_v1 = vpop.f32.mrf.mxu1 }
 0x1c5   :  { %v2665_v60 = vadd.f32 %v2664_v31, %v2331_v30  ;;  %2754 = vmatmul.bf16.vlgmr.msra.gmra.mxu3 %v2264_v25 }
 0x1c7   :  { %v2678_v33 = vadd.f32 %v2677_v1, %v2665_v60 }
 0x1cc   :  { %v2666_v35 = vpop.f32.mrf.mxu0  ;;  %v2679_v54 = vpop.f32.mrf.mxu1 }
 0x1e4   :  { %v2716_v39 = vpop.f32.mrf.mxu0  ;;  %v2729_v41 = vpop.f32.mrf.mxu1 }
 0x1e5   :  { %v2717_v40 = vadd.f32 %v2716_v39, %v2332_v3 }
 0x1e7   :  { %v2730_v42 = vadd.f32 %v2729_v41, %v2717_v40 }
 0x1ec   :  { %v2718_v0 = vpop.f32.mrf.mxu0  ;;  %v2731_v9 = vpop.f32.mrf.mxu1 }
 0x1f7   :  { %v2690_v11 = vpop.f32.mrf.mxu2 }
 0x1f8   :  { %v2691_v5 = vadd.f32 %v2690_v11, %v2678_v33 }
 0x1ff   :  { %v2692_v52 = vpop.f32.mrf.mxu2 }
 0x207   :  { %v2742_v29 = vpop.f32.mrf.mxu2 }
 0x208   :  { %v2743_v16 = vadd.f32 %v2742_v29, %v2730_v42 }
 0x20f   :  { %v2744_v55 = vpop.f32.mrf.mxu2 }
 0x238   :  { %v2703_v37 = vpop.f32.mrf.mxu3 }
 0x239   :  { %v2704_v62 = vadd.f32 %v2703_v37, %v2691_v5 }
 0x23b   :  { %v2759_v63 = vmax.f32 %v2704_v62, 0.0 }
 0x23d   :  { %v2761_v28 = vpack.c.bf16 %v2759_v63, %v2759_v63 }
 0x23f   :  { %2903 = vmatmul.bf16.vlgmr.msrb.gmra.mxu0 %v2761_v28 }
 0x240   :  { %v2705_v4 = vpop.f32.mrf.mxu3 }
 0x248   :  { %v2755_v6 = vpop.f32.mrf.mxu3 }
 0x249   :  { %v2756_v32 = vadd.f32 %v2755_v6, %v2743_v16 }
 0x24b   :  { %v2760_v7 = vmax.f32 %v2756_v32, 0.0 }
 0x24d   :  { %v2762_v8 = vpack.c.bf16 %v2760_v7, %v2760_v7 }
 0x24f   :  { %2916 = vmatmul.bf16.vlgmr.msrb.gmra.mxu1 %v2762_v8 }
 0x250   :  { %v2757_v45 = vpop.f32.mrf.mxu3 }
 0x2bc   :  { %v2904_v50 = vpop.f32.mrf.mxu0 }
 0x2bd   :  { %v2905_v13 = vadd.f32 %v4779_v12, %v2904_v50 }
 0x2c4   :  { %v2906_v10 = vpop.f32.mrf.mxu0 }
 0x2cc   :  { %v2917_v14 = vpop.f32.mrf.mxu1 }
 0x2cd   :  { %v2918_v15 = vadd.f32 %v2917_v14, %v2905_v13 }
 0x2cf   :  { %2921 = vst [vmem:[#allocation2] sm:$0x3] %v2918_v15 }
 0x2d0   :  { %2932 = dma.vmem_to_hbm [thread:$0]  %s2928_s2, 32, %s2930_s28, [#allocation3]  }
 0x2d4   :  { %v2919_v46 = vpop.f32.mrf.mxu1 }
 0x2d5   :  { %4806 = dma.done.wait [#allocation3], 32  }
 0x2d6   :  { %4807 = vsyncadd [#allocation3], 4294967264 }
 0x2d7   :  { %2937 = vsyncpa [#allocation3], 1 }

// kernel: forward.2
= control target key start
LH: loop header
LB: loop body
LE: loop exit
PB: predicated region body
PF: predicated region fallthrough
CT: control target
= control target key end

     0   :  { %s8329_s21 = smov 0   ;;  %s9803_s0 = inlined_call_operand.vmem [shape: bf16[2,848,128], index: 0, kind: input, shape index: {}]   ;;  %s9804_s1 = inlined_call_operand.vmem [shape: bf16[128,128], index: 1, kind: input, shape index: {}]   ;;  %s9805_s2 = inlined_call_operand.vmem [shape: bf16[1152,128], index: 2, kind: input, shape index: {}]   ;;  %s9806_s3 = inlined_call_operand.vmem [shape: f32[1,128], index: 3, kind: input, shape index: {}]   ;;  %s9807_s4 = inlined_call_operand.vmem [shape: bf16[1152,128], index: 4, kind: input, shape index: {}]   ;;  %s9808_s5 = inlined_call_operand.vmem [shape: f32[1,128], index: 5, kind: input, shape index: {}]   ;;  %s9809_s6 = inlined_call_operand.vmem [shape: bf16[2,9,128], index: 6, kind: output, shape index: {}]  }
   0x1 LB: > { %s6922_s22 = sadd.s32 4294967295, %s8290_s21   ;;  %p6926_p0 = scmp.ge.s32.totalorder %s8290_s21, 1  ;;  %s8290_s21 = sphi %s8329_s21, %s16_s21  }
   0x2   : > { %p212_p1 = scmp.lt.s32.totalorder %s8290_s21, 3 }
   0x4   : > { %p213_p2 = pnand %p6926_p0, %p212_p1 }
   0x6   : > { %216 = sbr.rel (%p213_p2) target bundleno = 1797 (0x705), region = 44 }
   0xb   : > { %v7897_v0 = vld [vmem:[%s9804_s1 + $0x38] sm:$0xff]  ;;  %v7896_v1 = vld [vmem:[%s9804_s1 + $0x30] sm:$0xff]  ;;  %v7895_v2 = vld [vmem:[%s9804_s1 + $0x28] sm:$0xff]  ;;  %p242_p3 = scmp.lt.s32.totalorder %s6922_s22, 1  ;;  %vm1228_vm0 = vcmask 1043456   ;;  %v8292_v30 = vmov 0  }
   0xc   : > { %741 = vmatpush.bf16.msra.mxu0 %v7897_v0  ;;  %8210 = vmatpush.bf16.msra.mxu2 %v7897_v0  ;;  %v7894_v3 = vld [vmem:[%s9804_s1 + $0x20] sm:$0xff]  ;;  %v7893_v4 = vld [vmem:[%s9804_s1 + $0x18] sm:$0xff]  ;;  %v7892_v5 = vld [vmem:[%s9804_s1 + $0x10] sm:$0xff]  ;;  %vm1229_vm1 = vsmask.f32 3328  ;;  %vm2295_vm3 = vcmask 1043459  }
   0xd   : > { %8211 = vmatpush.bf16.msra.mxu3 %v7897_v0  ;;  %8209 = vmatpush.bf16.msra.mxu1 %v7897_v0  ;;  %s9827_s22 = smov (!%p242_p3, %s6922_s22), 1  ;;  %v7891_v6 = vld [vmem:[%s9804_s1 + $0x8] sm:$0xff]  ;;  %v7890_v7 = vld [vmem:[%s9804_s1] sm:$0xff]  ;;  %v1231_v16 = vld [vmem:[#allocation3 + $0x4] sm:$0xf]  ;;  %vm2375_vm8 = vcmask 1040384  }
   0xe   : > { %s8252_s13 = smul.u32 424, %s9827_s22  ;;  %vm1230_vm2 = vmand %vm1228_vm0, %vm1229_vm1  ;;  %v5159_v21 = vld [vmem:[#allocation6] sm:$0xf]  ;;  %1227 = vst [vmem:[#allocation3] sm:$0xf] %v8292_v30  ;;  %vm2353_vm9 = vcmask 1041408  }
   0xf   : > { %v1232_v17 = vsel %vm1230_vm2, 0, %v1231_v16  ;;  %v5160_v22 = vsel %vm1230_vm2, 0, %v5159_v21  ;;  %5397 = vst [vmem:[#allocation7] sm:$0xf] %v8292_v30  ;;  %vm2296_vm4 = vsmask.f32 7950 }
  0x10   : > { %742 = vmatpush.bf16.msra.mxu0 %v7896_v1  ;;  %8213 = vmatpush.bf16.msra.mxu2 %v7896_v1  ;;  %s8367_s18 = scalar_lea.vmem %s9803_s0, %s8252_s13  ;;  %1233 = vst [vmem:[#allocation3 + $0x4] sm:$0xf] %v1232_v17  ;;  %vm8382_vm5 = vmand %vm2295_vm3, %vm2296_vm4  ;;  %vm1710_vm6 = vsmask.f32 7440  ;;  %vm3520_vm10 = vcmask 1046528   ;;  %vm3778_vm15 = vcmask 1044480  }
  0x11   : > { %8214 = vmatpush.bf16.msra.mxu3 %v7896_v1  ;;  %8212 = vmatpush.bf16.msra.mxu1 %v7896_v1  ;;  %v7837_v8 = vld [vmem:[%s8367_s18] sm:$0xff]  ;;  %v7838_v9 = vld [vmem:[%s8367_s18 + $0x8] sm:$0xff]  ;;  %v7839_v10 = vld [vmem:[%s8367_s18 + $0x10] sm:$0xff]  ;;  %5161 = vst [vmem:[#allocation6] sm:$0xf] %v5160_v22  ;;  %vm4468_vm2 = vcmask 1045504  }
  0x12   : > { %v7840_v11 = vld [vmem:[%s8367_s18 + $0x18] sm:$0xff]  ;;  %v7841_v12 = vld [vmem:[%s8367_s18 + $0x20] sm:$0xff]  ;;  %v7842_v13 = vld [vmem:[%s8367_s18 + $0x28] sm:$0xff]  ;;  %5398 = vst [vmem:[#allocation7 + $0x4] sm:$0xf] %v8292_v30  ;;  %s7836_s30 = sshll.u32 %s9827_s22, 3 }
  0x13   : > { %v7843_v14 = vld [vmem:[%s8367_s18 + $0x30] sm:$0xff]  ;;  %v7844_v15 = vld [vmem:[%s8367_s18 + $0x38] sm:$0xff]  ;;  %v7845_v18 = vld [vmem:[%s8367_s18 + $0x40] sm:$0xff]  ;;  %5399 = vst [vmem:[#allocation7 + $0x8] sm:$0xf] %v8292_v30  ;;  %s9786_s9 = scalar_lea.vmem %s9809_s6, %s7836_s30 }
  0x14   : > { %743 = vmatpush.bf16.msra.mxu0 %v7895_v2  ;;  %8216 = vmatpush.bf16.msra.mxu2 %v7895_v2  ;;  %v7846_v25 = vld [vmem:[%s8367_s18 + $0x48] sm:$0xff]  ;;  %5400 = vst [vmem:[#allocation7 + $0xc] sm:$0xf] %v8292_v30  ;;  %v7847_v38 = vld [vmem:[%s8367_s18 + $0x50] sm:$0xff]  ;;  %v7848_v57 = vld [vmem:[%s8367_s18 + $0x58] sm:$0xff] }
  0x15   : > { %8217 = vmatpush.bf16.msra.mxu3 %v7895_v2  ;;  %8215 = vmatpush.bf16.msra.mxu1 %v7895_v2  ;;  %5401 = vst [vmem:[#allocation7 + $0x10] sm:$0xf] %v8292_v30  ;;  %vm8390_vm7 = vmor %vm1229_vm1, %vm1710_vm6  ;;  %vm3165_vm11 = vsmask.f32 7424  ;;  %vm2354_vm12 = vsmask.f32 1280 }
  0x16   : > { %5402 = vst [vmem:[#allocation7 + $0x14] sm:$0xf] %v8292_v30  ;;  %vm8640_vm13 = vmand %vm2353_vm9, %vm2354_vm12  ;;  %vm3963_vm14 = vsmask.f32 4352  ;;  %vm4653_vm1 = vsmask.f32 5376 }
  0x17   : > { %5403 = vst [vmem:[#allocation7 + $0x18] sm:$0xf] %v8292_v30  ;;  %v2298_v40 = vld [vmem:[#allocation3 + $0x4] sm:$0x8]  ;;  %vm5440_vm3 = vsmask.f32 3330 }
  0x18   : > { %744 = vmatpush.bf16.msra.mxu0 %v7894_v3  ;;  %8219 = vmatpush.bf16.msra.mxu2 %v7894_v3  ;;  %5404 = vst [vmem:[#allocation7 + $0x1c] sm:$0xf] %v8292_v30  ;;  %vm9426_vm4 = vmand %vm1228_vm0, %vm5440_vm3  ;;  %vm5481_vm0 = vsmask.f32 5392  ;;  %vm5535_vm6 = vsmask.f32 2304 }
  0x19   : > { %8220 = vmatpush.bf16.msra.mxu3 %v7894_v3  ;;  %8218 = vmatpush.bf16.msra.mxu1 %v7894_v3  ;;  %6747 = vst [vmem:[#allocation9] sm:$0x3] %v8292_v30  ;;  %v7850_v30 = vld [vmem:[%s8367_s18 + $0x68] sm:$0xff]  ;;  %v8018_v58 = vld [vmem:[%s9807_s4 + $0xe0] sm:$0xff] }
  0x1c   : > { %745 = vmatpush.bf16.msra.mxu0 %v7893_v4  ;;  %8222 = vmatpush.bf16.msra.mxu2 %v7893_v4 }
  0x1d   : > { %8223 = vmatpush.bf16.msra.mxu3 %v7893_v4  ;;  %8221 = vmatpush.bf16.msra.mxu1 %v7893_v4 }
  0x20   : > { %746 = vmatpush.bf16.msra.mxu0 %v7892_v5  ;;  %8225 = vmatpush.bf16.msra.mxu2 %v7892_v5 }
  0x21   : > { %8226 = vmatpush.bf16.msra.mxu3 %v7892_v5  ;;  %8224 = vmatpush.bf16.msra.mxu1 %v7892_v5 }
  0x24   : > { %747 = vmatpush.bf16.msra.mxu0 %v7891_v6  ;;  %8228 = vmatpush.bf16.msra.mxu2 %v7891_v6 }
  0x25   : > { %8229 = vmatpush.bf16.msra.mxu3 %v7891_v6  ;;  %8227 = vmatpush.bf16.msra.mxu1 %v7891_v6 }
  0x28   : > { %748 = vmatpush.bf16.msra.mxu0 %v7890_v7  ;;  %8231 = vmatpush.bf16.msra.mxu2 %v7890_v7 }
  0x29   : > { %8232 = vmatpush.bf16.msra.mxu3 %v7890_v7  ;;  %8230 = vmatpush.bf16.msra.mxu1 %v7890_v7 }
  0x2b   : > { %749 = vmatmul.bf16.vlgmr.msra.gmra.mxu0 %v7837_v8 }
  0x3b   : > { %754 = vmatmul.bf16.gmra.mxu0 %v7838_v9 }
  0x4b   : > { %759 = vmatmul.bf16.gmra.mxu0 %v7839_v10 }
  0x5b   : > { %764 = vmatmul.bf16.gmra.mxu0 %v7840_v11 }
  0x6b   : > { %769 = vmatmul.bf16.gmra.mxu0 %v7841_v12  ;;  %v7849_v12 = vld [vmem:[%s8367_s18 + $0x60] sm:$0xff] }
  0x7b   : > { %774 = vmatmul.bf16.gmra.mxu0 %v7842_v13 }
  0x8b   : > { %779 = vmatmul.bf16.gmra.mxu0 %v7843_v14 }
  0x9b   : > { %784 = vmatmul.bf16.gmra.mxu0 %v7844_v15 }
  0xa8   : > { %v750_v19 = vpop.f32.mrf.mxu0 }
  0xa9   : > { %v1015_v20 = vmax.f32 %v750_v19, 0.0 }
  0xab   : > { %1121 = vst [vmem:[#allocation2] sm:$0xff] %v1015_v20  ;;  %789 = vmatmul.bf16.gmra.mxu0 %v7845_v18 }
  0xb0   : > { %v752_v23 = vpop.f32.mrf.mxu0 }
  0xb1   : > { %v1016_v24 = vmax.f32 %v752_v23, 0.0 }
  0xb3   : > { %1122 = vst [vmem:[#allocation2 + $0x8] sm:$0xff] %v1016_v24 }
  0xb8   : > { %v755_v26 = vpop.f32.mrf.mxu0 }
  0xb9   : > { %v1017_v27 = vmax.f32 %v755_v26, 0.0 }
  0xba   : > { %v1234_v28 = vld [vmem:[#allocation2] ss:$2 sm:$0xff]  ;;  %v1340_v29 = vld [vmem:[#allocation2 + $0x1] ss:$2 sm:$0xff] }
  0xbb   : > { %1123 = vst [vmem:[#allocation2 + $0x10] sm:$0xff] %v1017_v27  ;;  %794 = vmatmul.bf16.gmra.mxu0 %v7846_v25  ;;  %v1551_v32 = vmax.f32 %v1234_v28, %v1340_v29 }
  0xc0   : > { %v757_v31 = vpop.f32.mrf.mxu0 }
  0xc1   : > { %v1018_v33 = vmax.f32 %v757_v31, 0.0 }
  0xc2   : > { %v1446_v34 = vld [vmem:[#allocation2 + $0x2] ss:$2 sm:$0xff] }
  0xc3   : > { %v1604_v35 = vmax.f32 %v1551_v32, %v1446_v34  ;;  %1124 = vst [vmem:[#allocation2 + $0x18] sm:$0xff] %v1018_v33 }
  0xc5   : > { %v1657_v36 = vpack.c.bf16 %v1604_v35, %v1604_v35 }
  0xc7   : > { %v1713_v37 = vshll.u32 %v1657_v36, 16  ;;  %v1716_v45 = vshrl.u32 %v1657_v36, 16 }
  0xc8   : > { %v760_v41 = vpop.f32.mrf.mxu0 }
  0xc9   : > { %v1715_v42 = vrot.slane %v1713_v37, 5  ;;  %v1019_v43 = vmax.f32 %v760_v41, 0.0  ;;  %v1718_v49 = vrot.slane %v1716_v45, 4 }
  0xca   : > { %v1236_v46 = vld [vmem:[#allocation2 + $0x10] ss:$2 sm:$0xff]  ;;  %v1342_v47 = vld [vmem:[#allocation2 + $0x11] ss:$2 sm:$0xff] }
  0xcb   : > { %v2299_v44 = vsel %vm8382_vm5, %v1715_v42, %v2298_v40  ;;  %1125 = vst [vmem:[#allocation2 + $0x20] sm:$0xff] %v1019_v43  ;;  %799 = vmatmul.bf16.gmra.mxu0 %v7847_v38  ;;  %v1552_v50 = vmax.f32 %v1236_v46, %v1342_v47  ;;  %v1719_v54 = vor.u32 %v1718_v49, %v1715_v42  ;;  %v2359_v46 = vld [vmem:[#allocation3] sm:$0xf] }
  0xcc   : > { %2300 = vst [vmem:[#allocation3 + $0x4] sm:$0x8] %v2299_v44 }
  0xcd   : > { %v1720_v60 = vrot.slane %v1719_v54, 4 }
  0xd0   : > { %v762_v48 = vpop.f32.mrf.mxu0 }
  0xd1   : > { %v1020_v51 = vmax.f32 %v762_v48, 0.0 }
  0xd2   : > { %v1448_v52 = vld [vmem:[#allocation2 + $0x12] ss:$2 sm:$0xff] }
  0xd3   : > { %v1605_v53 = vmax.f32 %v1552_v50, %v1448_v52  ;;  %1126 = vst [vmem:[#allocation2 + $0x28] sm:$0xff] %v1020_v51  ;;  %v2361_v37 = vld [vmem:[#allocation3 + $0x4] sm:$0x8]  ;;  %v7885_v52 = vld [vmem:[%s8367_s18 + $0x180] sm:$0xff] }
  0xd4   : > { %v2369_v43 = vunpack.c.l.bf16 %v2361_v37  ;;  %989 = vmatmul.bf16.vlgmr.msra.gmra.mxu2 %v7885_v52 }
  0xd5   : > { %v1658_v55 = vpack.c.bf16 %v1605_v53, %v1605_v53 }
  0xd6   : > { %v2376_v53 = vrot.slane %v2369_v43, 7 }
  0xd7   : > { %v1722_v56 = vshll.u32 %v1658_v55, 16  ;;  %v1726_v0 = vshrl.u32 %v1658_v55, 16 }
  0xd8   : > { %v765_v59 = vpop.f32.mrf.mxu0 }
  0xd9   : > { %v1724_v61 = vrot.slane %v1722_v56, 5  ;;  %v1021_v62 = vmax.f32 %v765_v59, 0.0  ;;  %v1728_v4 = vrot.slane %v1726_v0, 4  ;;  %v7914_v56 = vld [vmem:[%s9805_s2 + $0x38] sm:$0xff]  ;;  %v2367_v59 = vunpack.c.l.bf16 %v2359_v46 }
  0xda   : > { %v1238_v1 = vld [vmem:[#allocation2 + $0x20] ss:$2 sm:$0xff]  ;;  %v1344_v2 = vld [vmem:[#allocation2 + $0x21] ss:$2 sm:$0xff]  ;;  %3437 = vmatpush.bf16.msrb.mxu2 %v7914_v56 }
  0xdb   : > { %v1725_v63 = vsel %vm8390_vm7, %v1720_v60, %v1724_v61  ;;  %1127 = vst [vmem:[#allocation2 + $0x30] sm:$0xff] %v1021_v62  ;;  %804 = vmatmul.bf16.gmra.mxu0 %v7848_v57  ;;  %v1553_v5 = vmax.f32 %v1238_v1, %v1344_v2  ;;  %v1729_v9 = vor.u32 %v1728_v4, %v1724_v61  ;;  %v7913_v4 = vld [vmem:[%s9805_s2 + $0x30] sm:$0xff] }
  0xdc   : > { %2301 = vst [vmem:[#allocation3 + $0x8] sm:$0xf] %v1725_v63 }
  0xdd   : > { %v1730_v14 = vrot.slane %v1729_v9, 4 }
  0xde   : > { %3438 = vmatpush.bf16.msrb.mxu2 %v7913_v4 }
  0xe0   : > { %v767_v3 = vpop.f32.mrf.mxu0 }
  0xe1   : > { %v1022_v6 = vmax.f32 %v767_v3, 0.0  ;;  %v7851_v3 = vld [vmem:[%s8367_s18 + $0x70] sm:$0xff] }
  0xe2   : > { %v1450_v7 = vld [vmem:[#allocation2 + $0x22] ss:$2 sm:$0xff] }
  0xe3   : > { %v1606_v8 = vmax.f32 %v1553_v5, %v1450_v7  ;;  %1128 = vst [vmem:[#allocation2 + $0x38] sm:$0xff] %v1022_v6  ;;  %v2362_v35 = vld [vmem:[#allocation3 + $0x8] sm:$0xf] }
  0xe4   : > { %v2370_v38 = vunpack.c.l.bf16 %v2362_v35 }
  0xe5   : > { %v1659_v10 = vpack.c.bf16 %v1606_v8, %v1606_v8 }
  0xe6   : > { %v8402_v47 = vrot.slane %v2370_v38, 7 }
  0xe7   : > { %v1732_v11 = vshll.u32 %v1659_v10, 16  ;;  %v1736_v18 = vshrl.u32 %v1659_v10, 16 }
  0xe8   : > { %v770_v13 = vpop.f32.mrf.mxu0  ;;  %v2378_v60 = vsel %vm2375_vm8, %v2376_v53, %v8402_v47 }
  0xe9   : > { %v1734_v15 = vrot.slane %v1732_v11, 5  ;;  %v1023_v16 = vmax.f32 %v770_v13, 0.0  ;;  %v1738_v22 = vrot.slane %v1736_v18, 4  ;;  %v2383_v5 = vmax.f32 %v2367_v59, %v2378_v60 }
  0xea   : > { %v1240_v19 = vld [vmem:[#allocation2 + $0x30] ss:$2 sm:$0xff]  ;;  %v1346_v20 = vld [vmem:[#allocation2 + $0x31] ss:$2 sm:$0xff] }
  0xeb   : > { %v1735_v17 = vsel %vm8390_vm7, %v1730_v14, %v1734_v15  ;;  %1129 = vst [vmem:[#allocation2 + $0x40] sm:$0xff] %v1023_v16  ;;  %809 = vmatmul.bf16.gmra.mxu0 %v7849_v12  ;;  %v1554_v23 = vmax.f32 %v1240_v19, %v1346_v20  ;;  %v1739_v27 = vor.u32 %v1738_v22, %v1734_v15  ;;  %v7912_v14 = vld [vmem:[%s9805_s2 + $0x28] sm:$0xff]  ;;  %v7911_v20 = vld [vmem:[%s9805_s2 + $0x20] sm:$0xff]  ;;  %v2360_v22 = vld [vmem:[#allocation3 + $0x4] sm:$0x7] }
  0xec   : > { %2302 = vst [vmem:[#allocation3 + $0xc] sm:$0xf] %v1735_v17  ;;  %3439 = vmatpush.bf16.msrb.mxu2 %v7912_v14 }
  0xed   : > { %v1740_v32 = vrot.slane %v1739_v27, 4 }
  0xf0   : > { %v772_v21 = vpop.f32.mrf.mxu0  ;;  %3440 = vmatpush.bf16.msrb.mxu2 %v7911_v20 }
  0xf1   : > { %v1024_v24 = vmax.f32 %v772_v21, 0.0 }
  0xf2   : > { %v1452_v25 = vld [vmem:[#allocation2 + $0x32] ss:$2 sm:$0xff] }
  0xf3   : > { %v1607_v26 = vmax.f32 %v1554_v23, %v1452_v25  ;;  %1130 = vst [vmem:[#allocation2 + $0x48] sm:$0xff] %v1024_v24  ;;  %v2364_v44 = vld [vmem:[#allocation3 + $0xc] sm:$0x8]  ;;  %v2363_v11 = vld [vmem:[#allocation3 + $0xc] sm:$0x7] }
  0xf4   : > { %v2389_v54 = vunpack.c.l.bf16 %v2364_v44  ;;  %v2371_v15 = vunpack.c.l.bf16 %v2363_v11 }
  0xf5   : > { %v1660_v28 = vpack.c.bf16 %v1607_v26, %v1607_v26 }
  0xf6   : > { %v2396_v0 = vrot.slane %v2389_v54, 6  ;;  %v2379_v23 = vrot.slane %v2371_v15, 7 }
  0xf7   : > { %v1742_v29 = vshll.u32 %v1660_v28, 16  ;;  %v1746_v40 = vshrl.u32 %v1660_v28, 16  ;;  %v7886_v28 = vld [vmem:[%s8367_s18 + $0x188] sm:$0xff] }
  0xf8   : > { %v775_v31 = vpop.f32.mrf.mxu0  ;;  %994 = vmatmul.bf16.gmra.mxu2 %v7886_v28 }
  0xf9   : > { %v1744_v33 = vrot.slane %v1742_v29, 5  ;;  %v1025_v34 = vmax.f32 %v775_v31, 0.0  ;;  %v1748_v48 = vrot.slane %v1746_v40, 4  ;;  %v7852_v40 = vld [vmem:[%s8367_s18 + $0x78] sm:$0xff] }
  0xfa   : > { %v1242_v41 = vld [vmem:[#allocation2 + $0x40] ss:$2 sm:$0xff]  ;;  %v1348_v42 = vld [vmem:[#allocation2 + $0x41] ss:$2 sm:$0xff] }
  0xfb   : > { %v1745_v36 = vsel %vm8390_vm7, %v1740_v32, %v1744_v33  ;;  %1131 = vst [vmem:[#allocation2 + $0x50] sm:$0xff] %v1025_v34  ;;  %814 = vmatmul.bf16.gmra.mxu0 %v7850_v30  ;;  %v1555_v49 = vmax.f32 %v1242_v41, %v1348_v42  ;;  %v1749_v62 = vor.u32 %v1748_v48, %v1744_v33  ;;  %v7910_v30 = vld [vmem:[%s9805_s2 + $0x18] sm:$0xff]  ;;  %v2368_v32 = vunpack.c.l.bf16 %v2360_v22  ;;  %v7909_v41 = vld [vmem:[%s9805_s2 + $0x10] sm:$0xff] }
  0xfc   : > { %2303 = vst [vmem:[#allocation3 + $0x10] sm:$0xf] %v1745_v36  ;;  %v2380_v33 = vsel %vm2375_vm8, %v8402_v47, %v2379_v23  ;;  %3441 = vmatpush.bf16.msrb.mxu2 %v7910_v30  ;;  %v7887_v30 = vld [vmem:[%s8367_s18 + $0x190] sm:$0xff] }
  0xfd   : > { %v1750_v8 = vrot.slane %v1749_v62, 4  ;;  %v2384_v42 = vmax.f32 %v2368_v32, %v2380_v33  ;;  %999 = vmatmul.bf16.vlgmr.msra.gmra.mxu3 %v7887_v30 }
 0x100   : > { %v777_v45 = vpop.f32.mrf.mxu0  ;;  %3442 = vmatpush.bf16.msrb.mxu2 %v7909_v41 }
 0x101   : > { %v1026_v50 = vmax.f32 %v777_v45, 0.0 }
 0x102   : > { %v1454_v51 = vld [vmem:[#allocation2 + $0x42] ss:$2 sm:$0xff] }
 0x103   : > { %v1608_v55 = vmax.f32 %v1555_v49, %v1454_v51  ;;  %1132 = vst [vmem:[#allocation2 + $0x58] sm:$0xff] %v1026_v50  ;;  %v2365_v57 = vld [vmem:[#allocation3 + $0x10] sm:$0xf]  ;;  %v7908_v50 = vld [vmem:[%s9805_s2 + $0x8] sm:$0xff] }
 0x104   : > { %v2390_v61 = vunpack.c.l.bf16 %v2365_v57  ;;  %3443 = vmatpush.bf16.msrb.mxu2 %v7908_v50 }
 0x105   : > { %v1661_v63 = vpack.c.bf16 %v1608_v55, %v1608_v55  ;;  %v7907_v55 = vld [vmem:[%s9805_s2] sm:$0xff] }
 0x106   : > { %v2397_v1 = vrot.slane %v2390_v61, 6 }
 0x107   : > { %v1752_v2 = vshll.u32 %v1661_v63, 16  ;;  %v1756_v17 = vshrl.u32 %v1661_v63, 16 }
 0x108   : > { %v780_v6 = vpop.f32.mrf.mxu0  ;;  %v2398_v7 = vsel %vm2353_vm9, %v2396_v0, %v2397_v1  ;;  %3444 = vmatpush.bf16.msrb.mxu2 %v7907_v55 }
 0x109   : > { %v1754_v9 = vrot.slane %v1752_v2, 5  ;;  %v1027_v10 = vmax.f32 %v780_v6, 0.0  ;;  %v2403_v12 = vmax.f32 %v2383_v5, %v2398_v7  ;;  %v1758_v24 = vrot.slane %v1756_v17, 4  ;;  %v7853_v2 = vld [vmem:[%s8367_s18 + $0x80] sm:$0xff]  ;;  %v2409_v17 = vld [vmem:[#allocation3 + $0xc] sm:$0x8] }
 0x10a   : > { %v1244_v18 = vld [vmem:[#allocation2 + $0x50] ss:$2 sm:$0xff]  ;;  %v1350_v19 = vld [vmem:[#allocation2 + $0x51] ss:$2 sm:$0xff]  ;;  %v2418_v22 = vunpack.c.l.bf16 %v2409_v17 }
 0x10b   : > { %v1755_v13 = vsel %vm8390_vm7, %v1750_v8, %v1754_v9  ;;  %1133 = vst [vmem:[#allocation2 + $0x60] sm:$0xff] %v1027_v10  ;;  %819 = vmatmul.bf16.gmra.mxu0 %v7851_v3  ;;  %v2405_v16 = vpack.c.bf16 %v2403_v12, %v2403_v12  ;;  %v1556_v25 = vmax.f32 %v1244_v18, %v1350_v19 }
 0x10c   : > { %2304 = vst [vmem:[#allocation3 + $0x14] sm:$0xf] %v1755_v13  ;;  %v1759_v35 = vor.u32 %v1758_v24, %v1754_v9 }
 0x10d   : > { %2407 = vst [vmem:[#allocation4] sm:$0xf] %v2405_v16 }
 0x10e   : > { %v1760_v45 = vrot.slane %v1759_v35, 4 }
 0x110   : > { %v782_v21 = vpop.f32.mrf.mxu0 }
 0x111   : > { %v1028_v26 = vmax.f32 %v782_v21, 0.0 }
 0x112   : > { %v1456_v27 = vld [vmem:[#allocation2 + $0x52] ss:$2 sm:$0xff] }
 0x113   : > { %v1609_v29 = vmax.f32 %v1556_v25, %v1456_v27  ;;  %1134 = vst [vmem:[#allocation2 + $0x68] sm:$0xff] %v1028_v26  ;;  %v2366_v31 = vld [vmem:[#allocation3 + $0x14] sm:$0x3]  ;;  %v2412_v8 = vld [vmem:[#allocation3 + $0x14] sm:$0xc] }
 0x114   : > { %v2391_v34 = vunpack.c.l.bf16 %v2366_v31  ;;  %v2421_v12 = vunpack.c.l.bf16 %v2412_v8  ;;  %v7883_v8 = vld [vmem:[%s8367_s18 + $0x170] sm:$0xff] }
 0x115   : > { %v1662_v36 = vpack.c.bf16 %v1609_v29, %v1609_v29  ;;  %v7854_v29 = vld [vmem:[%s8367_s18 + $0x88] sm:$0xff] }
 0x116   : > { %v2399_v37 = vrot.slane %v2391_v34, 6  ;;  %v2427_v19 = vrot.slane %v2421_v12, 7  ;;  %v7922_v12 = vld [vmem:[%s9805_s2 + $0x78] sm:$0xff] }
 0x117   : > { %v1762_v38 = vshll.u32 %v1662_v36, 16  ;;  %v1766_v52 = vshrl.u32 %v1662_v36, 16  ;;  %v7882_v36 = vld [vmem:[%s8367_s18 + $0x168] sm:$0xff]  ;;  %3312 = vmatpush.bf16.msrb.mxu1 %v7922_v12 }
 0x118   : > { %v785_v43 = vpop.f32.mrf.mxu0  ;;  %v2400_v44 = vsel %vm2353_vm9, %v2397_v1, %v2399_v37  ;;  %v2435_v26 = vmax.f32 %v2418_v22, %v2427_v19  ;;  %974 = vmatmul.bf16.vlgmr.msra.gmra.mxu1 %v7882_v36 }
 0x119   : > { %v1764_v46 = vrot.slane %v1762_v38, 5  ;;  %v1029_v48 = vmax.f32 %v785_v43, 0.0  ;;  %v2404_v47 = vmax.f32 %v2384_v42, %v2400_v44  ;;  %v1768_v57 = vrot.slane %v1766_v52, 4 }
 0x11a   : > { %v1246_v53 = vld [vmem:[#allocation2 + $0x60] ss:$2 sm:$0xff]  ;;  %v1352_v54 = vld [vmem:[#allocation2 + $0x61] ss:$2 sm:$0xff] }
 0x11b   : > { %v1765_v49 = vsel %vm8390_vm7, %v1760_v45, %v1764_v46  ;;  %1135 = vst [vmem:[#allocation2 + $0x70] sm:$0xff] %v1029_v48  ;;  %824 = vmatmul.bf16.gmra.mxu0 %v7852_v40  ;;  %v2406_v51 = vpack.c.bf16 %v2404_v47, %v2404_v47  ;;  %v1557_v59 = vmax.f32 %v1246_v53, %v1352_v54  ;;  %v2410_v53 = vld [vmem:[#allocation3 + $0x10] sm:$0xf] }
 0x11c   : > { %2305 = vst [vmem:[#allocation3 + $0x18] sm:$0xf] %v1765_v49  ;;  %v1769_v63 = vor.u32 %v1768_v57, %v1764_v46 }
 0x11d   : > { %2408 = vst [vmem:[#allocation4 + $0x4] sm:$0x7] %v2406_v51 }
 0x11e   : > { %v1770_v4 = vrot.slane %v1769_v63, 4  ;;  %v7855_v63 = vld [vmem:[%s8367_s18 + $0x90] sm:$0xff] }
 0x120   : > { %v787_v56 = vpop.f32.mrf.mxu0 }
 0x121   : > { %v1030_v60 = vmax.f32 %v787_v56, 0.0 }
 0x122   : > { %v1458_v61 = vld [vmem:[#allocation2 + $0x62] ss:$2 sm:$0xff] }
 0x123   : > { %v1610_v62 = vmax.f32 %v1557_v59, %v1458_v61  ;;  %1136 = vst [vmem:[#allocation2 + $0x78] sm:$0xff] %v1030_v60  ;;  %v2413_v37 = vld [vmem:[#allocation3 + $0x18] sm:$0xf]  ;;  %v2419_v61 = vunpack.c.l.bf16 %v2410_v53  ;;  %v7918_v53 = vld [vmem:[%s9805_s2 + $0x58] sm:$0xff] }
 0x124   : > { %v2422_v42 = vunpack.c.l.bf16 %v2413_v37  ;;  %v7919_v37 = vld [vmem:[%s9805_s2 + $0x60] sm:$0xff] }
 0x125   : > { %v1663_v0 = vpack.c.bf16 %v1610_v62, %v1610_v62 }
 0x126   : > { %v2428_v49 = vrot.slane %v2422_v42, 7  ;;  %v7889_v42 = vld [vmem:[%s8367_s18 + $0x1a0] sm:$0xff] }
 0x127   : > { %v1772_v1 = vshll.u32 %v1663_v0, 16  ;;  %v1776_v9 = vshrl.u32 %v1663_v0, 16  ;;  %v7888_v0 = vld [vmem:[%s8367_s18 + $0x198] sm:$0xff] }
 0x128   : > { %v790_v3 = vpop.f32.mrf.mxu0  ;;  %v2429_v59 = vsel %vm2375_vm8, %v2427_v19, %v2428_v49  ;;  %1004 = vmatmul.bf16.gmra.mxu3 %v7888_v0  ;;  %979 = vmatmul.bf16.gmra.mxu1 %v7883_v8  ;;  %v7921_v19 = vld [vmem:[%s9805_s2 + $0x70] sm:$0xff] }
 0x129   : > { %v1774_v5 = vrot.slane %v1772_v1, 5  ;;  %v1031_v6 = vmax.f32 %v790_v3, 0.0  ;;  %v1778_v14 = vrot.slane %v1776_v9, 4  ;;  %v7930_v3 = vld [vmem:[%s9805_s2 + $0xb8] sm:$0xff]  ;;  %3313 = vmatpush.bf16.msrb.mxu1 %v7921_v19 }
 0x12a   : > { %v1248_v10 = vld [vmem:[#allocation2 + $0x70] ss:$2 sm:$0xff]  ;;  %v1354_v11 = vld [vmem:[#allocation2 + $0x71] ss:$2 sm:$0xff]  ;;  %3601 = vmatpush.bf16.msrb.mxu3 %v7930_v3 }
 0x12b   : > { %v1775_v7 = vsel %vm8390_vm7, %v1770_v4, %v1774_v5  ;;  %1137 = vst [vmem:[#allocation2 + $0x80] sm:$0xff] %v1031_v6  ;;  %829 = vmatmul.bf16.gmra.mxu0 %v7853_v2  ;;  %v1558_v15 = vmax.f32 %v1248_v10, %v1354_v11  ;;  %v1779_v24 = vor.u32 %v1778_v14, %v1774_v5 }
 0x12c   : > { %2306 = vst [vmem:[#allocation3 + $0x1c] sm:$0xf] %v1775_v7  ;;  %v2436_v4 = vmax.f32 %v2419_v61, %v2429_v59  ;;  %v7917_v61 = vld [vmem:[%s9805_s2 + $0x50] sm:$0xff] }
 0x12d   : > { %v1780_v33 = vrot.slane %v1779_v24, 4 }
 0x130   : > { %v792_v13 = vpop.f32.mrf.mxu0 }
 0x131   : > { %v1032_v16 = vmax.f32 %v792_v13, 0.0  ;;  %v7929_v13 = vld [vmem:[%s9805_s2 + $0xb0] sm:$0xff] }
 0x132   : > { %v1460_v18 = vld [vmem:[#allocation2 + $0x72] ss:$2 sm:$0xff]  ;;  %3602 = vmatpush.bf16.msrb.mxu3 %v7929_v13 }
 0x133   : > { %v1611_v20 = vmax.f32 %v1558_v15, %v1460_v18  ;;  %1138 = vst [vmem:[#allocation2 + $0x88] sm:$0xff] %v1032_v16  ;;  %v2415_v21 = vld [vmem:[#allocation3 + $0x1c] sm:$0xc]  ;;  %v2414_v9 = vld [vmem:[#allocation3 + $0x1c] sm:$0x3] }
 0x134   : > { %v2444_v23 = vunpack.c.l.bf16 %v2415_v21  ;;  %v2423_v14 = vunpack.c.l.bf16 %v2414_v9  ;;  %v7928_v21 = vld [vmem:[%s9805_s2 + $0xa8] sm:$0xff]  ;;  %v7915_v9 = vld [vmem:[%s9805_s2 + $0x40] sm:$0xff] }
 0x135   : > { %v1664_v25 = vpack.c.bf16 %v1611_v20, %v1611_v20 }
 0x136   : > { %v2450_v27 = vrot.slane %v2444_v23, 6  ;;  %v2430_v22 = vrot.slane %v2423_v14, 7  ;;  %3603 = vmatpush.bf16.msrb.mxu3 %v7928_v21 }
 0x137   : > { %v1782_v28 = vshll.u32 %v1664_v25, 16  ;;  %v1786_v41 = vshrl.u32 %v1664_v25, 16 }
 0x138   : > { %v795_v31 = vpop.f32.mrf.mxu0  ;;  %v2458_v32 = vmax.f32 %v2435_v26, %v2450_v27  ;;  %1009 = vmatmul.bf16.gmra.mxu3 %v7889_v42 }
 0x139   : > { %v1784_v34 = vrot.slane %v1782_v28, 5  ;;  %v1033_v35 = vmax.f32 %v795_v31, 0.0  ;;  %v1788_v46 = vrot.slane %v1786_v41, 4  ;;  %v2411_v28 = vld [vmem:[#allocation3 + $0x14] sm:$0x3]  ;;  %v7856_v41 = vld [vmem:[%s8367_s18 + $0x98] sm:$0xff] }
 0x13a   : > { %v2461_v38 = vpack.c.bf16 %v2458_v32, %v2458_v32  ;;  %v1250_v43 = vld [vmem:[#allocation2 + $0x80] ss:$2 sm:$0xff]  ;;  %v1356_v44 = vld [vmem:[#allocation2 + $0x81] ss:$2 sm:$0xff]  ;;  %v2431_v32 = vsel %vm2375_vm8, %v2428_v49, %v2430_v22  ;;  %v2420_v36 = vunpack.c.l.bf16 %v2411_v28 }
 0x13b   : > { %v1785_v40 = vsel %vm8390_vm7, %v1780_v33, %v1784_v34  ;;  %1139 = vst [vmem:[#allocation2 + $0x90] sm:$0xff] %v1033_v35  ;;  %834 = vmatmul.bf16.gmra.mxu0 %v7854_v29  ;;  %v1559_v48 = vmax.f32 %v1250_v43, %v1356_v44  ;;  %v1789_v56 = vor.u32 %v1788_v46, %v1784_v34  ;;  %v7927_v31 = vld [vmem:[%s9805_s2 + $0xa0] sm:$0xff] }
 0x13c   : > { %2307 = vst [vmem:[#allocation3 + $0x20] sm:$0xf] %v1785_v40  ;;  %3604 = vmatpush.bf16.msrb.mxu3 %v7927_v31  ;;  %v2437_v43 = vmax.f32 %v2420_v36, %v2431_v32 }
 0x13d   : > { %2464 = vst [vmem:[#allocation4 + $0x4] sm:$0x8] %v2461_v38  ;;  %v1790_v5 = vrot.slane %v1789_v56, 4 }
 0x140   : > { %v797_v45 = vpop.f32.mrf.mxu0 }
 0x141   : > { %v1034_v47 = vmax.f32 %v797_v45, 0.0  ;;  %v7926_v45 = vld [vmem:[%s9805_s2 + $0x98] sm:$0xff] }
 0x142   : > { %v1462_v50 = vld [vmem:[#allocation2 + $0x82] ss:$2 sm:$0xff]  ;;  %3605 = vmatpush.bf16.msrb.mxu3 %v7926_v45 }
 0x143   : > { %v1612_v51 = vmax.f32 %v1559_v48, %v1462_v50  ;;  %1140 = vst [vmem:[#allocation2 + $0x98] sm:$0xff] %v1034_v47  ;;  %v2416_v52 = vld [vmem:[#allocation3 + $0x20] sm:$0xf]  ;;  %v7884_v50 = vld [vmem:[%s8367_s18 + $0x178] sm:$0xff] }
 0x144   : > { %v2445_v54 = vunpack.c.l.bf16 %v2416_v52  ;;  %v8450_v55 = vld [vmem:[#allocation4] sm:$0xff]   ;;  %984 = vmatmul.bf16.gmra.mxu1 %v7884_v50 }
 0x145   : > { %v1665_v57 = vpack.c.bf16 %v1612_v51, %v1612_v51  ;;  %3445 = vmatmul.bf16.vlgmr.msrb.gmra.mxu2 %v8450_v55 }
 0x146   : > { %v8454_v60 = vrot.slane %v2445_v54, 6  ;;  %v7925_v54 = vld [vmem:[%s9805_s2 + $0x90] sm:$0xff] }
 0x147   : > { %v1792_v62 = vshll.u32 %v1665_v57, 16  ;;  %v1796_v16 = vshrl.u32 %v1665_v57, 16  ;;  %3606 = vmatpush.bf16.msrb.mxu3 %v7925_v54  ;;  %v8140_v54 = vld [vmem:[#allocation4] sm:$0xf0] }
 0x148   : > { %v2452_v1 = vsel %vm2353_vm9, %v2450_v27, %v8454_v60  ;;  %v800_v2 = vpop.f32.mrf.mxu0  ;;  %v7920_v27 = vld [vmem:[%s9805_s2 + $0x68] sm:$0xff] }
 0x149   : > { %v1794_v6 = vrot.slane %v1792_v62, 5  ;;  %v1035_v7 = vmax.f32 %v800_v2, 0.0  ;;  %v2459_v10 = vmax.f32 %v2436_v4, %v2452_v1  ;;  %v1798_v23 = vrot.slane %v1796_v16, 4  ;;  %3314 = vmatpush.bf16.msrb.mxu1 %v7920_v27  ;;  %v7916_v4 = vld [vmem:[%s9805_s2 + $0x48] sm:$0xff] }
 0x14a   : > { %v1252_v17 = vld [vmem:[#allocation2 + $0x90] ss:$2 sm:$0xff]  ;;  %v1358_v18 = vld [vmem:[#allocation2 + $0x91] ss:$2 sm:$0xff] }
 0x14b   : > { %v1795_v11 = vsel %vm8390_vm7, %v1790_v5, %v1794_v6  ;;  %1141 = vst [vmem:[#allocation2 + $0xa0] sm:$0xff] %v1035_v7  ;;  %839 = vmatmul.bf16.gmra.mxu0 %v7855_v63  ;;  %v2462_v15 = vpack.c.bf16 %v2459_v10, %v2459_v10  ;;  %v1560_v24 = vmax.f32 %v1252_v17, %v1358_v18  ;;  %v7924_v63 = vld [vmem:[%s9805_s2 + $0x88] sm:$0xff] }
 0x14c   : > { %2308 = vst [vmem:[#allocation3 + $0x24] sm:$0xf] %v1795_v11  ;;  %v1799_v34 = vor.u32 %v1798_v23, %v1794_v6  ;;  %3607 = vmatpush.bf16.msrb.mxu3 %v7924_v63  ;;  %v7923_v6 = vld [vmem:[%s9805_s2 + $0x80] sm:$0xff] }
 0x14d   : > { %2465 = vst [vmem:[#allocation4 + $0x8] sm:$0xf] %v2462_v15  ;;  %3315 = vmatpush.bf16.msrb.mxu1 %v7919_v37  ;;  %v7857_v11 = vld [vmem:[%s8367_s18 + $0xa0] sm:$0xff] }
 0x14e   : > { %v1800_v48 = vrot.slane %v1799_v34, 4 }
 0x150   : > { %v802_v20 = vpop.f32.mrf.mxu0  ;;  %3608 = vmatpush.bf16.msrb.mxu3 %v7923_v6 }
 0x151   : > { %v1036_v25 = vmax.f32 %v802_v20, 0.0  ;;  %3316 = vmatpush.bf16.msrb.mxu1 %v7918_v53 }
 0x152   : > { %v1464_v26 = vld [vmem:[#allocation2 + $0x92] ss:$2 sm:$0xff] }
 0x153   : > { %v1613_v29 = vmax.f32 %v1560_v24, %v1464_v26  ;;  %1142 = vst [vmem:[#allocation2 + $0xa8] sm:$0xff] %v1036_v25  ;;  %v2417_v30 = vld [vmem:[#allocation3 + $0x24] sm:$0x1]  ;;  %v2470_v17 = vld [vmem:[#allocation3 + $0x24] sm:$0xe] }
 0x154   : > { %v2446_v33 = vunpack.c.l.bf16 %v2417_v30  ;;  %v2478_v21 = vunpack.c.l.bf16 %v2470_v17  ;;  %v2467_v26 = vld [vmem:[#allocation3 + $0x1c] sm:$0xc] }
 0x155   : > { %v1666_v35 = vpack.c.bf16 %v1613_v29, %v1613_v29  ;;  %3317 = vmatpush.bf16.msrb.mxu1 %v7917_v61  ;;  %v2475_v31 = vunpack.c.l.bf16 %v2467_v26  ;;  %v2468_v61 = vld [vmem:[#allocation3 + $0x20] sm:$0xf] }
 0x156   : > { %v2453_v38 = vrot.slane %v2446_v33, 6  ;;  %v2484_v28 = vrot.slane %v2478_v21, 7 }
 0x157   : > { %v1802_v40 = vshll.u32 %v1666_v35, 16  ;;  %v1806_v57 = vshrl.u32 %v1666_v35, 16 }
 0x158   : > { %v805_v44 = vpop.f32.mrf.mxu0  ;;  %v2454_v46 = vsel %vm2353_vm9, %v8454_v60, %v2453_v38  ;;  %v2492_v35 = vmax.f32 %v2475_v31, %v2484_v28  ;;  %v7858_v38 = vld [vmem:[%s8367_s18 + $0xa8] sm:$0xff] }
 0x159   : > { %v1804_v47 = vrot.slane %v1802_v40, 5  ;;  %v1037_v49 = vmax.f32 %v805_v44, 0.0  ;;  %v2460_v51 = vmax.f32 %v2437_v43, %v2454_v46  ;;  %v1808_v0 = vrot.slane %v1806_v57, 4  ;;  %3318 = vmatpush.bf16.msrb.mxu1 %v7916_v4 }
 0x15a   : > { %v1254_v59 = vld [vmem:[#allocation2 + $0xa0] ss:$2 sm:$0xff]  ;;  %v1360_v60 = vld [vmem:[#allocation2 + $0xa1] ss:$2 sm:$0xff] }
 0x15b   : > { %v1805_v52 = vsel %vm8390_vm7, %v1800_v48, %v1804_v47  ;;  %1143 = vst [vmem:[#allocation2 + $0xb0] sm:$0xff] %v1037_v49  ;;  %844 = vmatmul.bf16.gmra.mxu0 %v7856_v41  ;;  %v2463_v56 = vpack.c.bf16 %v2460_v51, %v2460_v51  ;;  %v1561_v1 = vmax.f32 %v1254_v59, %v1360_v60  ;;  %v8141_v60 = vld [vmem:[#allocation4] sm:$0xe] }
 0x15c   : > { %2309 = vst [vmem:[#allocation3 + $0x28] sm:$0xf] %v1805_v52  ;;  %v1809_v7 = vor.u32 %v1808_v0, %v1804_v47 }
 0x15d   : > { %2466 = vst [vmem:[#allocation4 + $0xc] sm:$0x3] %v2463_v56  ;;  %3319 = vmatpush.bf16.msrb.mxu1 %v7915_v9  ;;  %v3169_v56 = vshll.u32 %v8450_v55, 16 }
 0x15e   : > { %v1810_v13 = vrot.slane %v1809_v7, 4 }
 0x160   : > { %v807_v62 = vpop.f32.mrf.mxu0 }
 0x161   : > { %v1038_v2 = vmax.f32 %v807_v62, 0.0 }
 0x162   : > { %v1466_v3 = vld [vmem:[#allocation2 + $0xa2] ss:$2 sm:$0xff] }
 0x163   : > { %v1614_v5 = vmax.f32 %v1561_v1, %v1466_v3  ;;  %1144 = vst [vmem:[#allocation2 + $0xb8] sm:$0xff] %v1038_v2  ;;  %v2471_v46 = vld [vmem:[#allocation3 + $0x28] sm:$0xf]  ;;  %v8142_v2 = vor.u32 %v8141_v60, %v8140_v54  ;;  %v2469_v3 = vld [vmem:[#allocation3 + $0x24] sm:$0x1] }
 0x164   : > { %v2479_v50 = vunpack.c.l.bf16 %v2471_v46  ;;  %v7860_v54 = vld [vmem:[%s8367_s18 + $0xb8] sm:$0xff] }
 0x165   : > { %v1667_v8 = vpack.c.bf16 %v1614_v5, %v1614_v5  ;;  %v3171_v5 = vrot.slane %v3169_v56, 1  ;;  %v3521_v17 = vrot.slane %v8142_v2, 1 }
 0x166   : > { %v2485_v62 = vrot.slane %v2479_v50, 7 }
 0x167   : > { %v1812_v10 = vshll.u32 %v1667_v8, 16  ;;  %v1816_v18 = vshrl.u32 %v1667_v8, 16  ;;  %v2476_v8 = vunpack.c.l.bf16 %v2468_v61 }
 0x168   : > { %v810_v12 = vpop.f32.mrf.mxu0 }
 0x169   : > { %v1814_v14 = vrot.slane %v1812_v10, 5  ;;  %v1039_v15 = vmax.f32 %v810_v12, 0.0  ;;  %v1818_v23 = vrot.slane %v1816_v18, 4  ;;  %v3167_v10 = vshrl.u32 %v8450_v55, 16 }
 0x16a   : > { %v1256_v19 = vld [vmem:[#allocation2 + $0xb0] ss:$2 sm:$0xff]  ;;  %v1362_v20 = vld [vmem:[#allocation2 + $0xb1] ss:$2 sm:$0xff]  ;;  %v2477_v12 = vunpack.c.l.bf16 %v2469_v3 }
 0x16b   : > { %v1815_v16 = vsel %vm8390_vm7, %v1810_v13, %v1814_v14  ;;  %1145 = vst [vmem:[#allocation2 + $0xc0] sm:$0xff] %v1039_v15  ;;  %849 = vmatmul.bf16.gmra.mxu0 %v7857_v11  ;;  %v1562_v24 = vmax.f32 %v1256_v19, %v1362_v20  ;;  %v1819_v33 = vor.u32 %v1818_v23, %v1814_v14  ;;  %v7859_v23 = vld [vmem:[%s8367_s18 + $0xb0] sm:$0xff] }
 0x16c   : > { %2310 = vst [vmem:[#allocation3 + $0x2c] sm:$0xf] %v1815_v16  ;;  %v2486_v13 = vsel %vm2375_vm8, %v2484_v28, %v2485_v62  ;;  %v3172_v55 = vor.u32 %v3171_v5, %v3167_v10  ;;  %v990_v28 = vpop.f32.mrf.mxu2 }
 0x16d   : > { %v1820_v43 = vrot.slane %v1819_v33, 4 }
 0x170   : > { %v812_v22 = vpop.f32.mrf.mxu0 }
 0x171   : > { %v1040_v25 = vmax.f32 %v812_v22, 0.0 }
 0x172   : > { %v1468_v27 = vld [vmem:[#allocation2 + $0xb2] ss:$2 sm:$0xff] }
 0x173   : > { %v1615_v29 = vmax.f32 %v1562_v24, %v1468_v27  ;;  %1146 = vst [vmem:[#allocation2 + $0xc8] sm:$0xff] %v1040_v25  ;;  %v2473_v30 = vld [vmem:[#allocation3 + $0x2c] sm:$0xe]  ;;  %v2472_v42 = vld [vmem:[#allocation3 + $0x2c] sm:$0x1]  ;;  %v2493_v24 = vmax.f32 %v2476_v8, %v2486_v13 }
 0x174   : > { %v2501_v32 = vunpack.c.l.bf16 %v2473_v30  ;;  %v2480_v49 = vunpack.c.l.bf16 %v2472_v42 }
 0x175   : > { %v1668_v34 = vpack.c.bf16 %v1615_v29, %v1615_v29 }
 0x176   : > { %v8522_v36 = vrot.slane %v2501_v32, 6  ;;  %v2487_v57 = vrot.slane %v2480_v49, 7  ;;  %v992_v49 = vpop.f32.mrf.mxu2 }
 0x177   : > { %v1822_v37 = vshll.u32 %v1668_v34, 16  ;;  %v1826_v51 = vshrl.u32 %v1668_v34, 16 }
 0x178   : > { %v815_v40 = vpop.f32.mrf.mxu0  ;;  %v2511_v41 = vmax.f32 %v2492_v35, %v8522_v36  ;;  %v2488_v9 = vsel %vm2375_vm8, %v2485_v62, %v2487_v57 }
 0x179   : > { %v1824_v44 = vrot.slane %v1822_v37, 5  ;;  %v1041_v45 = vmax.f32 %v815_v40, 0.0  ;;  %v1828_v63 = vrot.slane %v1826_v51, 4  ;;  %v2494_v20 = vmax.f32 %v2477_v12, %v2488_v9 }
 0x17a   : > { %v2514_v48 = vpack.c.bf16 %v2511_v41, %v2511_v41  ;;  %v1258_v52 = vld [vmem:[#allocation2 + $0xc0] ss:$2 sm:$0xff]  ;;  %v1364_v53 = vld [vmem:[#allocation2 + $0xc1] ss:$2 sm:$0xff] }
 0x17b   : > { %v1825_v47 = vsel %vm8390_vm7, %v1820_v43, %v1824_v44  ;;  %1147 = vst [vmem:[#allocation2 + $0xd0] sm:$0xff] %v1041_v45  ;;  %854 = vmatmul.bf16.gmra.mxu0 %v7858_v38  ;;  %v1563_v0 = vmax.f32 %v1258_v52, %v1364_v53  ;;  %v1829_v15 = vor.u32 %v1828_v63, %v1824_v44 }
 0x17c   : > { %2311 = vst [vmem:[#allocation3 + $0x30] sm:$0xf] %v1825_v47 }
 0x17d   : > { %2517 = vst [vmem:[#allocation4 + $0xc] sm:$0xc] %v2514_v48  ;;  %v1830_v31 = vrot.slane %v1829_v15, 4 }
 0x17e   : > { %v995_v62 = vpop.f32.mrf.mxu2 }
 0x180   : > { %v817_v59 = vpop.f32.mrf.mxu0 }
 0x181   : > { %v1042_v1 = vmax.f32 %v817_v59, 0.0 }
 0x182   : > { %v1470_v4 = vld [vmem:[#allocation2 + $0xc2] ss:$2 sm:$0xff] }
 0x183   : > { %v1616_v6 = vmax.f32 %v1563_v0, %v1470_v4  ;;  %1148 = vst [vmem:[#allocation2 + $0xd8] sm:$0xff] %v1042_v1  ;;  %v2474_v7 = vld [vmem:[#allocation3 + $0x30] sm:$0xf]  ;;  %v1112_v0 = vmax.f32 %v992_v49, 0.0  ;;  %v1113_v1 = vmax.f32 %v995_v62, 0.0 }
 0x184   : > { %v8531_v11 = vld [vmem:[#allocation4 + $0x8] sm:$0xff]  ;;  %v2502_v14 = vunpack.c.l.bf16 %v2474_v7 }
 0x185   : > { %v1669_v16 = vpack.c.bf16 %v1616_v6, %v1616_v6  ;;  %3450 = vmatmul.bf16.gmra.mxu2 %v8531_v11  ;;  %v3522_v18 = vrot.slane %v8531_v11, 1  ;;  %v3174_v19 = vshll.u32 %v8531_v11, 16  ;;  %1218 = vst [vmem:[#allocation2 + $0x308] sm:$0xff] %v1112_v0 }
 0x186   : > { %v2506_v21 = vrot.slane %v2502_v14, 6  ;;  %1219 = vst [vmem:[#allocation2 + $0x310] sm:$0xff] %v1113_v1  ;;  %v7861_v14 = vld [vmem:[%s8367_s18 + $0xc0] sm:$0xff] }
 0x187   : > { %v1832_v22 = vshll.u32 %v1669_v16, 16  ;;  %v3523_v26 = vsel %vm3520_vm10, %v3521_v17, %v3522_v18  ;;  %v8541_v27 = vrot.slane %v3174_v19, 1  ;;  %v1836_v41 = vshrl.u32 %v1669_v16, 16 }
 0x188   : > { %v820_v25 = vpop.f32.mrf.mxu0  ;;  %v2507_v29 = vsel %vm2353_vm9, %v8522_v36, %v2506_v21  ;;  %v2513_v30 = vmax.f32 %v2494_v20, %v2506_v21  ;;  %3609 = vmatmul.bf16.vlgmr.msrb.gmra.mxu3 %v3523_v26  ;;  %v1111_v36 = vmax.f32 %v990_v28, 0.0 }
 0x189   : > { %v1834_v32 = vrot.slane %v1832_v22, 5  ;;  %v1043_v33 = vmax.f32 %v820_v25, 0.0  ;;  %v2512_v34 = vmax.f32 %v2493_v24, %v2507_v29  ;;  %v3177_v35 = vsel %vm3165_vm11, %v3172_v55, %v8541_v27  ;;  %v997_v55 = vpop.f32.mrf.mxu2 }
 0x18a   : > { %v2516_v37 = vpack.c.bf16 %v2513_v30, %v2513_v30  ;;  %3320 = vmatmul.bf16.vlgmr.msrb.gmra.mxu1 %v3177_v35  ;;  %v1260_v42 = vld [vmem:[#allocation2 + $0xd0] ss:$2 sm:$0xff]  ;;  %v1366_v43 = vld [vmem:[#allocation2 + $0xd1] ss:$2 sm:$0xff]  ;;  %1217 = vst [vmem:[#allocation2 + $0x300] sm:$0xff] %v1111_v36  ;;  %v1838_v45 = vrot.slane %v1836_v41, 4 }
 0x18b   : > { %v1835_v38 = vsel %vm8390_vm7, %v1830_v31, %v1834_v32  ;;  %1149 = vst [vmem:[#allocation2 + $0xe0] sm:$0xff] %v1043_v33  ;;  %859 = vmatmul.bf16.gmra.mxu0 %v7859_v23  ;;  %v2515_v40 = vpack.c.bf16 %v2512_v34, %v2512_v34  ;;  %v1564_v46 = vmax.f32 %v1260_v42, %v1366_v43  ;;  %v1114_v23 = vmax.f32 %v997_v55, 0.0 }
 0x18c   : > { %2312 = vst [vmem:[#allocation3 + $0x34] sm:$0xf] %v1835_v38  ;;  %v1839_v51 = vor.u32 %v1838_v45, %v1834_v32  ;;  %v2520_v32 = vld [vmem:[#allocation3 + $0x2c] sm:$0xe]  ;;  %v7862_v45 = vld [vmem:[%s8367_s18 + $0xc8] sm:$0xff] }
 0x18d   : > { %2519 = vst [vmem:[#allocation4 + $0x14] sm:$0x1] %v2516_v37 }
 0x18e   : > { %2518 = vst [vmem:[#allocation4 + $0x10] sm:$0xf] %v2515_v40  ;;  %v1840_v57 = vrot.slane %v1839_v51, 4  ;;  %v2526_v40 = vunpack.c.l.bf16 %v2520_v32 }
 0x18f   : > { %1220 = vst [vmem:[#allocation2 + $0x318] sm:$0xff] %v1114_v23 }
 0x190   : > { %v822_v44 = vpop.f32.mrf.mxu0 }
 0x191   : > { %v1044_v48 = vmax.f32 %v822_v44, 0.0  ;;  %v1436_v62 = vld [vmem:[#allocation2 + $0x301] ss:$2 sm:$0xff] }
 0x192   : > { %v1472_v47 = vld [vmem:[#allocation2 + $0xd2] ss:$2 sm:$0xff] }
 0x193   : > { %v1617_v50 = vmax.f32 %v1564_v46, %v1472_v47  ;;  %1150 = vst [vmem:[#allocation2 + $0xe8] sm:$0xff] %v1044_v48  ;;  %v8555_v21 = vld [vmem:[#allocation3 + $0x30] sm:$0xff]  }
 0x194   : > { %v8066_v26 = vunpack.c.h.bf16 %v8555_v21 }
 0x195   : > { %v1670_v52 = vpack.c.bf16 %v1617_v50, %v1617_v50 }
 0x196   : > { %v2532_v34 = vrot.slane %v8066_v26, 7 }
 0x197   : > { %v1842_v53 = vshll.u32 %v1670_v52, 16  ;;  %v1846_v63 = vshrl.u32 %v1670_v52, 16 }
 0x198   : > { %v825_v56 = vpop.f32.mrf.mxu0  ;;  %v2537_v42 = vmax.f32 %v2526_v40, %v2532_v34 }
 0x199   : > { %v1844_v59 = vrot.slane %v1842_v53, 5  ;;  %v1045_v60 = vmax.f32 %v825_v56, 0.0  ;;  %v1848_v5 = vrot.slane %v1846_v63, 4 }
 0x19a   : > { %v1262_v2 = vld [vmem:[#allocation2 + $0xe0] ss:$2 sm:$0xff]  ;;  %v1368_v3 = vld [vmem:[#allocation2 + $0xe1] ss:$2 sm:$0xff] }
 0x19b   : > { %v1845_v61 = vsel %vm8390_vm7, %v1840_v57, %v1844_v59  ;;  %1151 = vst [vmem:[#allocation2 + $0xf0] sm:$0xff] %v1045_v60  ;;  %864 = vmatmul.bf16.gmra.mxu0 %v7860_v54  ;;  %v1565_v6 = vmax.f32 %v1262_v2, %v1368_v3  ;;  %v1849_v10 = vor.u32 %v1848_v5, %v1844_v59  ;;  %v8561_v54 = vpop.f32.mrf.mxu1  ;;  %v8563_v57 = vpop.f32.mrf.mxu3 }
 0x19c   : > { %2313 = vst [vmem:[#allocation3 + $0x38] sm:$0xf] %v1845_v61  ;;  %v1330_v61 = vld [vmem:[#allocation2 + $0x300] ss:$2 sm:$0xff] }
 0x19d   : > { %v1850_v16 = vrot.slane %v1849_v10, 4  ;;  %v1599_v5 = vmax.f32 %v1330_v61, %v1436_v62 }
 0x1a0   : > { %v827_v4 = vpop.f32.mrf.mxu0 }
 0x1a1   : > { %v1046_v7 = vmax.f32 %v827_v4, 0.0 }
 0x1a2   : > { %v1474_v8 = vld [vmem:[#allocation2 + $0xe2] ss:$2 sm:$0xff] }
 0x1a3   : > { %v1618_v9 = vmax.f32 %v1565_v6, %v1474_v8  ;;  %1152 = vst [vmem:[#allocation2 + $0xf8] sm:$0xff] %v1046_v7  ;;  %v1542_v8 = vld [vmem:[#allocation2 + $0x302] ss:$2 sm:$0xff]  ;;  %v1002_v26 = vpop.f32.mrf.mxu3 }
 0x1a5   : > { %v1671_v12 = vpack.c.bf16 %v1618_v9, %v1618_v9 }
 0x1a7   : > { %v1852_v13 = vshll.u32 %v1671_v12, 16  ;;  %v1856_v22 = vshrl.u32 %v1671_v12, 16 }
 0x1a8   : > { %v830_v15 = vpop.f32.mrf.mxu0 }
 0x1a9   : > { %v1854_v17 = vrot.slane %v1852_v13, 5  ;;  %v1047_v19 = vmax.f32 %v830_v15, 0.0  ;;  %v1858_v29 = vrot.slane %v1856_v22, 4  ;;  %v3178_v15 = vshrl.u32 %v8531_v11, 16 }
 0x1aa   : > { %v1264_v24 = vld [vmem:[#allocation2 + $0xf0] ss:$2 sm:$0xff]  ;;  %v1370_v25 = vld [vmem:[#allocation2 + $0xf1] ss:$2 sm:$0xff]  ;;  %v1652_v22 = vmax.f32 %v1599_v5, %v1542_v8 }
 0x1ab   : > { %v1855_v20 = vsel %vm8390_vm7, %v1850_v16, %v1854_v17  ;;  %1153 = vst [vmem:[#allocation2 + $0x100] sm:$0xff] %v1047_v19  ;;  %869 = vmatmul.bf16.gmra.mxu0 %v7861_v14  ;;  %v1566_v30 = vmax.f32 %v1264_v24, %v1370_v25  ;;  %v1859_v41 = vor.u32 %v1858_v29, %v1854_v17  ;;  %v8065_v16 = vunpack.c.l.bf16 %v8555_v21  ;;  %v7863_v24 = vld [vmem:[%s8367_s18 + $0xd0] sm:$0xff] }
 0x1ac   : > { %2314 = vst [vmem:[#allocation3 + $0x3c] sm:$0xf] %v1855_v20  ;;  %v977_v20 = vpop.f32.mrf.mxu1  ;;  %v3180_v25 = vor.u32 %v3178_v15, %v8541_v27  ;;  %v1705_v11 = vpack.c.bf16 %v1652_v22, %v1652_v22 }
 0x1ad   : > { %v1860_v47 = vrot.slane %v1859_v41, 4 }
 0x1b0   : > { %v832_v28 = vpop.f32.mrf.mxu0 }
 0x1b1   : > { %v1048_v31 = vmax.f32 %v832_v28, 0.0 }
 0x1b2   : > { %v1476_v33 = vld [vmem:[#allocation2 + $0xf2] ss:$2 sm:$0xff] }
 0x1b3   : > { %v1619_v35 = vmax.f32 %v1566_v30, %v1476_v33  ;;  %1154 = vst [vmem:[#allocation2 + $0x108] sm:$0xff] %v1048_v31  ;;  %v8136_v37 = vld [vmem:[#allocation3 + $0x38] sm:$0xff]  }
 0x1b4   : > { %v8070_v38 = vunpack.c.h.bf16 %v8136_v37  ;;  %v8069_v53 = vunpack.c.l.bf16 %v8136_v37 }
 0x1b5   : > { %v1672_v36 = vpack.c.bf16 %v1619_v35, %v1619_v35 }
 0x1b6   : > { %v2547_v43 = vrot.slane %v8070_v38, 6  ;;  %v2533_v0 = vrot.slane %v8069_v53, 7  ;;  %v1438_v53 = vld [vmem:[#allocation2 + $0x311] ss:$2 sm:$0xff] }
 0x1b7   : > { %v1862_v44 = vshll.u32 %v1672_v36, 16  ;;  %v1866_v56 = vshrl.u32 %v1672_v36, 16 }
 0x1b8   : > { %v835_v46 = vpop.f32.mrf.mxu0  ;;  %v2552_v48 = vmax.f32 %v2537_v42, %v2547_v43  ;;  %v2534_v10 = vsel %vm2375_vm8, %v2532_v34, %v2533_v0  ;;  %v1105_v42 = vmax.f32 %v8561_v54, 0.0  ;;  %v1005_v54 = vpop.f32.mrf.mxu3 }
 0x1b9   : > { %v1864_v49 = vrot.slane %v1862_v44, 5  ;;  %v1049_v50 = vmax.f32 %v835_v46, 0.0  ;;  %v1868_v1 = vrot.slane %v1866_v56, 4  ;;  %v2538_v28 = vmax.f32 %v8065_v16, %v2534_v10 }
 0x1ba   : > { %v2554_v51 = vpack.c.bf16 %v2552_v48, %v2552_v48  ;;  %v1266_v59 = vld [vmem:[#allocation2 + $0x100] ss:$2 sm:$0xff]  ;;  %v1372_v60 = vld [vmem:[#allocation2 + $0x101] ss:$2 sm:$0xff]  ;;  %v1106_v44 = vmax.f32 %v977_v20, 0.0  ;;  %v1116_v46 = vmax.f32 %v1002_v26, 0.0 }
 0x1bb   : > { %v1865_v52 = vsel %vm8390_vm7, %v1860_v47, %v1864_v49  ;;  %1155 = vst [vmem:[#allocation2 + $0x110] sm:$0xff] %v1049_v50  ;;  %874 = vmatmul.bf16.gmra.mxu0 %v7862_v45  ;;  %v1567_v2 = vmax.f32 %v1266_v59, %v1372_v60  ;;  %v1869_v13 = vor.u32 %v1868_v1, %v1864_v49  ;;  %v2192_v48 = vshll.u32 %v1705_v11, 16  ;;  %v1332_v49 = vld [vmem:[#allocation2 + $0x310] ss:$2 sm:$0xff] }
 0x1bc   : > { %2315 = vst [vmem:[#allocation3 + $0x40] sm:$0xf] %v1865_v52  ;;  %v2196_v47 = vshrl.u32 %v1705_v11, 16 }
 0x1bd   : > { %2556 = vst [vmem:[#allocation4 + $0x14] sm:$0xe] %v2554_v51  ;;  %v1870_v33 = vrot.slane %v1869_v13, 4  ;;  %v980_v51 = vpop.f32.mrf.mxu1  ;;  %v8589_v61 = vrot.slane %v2192_v48, 5 }
 0x1be   : > { %1211 = vst [vmem:[#allocation2 + $0x2d0] sm:$0xff] %v1105_v42  ;;  %v2198_v62 = vrot.slane %v2196_v47, 4  ;;  %v1107_v22 = vmax.f32 %v980_v51, 0.0  ;;  %v7865_v51 = vld [vmem:[%s8367_s18 + $0xe0] sm:$0xff] }
 0x1bf   : > { %1212 = vst [vmem:[#allocation2 + $0x2d8] sm:$0xff] %v1106_v44 }
 0x1c0   : > { %v837_v63 = vpop.f32.mrf.mxu0  ;;  %1222 = vst [vmem:[#allocation2 + $0x328] sm:$0xff] %v1116_v46  ;;  %v2199_v5 = vor.u32 %v2198_v62, %v8589_v61  ;;  %v1007_v16 = vpop.f32.mrf.mxu3 }
 0x1c1   : > { %v1050_v3 = vmax.f32 %v837_v63, 0.0  ;;  %v1600_v63 = vmax.f32 %v1332_v49, %v1438_v53  ;;  %1213 = vst [vmem:[#allocation2 + $0x2e0] sm:$0xff] %v1107_v22 }
 0x1c2   : > { %v1478_v4 = vld [vmem:[#allocation2 + $0x102] ss:$2 sm:$0xff] }
 0x1c3   : > { %v1620_v6 = vmax.f32 %v1567_v2, %v1478_v4  ;;  %1156 = vst [vmem:[#allocation2 + $0x118] sm:$0xff] %v1050_v3  ;;  %v2525_v7 = vld [vmem:[#allocation3 + $0x40] sm:$0x7]  ;;  %v7864_v3 = vld [vmem:[%s8367_s18 + $0xd8] sm:$0xff] }
 0x1c4   : > { %v8565_v9 = vld [vmem:[#allocation4 + $0x10] sm:$0xff]  ;;  %v2544_v12 = vunpack.c.l.bf16 %v2525_v7 }
 0x1c5   : > { %v1673_v14 = vpack.c.bf16 %v1620_v6, %v1620_v6  ;;  %3455 = vmatmul.bf16.gmra.mxu2 %v8565_v9  ;;  %v3524_v17 = vrot.slane %v8565_v9, 1  ;;  %v3182_v19 = vshll.u32 %v8565_v9, 16  ;;  %v3186_v32 = vshrl.u32 %v8565_v9, 16 }
 0x1c6   : > { %v2548_v55 = vrot.slane %v2544_v12, 6 }
 0x1c7   : > { %v1872_v23 = vshll.u32 %v1673_v14, 16  ;;  %v3525_v21 = vsel %vm3520_vm10, %v3522_v18, %v3524_v17  ;;  %v3184_v30 = vrot.slane %v3182_v19, 1  ;;  %v1876_v41 = vshrl.u32 %v1673_v14, 16  ;;  %v982_v14 = vpop.f32.mrf.mxu1 }
 0x1c8   : > { %v840_v29 = vpop.f32.mrf.mxu0  ;;  %v2549_v31 = vsel %vm2353_vm9, %v2547_v43, %v2548_v55  ;;  %3614 = vmatmul.bf16.gmra.mxu3 %v3525_v21  ;;  %v1115_v43 = vmax.f32 %v8563_v57, 0.0  ;;  %v2200_v19 = vrot.slane %v2199_v5, 4  ;;  %v1430_v21 = vld [vmem:[#allocation2 + $0x2d1] ss:$2 sm:$0xff]  ;;  %v1010_v46 = vpop.f32.mrf.mxu3  ;;  %v1536_v48 = vld [vmem:[#allocation2 + $0x2d2] ss:$2 sm:$0xff] }
 0x1c9   : > { %v1874_v34 = vrot.slane %v1872_v23, 5  ;;  %v1051_v35 = vmax.f32 %v840_v29, 0.0  ;;  %v2553_v37 = vmax.f32 %v2538_v28, %v2549_v31  ;;  %v3185_v27 = vsel %vm3165_vm11, %v3180_v25, %v3184_v30  ;;  %v1324_v29 = vld [vmem:[#allocation2 + $0x2d0] ss:$2 sm:$0xff] }
 0x1ca   : > { %v8583_v38 = vor.u32 %v3186_v32, %v3184_v30  ;;  %3325 = vmatmul.bf16.gmra.mxu1 %v3185_v27  ;;  %v1268_v36 = vld [vmem:[#allocation2 + $0x110] ss:$2 sm:$0xff]  ;;  %v1374_v45 = vld [vmem:[#allocation2 + $0x111] ss:$2 sm:$0xff]  ;;  %1221 = vst [vmem:[#allocation2 + $0x320] sm:$0xff] %v1115_v43  ;;  %v1878_v52 = vrot.slane %v1876_v41, 4  ;;  %v1596_v41 = vmax.f32 %v1324_v29, %v1430_v21 }
 0x1cb   : > { %v1875_v40 = vsel %vm8390_vm7, %v1870_v33, %v1874_v34  ;;  %1157 = vst [vmem:[#allocation2 + $0x120] sm:$0xff] %v1051_v35  ;;  %879 = vmatmul.bf16.gmra.mxu0 %v7863_v24  ;;  %v2555_v18 = vpack.c.bf16 %v2553_v37, %v2553_v37  ;;  %v1568_v56 = vmax.f32 %v1268_v36, %v1374_v45  ;;  %v1117_v23 = vmax.f32 %v1005_v54, 0.0 }
 0x1cc   : > { %2316 = vst [vmem:[#allocation3 + $0x44] sm:$0xf] %v1875_v40  ;;  %v1879_v0 = vor.u32 %v1878_v52, %v1874_v34  ;;  %v1108_v28 = vmax.f32 %v982_v14, 0.0  ;;  %v1118_v34 = vmax.f32 %v1007_v16, 0.0  ;;  %v1119_v14 = vmax.f32 %v1010_v46, 0.0 }
 0x1cd   : > { %2557 = vst [vmem:[#allocation4 + $0x18] sm:$0xf] %v2555_v18 }
 0x1ce   : > { %v1880_v8 = vrot.slane %v1879_v0, 4  ;;  %1223 = vst [vmem:[#allocation2 + $0x330] sm:$0xff] %v1117_v23 }
 0x1cf   : > { %1214 = vst [vmem:[#allocation2 + $0x2e8] sm:$0xff] %v1108_v28  ;;  %v985_v43 = vpop.f32.mrf.mxu1 }
 0x1d0   : > { %v842_v50 = vpop.f32.mrf.mxu0  ;;  %1224 = vst [vmem:[#allocation2 + $0x338] sm:$0xff] %v1118_v34  ;;  %v1012_v23 = vpop.f32.mrf.mxu3 }
 0x1d1   : > { %v1052_v59 = vmax.f32 %v842_v50, 0.0  ;;  %v1544_v4 = vld [vmem:[#allocation2 + $0x312] ss:$2 sm:$0xff]  ;;  %v1440_v40 = vld [vmem:[#allocation2 + $0x321] ss:$2 sm:$0xff]  ;;  %v1649_v50 = vmax.f32 %v1596_v41, %v1536_v48  ;;  %1225 = vst [vmem:[#allocation2 + $0x340] sm:$0xff] %v1119_v14 }
 0x1d2   : > { %v1480_v60 = vld [vmem:[#allocation2 + $0x112] ss:$2 sm:$0xff]  ;;  %v1653_v7 = vmax.f32 %v1600_v63, %v1544_v4  ;;  %v1120_v29 = vmax.f32 %v1012_v23, 0.0 }
 0x1d3   : > { %v1621_v57 = vmax.f32 %v1568_v56, %v1480_v60  ;;  %1158 = vst [vmem:[#allocation2 + $0x128] sm:$0xff] %v1052_v59  ;;  %v1334_v33 = vld [vmem:[#allocation2 + $0x320] ss:$2 sm:$0xff]  ;;  %v2561_v47 = vld [vmem:[#allocation3 + $0x44] sm:$0xf] }
 0x1d4   : > { %v1706_v13 = vpack.c.bf16 %v1653_v7, %v1653_v7  ;;  %v1601_v42 = vmax.f32 %v1334_v33, %v1440_v40  ;;  %v2569_v62 = vunpack.c.l.bf16 %v2561_v47  ;;  %v2558_v33 = vld [vmem:[#allocation3 + $0x3c] sm:$0xf]  ;;  %1226 = vst [vmem:[#allocation2 + $0x348] sm:$0xff] %v1120_v29 }
 0x1d5   : > { %v1674_v1 = vpack.c.bf16 %v1621_v57, %v1621_v57  ;;  %v1546_v52 = vld [vmem:[#allocation2 + $0x322] ss:$2 sm:$0xff] }
 0x1d6   : > { %v2202_v20 = vshll.u32 %v1706_v13, 16  ;;  %v2206_v31 = vshrl.u32 %v1706_v13, 16  ;;  %v1654_v59 = vmax.f32 %v1601_v42, %v1546_v52  ;;  %v1432_v28 = vld [vmem:[#allocation2 + $0x2e1] ss:$2 sm:$0xff] }
 0x1d7   : > { %v1882_v2 = vshll.u32 %v1674_v1, 16  ;;  %v1886_v55 = vshrl.u32 %v1674_v1, 16 }
 0x1d8   : > { %v845_v6 = vpop.f32.mrf.mxu0  ;;  %v2204_v26 = vrot.slane %v2202_v20, 5  ;;  %v2208_v36 = vrot.slane %v2206_v31, 4  ;;  %v1707_v63 = vpack.c.bf16 %v1654_v59, %v1654_v59  ;;  %v7866_v59 = vld [vmem:[%s8367_s18 + $0xe8] sm:$0xff] }
 0x1d9   : > { %v1884_v10 = vrot.slane %v1882_v2, 5  ;;  %v1053_v12 = vmax.f32 %v845_v6, 0.0  ;;  %v1888_v35 = vrot.slane %v1886_v55, 4  ;;  %v1702_v2 = vpack.c.bf16 %v1649_v50, %v1649_v50 }
 0x1da   : > { %v1270_v24 = vld [vmem:[#allocation2 + $0x120] ss:$2 sm:$0xff]  ;;  %v1376_v25 = vld [vmem:[#allocation2 + $0x121] ss:$2 sm:$0xff]  ;;  %v2205_v30 = vsel %vm8390_vm7, %v2200_v19, %v2204_v26  ;;  %v2209_v53 = vor.u32 %v2208_v36, %v2204_v26  ;;  %v2212_v5 = vshll.u32 %v1707_v63, 16  ;;  %v1109_v6 = vmax.f32 %v985_v43, 0.0 }
 0x1db   : > { %v1885_v15 = vsel %vm8390_vm7, %v1880_v8, %v1884_v10  ;;  %1159 = vst [vmem:[#allocation2 + $0x130] sm:$0xff] %v1053_v12  ;;  %884 = vmatmul.bf16.gmra.mxu0 %v7864_v3  ;;  %v1569_v37 = vmax.f32 %v1270_v24, %v1376_v25  ;;  %v1889_v44 = vor.u32 %v1888_v35, %v1884_v10  ;;  %v2560_v3 = vld [vmem:[#allocation3 + $0x40] sm:$0x8]  ;;  %v8603_v8 = vrot.slane %v2569_v62, 7  ;;  %v1326_v26 = vld [vmem:[#allocation2 + $0x2e0] ss:$2 sm:$0xff] }
 0x1dc   : > { %2317 = vst [vmem:[#allocation3 + $0x48] sm:$0xf] %v1885_v15  ;;  %v2210_v4 = vrot.slane %v2209_v53, 4  ;;  %v8605_v13 = vrot.slane %v2212_v5, 5  ;;  %v987_v15 = vpop.f32.mrf.mxu1  ;;  %v2568_v16 = vunpack.c.l.bf16 %v2560_v3  ;;  %v2162_v20 = vshll.u32 %v1702_v2, 16 }
 0x1dd   : > { %2349 = vst [vmem:[#allocation3 + $0xc8] sm:$0xf] %v2205_v30  ;;  %v1890_v54 = vrot.slane %v1889_v44, 4  ;;  %v2166_v55 = vshrl.u32 %v1702_v2, 16  ;;  %v1110_v22 = vmax.f32 %v987_v15, 0.0  ;;  %v2216_v30 = vshrl.u32 %v1707_v63, 16 }
 0x1de   : > { %1215 = vst [vmem:[#allocation2 + $0x2f0] sm:$0xff] %v1109_v6  ;;  %v2215_v24 = vsel %vm8390_vm7, %v2210_v4, %v8605_v13  ;;  %v1442_v35 = vld [vmem:[#allocation2 + $0x331] ss:$2 sm:$0xff]  ;;  %v1597_v41 = vmax.f32 %v1326_v26, %v1432_v28  ;;  %v1444_v62 = vld [vmem:[#allocation2 + $0x341] ss:$2 sm:$0xf] }
 0x1df   : > { %2350 = vst [vmem:[#allocation3 + $0xcc] sm:$0xf] %v2215_v24  ;;  %v1548_v63 = vld [vmem:[#allocation2 + $0x332] ss:$2 sm:$0xff] }
 0x1e0   : > { %v847_v32 = vpop.f32.mrf.mxu0  ;;  %1216 = vst [vmem:[#allocation2 + $0x2f8] sm:$0xff] %v1110_v22 }
 0x1e1   : > { %v1054_v27 = vmax.f32 %v847_v32, 0.0  ;;  %v1336_v32 = vld [vmem:[#allocation2 + $0x330] ss:$2 sm:$0xff] }
 0x1e2   : > { %v1482_v11 = vld [vmem:[#allocation2 + $0x122] ss:$2 sm:$0xff]  ;;  %v1602_v48 = vmax.f32 %v1336_v32, %v1442_v35 }
 0x1e3   : > { %v1622_v18 = vmax.f32 %v1569_v37, %v1482_v11  ;;  %1160 = vst [vmem:[#allocation2 + $0x138] sm:$0xff] %v1054_v27  ;;  %v2563_v7 = vld [vmem:[#allocation3 + $0x48] sm:$0x8]  ;;  %v2574_v37 = vrot.slane %v2568_v16, 7  ;;  %v8610_v11 = vrot.slane %v2162_v20, 5 }
 0x1e4   : > { %v2587_v27 = vunpack.c.l.bf16 %v2563_v7  ;;  %v2562_v15 = vld [vmem:[#allocation3 + $0x48] sm:$0x7] }
 0x1e5   : > { %v1675_v45 = vpack.c.bf16 %v1622_v18, %v1622_v18  ;;  %v2168_v18 = vrot.slane %v2166_v55, 4  ;;  %v2576_v46 = vsel %vm2375_vm8, %v2574_v37, %v8603_v8  ;;  %v1538_v47 = vld [vmem:[#allocation2 + $0x2e2] ss:$2 sm:$0xff]  ;;  %v2570_v32 = vunpack.c.l.bf16 %v2562_v15 }
 0x1e6   : > { %v2593_v50 = vrot.slane %v2587_v27, 6 }
 0x1e7   : > { %v1892_v49 = vshll.u32 %v1675_v45, 16  ;;  %v1896_v1 = vshrl.u32 %v1675_v45, 16  ;;  %v2218_v45 = vrot.slane %v2216_v30, 4  ;;  %v2169_v53 = vor.u32 %v2168_v18, %v8610_v11  ;;  %v1328_v6 = vld [vmem:[#allocation2 + $0x2f0] ss:$2 sm:$0xff] }
 0x1e8   : > { %v850_v56 = vpop.f32.mrf.mxu0  ;;  %v1540_v22 = vld [vmem:[#allocation2 + $0x2f2] ss:$2 sm:$0xff] }
 0x1e9   : > { %v8598_v60 = vrot.slane %v1892_v49, 5  ;;  %v1055_v57 = vmax.f32 %v850_v56, 0.0  ;;  %v1898_v19 = vrot.slane %v1896_v1, 4  ;;  %v2566_v49 = vunpack.c.l.bf16 %v2558_v33 }
 0x1ea   : > { %v1272_v10 = vld [vmem:[#allocation2 + $0x130] ss:$2 sm:$0xff]  ;;  %v1378_v12 = vld [vmem:[#allocation2 + $0x131] ss:$2 sm:$0xff]  ;;  %v1650_v56 = vmax.f32 %v1597_v41, %v1538_v47  ;;  %v2219_v3 = vor.u32 %v2218_v45, %v8605_v13  ;;  %v2170_v20 = vrot.slane %v2169_v53, 4 }
 0x1eb   : > { %v1895_v0 = vsel %vm8390_vm7, %v1890_v54, %v8598_v60  ;;  %1161 = vst [vmem:[#allocation2 + $0x140] sm:$0xff] %v1055_v57  ;;  %889 = vmatmul.bf16.gmra.mxu0 %v7865_v51  ;;  %v1570_v21 = vmax.f32 %v1272_v10, %v1378_v12  ;;  %v1899_v42 = vor.u32 %v1898_v19, %v8598_v60  ;;  %v1338_v54 = vld [vmem:[#allocation2 + $0x340] ss:$2 sm:$0xf]  ;;  %v1434_v12 = vld [vmem:[#allocation2 + $0x2f1] ss:$2 sm:$0xff] }
 0x1ec   : > { %2318 = vst [vmem:[#allocation3 + $0x4c] sm:$0xf] %v1895_v0  ;;  %v2581_v0 = vmax.f32 %v2566_v49, %v2576_v46  ;;  %v1703_v5 = vpack.c.bf16 %v1650_v56, %v1650_v56  ;;  %v1603_v7 = vmax.f32 %v1338_v54, %v1444_v62  ;;  %v1655_v10 = vmax.f32 %v1602_v48, %v1548_v63 }
 0x1ed   : > { %v1900_v60 = vrot.slane %v1899_v42, 4  ;;  %v1598_v24 = vmax.f32 %v1328_v6, %v1434_v12  ;;  %v2220_v28 = vrot.slane %v2219_v3, 4 }
 0x1ee   : > { %v2172_v55 = vshll.u32 %v1703_v5, 16  ;;  %v2176_v13 = vshrl.u32 %v1703_v5, 16  ;;  %v1708_v23 = vpack.c.bf16 %v1655_v10, %v1655_v10 }
 0x1ef   : > { %v1651_v37 = vmax.f32 %v1598_v24, %v1540_v22  ;;  %v7867_v22 = vld [vmem:[%s8367_s18 + $0xf0] sm:$0xff] }
 0x1f0   : > { %v852_v25 = vpop.f32.mrf.mxu0  ;;  %v2174_v30 = vrot.slane %v2172_v55, 5  ;;  %v2178_v33 = vrot.slane %v2176_v13, 4  ;;  %v2226_v35 = vshrl.u32 %v1708_v23, 16 }
 0x1f1   : > { %v1056_v31 = vmax.f32 %v852_v25, 0.0  ;;  %v1550_v25 = vld [vmem:[#allocation2 + $0x342] ss:$2 sm:$0xf] }
 0x1f2   : > { %v1484_v34 = vld [vmem:[#allocation2 + $0x132] ss:$2 sm:$0xff]  ;;  %v2179_v41 = vor.u32 %v2178_v33, %v2174_v30  ;;  %v2228_v42 = vrot.slane %v2226_v35, 4 }
 0x1f3   : > { %v1623_v40 = vmax.f32 %v1570_v21, %v1484_v34  ;;  %1162 = vst [vmem:[#allocation2 + $0x148] sm:$0xff] %v1056_v31  ;;  %v2564_v36 = vld [vmem:[#allocation3 + $0x4c] sm:$0xf]  ;;  %v1656_v31 = vmax.f32 %v1603_v7, %v1550_v25  ;;  %v2222_v34 = vshll.u32 %v1708_v23, 16 }
 0x1f4   : > { %v2588_v43 = vunpack.c.l.bf16 %v2564_v36 }
 0x1f5   : > { %v1676_v44 = vpack.c.bf16 %v1623_v40, %v1623_v40  ;;  %v2175_v40 = vsel %vm8390_vm7, %v2170_v20, %v2174_v30  ;;  %v1709_v18 = vpack.c.bf16 %v1656_v31, %v1656_v31  ;;  %v2224_v36 = vrot.slane %v2222_v34, 5 }
 0x1f6   : > { %v8615_v51 = vrot.slane %v2588_v43, 6  ;;  %2346 = vst [vmem:[#allocation3 + $0xbc] sm:$0xf] %v2175_v40 }
 0x1f7   : > { %v1902_v52 = vshll.u32 %v1676_v44, 16  ;;  %v1906_v19 = vshrl.u32 %v1676_v44, 16  ;;  %v1704_v44 = vpack.c.bf16 %v1651_v37, %v1651_v37  ;;  %v2232_v48 = vshll.u32 %v1709_v18, 16 }
 0x1f8   : > { %v855_v57 = vpop.f32.mrf.mxu0  ;;  %v2595_v1 = vsel %vm2353_vm9, %v2593_v50, %v8615_v51  ;;  %v2236_v47 = vshrl.u32 %v1709_v18, 16  ;;  %v2180_v50 = vrot.slane %v2179_v41, 4  ;;  %v2229_v53 = vor.u32 %v2228_v42, %v2224_v36 }
 0x1f9   : > { %v8621_v2 = vrot.slane %v1902_v52, 5  ;;  %v1057_v4 = vmax.f32 %v855_v57, 0.0  ;;  %v2600_v14 = vmax.f32 %v2581_v0, %v2595_v1  ;;  %v1908_v27 = vrot.slane %v1906_v19, 4 }
 0x1fa   : > { %v1274_v29 = vld [vmem:[#allocation2 + $0x140] ss:$2 sm:$0xff]  ;;  %v1380_v21 = vld [vmem:[#allocation2 + $0x141] ss:$2 sm:$0xff]  ;;  %v2225_v52 = vsel %vm8390_vm7, %v2220_v28, %v2224_v36  ;;  %v2182_v56 = vshll.u32 %v1704_v44, 16  ;;  %v2234_v57 = vrot.slane %v2232_v48, 5 }
 0x1fb   : > { %v1905_v16 = vsel %vm8390_vm7, %v1900_v60, %v8621_v2  ;;  %1163 = vst [vmem:[#allocation2 + $0x150] sm:$0xff] %v1057_v4  ;;  %894 = vmatmul.bf16.gmra.mxu0 %v7866_v59  ;;  %v2602_v26 = vpack.c.bf16 %v2600_v14, %v2600_v14  ;;  %v1571_v45 = vmax.f32 %v1274_v29, %v1380_v21  ;;  %v2559_v59 = vld [vmem:[#allocation3 + $0x40] sm:$0x7]  ;;  %v2186_v60 = vshrl.u32 %v1704_v44, 16  ;;  %v3446_v21 = vpop.f32.mrf.mxu2 }
 0x1fc   : > { %2319 = vst [vmem:[#allocation3 + $0x50] sm:$0xf] %v1905_v16  ;;  %v2238_v62 = vrot.slane %v2236_v47, 4  ;;  %v1909_v63 = vor.u32 %v1908_v27, %v8621_v2  ;;  %v2230_v0 = vrot.slane %v2229_v53, 4  ;;  %v2184_v1 = vrot.slane %v2182_v56, 5 }
 0x1fd   : > { %2604 = vst [vmem:[#allocation4 + $0x1c] sm:$0xf] %v2602_v26  ;;  %v2577_v4 = vrot.slane %v2570_v32, 7  ;;  %v2188_v6 = vrot.slane %v2186_v60, 4  ;;  %v9816_v2 = vmov 0  ;;  %v2567_v13 = vunpack.c.l.bf16 %v2559_v59 }
 0x1fe   : > { %2351 = vst [vmem:[#allocation3 + $0xd0] sm:$0xf] %v2225_v52  ;;  %v2239_v7 = vor.u32 %v2238_v62, %v2234_v57  ;;  %v2185_v14 = vsel %vm8390_vm7, %v2180_v50, %v2184_v1  ;;  %v2235_v15 = vsel %vm8390_vm7, %v2230_v0, %v2234_v57  ;;  %v9817_v2 = vsel %vm8640_vm13, 4294967295, %v9816_v2  ;;  %v2356_v16 = vld [vmem:[#allocation3 + $0xd8] sm:$0x3] }
 0x1ff   : > { %9818 = vst [vmem:[#allocation10_spill] sm:$0xff] %v9817_v2  ;;  %v2189_v20 = vor.u32 %v2188_v6, %v2184_v1  ;;  %v2578_v28 = vsel %vm2375_vm8, %v8603_v8, %v2577_v4  ;;  %v1910_v30 = vrot.slane %v1909_v63, 4 }
 0x200   : > { %v857_v43 = vpop.f32.mrf.mxu0  ;;  %2347 = vst [vmem:[#allocation3 + $0xc0] sm:$0xf] %v2185_v14  ;;  %v2240_v55 = vrot.slane %v2239_v7, 4  ;;  %v2582_v18 = vmax.f32 %v2567_v13, %v2578_v28 }
 0x201   : > { %v1058_v46 = vmax.f32 %v857_v43, 0.0  ;;  %2352 = vst [vmem:[#allocation3 + $0xd4] sm:$0xf] %v2235_v15  ;;  %v2190_v32 = vrot.slane %v2189_v20, 4  ;;  %v2606_v20 = vld [vmem:[#allocation3 + $0x48] sm:$0x8] }
 0x202   : > { %v1486_v49 = vld [vmem:[#allocation2 + $0x142] ss:$2 sm:$0xff]  ;;  %v2357_v33 = vsel %vm8640_vm13, %v2240_v55, %v2356_v16  ;;  %v2615_v28 = vunpack.c.l.bf16 %v2606_v20 }
 0x203   : > { %v1624_v54 = vmax.f32 %v1571_v45, %v1486_v49  ;;  %1164 = vst [vmem:[#allocation2 + $0x158] sm:$0xff] %v1058_v46  ;;  %v2565_v3 = vld [vmem:[#allocation3 + $0x50] sm:$0x3]  ;;  %v2195_v40 = vsel %vm8390_vm7, %v2190_v32, %v8589_v61 }
 0x204   : > { %v8632_v10 = vld [vmem:[#allocation4 + $0x18] sm:$0xff]  ;;  %v2589_v12 = vunpack.c.l.bf16 %v2565_v3  ;;  %2358 = vst [vmem:[#allocation3 + $0xd8] sm:$0x3] %v2357_v33  ;;  %v2609_v3 = vld [vmem:[#allocation3 + $0x50] sm:$0xc] }
 0x205   : > { %v1677_v5 = vpack.c.bf16 %v1624_v54, %v1624_v54  ;;  %3460 = vmatmul.bf16.gmra.mxu2 %v8632_v10  ;;  %v3526_v25 = vrot.slane %v8632_v10, 1  ;;  %v3190_v26 = vshll.u32 %v8632_v10, 16  ;;  %2348 = vst [vmem:[#allocation3 + $0xc4] sm:$0xf] %v2195_v40  ;;  %v2618_v14 = vunpack.c.l.bf16 %v2609_v3 }
 0x206   : > { %v2596_v29 = vrot.slane %v2589_v12, 6 }
 0x207   : > { %v1912_v19 = vshll.u32 %v1677_v5, 16  ;;  %v3321_v24 = vpop.f32.mrf.mxu1  ;;  %v3527_v37 = vsel %vm3520_vm10, %v3524_v17, %v3526_v25  ;;  %v8657_v27 = vrot.slane %v3190_v26, 1  ;;  %v1916_v43 = vshrl.u32 %v1677_v5, 16 }
 0x208   : > { %v860_v23 = vpop.f32.mrf.mxu0  ;;  %v3447_v35 = vadd.f32 %v3446_v21, %v3321_v24  ;;  %3619 = vmatmul.bf16.gmra.mxu3 %v3527_v37  ;;  %v2597_v17 = vsel %vm2353_vm9, %v8615_v51, %v2596_v29  ;;  %v7868_v51 = vld [vmem:[%s8367_s18 + $0xf8] sm:$0xff] }
 0x209   : > { %v1914_v31 = vrot.slane %v1912_v19, 5  ;;  %v1059_v34 = vmax.f32 %v860_v23, 0.0  ;;  %v3193_v41 = vsel %vm3165_vm11, %v8583_v38, %v8657_v27  ;;  %v2601_v42 = vmax.f32 %v2582_v18, %v2597_v17  ;;  %v7869_v23 = vld [vmem:[%s8367_s18 + $0x100] sm:$0xff] }
 0x20a   : > { %3330 = vmatmul.bf16.gmra.mxu1 %v3193_v41  ;;  %v1276_v44 = vld [vmem:[#allocation2 + $0x150] ss:$2 sm:$0xff]  ;;  %v1382_v46 = vld [vmem:[#allocation2 + $0x151] ss:$2 sm:$0xff]  ;;  %v1918_v38 = vrot.slane %v1916_v43, 4 }
 0x20b   : > { %v1915_v8 = vsel %vm8390_vm7, %v1910_v30, %v1914_v31  ;;  %899 = vmatmul.bf16.gmra.mxu0 %v7867_v22  ;;  %v3610_v9 = vpop.f32.mrf.mxu3  ;;  %1165 = vst [vmem:[#allocation2 + $0x160] sm:$0xff] %v1059_v34  ;;  %v2603_v61 = vpack.c.bf16 %v2601_v42, %v2601_v42  ;;  %v1572_v47 = vmax.f32 %v1276_v44, %v1382_v46  ;;  %v2624_v22 = vrot.slane %v2618_v14, 7  ;;  %v8682_v14 = vpop.f32.mrf.mxu2 }
 0x20c   : > { %2320 = vst [vmem:[#allocation3 + $0x54] sm:$0xf] %v1915_v8  ;;  %v8669_v36 = vadd.f32 %v3610_v9, %v3447_v35  ;;  %v1919_v52 = vor.u32 %v1918_v38, %v1914_v31 }
 0x20d   : > { %2605 = vst [vmem:[#allocation4 + $0x20] sm:$0x7] %v2603_v61  ;;  %v2632_v33 = vmax.f32 %v2615_v28, %v2624_v22 }
 0x20e   : > { %v1920_v60 = vrot.slane %v1919_v52, 4 }
 0x210   : > { %v862_v45 = vpop.f32.mrf.mxu0 }
 0x211   : > { %v1060_v48 = vmax.f32 %v862_v45, 0.0  ;;  %v2607_v45 = vld [vmem:[#allocation3 + $0x4c] sm:$0xf] }
 0x212   : > { %v1488_v49 = vld [vmem:[#allocation2 + $0x152] ss:$2 sm:$0xff] }
 0x213   : > { %1166 = vst [vmem:[#allocation2 + $0x168] sm:$0xff] %v1060_v48  ;;  %v1625_v50 = vmax.f32 %v1572_v47, %v1488_v49  ;;  %v2610_v31 = vld [vmem:[#allocation3 + $0x54] sm:$0xf]  ;;  %v8686_v28 = vpop.f32.mrf.mxu3 }
 0x214   : > { %v2619_v35 = vunpack.c.l.bf16 %v2610_v31 }
 0x215   : > { %v1678_v53 = vpack.c.bf16 %v1625_v50, %v1625_v50 }
 0x216   : > { %v2625_v17 = vrot.slane %v2619_v35, 7  ;;  %v3451_v35 = vpop.f32.mrf.mxu2 }
 0x217   : > { %v1922_v54 = vshll.u32 %v1678_v53, 16  ;;  %v1926_v62 = vshrl.u32 %v1678_v53, 16 }
 0x218   : > { %v865_v56 = vpop.f32.mrf.mxu0  ;;  %v2626_v38 = vsel %vm2375_vm8, %v2624_v22, %v2625_v17 }
 0x219   : > { %v1061_v59 = vmax.f32 %v865_v56, 0.0  ;;  %v1924_v57 = vrot.slane %v1922_v54, 5  ;;  %v1928_v5 = vrot.slane %v1926_v62, 4  ;;  %v7870_v56 = vld [vmem:[%s8367_s18 + $0x108] sm:$0xff] }
 0x21a   : > { %v1278_v0 = vld [vmem:[#allocation2 + $0x160] ss:$2 sm:$0xff]  ;;  %v1384_v1 = vld [vmem:[#allocation2 + $0x161] ss:$2 sm:$0xff] }
 0x21b   : > { %1167 = vst [vmem:[#allocation2 + $0x170] sm:$0xff] %v1061_v59  ;;  %904 = vmatmul.bf16.gmra.mxu0 %v7868_v51  ;;  %v1925_v63 = vsel %vm8390_vm7, %v1920_v60, %v1924_v57  ;;  %v1573_v6 = vmax.f32 %v1278_v0, %v1384_v1  ;;  %v1929_v16 = vor.u32 %v1928_v5, %v1924_v57  ;;  %v2616_v51 = vunpack.c.l.bf16 %v2607_v45 }
 0x21c   : > { %2321 = vst [vmem:[#allocation3 + $0x58] sm:$0xf] %v1925_v63 }
 0x21d   : > { %v1930_v29 = vrot.slane %v1929_v16, 4  ;;  %v2633_v59 = vmax.f32 %v2616_v51, %v2626_v38 }
 0x220   : > { %v867_v4 = vpop.f32.mrf.mxu0 }
 0x221   : > { %v1062_v7 = vmax.f32 %v867_v4, 0.0 }
 0x222   : > { %v1490_v12 = vld [vmem:[#allocation2 + $0x162] ss:$2 sm:$0xff] }
 0x223   : > { %v1626_v15 = vmax.f32 %v1573_v6, %v1490_v12  ;;  %1168 = vst [vmem:[#allocation2 + $0x178] sm:$0xff] %v1062_v7  ;;  %v2612_v55 = vld [vmem:[#allocation3 + $0x58] sm:$0xc]  ;;  %v2611_v1 = vld [vmem:[#allocation3 + $0x58] sm:$0x3] }
 0x224   : > { %v2641_v24 = vunpack.c.l.bf16 %v2612_v55  ;;  %v2620_v6 = vunpack.c.l.bf16 %v2611_v1 }
 0x225   : > { %v1679_v19 = vpack.c.bf16 %v1626_v15, %v1626_v15  ;;  %v8684_v15 = vpop.f32.mrf.mxu1 }
 0x226   : > { %v2647_v32 = vrot.slane %v2641_v24, 6  ;;  %v2627_v22 = vrot.slane %v2620_v6, 7  ;;  %v2608_v24 = vld [vmem:[#allocation3 + $0x50] sm:$0x3] }
 0x227   : > { %v1932_v13 = vshll.u32 %v1679_v19, 16  ;;  %v1936_v8 = vshrl.u32 %v1679_v19, 16 }
 0x228   : > { %v870_v26 = vpop.f32.mrf.mxu0  ;;  %v2655_v37 = vmax.f32 %v2632_v33, %v2647_v32  ;;  %v2617_v33 = vunpack.c.l.bf16 %v2608_v24 }
 0x229   : > { %v1934_v21 = vrot.slane %v1932_v13, 5  ;;  %v1063_v30 = vmax.f32 %v870_v26, 0.0  ;;  %v1938_v42 = vrot.slane %v1936_v8, 4 }
 0x22a   : > { %v1280_v40 = vld [vmem:[#allocation2 + $0x170] ss:$2 sm:$0xff]  ;;  %v1386_v18 = vld [vmem:[#allocation2 + $0x171] ss:$2 sm:$0xff]  ;;  %v2658_v41 = vpack.c.bf16 %v2655_v37, %v2655_v37 }
 0x22b   : > { %v1935_v34 = vsel %vm8390_vm7, %v1930_v29, %v1934_v21  ;;  %1169 = vst [vmem:[#allocation2 + $0x180] sm:$0xff] %v1063_v30  ;;  %909 = vmatmul.bf16.gmra.mxu0 %v7869_v23  ;;  %v1574_v61 = vmax.f32 %v1280_v40, %v1386_v18  ;;  %v1939_v49 = vor.u32 %v1938_v42, %v1934_v21  ;;  %v7871_v40 = vld [vmem:[%s8367_s18 + $0x110] sm:$0xff]  ;;  %v3194_v42 = vshrl.u32 %v8632_v10, 16 }
 0x22c   : > { %2322 = vst [vmem:[#allocation3 + $0x5c] sm:$0xf] %v1935_v34 }
 0x22d   : > { %2661 = vst [vmem:[#allocation4 + $0x20] sm:$0x8] %v2658_v41  ;;  %v1940_v57 = vrot.slane %v1939_v49, 4  ;;  %v3196_v38 = vor.u32 %v3194_v42, %v8657_v27 }
 0x230   : > { %v872_v9 = vpop.f32.mrf.mxu0 }
 0x231   : > { %v1064_v43 = vmax.f32 %v872_v9, 0.0 }
 0x232   : > { %v1492_v44 = vld [vmem:[#allocation2 + $0x172] ss:$2 sm:$0xff] }
 0x233   : > { %v1627_v46 = vmax.f32 %v1574_v61, %v1492_v44  ;;  %1170 = vst [vmem:[#allocation2 + $0x188] sm:$0xff] %v1064_v43  ;;  %v2613_v48 = vld [vmem:[#allocation3 + $0x5c] sm:$0xf] }
 0x234   : > { %v2642_v47 = vunpack.c.l.bf16 %v2613_v48 }
 0x235   : > { %v1680_v50 = vpack.c.bf16 %v1627_v46, %v1627_v46 }
 0x236   : > { %v2648_v52 = vrot.slane %v2642_v47, 6 }
 0x237   : > { %v1942_v53 = vshll.u32 %v1680_v50, 16  ;;  %v1946_v5 = vshrl.u32 %v1680_v50, 16 }
 0x238   : > { %v875_v54 = vpop.f32.mrf.mxu0  ;;  %v2649_v60 = vsel %vm2353_vm9, %v2647_v32, %v2648_v52  ;;  %v2628_v32 = vsel %vm2375_vm8, %v2625_v17, %v2627_v22 }
 0x239   : > { %v1944_v62 = vrot.slane %v1942_v53, 5  ;;  %v1065_v63 = vmax.f32 %v875_v54, 0.0  ;;  %v2656_v0 = vmax.f32 %v2633_v59, %v2649_v60  ;;  %v1948_v19 = vrot.slane %v1946_v5, 4 }
 0x23a   : > { %v1282_v7 = vld [vmem:[#allocation2 + $0x180] ss:$2 sm:$0xff]  ;;  %v1388_v12 = vld [vmem:[#allocation2 + $0x181] ss:$2 sm:$0xff]  ;;  %v2634_v61 = vmax.f32 %v2617_v33, %v2628_v32 }
 0x23b   : > { %v1945_v3 = vsel %vm8390_vm7, %v1940_v57, %v1944_v62  ;;  %1171 = vst [vmem:[#allocation2 + $0x190] sm:$0xff] %v1065_v63  ;;  %914 = vmatmul.bf16.gmra.mxu0 %v7870_v56  ;;  %v2659_v4 = vpack.c.bf16 %v2656_v0, %v2656_v0  ;;  %v1575_v20 = vmax.f32 %v1282_v7, %v1388_v12 }
 0x23c   : > { %2323 = vst [vmem:[#allocation3 + $0x60] sm:$0xf] %v1945_v3  ;;  %v1949_v21 = vor.u32 %v1948_v19, %v1944_v62 }
 0x23d   : > { %2662 = vst [vmem:[#allocation4 + $0x24] sm:$0xf] %v2659_v4  ;;  %v7872_v4 = vld [vmem:[%s8367_s18 + $0x118] sm:$0xff] }
 0x23e   : > { %v1950_v44 = vrot.slane %v1949_v21, 4  ;;  %v2664_v21 = vld [vmem:[#allocation3 + $0x58] sm:$0xc] }
 0x240   : > { %v877_v16 = vpop.f32.mrf.mxu0 }
 0x241   : > { %v1066_v55 = vmax.f32 %v877_v16, 0.0 }
 0x242   : > { %v1494_v13 = vld [vmem:[#allocation2 + $0x182] ss:$2 sm:$0xff] }
 0x243   : > { %v1628_v23 = vmax.f32 %v1575_v20, %v1494_v13  ;;  %1172 = vst [vmem:[#allocation2 + $0x198] sm:$0xff] %v1066_v55  ;;  %v2614_v26 = vld [vmem:[#allocation3 + $0x60] sm:$0x1]  ;;  %v2667_v19 = vld [vmem:[#allocation3 + $0x60] sm:$0xe] }
 0x244   : > { %v2643_v29 = vunpack.c.l.bf16 %v2614_v26  ;;  %v8688_v31 = vld [vmem:[#allocation4 + $0x20] sm:$0xff]  ;;  %v2675_v13 = vunpack.c.l.bf16 %v2667_v19 }
 0x245   : > { %v1681_v30 = vpack.c.bf16 %v1628_v23, %v1628_v23  ;;  %3465 = vmatmul.bf16.gmra.mxu2 %v8688_v31  ;;  %v3528_v8 = vrot.slane %v8688_v31, 1  ;;  %v3198_v18 = vshll.u32 %v8688_v31, 16 }
 0x246   : > { %v2650_v34 = vrot.slane %v2643_v29, 6  ;;  %v2681_v32 = vrot.slane %v2675_v13, 7 }
 0x247   : > { %v1952_v37 = vshll.u32 %v1681_v30, 16  ;;  %v3326_v9 = vpop.f32.mrf.mxu1  ;;  %v3529_v48 = vsel %vm3520_vm10, %v3526_v25, %v3528_v8  ;;  %v8703_v47 = vrot.slane %v3198_v18, 1  ;;  %v1956_v10 = vshrl.u32 %v1681_v30, 16 }
 0x248   : > { %v880_v41 = vpop.f32.mrf.mxu0  ;;  %v2651_v43 = vsel %vm2353_vm9, %v2648_v52, %v2650_v34  ;;  %v3452_v46 = vadd.f32 %v3451_v35, %v3326_v9  ;;  %3624 = vmatmul.bf16.gmra.mxu3 %v3529_v48  ;;  %v2672_v35 = vunpack.c.l.bf16 %v2664_v21 }
 0x249   : > { %v1954_v17 = vrot.slane %v1952_v37, 5  ;;  %v1067_v45 = vmax.f32 %v880_v41, 0.0  ;;  %v2657_v49 = vmax.f32 %v2634_v61, %v2651_v43  ;;  %v3201_v51 = vsel %vm3165_vm11, %v3196_v38, %v8703_v47  ;;  %v7873_v61 = vld [vmem:[%s8367_s18 + $0x120] sm:$0xff] }
 0x24a   : > { %3335 = vmatmul.bf16.gmra.mxu1 %v3201_v51  ;;  %v1284_v27 = vld [vmem:[#allocation2 + $0x190] ss:$2 sm:$0xff]  ;;  %v1390_v56 = vld [vmem:[#allocation2 + $0x191] ss:$2 sm:$0xff]  ;;  %v1958_v54 = vrot.slane %v1956_v10, 4  ;;  %v2689_v41 = vmax.f32 %v2672_v35, %v2681_v32 }
 0x24b   : > { %v1955_v50 = vsel %vm8390_vm7, %v1950_v44, %v1954_v17  ;;  %1173 = vst [vmem:[#allocation2 + $0x1a0] sm:$0xff] %v1067_v45  ;;  %919 = vmatmul.bf16.gmra.mxu0 %v7871_v40  ;;  %v3615_v52 = vpop.f32.mrf.mxu3  ;;  %v2660_v53 = vpack.c.bf16 %v2657_v49, %v2657_v49  ;;  %v1576_v60 = vmax.f32 %v1284_v27, %v1390_v56 }
 0x24c   : > { %2324 = vst [vmem:[#allocation3 + $0x64] sm:$0xf] %v1955_v50  ;;  %v8709_v25 = vadd.f32 %v3615_v52, %v3452_v46  ;;  %v1959_v0 = vor.u32 %v1958_v54, %v1954_v17 }
 0x24d   : > { %2663 = vst [vmem:[#allocation4 + $0x28] sm:$0x3] %v2660_v53 }
 0x24e   : > { %v1960_v6 = vrot.slane %v1959_v0, 4 }
 0x250   : > { %v882_v59 = vpop.f32.mrf.mxu0 }
 0x251   : > { %v1068_v57 = vmax.f32 %v882_v59, 0.0 }
 0x252   : > { %v1496_v62 = vld [vmem:[#allocation2 + $0x192] ss:$2 sm:$0xff] }
 0x253   : > { %v1629_v63 = vmax.f32 %v1576_v60, %v1496_v62  ;;  %1174 = vst [vmem:[#allocation2 + $0x1a8] sm:$0xff] %v1068_v57  ;;  %v2668_v38 = vld [vmem:[#allocation3 + $0x64] sm:$0xf] }
 0x254   : > { %v2676_v52 = vunpack.c.l.bf16 %v2668_v38 }
 0x255   : > { %v1682_v1 = vpack.c.bf16 %v1629_v63, %v1629_v63  ;;  %v2666_v63 = vld [vmem:[#allocation3 + $0x60] sm:$0x1] }
 0x256   : > { %v2682_v54 = vrot.slane %v2676_v52, 7 }
 0x257   : > { %v1962_v3 = vshll.u32 %v1682_v1, 16  ;;  %v1966_v20 = vshrl.u32 %v1682_v1, 16  ;;  %v2665_v1 = vld [vmem:[#allocation3 + $0x5c] sm:$0xf] }
 0x258   : > { %v885_v5 = vpop.f32.mrf.mxu0 }
 0x259   : > { %v1964_v7 = vrot.slane %v1962_v3, 5  ;;  %v1069_v12 = vmax.f32 %v885_v5, 0.0  ;;  %v1968_v24 = vrot.slane %v1966_v20, 4  ;;  %v2673_v20 = vunpack.c.l.bf16 %v2665_v1 }
 0x25a   : > { %v1286_v55 = vld [vmem:[#allocation2 + $0x1a0] ss:$2 sm:$0xff]  ;;  %v1392_v22 = vld [vmem:[#allocation2 + $0x1a1] ss:$2 sm:$0xff] }
 0x25b   : > { %v1965_v16 = vsel %vm8390_vm7, %v1960_v6, %v1964_v7  ;;  %1175 = vst [vmem:[#allocation2 + $0x1b0] sm:$0xff] %v1069_v12  ;;  %924 = vmatmul.bf16.gmra.mxu0 %v7872_v4  ;;  %v1577_v26 = vmax.f32 %v1286_v55, %v1392_v22  ;;  %v1969_v40 = vor.u32 %v1968_v24, %v1964_v7  ;;  %v2674_v12 = vunpack.c.l.bf16 %v2666_v63 }
 0x25c   : > { %2325 = vst [vmem:[#allocation3 + $0x68] sm:$0xf] %v1965_v16  ;;  %v2683_v6 = vsel %vm2375_vm8, %v2681_v32, %v2682_v54 }
 0x25d   : > { %v1970_v45 = vrot.slane %v1969_v40, 4  ;;  %v2690_v24 = vmax.f32 %v2673_v20, %v2683_v6 }
 0x260   : > { %v887_v23 = vpop.f32.mrf.mxu0 }
 0x261   : > { %v1070_v29 = vmax.f32 %v887_v23, 0.0  ;;  %v7874_v23 = vld [vmem:[%s8367_s18 + $0x128] sm:$0xff] }
 0x262   : > { %v1498_v30 = vld [vmem:[#allocation2 + $0x1a2] ss:$2 sm:$0xff] }
 0x263   : > { %v1630_v33 = vmax.f32 %v1577_v26, %v1498_v30  ;;  %1176 = vst [vmem:[#allocation2 + $0x1b8] sm:$0xff] %v1070_v29  ;;  %v2670_v34 = vld [vmem:[#allocation3 + $0x68] sm:$0xe]  ;;  %v2669_v17 = vld [vmem:[#allocation3 + $0x68] sm:$0x1] }
 0x264   : > { %v2698_v37 = vunpack.c.l.bf16 %v2670_v34  ;;  %v2677_v51 = vunpack.c.l.bf16 %v2669_v17  ;;  %v8723_v17 = vpop.f32.mrf.mxu2 }
 0x265   : > { %v1683_v18 = vpack.c.bf16 %v1630_v33, %v1630_v33 }
 0x266   : > { %v2702_v9 = vrot.slane %v2698_v37, 6  ;;  %v2684_v56 = vrot.slane %v2677_v51, 7  ;;  %v8729_v51 = vpop.f32.mrf.mxu3 }
 0x267   : > { %v1972_v42 = vshll.u32 %v1683_v18, 16  ;;  %v1976_v53 = vshrl.u32 %v1683_v18, 16 }
 0x268   : > { %v890_v43 = vpop.f32.mrf.mxu0  ;;  %v2708_v44 = vmax.f32 %v2689_v41, %v2702_v9  ;;  %v2685_v5 = vsel %vm2375_vm8, %v2682_v54, %v2684_v56  ;;  %v7875_v56 = vld [vmem:[%s8367_s18 + $0x130] sm:$0xff] }
 0x269   : > { %v1974_v46 = vrot.slane %v1972_v42, 5  ;;  %v1071_v48 = vmax.f32 %v890_v43, 0.0  ;;  %v1978_v60 = vrot.slane %v1976_v53, 4  ;;  %v2691_v22 = vmax.f32 %v2674_v12, %v2685_v5 }
 0x26a   : > { %v2711_v49 = vpack.c.bf16 %v2708_v44, %v2708_v44  ;;  %v1288_v10 = vld [vmem:[#allocation2 + $0x1b0] ss:$2 sm:$0xff]  ;;  %v1394_v27 = vld [vmem:[#allocation2 + $0x1b1] ss:$2 sm:$0xff] }
 0x26b   : > { %v1975_v50 = vsel %vm8390_vm7, %v1970_v45, %v1974_v46  ;;  %1177 = vst [vmem:[#allocation2 + $0x1c0] sm:$0xff] %v1071_v48  ;;  %929 = vmatmul.bf16.gmra.mxu0 %v7873_v61  ;;  %v1578_v57 = vmax.f32 %v1288_v10, %v1394_v27  ;;  %v1979_v16 = vor.u32 %v1978_v60, %v1974_v46  ;;  %v8725_v45 = vpop.f32.mrf.mxu1 }
 0x26c   : > { %2326 = vst [vmem:[#allocation3 + $0x6c] sm:$0xf] %v1975_v50  ;;  %v3456_v63 = vpop.f32.mrf.mxu2 }
 0x26d   : > { %2714 = vst [vmem:[#allocation4 + $0x28] sm:$0xc] %v2711_v49  ;;  %v1980_v30 = vrot.slane %v1979_v16, 4 }
 0x270   : > { %v892_v59 = vpop.f32.mrf.mxu0 }
 0x271   : > { %v1072_v62 = vmax.f32 %v892_v59, 0.0  ;;  %v3202_v59 = vshrl.u32 %v8688_v31, 16 }
 0x272   : > { %v1500_v0 = vld [vmem:[#allocation2 + $0x1b2] ss:$2 sm:$0xff] }
 0x273   : > { %v1631_v3 = vmax.f32 %v1578_v57, %v1500_v0  ;;  %1178 = vst [vmem:[#allocation2 + $0x1c8] sm:$0xff] %v1072_v62  ;;  %v2671_v4 = vld [vmem:[#allocation3 + $0x6c] sm:$0xf]  ;;  %v3204_v1 = vor.u32 %v3202_v59, %v8703_v47 }
 0x274   : > { %v2699_v7 = vunpack.c.l.bf16 %v2671_v4 }
 0x275   : > { %v1684_v19 = vpack.c.bf16 %v1631_v3, %v1631_v3 }
 0x276   : > { %v2703_v55 = vrot.slane %v2699_v7, 6 }
 0x277   : > { %v1982_v13 = vshll.u32 %v1684_v19, 16  ;;  %v1986_v18 = vshrl.u32 %v1684_v19, 16 }
 0x278   : > { %v895_v26 = vpop.f32.mrf.mxu0  ;;  %v2704_v29 = vsel %vm2353_vm9, %v2702_v9, %v2703_v55  ;;  %v2710_v21 = vmax.f32 %v2691_v22, %v2703_v55 }
 0x279   : > { %v1984_v33 = vrot.slane %v1982_v13, 5  ;;  %v1073_v34 = vmax.f32 %v895_v26, 0.0  ;;  %v2709_v35 = vmax.f32 %v2690_v24, %v2704_v29  ;;  %v1988_v9 = vrot.slane %v1986_v18, 4 }
 0x27a   : > { %v2713_v37 = vpack.c.bf16 %v2710_v21, %v2710_v21  ;;  %v1290_v41 = vld [vmem:[#allocation2 + $0x1c0] ss:$2 sm:$0xff]  ;;  %v1396_v42 = vld [vmem:[#allocation2 + $0x1c1] ss:$2 sm:$0xff]  ;;  %v7876_v21 = vld [vmem:[%s8367_s18 + $0x138] sm:$0xff] }
 0x27b   : > { %v1985_v32 = vsel %vm8390_vm7, %v1980_v30, %v1984_v33  ;;  %1179 = vst [vmem:[#allocation2 + $0x1d0] sm:$0xff] %v1073_v34  ;;  %934 = vmatmul.bf16.gmra.mxu0 %v7874_v23  ;;  %v2712_v40 = vpack.c.bf16 %v2709_v35, %v2709_v35  ;;  %v1579_v43 = vmax.f32 %v1290_v41, %v1396_v42 }
 0x27c   : > { %2327 = vst [vmem:[#allocation3 + $0x70] sm:$0xf] %v1985_v32  ;;  %v1989_v38 = vor.u32 %v1988_v9, %v1984_v33 }
 0x27d   : > { %2716 = vst [vmem:[#allocation4 + $0x30] sm:$0x1] %v2713_v37 }
 0x27e   : > { %2715 = vst [vmem:[#allocation4 + $0x2c] sm:$0xf] %v2712_v40  ;;  %v1990_v54 = vrot.slane %v1989_v38, 4 }
 0x280   : > { %v897_v61 = vpop.f32.mrf.mxu0 }
 0x281   : > { %v1074_v44 = vmax.f32 %v897_v61, 0.0 }
 0x282   : > { %v1502_v46 = vld [vmem:[#allocation2 + $0x1c2] ss:$2 sm:$0xff] }
 0x283   : > { %v1632_v48 = vmax.f32 %v1579_v43, %v1502_v46  ;;  %1180 = vst [vmem:[#allocation2 + $0x1d8] sm:$0xff] %v1074_v44  ;;  %v2717_v44 = vld [vmem:[#allocation3 + $0x68] sm:$0xe] }
 0x285   : > { %v1685_v49 = vpack.c.bf16 %v1632_v48, %v1632_v48  ;;  %v8727_v50 = vld [vmem:[#allocation4 + $0x28] sm:$0xff] }
 0x286   : > { %3470 = vmatmul.bf16.gmra.mxu2 %v8727_v50  ;;  %v3530_v53 = vrot.slane %v8727_v50, 1  ;;  %v3206_v10 = vshll.u32 %v8727_v50, 16 }
 0x287   : > { %v1992_v52 = vshll.u32 %v1685_v49, 16  ;;  %v3331_v0 = vpop.f32.mrf.mxu1  ;;  %v1996_v31 = vshrl.u32 %v1685_v49, 16 }
 0x288   : > { %v900_v27 = vpop.f32.mrf.mxu0  ;;  %v3531_v62 = vsel %vm3520_vm10, %v3528_v8, %v3530_v53  ;;  %v8742_v3 = vrot.slane %v3206_v10, 1  ;;  %v3457_v5 = vadd.f32 %v3456_v63, %v3331_v0 }
 0x289   : > { %v1994_v60 = vrot.slane %v1992_v52, 5  ;;  %v1075_v57 = vmax.f32 %v900_v27, 0.0  ;;  %3629 = vmatmul.bf16.gmra.mxu3 %v3531_v62  ;;  %v1998_v19 = vrot.slane %v1996_v31, 4  ;;  %v2723_v52 = vunpack.c.l.bf16 %v2717_v44  ;;  %v7877_v62 = vld [vmem:[%s8367_s18 + $0x140] sm:$0xff] }
 0x28a   : > { %v3209_v6 = vsel %vm3165_vm11, %v3204_v1, %v8742_v3  ;;  %v1292_v8 = vld [vmem:[#allocation2 + $0x1d0] ss:$2 sm:$0xff]  ;;  %v1398_v7 = vld [vmem:[#allocation2 + $0x1d1] ss:$2 sm:$0xff] }
 0x28b   : > { %v1995_v4 = vsel %vm8390_vm7, %v1990_v54, %v1994_v60  ;;  %1181 = vst [vmem:[#allocation2 + $0x1e0] sm:$0xff] %v1075_v57  ;;  %939 = vmatmul.bf16.gmra.mxu0 %v7875_v56  ;;  %3340 = vmatmul.bf16.gmra.mxu1 %v3209_v6  ;;  %v3620_v12 = vpop.f32.mrf.mxu3  ;;  %v1580_v20 = vmax.f32 %v1292_v8, %v1398_v7 }
 0x28c   : > { %2328 = vst [vmem:[#allocation3 + $0x74] sm:$0xf] %v1995_v4  ;;  %v8748_v16 = vadd.f32 %v3620_v12, %v3457_v5  ;;  %v1999_v23 = vor.u32 %v1998_v19, %v1994_v60 }
 0x28e   : > { %v2000_v30 = vrot.slane %v1999_v23, 4  ;;  %v2718_v23 = vld [vmem:[#allocation3 + $0x6c] sm:$0xf] }
 0x290   : > { %v902_v47 = vpop.f32.mrf.mxu0 }
 0x291   : > { %v1076_v55 = vmax.f32 %v902_v47, 0.0 }
 0x292   : > { %v1504_v22 = vld [vmem:[#allocation2 + $0x1d2] ss:$2 sm:$0xff] }
 0x293   : > { %v1633_v13 = vmax.f32 %v1580_v20, %v1504_v22  ;;  %1182 = vst [vmem:[#allocation2 + $0x1e8] sm:$0xff] %v1076_v55  ;;  %v8137_v37 = vld [vmem:[#allocation3 + $0x70] sm:$0xff]  }
 0x294   : > { %v8073_v41 = vunpack.c.l.bf16 %v8137_v37  ;;  %v8074_v31 = vunpack.c.h.bf16 %v8137_v37 }
 0x295   : > { %v1686_v24 = vpack.c.bf16 %v1633_v13, %v1633_v13 }
 0x296   : > { %v2729_v48 = vrot.slane %v8073_v41, 7  ;;  %v2730_v19 = vrot.slane %v8074_v31, 7 }
 0x297   : > { %v2002_v26 = vshll.u32 %v1686_v24, 16  ;;  %v2006_v32 = vshrl.u32 %v1686_v24, 16 }
 0x298   : > { %v905_v29 = vpop.f32.mrf.mxu0  ;;  %v2734_v59 = vmax.f32 %v2723_v52, %v2729_v48 }
 0x299   : > { %v2004_v33 = vrot.slane %v2002_v26, 5  ;;  %v1077_v34 = vmax.f32 %v905_v29, 0.0  ;;  %v2008_v61 = vrot.slane %v2006_v32, 4  ;;  %v2731_v29 = vsel %vm2375_vm8, %v2729_v48, %v2730_v19 }
 0x29a   : > { %v1294_v40 = vld [vmem:[#allocation2 + $0x1e0] ss:$2 sm:$0xff]  ;;  %v1400_v18 = vld [vmem:[#allocation2 + $0x1e1] ss:$2 sm:$0xff] }
 0x29b   : > { %v2005_v35 = vsel %vm8390_vm7, %v2000_v30, %v2004_v33  ;;  %1183 = vst [vmem:[#allocation2 + $0x1f0] sm:$0xff] %v1077_v34  ;;  %944 = vmatmul.bf16.gmra.mxu0 %v7876_v21  ;;  %v1581_v9 = vmax.f32 %v1294_v40, %v1400_v18  ;;  %v2009_v27 = vor.u32 %v2008_v61, %v2004_v33  ;;  %v2724_v34 = vunpack.c.l.bf16 %v2718_v23  ;;  %v7878_v18 = vld [vmem:[%s8367_s18 + $0x148] sm:$0xff] }
 0x29c   : > { %2329 = vst [vmem:[#allocation3 + $0x78] sm:$0xf] %v2005_v35 }
 0x29d   : > { %v2010_v0 = vrot.slane %v2009_v27, 4  ;;  %v2735_v32 = vmax.f32 %v2724_v34, %v2731_v29 }
 0x2a0   : > { %v907_v42 = vpop.f32.mrf.mxu0 }
 0x2a1   : > { %v1078_v43 = vmax.f32 %v907_v42, 0.0 }
 0x2a2   : > { %v1506_v46 = vld [vmem:[#allocation2 + $0x1e2] ss:$2 sm:$0xff] }
 0x2a3   : > { %v1634_v38 = vmax.f32 %v1581_v9, %v1506_v46  ;;  %1184 = vst [vmem:[#allocation2 + $0x1f8] sm:$0xff] %v1078_v43  ;;  %v2721_v49 = vld [vmem:[#allocation3 + $0x78] sm:$0xf] }
 0x2a4   : > { %v2740_v10 = vunpack.c.l.bf16 %v2721_v49 }
 0x2a5   : > { %v1687_v56 = vpack.c.bf16 %v1634_v38, %v1634_v38 }
 0x2a6   : > { %v2744_v54 = vrot.slane %v2740_v10, 6 }
 0x2a7   : > { %v2012_v60 = vshll.u32 %v1687_v56, 16  ;;  %v2016_v8 = vshrl.u32 %v1687_v56, 16 }
 0x2a8   : > { %v910_v57 = vpop.f32.mrf.mxu0  ;;  %v2749_v63 = vmax.f32 %v2734_v59, %v2744_v54  ;;  %v8761_v59 = vpop.f32.mrf.mxu2 }
 0x2a9   : > { %v2014_v1 = vrot.slane %v2012_v60, 5  ;;  %v1079_v4 = vmax.f32 %v910_v57, 0.0  ;;  %v2018_v20 = vrot.slane %v2016_v8, 4 }
 0x2aa   : > { %v2751_v5 = vpack.c.bf16 %v2749_v63, %v2749_v63  ;;  %v1296_v7 = vld [vmem:[#allocation2 + $0x1f0] ss:$2 sm:$0xff]  ;;  %v1402_v12 = vld [vmem:[#allocation2 + $0x1f1] ss:$2 sm:$0xff] }
 0x2ab   : > { %v2015_v6 = vsel %vm8390_vm7, %v2010_v0, %v2014_v1  ;;  %1185 = vst [vmem:[#allocation2 + $0x200] sm:$0xff] %v1079_v4  ;;  %949 = vmatmul.bf16.gmra.mxu0 %v7877_v62  ;;  %v1582_v55 = vmax.f32 %v1296_v7, %v1402_v12  ;;  %v2019_v30 = vor.u32 %v2018_v20, %v2014_v1  ;;  %v8767_v1 = vpop.f32.mrf.mxu3  ;;  %v7879_v12 = vld [vmem:[%s8367_s18 + $0x150] sm:$0xff] }
 0x2ac   : > { %2330 = vst [vmem:[#allocation3 + $0x7c] sm:$0xf] %v2015_v6 }
 0x2ad   : > { %2753 = vst [vmem:[#allocation4 + $0x30] sm:$0xe] %v2751_v5  ;;  %v2020_v42 = vrot.slane %v2019_v30, 4  ;;  %v3210_v5 = vshrl.u32 %v8727_v50, 16 }
 0x2b0   : > { %v912_v47 = vpop.f32.mrf.mxu0  ;;  %v3461_v23 = vpop.f32.mrf.mxu2 }
 0x2b1   : > { %v1080_v22 = vmax.f32 %v912_v47, 0.0  ;;  %v3212_v47 = vor.u32 %v3210_v5, %v8742_v3 }
 0x2b2   : > { %v1508_v13 = vld [vmem:[#allocation2 + $0x1f2] ss:$2 sm:$0xff] }
 0x2b3   : > { %v1635_v24 = vmax.f32 %v1582_v55, %v1508_v13  ;;  %1186 = vst [vmem:[#allocation2 + $0x208] sm:$0xff] %v1080_v22  ;;  %v2722_v26 = vld [vmem:[#allocation3 + $0x7c] sm:$0x7] }
 0x2b4   : > { %v2741_v21 = vunpack.c.l.bf16 %v2722_v26 }
 0x2b5   : > { %v1688_v33 = vpack.c.bf16 %v1635_v24, %v1635_v24 }
 0x2b6   : > { %v2745_v35 = vrot.slane %v2741_v21, 6 }
 0x2b7   : > { %v2022_v37 = vshll.u32 %v1688_v33, 16  ;;  %v2026_v48 = vshrl.u32 %v1688_v33, 16 }
 0x2b8   : > { %v915_v40 = vpop.f32.mrf.mxu0  ;;  %v2746_v41 = vsel %vm2353_vm9, %v2744_v54, %v2745_v35  ;;  %v8763_v54 = vpop.f32.mrf.mxu1 }
 0x2b9   : > { %v2024_v61 = vrot.slane %v2022_v37, 5  ;;  %v1081_v9 = vmax.f32 %v915_v40, 0.0  ;;  %v2750_v43 = vmax.f32 %v2735_v32, %v2746_v41  ;;  %v2028_v10 = vrot.slane %v2026_v48, 4 }
 0x2ba   : > { %v1298_v38 = vld [vmem:[#allocation2 + $0x200] ss:$2 sm:$0xff]  ;;  %v1404_v49 = vld [vmem:[#allocation2 + $0x201] ss:$2 sm:$0xff] }
 0x2bb   : > { %v2025_v44 = vsel %vm8390_vm7, %v2020_v42, %v2024_v61  ;;  %1187 = vst [vmem:[#allocation2 + $0x210] sm:$0xff] %v1081_v9  ;;  %v2752_v46 = vpack.c.bf16 %v2750_v43, %v2750_v43  ;;  %954 = vmatmul.bf16.gmra.mxu0 %v7878_v18  ;;  %v1583_v27 = vmax.f32 %v1298_v38, %v1404_v49 }
 0x2bc   : > { %2331 = vst [vmem:[#allocation3 + $0x80] sm:$0xf] %v2025_v44  ;;  %v2029_v63 = vor.u32 %v2028_v10, %v2024_v61  ;;  %v7880_v44 = vld [vmem:[%s8367_s18 + $0x158] sm:$0xff]  ;;  %v2757_v10 = vld [vmem:[#allocation3 + $0x7c] sm:$0x8] }
 0x2bd   : > { %2754 = vst [vmem:[#allocation4 + $0x34] sm:$0xf] %v2752_v46 }
 0x2be   : > { %v2030_v55 = vrot.slane %v2029_v63, 4  ;;  %v2765_v63 = vunpack.c.l.bf16 %v2757_v10 }
 0x2c0   : > { %v917_v52 = vpop.f32.mrf.mxu0 }
 0x2c1   : > { %v1082_v56 = vmax.f32 %v917_v52, 0.0 }
 0x2c2   : > { %v1510_v60 = vld [vmem:[#allocation2 + $0x202] ss:$2 sm:$0xff] }
 0x2c3   : > { %v1636_v57 = vmax.f32 %v1583_v27, %v1510_v60  ;;  %1188 = vst [vmem:[#allocation2 + $0x218] sm:$0xff] %v1082_v56  ;;  %v2758_v49 = vld [vmem:[#allocation3 + $0x80] sm:$0xf] }
 0x2c4   : > { %v8765_v62 = vld [vmem:[#allocation4 + $0x30] sm:$0xff]  ;;  %v2766_v27 = vunpack.c.l.bf16 %v2758_v49 }
 0x2c5   : > { %v1689_v0 = vpack.c.bf16 %v1636_v57, %v1636_v57  ;;  %3475 = vmatmul.bf16.gmra.mxu2 %v8765_v62  ;;  %v3532_v4 = vrot.slane %v8765_v62, 1  ;;  %v3214_v6 = vshll.u32 %v8765_v62, 16  ;;  %v3218_v20 = vshrl.u32 %v8765_v62, 16 }
 0x2c7   : > { %v2032_v31 = vshll.u32 %v1689_v0, 16  ;;  %v3533_v7 = vsel %vm3520_vm10, %v3530_v53, %v3532_v4  ;;  %v3216_v19 = vrot.slane %v3214_v6, 1  ;;  %v3336_v24 = vpop.f32.mrf.mxu1  ;;  %v2036_v3 = vshrl.u32 %v1689_v0, 16 }
 0x2c8   : > { %v920_v8 = vpop.f32.mrf.mxu0  ;;  %3634 = vmatmul.bf16.gmra.mxu3 %v3533_v7  ;;  %v3462_v53 = vadd.f32 %v3461_v23, %v3336_v24  ;;  %v2772_v6 = vrot.slane %v2766_v27, 7 }
 0x2c9   : > { %v2034_v22 = vrot.slane %v2032_v31, 5  ;;  %v1083_v13 = vmax.f32 %v920_v8, 0.0  ;;  %v3217_v26 = vsel %vm3165_vm11, %v3212_v47, %v3216_v19  ;;  %v8782_v29 = vor.u32 %v3218_v20, %v3216_v19  ;;  %v2755_v47 = vld [vmem:[#allocation3 + $0x78] sm:$0xf] }
 0x2ca   : > { %3345 = vmatmul.bf16.gmra.mxu1 %v3217_v26  ;;  %v1300_v21 = vld [vmem:[#allocation2 + $0x210] ss:$2 sm:$0xff]  ;;  %v1406_v30 = vld [vmem:[#allocation2 + $0x211] ss:$2 sm:$0xff]  ;;  %v2038_v37 = vrot.slane %v2036_v3, 4  ;;  %v2771_v19 = vrot.slane %v2765_v63, 7 }
 0x2cb   : > { %v2035_v50 = vsel %vm8390_vm7, %v2030_v55, %v2034_v22  ;;  %1189 = vst [vmem:[#allocation2 + $0x220] sm:$0xff] %v1083_v13  ;;  %959 = vmatmul.bf16.gmra.mxu0 %v7879_v12  ;;  %v3625_v33 = vpop.f32.mrf.mxu3  ;;  %v1584_v32 = vmax.f32 %v1300_v21, %v1406_v30 }
 0x2cc   : > { %2332 = vst [vmem:[#allocation3 + $0x84] sm:$0xf] %v2035_v50  ;;  %v8786_v34 = vadd.f32 %v3625_v33, %v3462_v53  ;;  %v2039_v42 = vor.u32 %v2038_v37, %v2034_v22  ;;  %v2773_v13 = vsel %vm2375_vm8, %v2771_v19, %v2772_v6  ;;  %v2763_v50 = vunpack.c.l.bf16 %v2755_v47 }
 0x2ce   : > { %v2040_v46 = vrot.slane %v2039_v42, 4  ;;  %v2778_v30 = vmax.f32 %v2763_v50, %v2773_v13 }
 0x2d0   : > { %v922_v35 = vpop.f32.mrf.mxu0 }
 0x2d1   : > { %v1084_v40 = vmax.f32 %v922_v35, 0.0  ;;  %v7881_v35 = vld [vmem:[%s8367_s18 + $0x160] sm:$0xff] }
 0x2d2   : > { %v1512_v18 = vld [vmem:[#allocation2 + $0x212] ss:$2 sm:$0xff] }
 0x2d3   : > { %v1637_v41 = vmax.f32 %v1584_v32, %v1512_v18  ;;  %1190 = vst [vmem:[#allocation2 + $0x228] sm:$0xff] %v1084_v40  ;;  %v2760_v0 = vld [vmem:[#allocation3 + $0x84] sm:$0x8] }
 0x2d4   : > { %v2784_v20 = vunpack.c.l.bf16 %v2760_v0 }
 0x2d5   : > { %v1690_v61 = vpack.c.bf16 %v1637_v41, %v1637_v41  ;;  %v2759_v41 = vld [vmem:[#allocation3 + $0x84] sm:$0x7] }
 0x2d6   : > { %v2790_v53 = vrot.slane %v2784_v20, 6 }
 0x2d7   : > { %v2042_v9 = vshll.u32 %v1690_v61, 16  ;;  %v2046_v56 = vshrl.u32 %v1690_v61, 16 }
 0x2d8   : > { %v925_v43 = vpop.f32.mrf.mxu0 }
 0x2d9   : > { %v2044_v48 = vrot.slane %v2042_v9, 5  ;;  %v1085_v38 = vmax.f32 %v925_v43, 0.0  ;;  %v2048_v31 = vrot.slane %v2046_v56, 4  ;;  %v2767_v43 = vunpack.c.l.bf16 %v2759_v41  ;;  %v8804_v41 = vpop.f32.mrf.mxu3 }
 0x2da   : > { %v1302_v60 = vld [vmem:[#allocation2 + $0x220] ss:$2 sm:$0xff]  ;;  %v1408_v57 = vld [vmem:[#allocation2 + $0x221] ss:$2 sm:$0xff] }
 0x2db   : > { %v2045_v52 = vsel %vm8390_vm7, %v2040_v46, %v2044_v48  ;;  %1191 = vst [vmem:[#allocation2 + $0x230] sm:$0xff] %v1085_v38  ;;  %964 = vmatmul.bf16.gmra.mxu0 %v7880_v44  ;;  %v1585_v8 = vmax.f32 %v1302_v60, %v1408_v57  ;;  %v2049_v24 = vor.u32 %v2048_v31, %v2044_v48  ;;  %v2774_v49 = vrot.slane %v2767_v43, 7  ;;  %v2756_v60 = vld [vmem:[#allocation3 + $0x7c] sm:$0x7] }
 0x2dc   : > { %2333 = vst [vmem:[#allocation3 + $0x88] sm:$0xf] %v2045_v52 }
 0x2dd   : > { %v2050_v32 = vrot.slane %v2049_v24, 4  ;;  %v2775_v0 = vsel %vm2375_vm8, %v2772_v6, %v2774_v49 }
 0x2e0   : > { %v927_v5 = vpop.f32.mrf.mxu0 }
 0x2e1   : > { %v1086_v7 = vmax.f32 %v927_v5, 0.0 }
 0x2e2   : > { %v1514_v12 = vld [vmem:[#allocation2 + $0x222] ss:$2 sm:$0xff] }
 0x2e3   : > { %v1638_v55 = vmax.f32 %v1585_v8, %v1514_v12  ;;  %1192 = vst [vmem:[#allocation2 + $0x238] sm:$0xff] %v1086_v7  ;;  %v2761_v22 = vld [vmem:[#allocation3 + $0x88] sm:$0xf]  ;;  %v2764_v7 = vunpack.c.l.bf16 %v2756_v60 }
 0x2e4   : > { %v2785_v23 = vunpack.c.l.bf16 %v2761_v22 }
 0x2e5   : > { %v1691_v26 = vpack.c.bf16 %v1638_v55, %v1638_v55  ;;  %v2779_v19 = vmax.f32 %v2764_v7, %v2775_v0  ;;  %v7938_v0 = vld [vmem:[%s9805_s2 + $0xf8] sm:$0xff] }
 0x2e6   : > { %v2791_v3 = vrot.slane %v2785_v23, 6  ;;  %3859 = vmatpush.bf16.msra.mxu1 %v7938_v0 }
 0x2e7   : > { %v2052_v21 = vshll.u32 %v1691_v26, 16  ;;  %v2056_v44 = vshrl.u32 %v1691_v26, 16 }
 0x2e8   : > { %v930_v33 = vpop.f32.mrf.mxu0  ;;  %v2792_v37 = vsel %vm2353_vm9, %v2790_v53, %v2791_v3 }
 0x2e9   : > { %v2054_v40 = vrot.slane %v2052_v21, 5  ;;  %v1087_v18 = vmax.f32 %v930_v33, 0.0  ;;  %v2797_v42 = vmax.f32 %v2778_v30, %v2792_v37  ;;  %v2058_v52 = vrot.slane %v2056_v44, 4 }
 0x2ea   : > { %v1304_v46 = vld [vmem:[#allocation2 + $0x230] ss:$2 sm:$0xff]  ;;  %v1410_v48 = vld [vmem:[#allocation2 + $0x231] ss:$2 sm:$0xff] }
 0x2eb   : > { %v2055_v61 = vsel %vm8390_vm7, %v2050_v32, %v2054_v40  ;;  %1193 = vst [vmem:[#allocation2 + $0x240] sm:$0xff] %v1087_v18  ;;  %v2799_v9 = vpack.c.bf16 %v2797_v42, %v2797_v42  ;;  %969 = vmatmul.bf16.gmra.mxu0 %v7881_v35  ;;  %v1586_v10 = vmax.f32 %v1304_v46, %v1410_v48  ;;  %v8800_v32 = vpop.f32.mrf.mxu2 }
 0x2ec   : > { %2334 = vst [vmem:[#allocation3 + $0x8c] sm:$0xf] %v2055_v61  ;;  %v2059_v31 = vor.u32 %v2058_v52, %v2054_v40 }
 0x2ed   : > { %2801 = vst [vmem:[#allocation4 + $0x38] sm:$0xf] %v2799_v9 }
 0x2ee   : > { %v2060_v22 = vrot.slane %v2059_v31, 4 }
 0x2f0   : > { %v932_v38 = vpop.f32.mrf.mxu0 }
 0x2f1   : > { %v1088_v27 = vmax.f32 %v932_v38, 0.0 }
 0x2f2   : > { %v1516_v56 = vld [vmem:[#allocation2 + $0x232] ss:$2 sm:$0xff] }
 0x2f3   : > { %v1639_v57 = vmax.f32 %v1586_v10, %v1516_v56  ;;  %1194 = vst [vmem:[#allocation2 + $0x248] sm:$0xff] %v1088_v27  ;;  %v2762_v63 = vld [vmem:[#allocation3 + $0x8c] sm:$0x3]  ;;  %v3466_v48 = vpop.f32.mrf.mxu2  ;;  %v2806_v27 = vld [vmem:[#allocation3 + $0x8c] sm:$0xc] }
 0x2f4   : > { %v2786_v5 = vunpack.c.l.bf16 %v2762_v63  ;;  %v7954_v63 = vld [vmem:[%s9805_s2 + $0x178] sm:$0xff] }
 0x2f5   : > { %v1692_v8 = vpack.c.bf16 %v1639_v57, %v1639_v57  ;;  %v7946_v57 = vld [vmem:[%s9805_s2 + $0x138] sm:$0xff]  ;;  %4291 = vmatpush.bf16.msra.mxu3 %v7954_v63 }
 0x2f6   : > { %v2793_v12 = vrot.slane %v2786_v5, 6  ;;  %v2815_v5 = vunpack.c.l.bf16 %v2806_v27  ;;  %4121 = vmatpush.bf16.msra.mxu2 %v7946_v57 }
 0x2f7   : > { %v2062_v47 = vshll.u32 %v1692_v8, 16  ;;  %v2066_v6 = vshrl.u32 %v1692_v8, 16 }
 0x2f8   : > { %v935_v20 = vpop.f32.mrf.mxu0  ;;  %v2794_v55 = vsel %vm2353_vm9, %v2791_v3, %v2793_v12  ;;  %v8802_v3 = vpop.f32.mrf.mxu1 }
 0x2f9   : > { %v2064_v13 = vrot.slane %v2062_v47, 5  ;;  %v1089_v23 = vmax.f32 %v935_v20, 0.0  ;;  %v2798_v24 = vmax.f32 %v2779_v19, %v2794_v55  ;;  %v2068_v33 = vrot.slane %v2066_v6, 4  ;;  %v2803_v47 = vld [vmem:[#allocation3 + $0x84] sm:$0x8] }
 0x2fa   : > { %v1306_v53 = vld [vmem:[#allocation2 + $0x240] ss:$2 sm:$0xff]  ;;  %v1412_v21 = vld [vmem:[#allocation2 + $0x241] ss:$2 sm:$0xff]  ;;  %v2821_v20 = vrot.slane %v2815_v5, 7 }
 0x2fb   : > { %v2065_v26 = vsel %vm8390_vm7, %v2060_v22, %v2064_v13  ;;  %1195 = vst [vmem:[#allocation2 + $0x250] sm:$0xff] %v1089_v23  ;;  %v2800_v50 = vpack.c.bf16 %v2798_v24, %v2798_v24  ;;  %v1587_v35 = vmax.f32 %v1306_v53, %v1412_v21  ;;  %v2069_v42 = vor.u32 %v2068_v33, %v2064_v13 }
 0x2fc   : > { %2335 = vst [vmem:[#allocation3 + $0x90] sm:$0xf] %v2065_v26  ;;  %v2812_v24 = vunpack.c.l.bf16 %v2803_v47 }
 0x2fd   : > { %2802 = vst [vmem:[#allocation4 + $0x3c] sm:$0x7] %v2800_v50  ;;  %v2070_v43 = vrot.slane %v2069_v42, 4 }
 0x2fe   : > { %v2829_v6 = vmax.f32 %v2812_v24, %v2821_v20 }
 0x300   : > { %v937_v30 = vpop.f32.mrf.mxu0 }
 0x301   : > { %v1090_v37 = vmax.f32 %v937_v30, 0.0 }
 0x302   : > { %v1518_v40 = vld [vmem:[#allocation2 + $0x242] ss:$2 sm:$0xff] }
 0x303   : > { %v1640_v18 = vmax.f32 %v1587_v35, %v1518_v40  ;;  %1196 = vst [vmem:[#allocation2 + $0x258] sm:$0xff] %v1090_v37  ;;  %v2807_v42 = vld [vmem:[#allocation3 + $0x90] sm:$0xf] }
 0x305   : > { %v1693_v61 = vpack.c.bf16 %v1640_v18, %v1640_v18 }
 0x307   : > { %v2072_v9 = vshll.u32 %v1693_v61, 16  ;;  %v2076_v31 = vshrl.u32 %v1693_v61, 16 }
 0x308   : > { %v940_v46 = vpop.f32.mrf.mxu0  ;;  %v3341_v49 = vpop.f32.mrf.mxu1 }
 0x309   : > { %v2074_v44 = vrot.slane %v2072_v9, 5  ;;  %v1091_v38 = vmax.f32 %v940_v46, 0.0  ;;  %v3467_v10 = vadd.f32 %v3466_v48, %v3341_v49  ;;  %v2078_v55 = vrot.slane %v2076_v31, 4  ;;  %v2804_v31 = vld [vmem:[#allocation3 + $0x88] sm:$0xf] }
 0x30a   : > { %v1308_v8 = vld [vmem:[#allocation2 + $0x250] ss:$2 sm:$0xff]  ;;  %v1414_v7 = vld [vmem:[#allocation2 + $0x251] ss:$2 sm:$0xff]  ;;  %v2816_v48 = vunpack.c.l.bf16 %v2807_v42 }
 0x30b   : > { %v2075_v52 = vsel %vm8390_vm7, %v2070_v43, %v2074_v44  ;;  %1197 = vst [vmem:[#allocation2 + $0x260] sm:$0xff] %v1091_v38  ;;  %v1588_v22 = vmax.f32 %v1308_v8, %v1414_v7  ;;  %v2079_v21 = vor.u32 %v2078_v55, %v2074_v44  ;;  %v7945_v44 = vld [vmem:[%s9805_s2 + $0x130] sm:$0xff] }
 0x30c   : > { %2336 = vst [vmem:[#allocation3 + $0x94] sm:$0xf] %v2075_v52  ;;  %v3630_v56 = vpop.f32.mrf.mxu3  ;;  %4122 = vmatpush.bf16.msra.mxu2 %v7945_v44  ;;  %v2822_v27 = vrot.slane %v2816_v48, 7 }
 0x30d   : > { %v8808_v60 = vadd.f32 %v3630_v56, %v3467_v10  ;;  %v2080_v61 = vrot.slane %v2079_v21, 4 }
 0x310   : > { %v942_v12 = vpop.f32.mrf.mxu0 }
 0x311   : > { %v1092_v19 = vmax.f32 %v942_v12, 0.0  ;;  %v2823_v12 = vsel %vm2375_vm8, %v2821_v20, %v2822_v27 }
 0x312   : > { %v1520_v23 = vld [vmem:[#allocation2 + $0x252] ss:$2 sm:$0xff] }
 0x313   : > { %v2809_v13 = vld [vmem:[#allocation3 + $0x94] sm:$0xc]  ;;  %1198 = vst [vmem:[#allocation2 + $0x268] sm:$0xff] %v1092_v19  ;;  %v1641_v50 = vmax.f32 %v1588_v22, %v1520_v23 }
 0x314   : > { %v2838_v26 = vunpack.c.l.bf16 %v2809_v13  ;;  %v2813_v13 = vunpack.c.l.bf16 %v2804_v31 }
 0x315   : > { %v1694_v30 = vpack.c.bf16 %v1641_v50, %v1641_v50 }
 0x316   : > { %v2844_v53 = vrot.slane %v2838_v26, 6  ;;  %v2830_v20 = vmax.f32 %v2813_v13, %v2823_v12 }
 0x317   : > { %v2082_v35 = vshll.u32 %v1694_v30, 16  ;;  %v2086_v46 = vshrl.u32 %v1694_v30, 16 }
 0x318   : > { %v2852_v33 = vmax.f32 %v2829_v6, %v2844_v53  ;;  %v945_v37 = vpop.f32.mrf.mxu0 }
 0x319   : > { %v1093_v40 = vmax.f32 %v945_v37, 0.0  ;;  %v2084_v9 = vrot.slane %v2082_v35, 5  ;;  %v2088_v52 = vrot.slane %v2086_v46, 4 }
 0x31a   : > { %v2855_v18 = vpack.c.bf16 %v2852_v33, %v2852_v33  ;;  %v1310_v38 = vld [vmem:[#allocation2 + $0x260] ss:$2 sm:$0xff]  ;;  %v1416_v49 = vld [vmem:[#allocation2 + $0x261] ss:$2 sm:$0xff] }
 0x31b   : > { %1199 = vst [vmem:[#allocation2 + $0x270] sm:$0xff] %v1093_v40  ;;  %v2085_v43 = vsel %vm8390_vm7, %v2080_v61, %v2084_v9  ;;  %v1589_v56 = vmax.f32 %v1310_v38, %v1416_v49  ;;  %v2089_v8 = vor.u32 %v2088_v52, %v2084_v9  ;;  %v2808_v40 = vld [vmem:[#allocation3 + $0x94] sm:$0x3] }
 0x31c   : > { %2858 = vst [vmem:[#allocation4 + $0x3c] sm:$0x8] %v2855_v18  ;;  %v2817_v61 = vunpack.c.l.bf16 %v2808_v40 }
 0x31d   : > { %2337 = vst [vmem:[#allocation3 + $0x98] sm:$0xf] %v2085_v43  ;;  %v2090_v30 = vrot.slane %v2089_v8, 4  ;;  %v7953_v43 = vld [vmem:[%s9805_s2 + $0x170] sm:$0xff] }
 0x31e   : > { %4292 = vmatpush.bf16.msra.mxu3 %v7953_v43  ;;  %v2824_v38 = vrot.slane %v2817_v61, 7 }
 0x320   : > { %v947_v10 = vpop.f32.mrf.mxu0  ;;  %v2825_v31 = vsel %vm2375_vm8, %v2822_v27, %v2824_v38 }
 0x321   : > { %v1094_v57 = vmax.f32 %v947_v10, 0.0 }
 0x322   : > { %v1522_v63 = vld [vmem:[#allocation2 + $0x262] ss:$2 sm:$0xff] }
 0x323   : > { %v1642_v0 = vmax.f32 %v1589_v56, %v1522_v63  ;;  %1200 = vst [vmem:[#allocation2 + $0x278] sm:$0xff] %v1094_v57  ;;  %v8824_v5 = vld [vmem:[#allocation4 + $0x38] sm:$0xff]  ;;  %v2805_v57 = vld [vmem:[#allocation3 + $0x8c] sm:$0x3] }
 0x324   : > { %v2810_v7 = vld [vmem:[#allocation3 + $0x98] sm:$0xf]  ;;  %3480 = vmatmul.bf16.gmra.mxu2 %v8824_v5  ;;  %v3534_v19 = vrot.slane %v8824_v5, 1  ;;  %v3222_v55 = vshll.u32 %v8824_v5, 16  ;;  %v3226_v21 = vshrl.u32 %v8824_v5, 16  ;;  %v7942_v5 = vld [vmem:[%s9805_s2 + $0x118] sm:$0xff] }
 0x325   : > { %v1695_v47 = vpack.c.bf16 %v1642_v0, %v1642_v0  ;;  %v2839_v22 = vunpack.c.l.bf16 %v2810_v7 }
 0x326   : > { %v3535_v24 = vsel %vm3520_vm10, %v3532_v4, %v3534_v19  ;;  %v3224_v26 = vrot.slane %v3222_v55, 1 }
 0x327   : > { %v2092_v23 = vshll.u32 %v1695_v47, 16  ;;  %3639 = vmatmul.bf16.gmra.mxu3 %v3535_v24  ;;  %v2845_v6 = vrot.slane %v2839_v22, 6  ;;  %v2096_v9 = vshrl.u32 %v1695_v47, 16  ;;  %v2814_v47 = vunpack.c.l.bf16 %v2805_v57 }
 0x328   : > { %v950_v50 = vpop.f32.mrf.mxu0  ;;  %v3225_v37 = vsel %vm3165_vm11, %v8782_v29, %v3224_v26  ;;  %v8839_v62 = vor.u32 %v3226_v21, %v3224_v26  ;;  %v7937_v29 = vld [vmem:[%s9805_s2 + $0xf0] sm:$0xff] }
 0x329   : > { %v2094_v33 = vrot.slane %v2092_v23, 5  ;;  %v1095_v35 = vmax.f32 %v950_v50, 0.0  ;;  %3350 = vmatmul.bf16.gmra.mxu1 %v3225_v37  ;;  %v2846_v18 = vsel %vm2353_vm9, %v2844_v53, %v2845_v6  ;;  %v2098_v49 = vrot.slane %v2096_v9, 4  ;;  %v7952_v37 = vld [vmem:[%s9805_s2 + $0x168] sm:$0xff] }
 0x32a   : > { %v2853_v42 = vmax.f32 %v2830_v20, %v2846_v18  ;;  %v1312_v53 = vld [vmem:[#allocation2 + $0x270] ss:$2 sm:$0xff]  ;;  %v1418_v48 = vld [vmem:[#allocation2 + $0x271] ss:$2 sm:$0xff]  ;;  %3860 = vmatpush.bf16.msra.mxu1 %v7937_v29  ;;  %v2831_v13 = vmax.f32 %v2814_v47, %v2825_v31  ;;  %4293 = vmatpush.bf16.msra.mxu3 %v7952_v37 }
 0x32b   : > { %v2095_v4 = vsel %vm8390_vm7, %v2090_v30, %v2094_v33  ;;  %1201 = vst [vmem:[#allocation2 + $0x280] sm:$0xff] %v1095_v35  ;;  %v1590_v52 = vmax.f32 %v1312_v53, %v1418_v48  ;;  %v2099_v7 = vor.u32 %v2098_v49, %v2094_v33  ;;  %v7944_v33 = vld [vmem:[%s9805_s2 + $0x128] sm:$0xff]  ;;  %v8866_v53 = vpop.f32.mrf.mxu3 }
 0x32c   : > { %2338 = vst [vmem:[#allocation3 + $0x9c] sm:$0xf] %v2095_v4  ;;  %v2856_v46 = vpack.c.bf16 %v2853_v42, %v2853_v42  ;;  %v8862_v4 = vpop.f32.mrf.mxu2  ;;  %4123 = vmatpush.bf16.msra.mxu2 %v7944_v33  ;;  %v8864_v42 = vpop.f32.mrf.mxu1 }
 0x32d   : > { %v2100_v26 = vrot.slane %v2099_v7, 4 }
 0x32e   : > { %2859 = vst [vmem:[#allocation4 + $0x40] sm:$0xf] %v2856_v46 }
 0x330   : > { %v952_v44 = vpop.f32.mrf.mxu0 }
 0x331   : > { %v1096_v10 = vmax.f32 %v952_v44, 0.0 }
 0x332   : > { %v1524_v56 = vld [vmem:[#allocation2 + $0x272] ss:$2 sm:$0xff] }
 0x333   : > { %v1643_v63 = vmax.f32 %v1590_v52, %v1524_v56  ;;  %1202 = vst [vmem:[#allocation2 + $0x288] sm:$0xff] %v1096_v10  ;;  %v2811_v0 = vld [vmem:[#allocation3 + $0x9c] sm:$0x1] }
 0x334   : > { %v2840_v8 = vunpack.c.l.bf16 %v2811_v0  ;;  %v3471_v49 = vpop.f32.mrf.mxu2 }
 0x335   : > { %v1696_v12 = vpack.c.bf16 %v1643_v63, %v1643_v63 }
 0x336   : > { %v2847_v55 = vrot.slane %v2840_v8, 6 }
 0x337   : > { %v2102_v22 = vshll.u32 %v1696_v12, 16  ;;  %v2106_v27 = vshrl.u32 %v1696_v12, 16  ;;  %v2864_v12 = vld [vmem:[#allocation3 + $0x9c] sm:$0xe] }
 0x338   : > { %v955_v23 = vpop.f32.mrf.mxu0  ;;  %v2848_v24 = vsel %vm2353_vm9, %v2845_v6, %v2847_v55  ;;  %v7936_v6 = vld [vmem:[%s9805_s2 + $0xe8] sm:$0xff] }
 0x339   : > { %v2104_v50 = vrot.slane %v2102_v22, 5  ;;  %v1097_v20 = vmax.f32 %v955_v23, 0.0  ;;  %v2854_v21 = vmax.f32 %v2831_v13, %v2848_v24  ;;  %3861 = vmatpush.bf16.msra.mxu1 %v7936_v6  ;;  %v2108_v9 = vrot.slane %v2106_v27, 4  ;;  %v7943_v22 = vld [vmem:[%s9805_s2 + $0x120] sm:$0xff] }
 0x33a   : > { %v1314_v40 = vld [vmem:[#allocation2 + $0x280] ss:$2 sm:$0xff]  ;;  %v1420_v18 = vld [vmem:[#allocation2 + $0x281] ss:$2 sm:$0xff]  ;;  %4124 = vmatpush.bf16.msra.mxu2 %v7943_v22 }
 0x33b   : > { %v2105_v30 = vsel %vm8390_vm7, %v2100_v26, %v2104_v50  ;;  %1203 = vst [vmem:[#allocation2 + $0x290] sm:$0xff] %v1097_v20  ;;  %v2857_v35 = vpack.c.bf16 %v2854_v21, %v2854_v21  ;;  %v1591_v43 = vmax.f32 %v1314_v40, %v1420_v18  ;;  %v2109_v44 = vor.u32 %v2108_v9, %v2104_v50  ;;  %v7951_v13 = vld [vmem:[%s9805_s2 + $0x160] sm:$0xff] }
 0x33c   : > { %2339 = vst [vmem:[#allocation3 + $0xa0] sm:$0xf] %v2105_v30  ;;  %v7935_v23 = vld [vmem:[%s9805_s2 + $0xe0] sm:$0xff]  ;;  %v2872_v50 = vunpack.c.l.bf16 %v2864_v12  ;;  %4294 = vmatpush.bf16.msra.mxu3 %v7951_v13 }
 0x33d   : > { %2860 = vst [vmem:[#allocation4 + $0x44] sm:$0x3] %v2857_v35  ;;  %v2110_v57 = vrot.slane %v2109_v44, 4  ;;  %3862 = vmatpush.bf16.msra.mxu1 %v7935_v23  ;;  %v2861_v27 = vld [vmem:[#allocation3 + $0x94] sm:$0xc] }
 0x33e   : > { %v2878_v37 = vrot.slane %v2872_v50, 7  ;;  %v2869_v18 = vunpack.c.l.bf16 %v2861_v27  ;;  %4125 = vmatpush.bf16.msra.mxu2 %v7942_v5  ;;  %v3001_v5 = vld [vmem:[#allocation3 + $0xc4] sm:$0xf] }
 0x340   : > { %v957_v61 = vpop.f32.mrf.mxu0 }
 0x341   : > { %v1098_v29 = vmax.f32 %v957_v61, 0.0 }
 0x342   : > { %v1526_v46 = vld [vmem:[#allocation2 + $0x282] ss:$2 sm:$0xff] }
 0x343   : > { %v1644_v48 = vmax.f32 %v1591_v43, %v1526_v46  ;;  %1204 = vst [vmem:[#allocation2 + $0x298] sm:$0xff] %v1098_v29  ;;  %v2886_v29 = vmax.f32 %v2869_v18, %v2878_v37 }
 0x345   : > { %v1697_v38 = vpack.c.bf16 %v1644_v48, %v1644_v48 }
 0x347   : > { %v2112_v52 = vshll.u32 %v1697_v38, 16  ;;  %v3346_v56 = vpop.f32.mrf.mxu1  ;;  %v2116_v55 = vshrl.u32 %v1697_v38, 16 }
 0x348   : > { %v960_v10 = vpop.f32.mrf.mxu0  ;;  %v3472_v31 = vadd.f32 %v3471_v49, %v3346_v56 }
 0x349   : > { %v2114_v63 = vrot.slane %v2112_v52, 5  ;;  %v1099_v0 = vmax.f32 %v960_v10, 0.0  ;;  %v2118_v21 = vrot.slane %v2116_v55, 4 }
 0x34a   : > { %v1316_v24 = vld [vmem:[#allocation2 + $0x290] ss:$2 sm:$0xff]  ;;  %v1422_v26 = vld [vmem:[#allocation2 + $0x291] ss:$2 sm:$0xff] }
 0x34b   : > { %v2115_v8 = vsel %vm8390_vm7, %v2110_v57, %v2114_v63  ;;  %1205 = vst [vmem:[#allocation2 + $0x2a0] sm:$0xff] %v1099_v0  ;;  %v3635_v7 = vpop.f32.mrf.mxu3  ;;  %v1592_v30 = vmax.f32 %v1316_v24, %v1422_v26  ;;  %v2119_v9 = vor.u32 %v2118_v21, %v2114_v63  ;;  %v2865_v57 = vld [vmem:[#allocation3 + $0xa0] sm:$0xf] }
 0x34c   : > { %2340 = vst [vmem:[#allocation3 + $0xa4] sm:$0xf] %v2115_v8  ;;  %v8870_v47 = vadd.f32 %v3635_v7, %v3472_v31  ;;  %v2873_v7 = vunpack.c.l.bf16 %v2865_v57 }
 0x34d   : > { %v2120_v52 = vrot.slane %v2119_v9, 4 }
 0x34e   : > { %v2879_v23 = vrot.slane %v2873_v7, 7 }
 0x350   : > { %v962_v20 = vpop.f32.mrf.mxu0  ;;  %v2880_v18 = vsel %vm2375_vm8, %v2878_v37, %v2879_v23 }
 0x351   : > { %v1100_v35 = vmax.f32 %v962_v20, 0.0  ;;  %v2863_v20 = vld [vmem:[#allocation3 + $0x9c] sm:$0x1] }
 0x352   : > { %v1528_v33 = vld [vmem:[#allocation2 + $0x292] ss:$2 sm:$0xff] }
 0x353   : > { %v1645_v6 = vmax.f32 %v1592_v30, %v1528_v33  ;;  %1206 = vst [vmem:[#allocation2 + $0x2a8] sm:$0xff] %v1100_v35  ;;  %v2867_v40 = vld [vmem:[#allocation3 + $0xa4] sm:$0xe]  ;;  %v2866_v49 = vld [vmem:[#allocation3 + $0xa4] sm:$0x1] }
 0x354   : > { %v2895_v61 = vunpack.c.l.bf16 %v2867_v40  ;;  %v2874_v8 = vunpack.c.l.bf16 %v2866_v49  ;;  %v2862_v30 = vld [vmem:[#allocation3 + $0x98] sm:$0xf]  ;;  %v2871_v40 = vunpack.c.l.bf16 %v2863_v20 }
 0x355   : > { %v1698_v43 = vpack.c.bf16 %v1645_v6, %v1645_v6 }
 0x356   : > { %v2899_v46 = vrot.slane %v2895_v61, 6  ;;  %v2881_v22 = vrot.slane %v2874_v8, 7 }
 0x357   : > { %v2122_v48 = vshll.u32 %v1698_v43, 16  ;;  %v2126_v63 = vshrl.u32 %v1698_v43, 16 }
 0x358   : > { %v965_v44 = vpop.f32.mrf.mxu0  ;;  %v2905_v38 = vmax.f32 %v2886_v29, %v2899_v46  ;;  %v2882_v33 = vsel %vm2375_vm8, %v2879_v23, %v2881_v22  ;;  %v2870_v29 = vunpack.c.l.bf16 %v2862_v30 }
 0x359   : > { %v2124_v10 = vrot.slane %v2122_v48, 5  ;;  %v1101_v56 = vmax.f32 %v965_v44, 0.0  ;;  %v2128_v24 = vrot.slane %v2126_v63, 4 }
 0x35a   : > { %v2908_v0 = vpack.c.bf16 %v2905_v38, %v2905_v38  ;;  %v1318_v12 = vld [vmem:[#allocation2 + $0x2a0] ss:$2 sm:$0xff]  ;;  %v1424_v55 = vld [vmem:[#allocation2 + $0x2a1] ss:$2 sm:$0xff]  ;;  %v2888_v38 = vmax.f32 %v2871_v40, %v2882_v33 }
 0x35b   : > { %v2125_v31 = vsel %vm8390_vm7, %v2120_v52, %v2124_v10  ;;  %1207 = vst [vmem:[#allocation2 + $0x2b0] sm:$0xff] %v1101_v56  ;;  %v1593_v26 = vmax.f32 %v1318_v12, %v1424_v55  ;;  %v2129_v9 = vor.u32 %v2128_v24, %v2124_v10  ;;  %v2887_v56 = vmax.f32 %v2870_v29, %v2880_v18 }
 0x35c   : > { %2341 = vst [vmem:[#allocation3 + $0xa8] sm:$0xf] %v2125_v31 }
 0x35d   : > { %2911 = vst [vmem:[#allocation4 + $0x44] sm:$0xc] %v2908_v0  ;;  %v2130_v8 = vrot.slane %v2129_v9, 4 }
 0x360   : > { %v967_v13 = vpop.f32.mrf.mxu0 }
 0x361   : > { %v1102_v50 = vmax.f32 %v967_v13, 0.0  ;;  %v7934_v13 = vld [vmem:[%s9805_s2 + $0xd8] sm:$0xff] }
 0x362   : > { %v1530_v21 = vld [vmem:[#allocation2 + $0x2a2] ss:$2 sm:$0xff]  ;;  %3863 = vmatpush.bf16.msra.mxu1 %v7934_v13 }
 0x363   : > { %v1646_v35 = vmax.f32 %v1593_v26, %v1530_v21  ;;  %1208 = vst [vmem:[#allocation2 + $0x2b8] sm:$0xff] %v1102_v50  ;;  %v2868_v27 = vld [vmem:[#allocation3 + $0xa8] sm:$0xf]  ;;  %v7949_v26 = vld [vmem:[%s9805_s2 + $0x150] sm:$0xff] }
 0x364   : > { %v8884_v6 = vld [vmem:[#allocation4 + $0x40] sm:$0xff]  ;;  %v2896_v61 = vunpack.c.l.bf16 %v2868_v27 }
 0x365   : > { %v1699_v43 = vpack.c.bf16 %v1646_v35, %v1646_v35  ;;  %3485 = vmatmul.bf16.gmra.mxu2 %v8884_v6  ;;  %v3536_v48 = vrot.slane %v8884_v6, 1  ;;  %v3230_v44 = vshll.u32 %v8884_v6, 16  ;;  %v7933_v50 = vld [vmem:[%s9805_s2 + $0xd0] sm:$0xff] }
 0x366   : > { %v2900_v49 = vrot.slane %v2896_v61, 6  ;;  %3864 = vmatpush.bf16.msra.mxu1 %v7933_v50 }
 0x367   : > { %v2132_v52 = vshll.u32 %v1699_v43, 16  ;;  %v3537_v37 = vsel %vm3520_vm10, %v3534_v19, %v3536_v48  ;;  %v8895_v10 = vrot.slane %v3230_v44, 1  ;;  %v2136_v24 = vshrl.u32 %v1699_v43, 16 }
 0x368   : > { %v970_v57 = vpop.f32.mrf.mxu0  ;;  %v2901_v0 = vsel %vm2353_vm9, %v2899_v46, %v2900_v49  ;;  %v2907_v31 = vmax.f32 %v2888_v38, %v2900_v49  ;;  %3644 = vmatmul.bf16.gmra.mxu3 %v3537_v37  ;;  %v7950_v46 = vld [vmem:[%s9805_s2 + $0x158] sm:$0xff] }
 0x369   : > { %v2134_v7 = vrot.slane %v2132_v52, 5  ;;  %v1103_v63 = vmax.f32 %v970_v57, 0.0  ;;  %v2906_v12 = vmax.f32 %v2887_v56, %v2901_v0  ;;  %v3233_v55 = vsel %vm3165_vm11, %v8839_v62, %v8895_v10  ;;  %v7941_v62 = vld [vmem:[%s9805_s2 + $0x110] sm:$0xff]  ;;  %4295 = vmatpush.bf16.msra.mxu3 %v7950_v46 }
 0x36a   : > { %v2910_v22 = vpack.c.bf16 %v2907_v31, %v2907_v31  ;;  %3355 = vmatmul.bf16.gmra.mxu1 %v3233_v55  ;;  %v1320_v20 = vld [vmem:[#allocation2 + $0x2b0] ss:$2 sm:$0xff]  ;;  %v1426_v21 = vld [vmem:[#allocation2 + $0x2b1] ss:$2 sm:$0xff]  ;;  %4126 = vmatpush.bf16.msra.mxu2 %v7941_v62  ;;  %v2138_v35 = vrot.slane %v2136_v24, 4 }
 0x36b   : > { %v2135_v19 = vsel %vm8390_vm7, %v2130_v8, %v2134_v7  ;;  %1209 = vst [vmem:[#allocation2 + $0x2c0] sm:$0xff] %v1103_v63  ;;  %v2909_v23 = vpack.c.bf16 %v2906_v12, %v2906_v12  ;;  %v1594_v27 = vmax.f32 %v1320_v20, %v1426_v21  ;;  %v3000_v63 = vld [vmem:[#allocation3 + $0xc0] sm:$0x8]  ;;  %v3003_v12 = vld [vmem:[#allocation3 + $0xc8] sm:$0xc] }
 0x36c   : > { %2342 = vst [vmem:[#allocation3 + $0xac] sm:$0xf] %v2135_v19  ;;  %v2139_v61 = vor.u32 %v2138_v35, %v2134_v7  ;;  %v3006_v55 = vld [vmem:[#allocation3 + $0xd0] sm:$0xc]  ;;  %v3009_v46 = vunpack.c.l.bf16 %v3000_v63  ;;  %v3012_v13 = vunpack.c.l.bf16 %v3003_v12  ;;  %v3005_v24 = vld [vmem:[#allocation3 + $0xd0] sm:$0x3] }
 0x36d   : > { %2913 = vst [vmem:[#allocation4 + $0x4c] sm:$0x1] %v2910_v22  ;;  %4296 = vmatpush.bf16.msra.mxu3 %v7949_v26  ;;  %v3004_v22 = vld [vmem:[#allocation3 + $0xcc] sm:$0xf]  ;;  %v3035_v62 = vunpack.c.l.bf16 %v3006_v55  ;;  %v3007_v20 = vld [vmem:[#allocation3 + $0xd4] sm:$0xf] }
 0x36e   : > { %2912 = vst [vmem:[#allocation4 + $0x48] sm:$0xf] %v2909_v23  ;;  %v2140_v44 = vrot.slane %v2139_v61, 4  ;;  %v3002_v23 = vld [vmem:[#allocation3 + $0xc8] sm:$0x3] }
 0x36f   : > { %v3008_v21 = vld [vmem:[#allocation3 + $0xd8] sm:$0x1]  ;;  %v3041_v35 = vrot.slane %v3035_v62, 6  ;;  %v3011_v61 = vunpack.c.l.bf16 %v3002_v23  ;;  %v2958_v62 = vld [vmem:[#allocation3 + $0xc4] sm:$0xf] }
 0x370   : > { %v972_v30 = vpop.f32.mrf.mxu0  ;;  %v2959_v23 = vld [vmem:[#allocation3 + $0xc8] sm:$0x3] }
 0x371   : > { %v1104_v33 = vmax.f32 %v972_v30, 0.0  ;;  %v3018_v30 = vrot.slane %v3012_v13, 7 }
 0x372   : > { %v1532_v40 = vld [vmem:[#allocation2 + $0x2b2] ss:$2 sm:$0xff] }
 0x373   : > { %v1647_v18 = vmax.f32 %v1594_v27, %v1532_v40  ;;  %1210 = vst [vmem:[#allocation2 + $0x2c8] sm:$0xff] %v1104_v33  ;;  %v3010_v27 = vunpack.c.l.bf16 %v3001_v5  ;;  %v3013_v33 = vunpack.c.l.bf16 %v3004_v22 }
 0x375   : > { %v1700_v9 = vpack.c.bf16 %v1647_v18, %v1647_v18 }
 0x377   : > { %v2142_v43 = vshll.u32 %v1700_v9, 16  ;;  %v2146_v29 = vshrl.u32 %v1700_v9, 16  ;;  %v3014_v9 = vunpack.c.l.bf16 %v3005_v24 }
 0x379   : > { %v2144_v38 = vrot.slane %v2142_v43, 5  ;;  %v2148_v49 = vrot.slane %v2146_v29, 4  ;;  %v8923_v43 = vld [vmem:[#allocation3 + $0xa8] sm:$0xff]   ;;  %v7940_v29 = vld [vmem:[%s9805_s2 + $0x108] sm:$0xff] }
 0x37a   : > { %v1322_v52 = vld [vmem:[#allocation2 + $0x2c0] ss:$2 sm:$0xff]  ;;  %v1428_v56 = vld [vmem:[#allocation2 + $0x2c1] ss:$2 sm:$0xff]  ;;  %4127 = vmatpush.bf16.msra.mxu2 %v7940_v29  ;;  %v8078_v22 = vunpack.c.h.bf16 %v8923_v43  ;;  %v2983_v29 = vunpack.c.l.bf16 %v2959_v23 }
 0x37b   : > { %v2145_v57 = vsel %vm8390_vm7, %v2140_v44, %v2144_v38  ;;  %v1595_v37 = vmax.f32 %v1322_v52, %v1428_v56  ;;  %v2149_v0 = vor.u32 %v2148_v49, %v2144_v38  ;;  %v1534_v31 = vld [vmem:[#allocation2 + $0x2c2] ss:$2 sm:$0xff]  ;;  %v3026_v38 = vmax.f32 %v3009_v46, %v3018_v30 }
 0x37c   : > { %2343 = vst [vmem:[#allocation3 + $0xb0] sm:$0xf] %v2145_v57  ;;  %v7948_v44 = vld [vmem:[%s9805_s2 + $0x148] sm:$0xff]  ;;  %v3019_v49 = vrot.slane %v3013_v33, 7  ;;  %v3036_v52 = vunpack.c.l.bf16 %v3007_v20  ;;  %v3037_v56 = vunpack.c.l.bf16 %v3008_v21 }
 0x37d   : > { %v1648_v8 = vmax.f32 %v1595_v37, %v1534_v31  ;;  %v2150_v19 = vrot.slane %v2149_v0, 4  ;;  %v2955_v0 = vld [vmem:[#allocation3 + $0xbc] sm:$0xf]  ;;  %v3021_v31 = vrot.slane %v3014_v9, 7  ;;  %4297 = vmatpush.bf16.msra.mxu3 %v7948_v44  ;;  %v3049_v63 = vmax.f32 %v3026_v38, %v3041_v35  ;;  %v2957_v38 = vld [vmem:[#allocation3 + $0xc0] sm:$0x8] }
 0x37e   : > { %v3020_v12 = vsel %vm2375_vm8, %v3018_v30, %v3019_v49  ;;  %v3042_v55 = vrot.slane %v3036_v52, 6  ;;  %v2963_v30 = vunpack.c.l.bf16 %v2955_v0  ;;  %v2982_v9 = vunpack.c.l.bf16 %v2958_v62 }
 0x37f   : > { %v1701_v7 = vpack.c.bf16 %v1648_v8, %v1648_v8  ;;  %v2956_v8 = vld [vmem:[#allocation3 + $0xc0] sm:$0x7]  ;;  %v3022_v46 = vsel %vm2375_vm8, %v3019_v49, %v3021_v31  ;;  %v3027_v13 = vmax.f32 %v3010_v27, %v3020_v12  ;;  %v3052_v24 = vpack.c.bf16 %v3049_v63, %v3049_v63 }
 0x380   : > { %v2964_v33 = vunpack.c.l.bf16 %v2956_v8  ;;  %v2969_v52 = vrot.slane %v2963_v30, 7  ;;  %v2981_v0 = vunpack.c.l.bf16 %v2957_v38  ;;  %v2988_v31 = vrot.slane %v2982_v9, 6 }
 0x381   : > { %v2152_v26 = vshll.u32 %v1701_v7, 16  ;;  %v2156_v50 = vshrl.u32 %v1701_v7, 16  ;;  %v3044_v7 = vrot.slane %v3037_v56, 6  ;;  %3055 = vst [vmem:[#allocation4 + $0x58] sm:$0x8] %v3052_v24  ;;  %v2990_v8 = vrot.slane %v2983_v29, 6 }
 0x382   : > { %v2971_v56 = vrot.slane %v2964_v33, 7  ;;  %v8077_v24 = vunpack.c.l.bf16 %v8923_v43 }
 0x383   : > { %v2154_v40 = vrot.slane %v2152_v26, 5  ;;  %v2158_v18 = vrot.slane %v2156_v50, 4  ;;  %v3028_v26 = vmax.f32 %v3011_v61, %v3022_v46  ;;  %v3043_v50 = vsel %vm2353_vm9, %v3041_v35, %v3042_v55 }
 0x384   : > { %v3045_v20 = vsel %vm2353_vm9, %v3042_v55, %v3044_v7  ;;  %v2926_v61 = vrot.slane %v8078_v22, 7  ;;  %v2972_v22 = vsel %vm2375_vm8, %v2969_v52, %v2971_v56 }
 0x385   : > { %v2155_v57 = vsel %vm8390_vm7, %v2150_v19, %v2154_v40  ;;  %v2159_v37 = vor.u32 %v2158_v18, %v2154_v40  ;;  %v7932_v19 = vld [vmem:[%s9805_s2 + $0xc8] sm:$0xff]  ;;  %v3050_v40 = vmax.f32 %v3027_v13, %v3043_v50  ;;  %v3051_v27 = vmax.f32 %v3028_v26, %v3045_v20  ;;  %v2914_v18 = vld [vmem:[#allocation3 + $0xa4] sm:$0xe] }
 0x386   : > { %2344 = vst [vmem:[#allocation3 + $0xb4] sm:$0xf] %v2155_v57  ;;  %3865 = vmatpush.bf16.msra.mxu1 %v7932_v19  ;;  %v2987_v20 = vrot.slane %v2981_v0, 6 }
 0x387   : > { %v2160_v5 = vrot.slane %v2159_v37, 4  ;;  %v3053_v44 = vpack.c.bf16 %v3050_v40, %v3050_v40  ;;  %v3054_v35 = vpack.c.bf16 %v3051_v27, %v3051_v27  ;;  %v7939_v40 = vld [vmem:[%s9805_s2 + $0x100] sm:$0xff] }
 0x388   : > { %v7947_v27 = vld [vmem:[%s9805_s2 + $0x140] sm:$0xff]  ;;  %4128 = vmatpush.bf16.msra.mxu2 %v7939_v40  ;;  %v2989_v56 = vsel %vm2353_vm9, %v2987_v20, %v2988_v31 }
 0x389   : > { %v2165_v21 = vsel %vm8390_vm7, %v2160_v5, %v8610_v11  ;;  %3056 = vst [vmem:[#allocation4 + $0x5c] sm:$0xf] %v3053_v44  ;;  %v2920_v11 = vunpack.c.l.bf16 %v2914_v18  ;;  %v7931_v18 = vld [vmem:[%s9805_s2 + $0xc0] sm:$0xff]  ;;  %4298 = vmatpush.bf16.msra.mxu3 %v7947_v27  ;;  %v8234_v27 = vld [vmem:[#allocation4 + $0x4] sm:$0xf0]  }
 0x38a   : > { %2345 = vst [vmem:[#allocation3 + $0xb8] sm:$0xf] %v2165_v21  ;;  %v2991_v21 = vsel %vm2353_vm9, %v2988_v31, %v2990_v8  ;;  %3866 = vmatpush.bf16.msra.mxu1 %v7931_v18  ;;  %v8974_v18 = vld [vmem:[#allocation4 + $0xc] sm:$0xff]  }
 0x38b   : > { %3057 = vst [vmem:[#allocation4 + $0x60] sm:$0x3] %v3054_v35  ;;  %v2931_v63 = vmax.f32 %v2920_v11, %v2926_v61 }
 0x38d   : > { %v8139_v49 = vld [vmem:[#allocation3 + $0xb0] sm:$0xff]  }
 0x38e   : > { %v8082_v57 = vunpack.c.h.bf16 %v8139_v49  ;;  %v8081_v37 = vunpack.c.l.bf16 %v8139_v49  ;;  %v2952_v26 = vld [vmem:[#allocation3 + $0xb4] sm:$0xf] }
 0x390   : > { %v2941_v12 = vrot.slane %v8082_v57, 6  ;;  %v2927_v55 = vrot.slane %v8081_v37, 7 }
 0x391   : > { %v2919_v7 = vld [vmem:[#allocation3 + $0xb8] sm:$0x7]  ;;  %v2954_v46 = vld [vmem:[#allocation3 + $0xb8] sm:$0x8] }
 0x392   : > { %v2953_v5 = vld [vmem:[#allocation3 + $0xb8] sm:$0x7]  ;;  %v2946_v13 = vmax.f32 %v2931_v63, %v2941_v12  ;;  %v2928_v19 = vsel %vm2375_vm8, %v2926_v61, %v2927_v55  ;;  %v2938_v62 = vunpack.c.l.bf16 %v2919_v7  ;;  %v2962_v50 = vunpack.c.l.bf16 %v2954_v46  ;;  %v8963_v46 = vpop.f32.mrf.mxu2 }
 0x393   : > { %v2961_v23 = vunpack.c.l.bf16 %v2953_v5  ;;  %v2932_v9 = vmax.f32 %v8077_v24, %v2928_v19  ;;  %v2960_v61 = vunpack.c.l.bf16 %v2952_v26  ;;  %v3234_v7 = vshrl.u32 %v8884_v6, 16  ;;  %v8969_v19 = vpop.f32.mrf.mxu3 }
 0x394   : > { %v2948_v30 = vpack.c.bf16 %v2946_v13, %v2946_v13  ;;  %v2942_v33 = vrot.slane %v2938_v62, 6  ;;  %v2968_v29 = vrot.slane %v2962_v50, 7 }
 0x395   : > { %v2976_v43 = vmax.f32 %v2961_v23, %v2972_v22  ;;  %v3236_v31 = vor.u32 %v3234_v7, %v8895_v10 }
 0x396   : > { %2950 = vst [vmem:[#allocation4 + $0x4c] sm:$0xe] %v2948_v30  ;;  %v2943_v44 = vsel %vm2353_vm9, %v2941_v12, %v2942_v33  ;;  %v2970_v49 = vsel %vm2375_vm8, %v2968_v29, %v2969_v52  ;;  %v8960_v12 = vpop.f32.mrf.mxu1  ;;  %v8162_v29 = vld [vmem:[#allocation4 + $0x4] sm:$0x8] }
 0x397   : > { %v2995_v38 = vmax.f32 %v2976_v43, %v2991_v21  ;;  %v2947_v35 = vmax.f32 %v2932_v9, %v2943_v44  ;;  %v2975_v57 = vmax.f32 %v2960_v61, %v2970_v49  ;;  %v7979_v44 = vld [vmem:[%s9805_s2 + $0x1f8] sm:$0xff]  ;;  %v8163_v61 = vor.u32 %v8234_v27, %v8162_v29 }
 0x398   : > { %4811 = vmatpush.bf16.msrb.mxu2 %v7979_v44  ;;  %v3973_v49 = vshrl.u32 %v8974_v18, 16  ;;  %v3780_v27 = vrot.slane %v8974_v18, 3 }
 0x399   : > { %v2997_v11 = vpack.c.bf16 %v2995_v38, %v2995_v38  ;;  %v2949_v37 = vpack.c.bf16 %v2947_v35, %v2947_v35  ;;  %v2994_v0 = vmax.f32 %v2975_v57, %v2989_v56  ;;  %v3976_v56 = vshll.u32 %v8974_v18, 16  ;;  %v7987_v57 = vld [vmem:[%s9805_s2 + $0x238] sm:$0xff] }
 0x39a   : > { %v3476_v20 = vpop.f32.mrf.mxu2  ;;  %4995 = vmatpush.bf16.msrb.mxu3 %v7987_v57 }
 0x39b   : > { %2999 = vst [vmem:[#allocation4 + $0x58] sm:$0x7] %v2997_v11  ;;  %v2996_v8 = vpack.c.bf16 %v2994_v0, %v2994_v0  ;;  %v3968_v0 = vshll.u32 %v8163_v61, 16 }
 0x39c   : > { %2951 = vst [vmem:[#allocation4 + $0x50] sm:$0xf] %v2949_v37  ;;  %v3965_v37 = vshrl.u32 %v8163_v61, 16 }
 0x39d   : > { %v7906_v63 = vld [vmem:[#allocation4 + $0x48] sm:$0xff]  ;;  %2998 = vst [vmem:[#allocation4 + $0x54] sm:$0xf] %v2996_v8 }
 0x39e   : > { %3490 = vmatmul.bf16.gmra.mxu2 %v7906_v63  ;;  %v3538_v55 = vrot.slane %v7906_v63, 1  ;;  %v3238_v5 = vshll.u32 %v7906_v63, 16  ;;  %v3242_v43 = vshrl.u32 %v7906_v63, 16  ;;  %v7971_v8 = vld [vmem:[%s9805_s2 + $0x1b8] sm:$0xff]  ;;  %v3975_v63 = vrot.slane %v3973_v49, 3  ;;  %v7985_v49 = vld [vmem:[%s9805_s2 + $0x228] sm:$0xff] }
 0x39f   : > { %4549 = vmatpush.bf16.msrb.mxu1 %v7971_v8  ;;  %v3967_v7 = vrot.slane %v3965_v37, 3 }
 0x3a0   : > { %v3539_v52 = vsel %vm3520_vm10, %v3536_v48, %v3538_v55  ;;  %v3240_v22 = vrot.slane %v3238_v5, 1  ;;  %v3970_v5 = vrot.slane %v3968_v0, 4  ;;  %v7969_v0 = vld [vmem:[%s9805_s2 + $0x1a8] sm:$0xff] }
 0x3a1   : > { %3649 = vmatmul.bf16.gmra.mxu3 %v3539_v52 }
 0x3a2   : > { %v3241_v62 = vsel %vm3165_vm11, %v3236_v31, %v3240_v22  ;;  %v3244_v35 = vor.u32 %v3242_v43, %v3240_v22  ;;  %v3971_v31 = vor.u32 %v3970_v5, %v3967_v7  ;;  %v8143_v43 = vld [vmem:[#allocation4 + $0x8] sm:$0xff]   ;;  %v9023_v8 = vpop.f32.mrf.mxu2 }
 0x3a3   : > { %v3095_v13 = vld [vmem:[#allocation4 + $0x50] sm:$0xf]  ;;  %3360 = vmatmul.bf16.gmra.mxu1 %v3241_v62 }
 0x3a4   : > { %v3153_v23 = vunpack.c.l.b16 %v3095_v13  ;;  %v3078_v24 = vld [vmem:[#allocation4 + $0x50] sm:$0x7]  ;;  %v8990_v13 = vld [vmem:[#allocation4 + $0x14] sm:$0xff]  }
 0x3a5   : > { %v3376_v21 = vunpack.c.l.b16 %v3078_v24  ;;  %v3982_v24 = vshrl.u32 %v8990_v13, 16  ;;  %v3782_v37 = vrot.slane %v8990_v13, 3 }
 0x3a6   : > { %v3351_v26 = vpop.f32.mrf.mxu1  ;;  %v3164_v50 = vpack.c.b16 %v3153_v23, %v3153_v23 }
 0x3a7   : > { %v3477_v30 = vadd.f32 %v3476_v20, %v3351_v26  ;;  %v3377_v10 = vpack.c.b16 %v3376_v21, %v3376_v21  ;;  %v3985_v26 = vshll.u32 %v8990_v13, 16  ;;  %v7978_v20 = vld [vmem:[%s9805_s2 + $0x1f0] sm:$0xff]  ;;  %v3984_v21 = vrot.slane %v3982_v24, 3 }
 0x3a8   : > { %v3246_v33 = vshll.u32 %v3164_v50, 16  ;;  %v3540_v40 = vrot.slane %v3164_v50, 1  ;;  %v3250_v62 = vshrl.u32 %v3164_v50, 16  ;;  %4812 = vmatpush.bf16.msrb.mxu2 %v7978_v20  ;;  %v7970_v50 = vld [vmem:[%s9805_s2 + $0x1b0] sm:$0xff] }
 0x3a9   : > { %4550 = vmatpush.bf16.msrb.mxu1 %v7970_v50 }
 0x3aa   : > { %v3640_v6 = vpop.f32.mrf.mxu3  ;;  %v3248_v9 = vrot.slane %v3246_v33, 1  ;;  %v3541_v38 = vsel %vm3520_vm10, %v3538_v55, %v3540_v40  ;;  %v3978_v55 = vrot.slane %v3976_v56, 4 }
 0x3ab   : > { %v8972_v48 = vadd.f32 %v3640_v6, %v3477_v30  ;;  %v3987_v30 = vrot.slane %v3985_v26, 4  ;;  %v7986_v6 = vld [vmem:[%s9805_s2 + $0x230] sm:$0xff] }
 0x3ac   : > { %v3249_v11 = vsel %vm3165_vm11, %v3244_v35, %v3248_v9  ;;  %v3979_v52 = vor.u32 %v3978_v55, %v3975_v63  ;;  %v3252_v23 = vor.u32 %v3250_v62, %v3248_v9  ;;  %4996 = vmatpush.bf16.msrb.mxu3 %v7986_v6  ;;  %v3779_v9 = vrot.slane %v8163_v61, 3  ;;  %v7977_v35 = vld [vmem:[%s9805_s2 + $0x1e8] sm:$0xff]  ;;  %v8144_v55 = vld [vmem:[#allocation4 + $0x10] sm:$0xff]   ;;  %v3481_v62 = vpop.f32.mrf.mxu2 }
 0x3ad   : > { %v3988_v33 = vor.u32 %v3987_v30, %v3984_v21  ;;  %4813 = vmatpush.bf16.msrb.mxu2 %v7977_v35  ;;  %4551 = vmatpush.bf16.msrb.mxu1 %v7969_v0  ;;  %v9035_v6 = vld [vmem:[#allocation4 + $0x2c] sm:$0xff]  }
 0x3ae   : > { %3495 = vmatmul.bf16.gmra.mxu2 %v3377_v10  ;;  %v3980_v22 = vsel %vm3963_vm14, %v3971_v31, %v3979_v52  ;;  %v9025_v63 = vpop.f32.mrf.mxu1 }
 0x3af   : > { %v3989_v10 = vsel %vm3963_vm14, %v3979_v52, %v3988_v33  ;;  %v3783_v52 = vsel %vm3778_vm15, %v3780_v27, %v3782_v37 }
 0x3b0   : > { %4997 = vmatpush.bf16.msrb.mxu3 %v7985_v49 }
 0x3b1   : > { %3654 = vmatmul.bf16.gmra.mxu3 %v3541_v38  ;;  %v3781_v38 = vsel %vm3778_vm15, %v3779_v9, %v3780_v27  ;;  %v4012_v27 = vshll.u32 %v9035_v6, 16 }
 0x3b2   : > { %v9030_v31 = vpop.f32.mrf.mxu3 }
 0x3b3   : > { %3365 = vmatmul.bf16.gmra.mxu1 %v3249_v11  ;;  %v9017_v11 = vld [vmem:[#allocation4 + $0x24] sm:$0xff]  }
 0x3b4   : > { %v4000_v7 = vshrl.u32 %v9017_v11, 16  ;;  %v4003_v5 = vshll.u32 %v9017_v11, 16 }
 0x3b6   : > { %v4005_v13 = vrot.slane %v4003_v5, 4  ;;  %v7975_v5 = vld [vmem:[%s9805_s2 + $0x1d8] sm:$0xff] }
 0x3be   : > { %4129 = vmatmul.bf16.vlgmr.msra.gmra.mxu2 %v3980_v22  ;;  %v4002_v22 = vrot.slane %v4000_v7, 3 }
 0x3c0   : > { %v4006_v26 = vor.u32 %v4005_v13, %v4002_v22  ;;  %v7967_v13 = vld [vmem:[%s9805_s2 + $0x198] sm:$0xff] }
 0x3c1   : > { %3659 = vmatmul.bf16.gmra.mxu3 %v3540_v40  ;;  %v9004_v40 = vld [vmem:[#allocation4 + $0x1c] sm:$0xff]  }
 0x3c2   : > { %v3991_v29 = vshrl.u32 %v9004_v40, 16  ;;  %v3994_v44 = vshll.u32 %v9004_v40, 16  ;;  %v3784_v50 = vrot.slane %v9004_v40, 3  ;;  %v7968_v40 = vld [vmem:[%s9805_s2 + $0x1a0] sm:$0xff] }
 0x3c3   : > { %3370 = vmatmul.bf16.gmra.mxu1 %v3252_v23 }
 0x3c4   : > { %v3993_v18 = vrot.slane %v3991_v29, 3  ;;  %v3996_v56 = vrot.slane %v3994_v44, 4  ;;  %v3785_v9 = vsel %vm3778_vm15, %v3782_v37, %v3784_v50  ;;  %v7984_v29 = vld [vmem:[%s9805_s2 + $0x220] sm:$0xff]  ;;  %4552 = vmatpush.bf16.msrb.mxu1 %v7968_v40 }
 0x3c5   : > { %4998 = vmatpush.bf16.msrb.mxu3 %v7984_v29 }
 0x3c6   : > { %v3997_v61 = vor.u32 %v3996_v56, %v3993_v18  ;;  %v9051_v18 = vld [vmem:[#allocation4 + $0x34] sm:$0xff]   ;;  %v3786_v56 = vrot.slane %v9017_v11, 3  ;;  %v7983_v11 = vld [vmem:[%s9805_s2 + $0x218] sm:$0xff] }
 0x3c7   : > { %v4021_v37 = vshll.u32 %v9051_v18, 16 }
 0x3c8   : > { %v3998_v57 = vsel %vm3963_vm14, %v3988_v33, %v3997_v61  ;;  %v4007_v30 = vsel %vm3963_vm14, %v3997_v61, %v4006_v26  ;;  %v8145_v33 = vld [vmem:[#allocation4 + $0x18] sm:$0xff]   ;;  %v8146_v61 = vld [vmem:[#allocation4 + $0x20] sm:$0xff]   ;;  %v3787_v0 = vsel %vm3778_vm15, %v3784_v50, %v3786_v56  ;;  %4553 = vmatpush.bf16.msrb.mxu1 %v7967_v13 }
 0x3c9   : > { %v4023_v7 = vrot.slane %v4021_v37, 4  ;;  %4999 = vmatpush.bf16.msrb.mxu3 %v7983_v11 }
 0x3ce   : > { %4134 = vmatmul.bf16.gmra.mxu2 %v3989_v10  ;;  %v4009_v10 = vshrl.u32 %v9035_v6, 16 }
 0x3d0   : > { %v4011_v44 = vrot.slane %v4009_v10, 3 }
 0x3d1   : > { %4299 = vmatmul.bf16.vlgmr.msra.gmra.mxu3 %v8143_v43  ;;  %v7976_v43 = vld [vmem:[%s9805_s2 + $0x1e0] sm:$0xff] }
 0x3d2   : > { %4814 = vmatpush.bf16.msrb.mxu2 %v7976_v43 }
 0x3d3   : > { %3867 = vmatmul.bf16.vlgmr.msra.gmra.mxu1 %v3781_v38  ;;  %v4014_v38 = vrot.slane %v4012_v27, 4 }
 0x3d5   : > { %v4015_v35 = vor.u32 %v4014_v38, %v4011_v44  ;;  %v9080_v44 = vld [vmem:[#allocation4 + $0x44] sm:$0xff]  }
 0x3d6   : > { %4815 = vmatpush.bf16.msrb.mxu2 %v7975_v5  ;;  %v7974_v38 = vld [vmem:[%s9805_s2 + $0x1d0] sm:$0xff] }
 0x3d7   : > { %v4016_v49 = vsel %vm3963_vm14, %v4006_v26, %v4015_v35 }
 0x3da   : > { %4816 = vmatpush.bf16.msrb.mxu2 %v7974_v38  ;;  %v8149_v38 = vld [vmem:[#allocation4 + $0x38] sm:$0xff]  }
 0x3de   : > { %4139 = vmatmul.bf16.gmra.mxu2 %v3998_v57  ;;  %v4018_v57 = vshrl.u32 %v9051_v18, 16 }
 0x3e1   : > { %4304 = vmatmul.bf16.gmra.mxu3 %v8144_v55  ;;  %v4020_v55 = vrot.slane %v4018_v57, 3 }
 0x3e3   : > { %3872 = vmatmul.bf16.gmra.mxu1 %v3783_v52  ;;  %v9060_v52 = vpop.f32.mrf.mxu2  ;;  %v4024_v22 = vor.u32 %v4023_v7, %v4020_v55  ;;  %v4039_v55 = vshll.u32 %v9080_v44, 16  ;;  %v7966_v7 = vld [vmem:[%s9805_s2 + $0x190] sm:$0xff] }
 0x3e4   : > { %4554 = vmatpush.bf16.msrb.mxu1 %v7966_v7 }
 0x3e5   : > { %v4041_v13 = vrot.slane %v4039_v55, 4 }
 0x3e7   : > { %v3356_v23 = vpop.f32.mrf.mxu1 }
 0x3e8   : > { %v3482_v24 = vadd.f32 %v3481_v62, %v3356_v23  ;;  %v4025_v62 = vsel %vm3963_vm14, %v4015_v35, %v4024_v22  ;;  %v9069_v23 = vld [vmem:[#allocation4 + $0x3c] sm:$0xff]   ;;  %v3790_v35 = vrot.slane %v9051_v18, 3 }
 0x3e9   : > { %v4030_v50 = vshll.u32 %v9069_v23, 16 }
 0x3eb   : > { %v3645_v20 = vpop.f32.mrf.mxu3  ;;  %v3486_v26 = vpop.f32.mrf.mxu2  ;;  %v4032_v27 = vrot.slane %v4030_v50, 4 }
 0x3ec   : > { %v9032_v21 = vadd.f32 %v3645_v20, %v3482_v24  ;;  %v3788_v24 = vrot.slane %v9035_v6, 3  ;;  %v8147_v20 = vld [vmem:[#allocation4 + $0x28] sm:$0xff]  }
 0x3ee   : > { %4144 = vmatmul.bf16.gmra.mxu2 %v4007_v30  ;;  %v4027_v30 = vshrl.u32 %v9069_v23, 16  ;;  %v3791_v18 = vsel %vm3778_vm15, %v3788_v24, %v3790_v35 }
 0x3ef   : > { %v9075_v43 = vpop.f32.mrf.mxu1 }
 0x3f0   : > { %v4029_v10 = vrot.slane %v4027_v30, 3 }
 0x3f1   : > { %4309 = vmatmul.bf16.gmra.mxu3 %v8145_v33  ;;  %v3789_v33 = vsel %vm3778_vm15, %v3786_v56, %v3788_v24  ;;  %v3792_v24 = vrot.slane %v9069_v23, 3 }
 0x3f2   : > { %v4033_v29 = vor.u32 %v4032_v27, %v4029_v10  ;;  %v9100_v27 = vld [vmem:[#allocation4 + $0x4c] sm:$0xff]  }
 0x3f3   : > { %3877 = vmatmul.bf16.gmra.mxu1 %v3785_v9  ;;  %v3488_v9 = vpop.f32.mrf.mxu2  ;;  %v9077_v40 = vpop.f32.mrf.mxu3 }
 0x3f4   : > { %v4034_v6 = vsel %vm3963_vm14, %v4024_v22, %v4033_v29 }
 0x3fe   : > { %4149 = vmatmul.bf16.gmra.mxu2 %v4016_v49  ;;  %v7982_v49 = vld [vmem:[%s9805_s2 + $0x210] sm:$0xff] }
 0x3ff   : > { %5000 = vmatpush.bf16.msrb.mxu3 %v7982_v49 }
 0x401   : > { %4314 = vmatmul.bf16.gmra.mxu3 %v8146_v61  ;;  %v8148_v61 = vld [vmem:[#allocation4 + $0x30] sm:$0xff]  }
 0x403   : > { %3882 = vmatmul.bf16.gmra.mxu1 %v3787_v0  ;;  %v4036_v0 = vshrl.u32 %v9080_v44, 16 }
 0x405   : > { %v4038_v11 = vrot.slane %v4036_v0, 3 }
 0x407   : > { %v4042_v30 = vor.u32 %v4041_v13, %v4038_v11  ;;  %v3943_v11 = vld [vmem:[#allocation4 + $0x58] sm:$0x7] }
 0x409   : > { %v4043_v10 = vsel %vm3963_vm14, %v4033_v29, %v4042_v30  ;;  %v7973_v29 = vld [vmem:[%s9805_s2 + $0x1c8] sm:$0xff] }
 0x40a   : > { %4817 = vmatpush.bf16.msrb.mxu2 %v7973_v29  ;;  %v8150_v29 = vld [vmem:[#allocation4 + $0x40] sm:$0xff]  }
 0x40e   : > { %4154 = vmatmul.bf16.gmra.mxu2 %v4025_v62 }
 0x411   : > { %4319 = vmatmul.bf16.gmra.mxu3 %v8147_v20 }
 0x413   : > { %3887 = vmatmul.bf16.gmra.mxu1 %v3789_v33 }
 0x41e   : > { %4159 = vmatmul.bf16.gmra.mxu2 %v4034_v6 }
 0x420   : > { %v3361_v56 = vpop.f32.mrf.mxu1 }
 0x421   : > { %v3487_v57 = vadd.f32 %v3486_v26, %v3361_v56  ;;  %v3491_v37 = vpop.f32.mrf.mxu2  ;;  %4324 = vmatmul.bf16.gmra.mxu3 %v8148_v61  ;;  %v4045_v61 = vshrl.u32 %v9100_v27, 16 }
 0x423   : > { %3892 = vmatmul.bf16.gmra.mxu1 %v3791_v18  ;;  %v4047_v23 = vrot.slane %v4045_v61, 3  ;;  %v7965_v18 = vld [vmem:[%s9805_s2 + $0x188] sm:$0xff] }
 0x424   : > { %v3650_v5 = vpop.f32.mrf.mxu3  ;;  %4555 = vmatpush.bf16.msrb.mxu1 %v7965_v18 }
 0x425   : > { %v9095_v22 = vadd.f32 %v3650_v5, %v3487_v57  ;;  %v3793_v57 = vsel %vm3778_vm15, %v3790_v35, %v3792_v24  ;;  %v9117_v35 = vld [vmem:[#allocation4 + $0x50] sm:$0xff]  }
 0x428   : > { %v3363_v62 = vpop.f32.mrf.mxu1 }
 0x429   : > { %v3489_v26 = vadd.f32 %v3488_v9, %v3363_v62  ;;  %v3493_v20 = vpop.f32.mrf.mxu2  ;;  %v4048_v9 = vshll.u32 %v9100_v27, 16 }
 0x42b   : > { %v4050_v7 = vrot.slane %v4048_v9, 4  ;;  %v3794_v9 = vrot.slane %v9080_v44, 3  ;;  %v7972_v44 = vld [vmem:[%s9805_s2 + $0x1c0] sm:$0xff] }
 0x42c   : > { %v3652_v50 = vpop.f32.mrf.mxu3  ;;  %4818 = vmatpush.bf16.msrb.mxu2 %v7972_v44 }
 0x42d   : > { %v9097_v33 = vadd.f32 %v3652_v50, %v3489_v26  ;;  %v4051_v26 = vor.u32 %v4050_v7, %v4047_v23  ;;  %v8126_v50 = vunpack.c.h.b16 %v9117_v35 }
 0x42e   : > { %4164 = vmatmul.bf16.gmra.mxu2 %v4043_v10  ;;  %v9120_v10 = vunpack.c.l.b16 %v3943_v11 }
 0x430   : > { %v3366_v6 = vpop.f32.mrf.mxu1  ;;  %v3962_v61 = vpack.c.b16 %v9120_v10, %v8126_v50 }
 0x431   : > { %v3492_v49 = vadd.f32 %v3491_v37, %v3366_v6  ;;  %v3496_v56 = vpop.f32.mrf.mxu2  ;;  %4329 = vmatmul.bf16.gmra.mxu3 %v8149_v38  ;;  %v7981_v37 = vld [vmem:[%s9805_s2 + $0x208] sm:$0xff] }
 0x432   : > { %5001 = vmatpush.bf16.msrb.mxu3 %v7981_v37  ;;  %v4054_v23 = vshrl.u32 %v3962_v61, 16  ;;  %v4057_v7 = vshll.u32 %v3962_v61, 16  ;;  %v3795_v37 = vsel %vm3778_vm15, %v3792_v24, %v3794_v9  ;;  %v7964_v61 = vld [vmem:[%s9805_s2 + $0x180] sm:$0xff] }
 0x433   : > { %3897 = vmatmul.bf16.gmra.mxu1 %v3793_v57 }
 0x434   : > { %v3655_v0 = vpop.f32.mrf.mxu3  ;;  %v4056_v11 = vrot.slane %v4054_v23, 3  ;;  %4556 = vmatpush.bf16.msrb.mxu1 %v7964_v61 }
 0x435   : > { %v9109_v55 = vadd.f32 %v3655_v0, %v3492_v49  ;;  %v4052_v49 = vsel %vm3963_vm14, %v4042_v30, %v4051_v26  ;;  %v4059_v30 = vrot.slane %v4057_v7, 4 }
 0x438   : > { %v3368_v5 = vpop.f32.mrf.mxu1 }
 0x439   : > { %v3494_v13 = vadd.f32 %v3493_v20, %v3368_v5  ;;  %v3498_v62 = vpop.f32.mrf.mxu2 }
 0x43c   : > { %v3657_v6 = vpop.f32.mrf.mxu3 }
 0x43d   : > { %v9122_v38 = vadd.f32 %v3657_v6, %v3494_v13  ;;  %v4060_v6 = vor.u32 %v4059_v30, %v4056_v11 }
 0x43e   : > { %4169 = vmatmul.bf16.gmra.mxu2 %v4052_v49 }
 0x43f   : > { %v4061_v49 = vsel %vm3963_vm14, %v4051_v26, %v4060_v6  ;;  %v3449_v26 = vadd.f32 %v8682_v14, %v8684_v15  ;;  %v9153_v14 = vld [vmem:[#allocation4 + $0x14] sm:$0xff] }
 0x440   : > { %v3371_v57 = vpop.f32.mrf.mxu1 }
 0x441   : > { %v3497_v0 = vadd.f32 %v3496_v56, %v3371_v57  ;;  %v4130_v20 = vpop.f32.mrf.mxu2  ;;  %4334 = vmatmul.bf16.gmra.mxu3 %v8150_v29  ;;  %v7980_v56 = vld [vmem:[%s9805_s2 + $0x200] sm:$0xff]  ;;  %v3796_v57 = vrot.slane %v9100_v27, 3  ;;  %v3665_v27 = vadd.f32 %v8686_v28, %v3449_v26 }
 0x442   : > { %5002 = vmatpush.bf16.msrb.mxu3 %v7980_v56 }
 0x443   : > { %3902 = vmatmul.bf16.gmra.mxu1 %v3795_v37  ;;  %v3797_v37 = vsel %vm3778_vm15, %v3794_v9, %v3796_v57 }
 0x444   : > { %v3660_v18 = vpop.f32.mrf.mxu3 }
 0x445   : > { %v9128_v5 = vadd.f32 %v3660_v18, %v3497_v0  ;;  %v8151_v0 = vld [vmem:[#allocation4 + $0x48] sm:$0xff]  }
 0x448   : > { %v3373_v13 = vpop.f32.mrf.mxu1 }
 0x449   : > { %v4132_v62 = vpop.f32.mrf.mxu2  ;;  %v3706_v13 = vld [vmem:[#allocation4 + $0x58] sm:$0x3] }
 0x44a   : > { %v3766_v56 = vunpack.c.l.b16 %v3706_v13 }
 0x44c   : > { %v3662_v24 = vpop.f32.mrf.mxu3  ;;  %v3777_v61 = vpack.c.b16 %v3766_v56, %v8126_v50  ;;  %v4663_v50 = vshrl.u32 %v9153_v14, 16 }
 0x44d   : > { %v9148_v24 = vld [vmem:[#allocation4 + $0x10] sm:$0xf] }
 0x44e   : > { %4174 = vmatmul.bf16.gmra.mxu2 %v4061_v49 }
 0x450   : > { %v3868_v29 = vpop.f32.mrf.mxu1 }
 0x451   : > { %v3922_v23 = vadd.f32 %v3868_v29, %v8669_v36  ;;  %v4135_v7 = vpop.f32.mrf.mxu2  ;;  %4339 = vmatmul.bf16.gmra.mxu3 %v8151_v0  ;;  %v4375_v29 = vld [vmem:[#allocation4 + $0xc] sm:$0xc] }
 0x452   : > { %v4435_v15 = vunpack.c.l.b16 %v4375_v29 }
 0x453   : > { %3907 = vmatmul.bf16.gmra.mxu1 %v3797_v37  ;;  %v4184_v18 = vadd.f32 %v4130_v20, %v3922_v23  ;;  %v4436_v20 = vunpack.c.l.b16 %v9148_v24  ;;  %v3798_v37 = vrot.slane %v3777_v61, 3  ;;  %v3454_v24 = vadd.f32 %v8723_v17, %v8725_v45  ;;  %v9172_v45 = vld [vmem:[#allocation4 + $0x1c] sm:$0xff] }
 0x454   : > { %v4300_v11 = vpop.f32.mrf.mxu3 }
 0x455   : > { %v9145_v30 = vadd.f32 %v4300_v11, %v4184_v18  ;;  %v9155_v28 = vpack.c.b16 %v4436_v20, %v4435_v15  ;;  %v3799_v13 = vsel %vm3778_vm15, %v3796_v57, %v3798_v37  ;;  %v3667_v61 = vadd.f32 %v8729_v51, %v3454_v24 }
 0x456   : > { %v4231_v51 = vpack.c.b16 %v9120_v10, %v9120_v10  ;;  %v3459_v24 = vadd.f32 %v8761_v59, %v8763_v54  ;;  %v4895_v10 = vld [vmem:[#allocation4 + $0xc] sm:$0x8]  ;;  %v9188_v54 = vld [vmem:[#allocation4 + $0x24] sm:$0xff] }
 0x458   : > { %v3870_v44 = vpop.f32.mrf.mxu1 }
 0x459   : > { %v3923_v36 = vadd.f32 %v3870_v44, %v3665_v27  ;;  %v4137_v49 = vpop.f32.mrf.mxu2  ;;  %v4655_v44 = vshrl.u32 %v9155_v28, 16 }
 0x45b   : > { %v4185_v9 = vadd.f32 %v4132_v62, %v3923_v36  ;;  %v4666_v62 = vshll.u32 %v9153_v14, 16  ;;  %v4665_v36 = vrot.slane %v4663_v50, 2  ;;  %v4657_v29 = vrot.slane %v4655_v44, 2 }
 0x45c   : > { %v4302_v0 = vpop.f32.mrf.mxu3  ;;  %v4672_v44 = vshrl.u32 %v9172_v45, 16 }
 0x45d   : > { %v9151_v23 = vadd.f32 %v4302_v0, %v4185_v9 }
 0x45e   : > { %4179 = vmatmul.bf16.gmra.mxu2 %v4060_v6  ;;  %v4658_v6 = vshll.u32 %v9155_v28, 16 }
 0x460   : > { %v3873_v18 = vpop.f32.mrf.mxu1  ;;  %v4660_v9 = vrot.slane %v4658_v6, 3 }
 0x461   : > { %v3924_v11 = vadd.f32 %v3873_v18, %v8709_v25  ;;  %v4140_v26 = vpop.f32.mrf.mxu2  ;;  %4344 = vmatmul.bf16.gmra.mxu3 %v9117_v35  ;;  %v4668_v35 = vrot.slane %v4666_v62, 3 }
 0x463   : > { %3912 = vmatmul.bf16.gmra.mxu1 %v3799_v13  ;;  %v4186_v27 = vadd.f32 %v4135_v7, %v3924_v11  ;;  %v4669_v7 = vor.u32 %v4668_v35, %v4665_v36  ;;  %v4661_v11 = vor.u32 %v4660_v9, %v4657_v29  ;;  %v4674_v35 = vrot.slane %v4672_v44, 2 }
 0x464   : > { %v4305_v56 = vpop.f32.mrf.mxu3  ;;  %v3669_v29 = vadd.f32 %v8767_v1, %v3459_v24  ;;  %v4913_v9 = vunpack.c.l.b16 %v4895_v10  ;;  %v4470_v1 = vrot.slane %v9153_v14, 2 }
 0x465   : > { %v9166_v25 = vadd.f32 %v4305_v56, %v4186_v27  ;;  %v4670_v17 = vsel %vm4653_vm1, %v4661_v11, %v4669_v7 }
 0x466   : > { %v4914_v11 = vpack.c.b16 %v4436_v20, %v4913_v9  ;;  %v4469_v20 = vrot.slane %v9155_v28, 2 }
 0x468   : > { %v3875_v0 = vpop.f32.mrf.mxu1 }
 0x469   : > { %v3925_v57 = vadd.f32 %v3875_v0, %v3667_v61  ;;  %v4142_v15 = vpop.f32.mrf.mxu2 }
 0x46b   : > { %v4187_v18 = vadd.f32 %v4137_v49, %v3925_v57  ;;  %v4675_v49 = vshll.u32 %v9172_v45, 16 }
 0x46c   : > { %v4307_v13 = vpop.f32.mrf.mxu3 }
 0x46d   : > { %v9169_v2 = vadd.f32 %v4307_v13, %v4187_v18  ;;  %v4677_v61 = vrot.slane %v4675_v49, 3  ;;  %v4681_v49 = vshrl.u32 %v9188_v54, 16 }
 0x46e   : > { %4819 = vmatmul.bf16.vlgmr.msrb.gmra.mxu2 %v4670_v17 }
 0x46f   : > { %v4678_v18 = vor.u32 %v4677_v61, %v4674_v35  ;;  %v4683_v61 = vrot.slane %v4681_v49, 2  ;;  %v3469_v49 = vadd.f32 %v8862_v4, %v8864_v42  ;;  %v4474_v4 = vrot.slane %v9188_v54, 2 }
 0x470   : > { %v3878_v50 = vpop.f32.mrf.mxu1 }
 0x471   : > { %v3926_v62 = vadd.f32 %v3878_v50, %v8748_v16  ;;  %v4145_v27 = vpop.f32.mrf.mxu2  ;;  %4349 = vmatmul.bf16.gmra.mxu3 %v4231_v51  ;;  %v4679_v59 = vsel %vm4653_vm1, %v4669_v7, %v4678_v18  ;;  %v4915_v51 = vrot.slane %v4914_v11, 3  ;;  %v4684_v7 = vshll.u32 %v9188_v54, 16 }
 0x473   : > { %3917 = vmatmul.bf16.gmra.mxu1 %v3798_v37  ;;  %v4188_v6 = vadd.f32 %v4140_v26, %v3926_v62  ;;  %v4916_v26 = vrot.slane %v9153_v14, 3  ;;  %v3464_v14 = vadd.f32 %v8800_v32, %v8802_v3  ;;  %v4686_v28 = vrot.slane %v4684_v7, 3 }
 0x474   : > { %v4310_v56 = vpop.f32.mrf.mxu3  ;;  %v4472_v32 = vrot.slane %v9172_v45, 2 }
 0x475   : > { %v9181_v36 = vadd.f32 %v4310_v56, %v4188_v6  ;;  %v4917_v62 = vsel %vm3778_vm15, %v4915_v51, %v4916_v26  ;;  %v4471_v6 = vsel %vm4468_vm2, %v4469_v20, %v4470_v1  ;;  %v4687_v9 = vor.u32 %v4686_v28, %v4683_v61 }
 0x476   : > { %v4473_v20 = vsel %vm4468_vm2, %v4470_v1, %v4472_v32  ;;  %v4920_v1 = vrot.slane %v9188_v54, 3 }
 0x478   : > { %v3880_v16 = vpop.f32.mrf.mxu1 }
 0x479   : > { %v3927_v0 = vadd.f32 %v3880_v16, %v3669_v29  ;;  %v4147_v57 = vpop.f32.mrf.mxu2 }
 0x47b   : > { %v4189_v13 = vadd.f32 %v4142_v15, %v3927_v0 }
 0x47c   : > { %v4312_v37 = vpop.f32.mrf.mxu3 }
 0x47d   : > { %v9185_v17 = vadd.f32 %v4312_v37, %v4189_v13  ;;  %v4918_v13 = vrot.slane %v9172_v45, 3 }
 0x47e   : > { %4824 = vmatmul.bf16.gmra.mxu2 %v4679_v59  ;;  %v9206_v59 = vld [vmem:[#allocation4 + $0x2c] sm:$0xff] }
 0x480   : > { %v3883_v50 = vpop.f32.mrf.mxu1 }
 0x481   : > { %v3928_v15 = vadd.f32 %v3883_v50, %v8786_v34  ;;  %v4150_v44 = vpop.f32.mrf.mxu2  ;;  %5003 = vmatmul.bf16.vlgmr.msrb.gmra.mxu3 %v4917_v62  ;;  %v3671_v34 = vadd.f32 %v8804_v41, %v3464_v14  ;;  %v4919_v41 = vsel %vm3778_vm15, %v4916_v26, %v4918_v13  ;;  %v4693_v62 = vshll.u32 %v9206_v59, 16 }
 0x483   : > { %4557 = vmatmul.bf16.vlgmr.msrb.gmra.mxu1 %v4471_v6  ;;  %v4190_v56 = vadd.f32 %v4145_v27, %v3928_v15  ;;  %v4688_v27 = vsel %vm4653_vm1, %v4678_v18, %v4687_v9  ;;  %v4695_v26 = vrot.slane %v4693_v62, 3 }
 0x484   : > { %v4315_v24 = vpop.f32.mrf.mxu3 }
 0x485   : > { %v9199_v35 = vadd.f32 %v4315_v24, %v4190_v56 }
 0x488   : > { %v3885_v10 = vpop.f32.mrf.mxu1 }
 0x489   : > { %v3929_v29 = vadd.f32 %v3885_v10, %v3671_v34  ;;  %v4152_v16 = vpop.f32.mrf.mxu2  ;;  %v9223_v10 = vld [vmem:[#allocation4 + $0x34] sm:$0xff] }
 0x48b   : > { %v4191_v0 = vadd.f32 %v4147_v57, %v3929_v29  ;;  %v4690_v57 = vshrl.u32 %v9206_v59, 16 }
 0x48c   : > { %v4317_v11 = vpop.f32.mrf.mxu3 }
 0x48d   : > { %v9203_v37 = vadd.f32 %v4317_v11, %v4191_v0  ;;  %v4692_v7 = vrot.slane %v4690_v57, 2  ;;  %v4702_v11 = vshll.u32 %v9223_v10, 16 }
 0x48e   : > { %4829 = vmatmul.bf16.gmra.mxu2 %v4688_v27  ;;  %v4475_v27 = vsel %vm4468_vm2, %v4472_v32, %v4474_v4  ;;  %v4922_v32 = vrot.slane %v9206_v59, 3 }
 0x48f   : > { %v4696_v14 = vor.u32 %v4695_v26, %v4692_v7  ;;  %v9240_v26 = vld [vmem:[#allocation4 + $0x3c] sm:$0xff] }
 0x490   : > { %v3888_v3 = vpop.f32.mrf.mxu1 }
 0x491   : > { %v3930_v51 = vadd.f32 %v3888_v3, %v8808_v60  ;;  %v4155_v50 = vpop.f32.mrf.mxu2  ;;  %5008 = vmatmul.bf16.gmra.mxu3 %v4919_v41  ;;  %v3673_v60 = vadd.f32 %v8866_v53, %v3469_v49  ;;  %v4921_v53 = vsel %vm3778_vm15, %v4918_v13, %v4920_v1  ;;  %v3474_v41 = vadd.f32 %v8963_v46, %v8960_v12 }
 0x492   : > { %v4704_v13 = vrot.slane %v4702_v11, 3  ;;  %v4476_v12 = vrot.slane %v9206_v59, 2 }
 0x493   : > { %4562 = vmatmul.bf16.gmra.mxu1 %v4473_v20  ;;  %v4192_v18 = vadd.f32 %v4150_v44, %v3930_v51  ;;  %v4697_v44 = vsel %vm4653_vm1, %v4687_v9, %v4696_v14 }
 0x494   : > { %v4320_v15 = vpop.f32.mrf.mxu3 }
 0x495   : > { %v9216_v45 = vadd.f32 %v4320_v15, %v4192_v18 }
 0x498   : > { %v3890_v6 = vpop.f32.mrf.mxu1 }
 0x499   : > { %v3931_v56 = vadd.f32 %v3890_v6, %v3673_v60  ;;  %v4157_v24 = vpop.f32.mrf.mxu2 }
 0x49b   : > { %v4193_v61 = vadd.f32 %v4152_v16, %v3931_v56  ;;  %v4699_v16 = vshrl.u32 %v9223_v10, 16  ;;  %v4708_v56 = vshrl.u32 %v9240_v26, 16 }
 0x49c   : > { %v4322_v28 = vpop.f32.mrf.mxu3 }
 0x49d   : > { %v9220_v34 = vadd.f32 %v4322_v28, %v4193_v61  ;;  %v4701_v51 = vrot.slane %v4699_v16, 2  ;;  %v4477_v61 = vsel %vm4468_vm2, %v4474_v4, %v4476_v12  ;;  %v4924_v4 = vrot.slane %v9223_v10, 3 }
 0x49e   : > { %4834 = vmatmul.bf16.gmra.mxu2 %v4697_v44  ;;  %v3479_v44 = vadd.f32 %v9023_v8, %v9025_v63  ;;  %v4478_v8 = vrot.slane %v9223_v10, 2 }
 0x49f   : > { %v4705_v18 = vor.u32 %v4704_v13, %v4701_v51 }
 0x4a0   : > { %v3893_v42 = vpop.f32.mrf.mxu1 }
 0x4a1   : > { %v3932_v29 = vadd.f32 %v3893_v42, %v8870_v47  ;;  %v4160_v0 = vpop.f32.mrf.mxu2  ;;  %5013 = vmatmul.bf16.gmra.mxu3 %v4921_v53  ;;  %v3675_v47 = vadd.f32 %v8969_v19, %v3474_v41  ;;  %v4923_v19 = vsel %vm3778_vm15, %v4920_v1, %v4922_v32  ;;  %v4710_v42 = vrot.slane %v4708_v56, 2  ;;  %v9257_v41 = vld [vmem:[#allocation4 + $0x44] sm:$0xff] }
 0x4a3   : > { %4567 = vmatmul.bf16.gmra.mxu1 %v4475_v27  ;;  %v4194_v9 = vadd.f32 %v4155_v50, %v3932_v29  ;;  %v4706_v50 = vsel %vm4653_vm1, %v4696_v14, %v4705_v18 }
 0x4a4   : > { %v4325_v3 = vpop.f32.mrf.mxu3 }
 0x4a5   : > { %v9233_v54 = vadd.f32 %v4325_v3, %v4194_v9 }
 0x4a8   : > { %v3895_v57 = vpop.f32.mrf.mxu1 }
 0x4a9   : > { %v3933_v62 = vadd.f32 %v3895_v57, %v3675_v47  ;;  %v4162_v20 = vpop.f32.mrf.mxu2  ;;  %v4717_v47 = vshrl.u32 %v9257_v41, 16  ;;  %v4720_v57 = vshll.u32 %v9257_v41, 16 }
 0x4ab   : > { %v4195_v15 = vadd.f32 %v4157_v24, %v3933_v62  ;;  %v4711_v24 = vshll.u32 %v9240_v26, 16  ;;  %v4479_v62 = vsel %vm4468_vm2, %v4476_v12, %v4478_v8  ;;  %v4926_v12 = vrot.slane %v9240_v26, 3 }
 0x4ac   : > { %v4327_v49 = vpop.f32.mrf.mxu3 }
 0x4ad   : > { %v9237_v7 = vadd.f32 %v4327_v49, %v4195_v15  ;;  %v4713_v1 = vrot.slane %v4711_v24, 3  ;;  %v3484_v15 = vadd.f32 %v9060_v52, %v9075_v43  ;;  %v4719_v49 = vrot.slane %v4717_v47, 2  ;;  %v9289_v47 = vld [vmem:[#allocation4 + $0x54] sm:$0xff] }
 0x4ae   : > { %4839 = vmatmul.bf16.gmra.mxu2 %v4706_v50  ;;  %v4480_v52 = vrot.slane %v9240_v26, 2 }
 0x4af   : > { %v4714_v11 = vor.u32 %v4713_v1, %v4710_v42 }
 0x4b0   : > { %v3898_v46 = vpop.f32.mrf.mxu1 }
 0x4b1   : > { %v3934_v60 = vadd.f32 %v3898_v46, %v8972_v48  ;;  %v4165_v6 = vpop.f32.mrf.mxu2  ;;  %5018 = vmatmul.bf16.gmra.mxu3 %v4923_v19  ;;  %v3677_v48 = vadd.f32 %v9030_v31, %v3479_v44  ;;  %v4925_v31 = vsel %vm3778_vm15, %v4922_v32, %v4924_v4  ;;  %v4722_v32 = vrot.slane %v4720_v57, 3 }
 0x4b3   : > { %4572 = vmatmul.bf16.gmra.mxu1 %v4477_v61  ;;  %v4196_v14 = vadd.f32 %v4160_v0, %v3934_v60  ;;  %v4715_v0 = vsel %vm4653_vm1, %v4705_v18, %v4714_v11  ;;  %v4723_v60 = vor.u32 %v4722_v32, %v4719_v49 }
 0x4b4   : > { %v4330_v28 = vpop.f32.mrf.mxu3 }
 0x4b5   : > { %v9250_v59 = vadd.f32 %v4330_v28, %v4196_v14  ;;  %v9274_v14 = vld [vmem:[#allocation4 + $0x4c] sm:$0xff] }
 0x4b6   : > { %v4726_v42 = vshrl.u32 %v9274_v14, 16  ;;  %v4729_v1 = vshll.u32 %v9274_v14, 16 }
 0x4b8   : > { %v3900_v53 = vpop.f32.mrf.mxu1  ;;  %v4731_v26 = vrot.slane %v4729_v1, 3 }
 0x4b9   : > { %v3935_v29 = vadd.f32 %v3900_v53, %v3677_v48  ;;  %v4167_v16 = vpop.f32.mrf.mxu2  ;;  %v4481_v48 = vsel %vm4468_vm2, %v4478_v8, %v4480_v52 }
 0x4bb   : > { %v4197_v27 = vadd.f32 %v4162_v20, %v3935_v29 }
 0x4bc   : > { %v4332_v9 = vpop.f32.mrf.mxu3 }
 0x4bd   : > { %v9254_v3 = vadd.f32 %v4332_v9, %v4197_v27 }
 0x4be   : > { %4844 = vmatmul.bf16.gmra.mxu2 %v4715_v0 }
 0x4c0   : > { %v3903_v63 = vpop.f32.mrf.mxu1 }
 0x4c1   : > { %v3936_v51 = vadd.f32 %v3903_v63, %v9032_v21  ;;  %v4170_v13 = vpop.f32.mrf.mxu2  ;;  %5023 = vmatmul.bf16.gmra.mxu3 %v4925_v31  ;;  %v3679_v21 = vadd.f32 %v9077_v40, %v3484_v15  ;;  %v4927_v40 = vsel %vm3778_vm15, %v4924_v4, %v4926_v12  ;;  %v4928_v31 = vrot.slane %v9257_v41, 3 }
 0x4c2   : > { %v4738_v15 = vshll.u32 %v9289_v47, 16 }
 0x4c3   : > { %4577 = vmatmul.bf16.gmra.mxu1 %v4479_v62  ;;  %v4198_v20 = vadd.f32 %v4165_v6, %v3936_v51  ;;  %v4724_v6 = vsel %vm4653_vm1, %v4714_v11, %v4723_v60  ;;  %v4728_v11 = vrot.slane %v4726_v42, 2  ;;  %v4929_v62 = vsel %vm3778_vm15, %v4926_v12, %v4928_v31 }
 0x4c4   : > { %v4335_v18 = vpop.f32.mrf.mxu3 }
 0x4c5   : > { %v9267_v10 = vadd.f32 %v4335_v18, %v4198_v20  ;;  %v4735_v18 = vshrl.u32 %v9289_v47, 16 }
 0x4c8   : > { %v3905_v50 = vpop.f32.mrf.mxu1 }
 0x4c9   : > { %v3937_v46 = vadd.f32 %v3905_v50, %v3679_v21  ;;  %v4172_v19 = vpop.f32.mrf.mxu2 }
 0x4cb   : > { %v4199_v56 = vadd.f32 %v4167_v16, %v3937_v46  ;;  %v4737_v46 = vrot.slane %v4735_v18, 2 }
 0x4cc   : > { %v4337_v24 = vpop.f32.mrf.mxu3 }
 0x4cd   : > { %v9271_v61 = vadd.f32 %v4337_v24, %v4199_v56 }
 0x4ce   : > { %4849 = vmatmul.bf16.gmra.mxu2 %v4724_v6 }
 0x4d0   : > { %v3908_v43 = vpop.f32.mrf.mxu1 }
 0x4d1   : > { %v3938_v28 = vadd.f32 %v3908_v43, %v9095_v22  ;;  %v4175_v44 = vpop.f32.mrf.mxu2  ;;  %5028 = vmatmul.bf16.gmra.mxu3 %v4927_v40  ;;  %v4732_v22 = vor.u32 %v4731_v26, %v4728_v11 }
 0x4d3   : > { %4582 = vmatmul.bf16.gmra.mxu1 %v4481_v48  ;;  %v4200_v53 = vadd.f32 %v4170_v13, %v3938_v28  ;;  %v4733_v8 = vsel %vm4653_vm1, %v4723_v60, %v4732_v22  ;;  %v4482_v13 = vrot.slane %v9257_v41, 2  ;;  %v4740_v41 = vrot.slane %v4738_v15, 3  ;;  %v4633_v60 = vld [vmem:[#allocation4 + $0x60] sm:$0x3] }
 0x4d4   : > { %v4340_v29 = vpop.f32.mrf.mxu3  ;;  %v4651_v43 = vunpack.c.l.b16 %v4633_v60  ;;  %v4484_v48 = vrot.slane %v9274_v14, 2 }
 0x4d5   : > { %v9282_v16 = vadd.f32 %v4340_v29, %v4200_v53  ;;  %v4483_v49 = vsel %vm4468_vm2, %v4480_v52, %v4482_v13  ;;  %v4741_v12 = vor.u32 %v4740_v41, %v4737_v46  ;;  %v4930_v52 = vrot.slane %v9274_v14, 3  ;;  %v9327_v41 = vld [vmem:[%s9806_s3] ss:$0 sm:$0xff] }
 0x4d8   : > { %v3910_v27 = vpop.f32.mrf.mxu1 }
 0x4d9   : > { %v3939_v9 = vadd.f32 %v3910_v27, %v9097_v33  ;;  %v4177_v4 = vpop.f32.mrf.mxu2 }
 0x4db   : > { %v4201_v0 = vadd.f32 %v4172_v19, %v3939_v9  ;;  %v4395_v19 = vld [vmem:[#allocation4 + $0x5c] sm:$0xf]  ;;  %v4485_v9 = vsel %vm4468_vm2, %v4482_v13, %v4484_v48 }
 0x4dc   : > { %v4342_v63 = vpop.f32.mrf.mxu3  ;;  %v4455_v6 = vunpack.c.l.b16 %v4395_v19  ;;  %v4396_v19 = vld [vmem:[#allocation4 + $0x60] sm:$0x1] }
 0x4dd   : > { %v9286_v51 = vadd.f32 %v4342_v63, %v4201_v0 }
 0x4de   : > { %4854 = vmatmul.bf16.gmra.mxu2 %v4733_v8  ;;  %v9304_v1 = vpack.c.b16 %v4651_v43, %v4455_v6 }
 0x4e0   : > { %v3913_v57 = vpop.f32.mrf.mxu1  ;;  %v4744_v26 = vshrl.u32 %v9304_v1, 16  ;;  %v4747_v27 = vshll.u32 %v9304_v1, 16 }
 0x4e1   : > { %v3940_v33 = vadd.f32 %v3913_v57, %v9109_v55  ;;  %v4180_v20 = vpop.f32.mrf.mxu2  ;;  %5033 = vmatmul.bf16.gmra.mxu3 %v4929_v62  ;;  %v4932_v62 = vrot.slane %v9289_v47, 3 }
 0x4e2   : > { %v4749_v63 = vrot.slane %v4747_v27, 3 }
 0x4e3   : > { %4587 = vmatmul.bf16.gmra.mxu1 %v4483_v49  ;;  %v4202_v32 = vadd.f32 %v4175_v44, %v3940_v33  ;;  %v4742_v44 = vsel %vm4653_vm1, %v4732_v22, %v4741_v12  ;;  %v4933_v15 = vsel %vm3778_vm15, %v4930_v52, %v4932_v62 }
 0x4e4   : > { %v4345_v21 = vpop.f32.mrf.mxu3 }
 0x4e5   : > { %v9297_v50 = vadd.f32 %v4345_v21, %v4202_v32 }
 0x4e8   : > { %v3915_v56 = vpop.f32.mrf.mxu1 }
 0x4e9   : > { %v3941_v55 = vadd.f32 %v3915_v56, %v9122_v38  ;;  %v4182_v24 = vpop.f32.mrf.mxu2  ;;  %v4931_v38 = vsel %vm3778_vm15, %v4928_v31, %v4930_v52 }
 0x4eb   : > { %v4203_v40 = vadd.f32 %v4177_v4, %v3941_v55  ;;  %v8293_v4 = vmov 0.0  }
 0x4ec   : > { %v4347_v28 = vpop.f32.mrf.mxu3  ;;  %5125 = vst [vmem:[#allocation5] sm:$0x1] %v8293_v4 }
 0x4ed   : > { %v9301_v42 = vadd.f32 %v4347_v28, %v4203_v40  ;;  %5158 = vst [vmem:[#allocation5 + $0xa7] sm:$0x3] %v8293_v4 }
 0x4ee   : > { %4859 = vmatmul.bf16.gmra.mxu2 %v4742_v44  ;;  %6734 = vst [vmem:[#allocation8] sm:$0x1] %v8293_v4  ;;  %v4934_v44 = vrot.slane %v9304_v1, 3 }
 0x4ef   : > { %6746 = vst [vmem:[#allocation8 + $0x2f] sm:$0x3] %v8293_v4 }
 0x4f0   : > { %v3918_v53 = vpop.f32.mrf.mxu1 }
 0x4f1   : > { %v3942_v29 = vadd.f32 %v3918_v53, %v9128_v5  ;;  %v4820_v11 = vpop.f32.mrf.mxu2  ;;  %5038 = vmatmul.bf16.gmra.mxu3 %v4931_v38  ;;  %v4746_v5 = vrot.slane %v4744_v26, 2 }
 0x4f3   : > { %4592 = vmatmul.bf16.gmra.mxu1 %v4485_v9  ;;  %v4204_v22 = vadd.f32 %v4180_v20, %v3942_v29  ;;  %v4750_v57 = vor.u32 %v4749_v63, %v4746_v5  ;;  %v4486_v20 = vrot.slane %v9289_v47, 2  ;;  %v4456_v47 = vunpack.c.l.b16 %v4396_v19  ;;  %v7996_v63 = vld [vmem:[%s9807_s4 + $0x38] sm:$0xff] }
 0x4f4   : > { %v4350_v14 = vpop.f32.mrf.mxu3  ;;  %5892 = vmatpush.bf16.msra.mxu2 %v7996_v63 }
 0x4f5   : > { %v9315_v0 = vadd.f32 %v4350_v14, %v4204_v22  ;;  %v4751_v33 = vsel %vm4653_vm1, %v4741_v12, %v4750_v57  ;;  %v4487_v21 = vsel %vm4468_vm2, %v4484_v48, %v4486_v20  ;;  %v4467_v40 = vpack.c.b16 %v4456_v47, %v4455_v6 }
 0x4f7   : > { %v4488_v53 = vrot.slane %v4467_v40, 2 }
 0x4f8   : > { %v3920_v31 = vpop.f32.mrf.mxu1 }
 0x4f9   : > { %v4822_v8 = vpop.f32.mrf.mxu2  ;;  %v8004_v31 = vld [vmem:[%s9807_s4 + $0x78] sm:$0xff] }
 0x4fa   : > { %5814 = vmatpush.bf16.msra.mxu1 %v8004_v31 }
 0x4fc   : > { %v4352_v13 = vpop.f32.mrf.mxu3 }
 0x4fe   : > { %4864 = vmatmul.bf16.gmra.mxu2 %v4751_v33 }
 0x500   : > { %v4558_v18 = vpop.f32.mrf.mxu1 }
 0x501   : > { %v4612_v49 = vadd.f32 %v4558_v18, %v9145_v30  ;;  %v4825_v32 = vpop.f32.mrf.mxu2  ;;  %5043 = vmatmul.bf16.gmra.mxu3 %v4933_v15 }
 0x503   : > { %4597 = vmatmul.bf16.gmra.mxu1 %v4487_v21  ;;  %v4874_v46 = vadd.f32 %v4820_v11, %v4612_v49  ;;  %v4935_v11 = vsel %vm3778_vm15, %v4932_v62, %v4934_v44 }
 0x504   : > { %v5004_v60 = vpop.f32.mrf.mxu3 }
 0x505   : > { %v5058_v56 = vadd.f32 %v5004_v60, %v4874_v46 }
 0x507   : > { %v5083_v55 = vadd.f32 %v9327_v41, %v5058_v56 }
 0x508   : > { %v4560_v24 = vpop.f32.mrf.mxu1 }
 0x509   : > { %v5104_v12 = vmax.f32 %v5083_v55, 0.0  ;;  %v4613_v30 = vadd.f32 %v4560_v24, %v9151_v23  ;;  %v4827_v43 = vpop.f32.mrf.mxu2  ;;  %v4489_v23 = vsel %vm4468_vm2, %v4486_v20, %v4488_v53  ;;  %v5381_v24 = vld [vmem:[#allocation6] sm:$0x8] }
 0x50b   : > { %5126 = vst [vmem:[#allocation5 + $0x1] sm:$0xff] %v5104_v12  ;;  %v4875_v28 = vadd.f32 %v4822_v8, %v4613_v30 }
 0x50c   : > { %v5006_v52 = vpop.f32.mrf.mxu3 }
 0x50d   : > { %v5059_v48 = vadd.f32 %v5006_v52, %v4875_v28 }
 0x50e   : > { %4869 = vmatmul.bf16.gmra.mxu2 %v4750_v57 }
 0x50f   : > { %v5084_v38 = vadd.f32 %v9327_v41, %v5059_v48 }
 0x510   : > { %v4563_v29 = vpop.f32.mrf.mxu1 }
 0x511   : > { %v5105_v26 = vmax.f32 %v5084_v38, 0.0  ;;  %v4614_v27 = vadd.f32 %v4563_v29, %v9166_v25  ;;  %v4830_v9 = vpop.f32.mrf.mxu2  ;;  %5048 = vmatmul.bf16.gmra.mxu3 %v4935_v11  ;;  %v8012_v25 = vld [vmem:[%s9807_s4 + $0xb8] sm:$0xff]  ;;  %v8003_v38 = vld [vmem:[%s9807_s4 + $0x70] sm:$0xff] }
 0x512   : > { %5992 = vmatpush.bf16.msra.mxu3 %v8012_v25  ;;  %5815 = vmatpush.bf16.msra.mxu1 %v8003_v38 }
 0x513   : > { %5127 = vst [vmem:[#allocation5 + $0x9] sm:$0xff] %v5105_v26  ;;  %4602 = vmatmul.bf16.gmra.mxu1 %v4489_v23  ;;  %v4876_v6 = vadd.f32 %v4825_v32, %v4614_v27 }
 0x514   : > { %5147 = vst [vmem:[#allocation5 + $0xd] sm:$0x3] %v8293_v4  ;;  %v5009_v1 = vpop.f32.mrf.mxu3 }
 0x515   : > { %v5060_v22 = vadd.f32 %v5009_v1, %v4876_v6 }
 0x517   : > { %v5085_v14 = vadd.f32 %v9327_v41, %v5060_v22 }
 0x518   : > { %v4565_v5 = vpop.f32.mrf.mxu1 }
 0x519   : > { %v5106_v8 = vmax.f32 %v5085_v14, 0.0  ;;  %v4615_v57 = vadd.f32 %v4565_v5, %v9169_v2  ;;  %v4832_v13 = vpop.f32.mrf.mxu2 }
 0x51b   : > { %v5162_v62 = vld [vmem:[#allocation5] ss:$2 sm:$0xff]  ;;  %v5184_v33 = vld [vmem:[#allocation5 + $0x1] ss:$2 sm:$0xff]  ;;  %v4877_v20 = vadd.f32 %v4827_v43, %v4615_v57  ;;  %5128 = vst [vmem:[#allocation5 + $0x11] sm:$0xff] %v5106_v8 }
 0x51c   : > { %v5227_v18 = vmax.f32 %v5162_v62, %v5184_v33  ;;  %v5011_v15 = vpop.f32.mrf.mxu3  ;;  %v5206_v49 = vld [vmem:[#allocation5 + $0x2] ss:$2 sm:$0xff] }
 0x51d   : > { %v5061_v32 = vadd.f32 %v5011_v15, %v4877_v20 }
 0x51e   : > { %v5238_v21 = vmax.f32 %v5227_v18, %v5206_v49 }
 0x51f   : > { %v5086_v46 = vadd.f32 %v9327_v41, %v5061_v32 }
 0x520   : > { %v5249_v19 = vpack.c.bf16 %v5238_v21, %v5238_v21  ;;  %v4568_v60 = vpop.f32.mrf.mxu1 }
 0x521   : > { %v5107_v56 = vmax.f32 %v5086_v46, 0.0  ;;  %v4616_v2 = vadd.f32 %v4568_v60, %v9181_v36  ;;  %v4835_v47 = vpop.f32.mrf.mxu2  ;;  %5053 = vmatmul.bf16.gmra.mxu3 %v4934_v44  ;;  %v7995_v44 = vld [vmem:[%s9807_s4 + $0x30] sm:$0xff]  ;;  %v8010_v46 = vld [vmem:[%s9807_s4 + $0xa8] sm:$0xff] }
 0x522   : > { %v5261_v55 = vshll.u32 %v5249_v19, 16  ;;  %v5264_v48 = vshrl.u32 %v5249_v19, 16  ;;  %5893 = vmatpush.bf16.msra.mxu2 %v7995_v44  ;;  %v7992_v44 = vld [vmem:[%s9807_s4 + $0x18] sm:$0xff] }
 0x523   : > { %5129 = vst [vmem:[#allocation5 + $0x19] sm:$0xff] %v5107_v56  ;;  %4607 = vmatmul.bf16.gmra.mxu1 %v4488_v53  ;;  %v4878_v12 = vadd.f32 %v4830_v9, %v4616_v2  ;;  %v8011_v53 = vld [vmem:[%s9807_s4 + $0xb0] sm:$0xff] }
 0x524   : > { %v5263_v30 = vrot.slane %v5261_v55, 5  ;;  %5148 = vst [vmem:[#allocation5 + $0x1b] sm:$0x3] %v8293_v4  ;;  %v5014_v43 = vpop.f32.mrf.mxu3  ;;  %5993 = vmatpush.bf16.msra.mxu3 %v8011_v53  ;;  %v5266_v23 = vrot.slane %v5264_v48, 4 }
 0x525   : > { %v5062_v40 = vadd.f32 %v5014_v43, %v4878_v12 }
 0x526   : > { %v5382_v28 = vsel %vm8382_vm5, %v5263_v30, %v5381_v24  ;;  %v5267_v25 = vor.u32 %v5266_v23, %v5263_v30  ;;  %v7991_v23 = vld [vmem:[%s9807_s4 + $0x10] sm:$0xff]  ;;  %vm9476_vm5 = vmor %vm2354_vm12, %vm5481_vm0  ;;  %vm5536_vm12 = vsmask.f32 6416 }
 0x527   : > { %5383 = vst [vmem:[#allocation6] sm:$0x8] %v5382_v28  ;;  %v5087_v52 = vadd.f32 %v9327_v41, %v5062_v40  ;;  %v7993_v28 = vld [vmem:[%s9807_s4 + $0x20] sm:$0xff]  ;;  %vm5537_vm14 = vmor %vm5535_vm6, %vm5536_vm12 }
 0x528   : > { %v4570_v36 = vpop.f32.mrf.mxu1  ;;  %v5268_v20 = vrot.slane %v5267_v25, 4  ;;  %5994 = vmatpush.bf16.msra.mxu3 %v8010_v46 }
 0x529   : > { %v5108_v29 = vmax.f32 %v5087_v52, 0.0  ;;  %v4617_v39 = vadd.f32 %v4570_v36, %v9185_v17  ;;  %v4837_v11 = vpop.f32.mrf.mxu2 }
 0x52b   : > { %v5164_v26 = vld [vmem:[#allocation5 + $0x10] ss:$2 sm:$0xff]  ;;  %v5186_v27 = vld [vmem:[#allocation5 + $0x11] ss:$2 sm:$0xff]  ;;  %v4879_v9 = vadd.f32 %v4832_v13, %v4617_v39  ;;  %5130 = vst [vmem:[#allocation5 + $0x21] sm:$0xff] %v5108_v29 }
 0x52c   : > { %v5228_v6 = vmax.f32 %v5164_v26, %v5186_v27  ;;  %v5016_v1 = vpop.f32.mrf.mxu3  ;;  %v5208_v22 = vld [vmem:[#allocation5 + $0x12] ss:$2 sm:$0xff] }
 0x52d   : > { %v5063_v14 = vadd.f32 %v5016_v1, %v4879_v9 }
 0x52e   : > { %v5239_v5 = vmax.f32 %v5228_v6, %v5208_v22  ;;  %v5406_v25 = vld [vmem:[#allocation6] sm:$0x8] }
 0x52f   : > { %v5088_v63 = vadd.f32 %v9327_v41, %v5063_v14 }
 0x530   : > { %v5250_v31 = vpack.c.bf16 %v5239_v5, %v5239_v5  ;;  %v4573_v8 = vpop.f32.mrf.mxu1 }
 0x531   : > { %v5109_v17 = vmax.f32 %v5088_v63, 0.0  ;;  %v4618_v57 = vadd.f32 %v4573_v8, %v9199_v35  ;;  %v4840_v62 = vpop.f32.mrf.mxu2  ;;  %v7994_v35 = vld [vmem:[%s9807_s4 + $0x28] sm:$0xff] }
 0x532   : > { %v5270_v33 = vshll.u32 %v5250_v31, 16  ;;  %v5274_v19 = vshrl.u32 %v5250_v31, 16  ;;  %5894 = vmatpush.bf16.msra.mxu2 %v7994_v35  ;;  %v8002_v8 = vld [vmem:[%s9807_s4 + $0x68] sm:$0xff] }
 0x533   : > { %5131 = vst [vmem:[#allocation5 + $0x29] sm:$0xff] %v5109_v17  ;;  %v4880_v13 = vadd.f32 %v4835_v47, %v4618_v57  ;;  %v7990_v17 = vld [vmem:[%s9807_s4 + $0x8] sm:$0xff]  ;;  %5816 = vmatpush.bf16.msra.mxu1 %v8002_v8 }
 0x534   : > { %v5272_v18 = vrot.slane %v5270_v33, 5  ;;  %5149 = vst [vmem:[#allocation5 + $0x29] sm:$0x3] %v8293_v4  ;;  %v5019_v15 = vpop.f32.mrf.mxu3  ;;  %v5276_v30 = vrot.slane %v5274_v19, 4  ;;  %v7989_v19 = vld [vmem:[%s9807_s4] sm:$0xff] }
 0x535   : > { %v5064_v49 = vadd.f32 %v5019_v15, %v4880_v13 }
 0x536   : > { %v5273_v32 = vsel %vm8390_vm7, %v5268_v20, %v5272_v18  ;;  %5895 = vmatpush.bf16.msra.mxu2 %v7993_v28  ;;  %v5277_v53 = vor.u32 %v5276_v30, %v5272_v18 }
 0x537   : > { %5384 = vst [vmem:[#allocation6 + $0x4] sm:$0xf] %v5273_v32  ;;  %v5089_v21 = vadd.f32 %v9327_v41, %v5064_v49  ;;  %v5405_v49 = vld [vmem:[#allocation6] sm:$0x7]  ;;  %v5411_v32 = vunpack.c.l.bf16 %v5406_v25 }
 0x538   : > { %v4575_v60 = vpop.f32.mrf.mxu1  ;;  %v5278_v6 = vrot.slane %v5277_v53, 4  ;;  %v5410_v30 = vunpack.c.l.bf16 %v5405_v49 }
 0x539   : > { %v5110_v56 = vmax.f32 %v5089_v21, 0.0  ;;  %v4619_v2 = vadd.f32 %v4575_v60, %v9203_v37  ;;  %v4842_v47 = vpop.f32.mrf.mxu2 }
 0x53a   : > { %5896 = vmatpush.bf16.msra.mxu2 %v7992_v44 }
 0x53b   : > { %v5166_v55 = vld [vmem:[#allocation5 + $0x20] ss:$2 sm:$0xff]  ;;  %v5188_v24 = vld [vmem:[#allocation5 + $0x21] ss:$2 sm:$0xff]  ;;  %v4881_v12 = vadd.f32 %v4837_v11, %v4619_v2  ;;  %5132 = vst [vmem:[#allocation5 + $0x31] sm:$0xff] %v5110_v56 }
 0x53c   : > { %v5229_v43 = vmax.f32 %v5166_v55, %v5188_v24  ;;  %v5021_v40 = vpop.f32.mrf.mxu3  ;;  %v5210_v52 = vld [vmem:[#allocation5 + $0x22] ss:$2 sm:$0xff]  ;;  %5150 = vst [vmem:[#allocation5 + $0x37] sm:$0x3] %v8293_v4 }
 0x53d   : > { %v5065_v48 = vadd.f32 %v5021_v40, %v4881_v12 }
 0x53e   : > { %v5240_v36 = vmax.f32 %v5229_v43, %v5210_v52  ;;  %v5407_v5 = vld [vmem:[#allocation6 + $0x4] sm:$0x7]  ;;  %5897 = vmatpush.bf16.msra.mxu2 %v7991_v23  ;;  %v5408_v60 = vld [vmem:[#allocation6 + $0x4] sm:$0x8]  ;;  %v5415_v43 = vrot.slane %v5411_v32, 7 }
 0x53f   : > { %v5090_v37 = vadd.f32 %v9327_v41, %v5065_v48  ;;  %v5422_v40 = vunpack.c.l.bf16 %v5408_v60  ;;  %v8062_v60 = vld [vmem:[%s9807_s4 + $0x238] sm:$0xff] }
 0x540   : > { %v5251_v38 = vpack.c.bf16 %v5240_v36, %v5240_v36  ;;  %v4578_v29 = vpop.f32.mrf.mxu1 }
 0x541   : > { %v5111_v39 = vmax.f32 %v5090_v37, 0.0  ;;  %v4620_v11 = vadd.f32 %v4578_v29, %v9216_v45  ;;  %v4845_v26 = vpop.f32.mrf.mxu2 }
 0x542   : > { %v5280_v27 = vshll.u32 %v5251_v38, 16  ;;  %v5284_v45 = vshrl.u32 %v5251_v38, 16  ;;  %5898 = vmatpush.bf16.msra.mxu2 %v7990_v17 }
 0x543   : > { %5133 = vst [vmem:[#allocation5 + $0x39] sm:$0xff] %v5111_v39  ;;  %v4882_v9 = vadd.f32 %v4840_v62, %v4620_v11  ;;  %v5412_v62 = vunpack.c.l.bf16 %v5407_v5  ;;  %v5426_v39 = vrot.slane %v5422_v40, 6 }
 0x544   : > { %v5282_v1 = vrot.slane %v5280_v27, 5  ;;  %v5024_v22 = vpop.f32.mrf.mxu3  ;;  %v5286_v21 = vrot.slane %v5284_v45, 4  ;;  %v8009_v45 = vld [vmem:[%s9807_s4 + $0xa0] sm:$0xff] }
 0x545   : > { %v5066_v14 = vadd.f32 %v5024_v22, %v4882_v9  ;;  %v5416_v2 = vrot.slane %v5412_v62, 7  ;;  %5995 = vmatpush.bf16.msra.mxu3 %v8009_v45 }
 0x546   : > { %v5283_v63 = vsel %vm8390_vm7, %v5278_v6, %v5282_v1  ;;  %5899 = vmatpush.bf16.msra.mxu2 %v7989_v19  ;;  %v5287_v28 = vor.u32 %v5286_v21, %v5282_v1 }
 0x547   : > { %5385 = vst [vmem:[#allocation6 + $0x8] sm:$0xf] %v5283_v63  ;;  %v5091_v31 = vadd.f32 %v9327_v41, %v5066_v14  ;;  %v5417_v37 = vsel %vm2375_vm8, %v5415_v43, %v5416_v2 }
 0x548   : > { %v4580_v57 = vpop.f32.mrf.mxu1  ;;  %v5288_v27 = vrot.slane %v5287_v28, 4  ;;  %v5419_v6 = vmax.f32 %v5410_v30, %v5417_v37 }
 0x549   : > { %v5112_v33 = vmax.f32 %v5091_v31, 0.0  ;;  %v4621_v13 = vadd.f32 %v4580_v57, %v9220_v34  ;;  %v9399_v20 = vpop.f32.mrf.mxu2 }
 0x54a   : > { %v5168_v18 = vld [vmem:[#allocation5 + $0x30] ss:$2 sm:$0xff]  ;;  %v5190_v15 = vld [vmem:[#allocation5 + $0x31] ss:$2 sm:$0xff] }
 0x54b   : > { %v5230_v35 = vmax.f32 %v5168_v18, %v5190_v15  ;;  %5134 = vst [vmem:[#allocation5 + $0x41] sm:$0xff] %v5112_v33  ;;  %v4883_v46 = vadd.f32 %v4842_v47, %v4621_v13  ;;  %v5212_v56 = vld [vmem:[#allocation5 + $0x32] ss:$2 sm:$0xff] }
 0x54c   : > { %5151 = vst [vmem:[#allocation5 + $0x45] sm:$0x3] %v8293_v4  ;;  %v5026_v34 = vpop.f32.mrf.mxu3 }
 0x54d   : > { %v5241_v55 = vmax.f32 %v5230_v35, %v5212_v56  ;;  %v5067_v24 = vadd.f32 %v5026_v34, %v4883_v46  ;;  %v5442_v56 = vld [vmem:[#allocation7 + $0x4] sm:$0xf] }
 0x54e   : > { %v5409_v12 = vld [vmem:[#allocation6 + $0x8] sm:$0x3]  ;;  %v5447_v13 = vld [vmem:[#allocation6 + $0x8] sm:$0xc] }
 0x54f   : > { %v5252_v52 = vpack.c.bf16 %v5241_v55, %v5241_v55  ;;  %v5092_v47 = vadd.f32 %v9327_v41, %v5067_v24  ;;  %v5423_v48 = vunpack.c.l.bf16 %v5409_v12  ;;  %v5453_v34 = vunpack.c.l.bf16 %v5447_v13 }
 0x550   : > { %v4583_v36 = vpop.f32.mrf.mxu1 }
 0x551   : > { %v5290_v44 = vshll.u32 %v5252_v52, 16  ;;  %v5113_v53 = vmax.f32 %v5092_v47, 0.0  ;;  %v4622_v38 = vadd.f32 %v4583_v36, %v9233_v54  ;;  %v9408_v29 = vpop.f32.mrf.mxu2  ;;  %v5427_v11 = vrot.slane %v5423_v48, 6 }
 0x552   : > { %v5294_v25 = vshrl.u32 %v5252_v52, 16  ;;  %v5445_v52 = vld [vmem:[#allocation6 + $0x4] sm:$0x8]  ;;  %v5457_v48 = vrot.slane %v5453_v34, 7 }
 0x553   : > { %v5292_v9 = vrot.slane %v5290_v44, 5  ;;  %5135 = vst [vmem:[#allocation5 + $0x49] sm:$0xff] %v5113_v53  ;;  %v4884_v23 = vadd.f32 %v4845_v26, %v4622_v38  ;;  %v5428_v22 = vsel %vm2353_vm9, %v5426_v39, %v5427_v11  ;;  %v8001_v26 = vld [vmem:[%s9807_s4 + $0x60] sm:$0xff]  ;;  %v5451_v38 = vunpack.c.l.bf16 %v5445_v52 }
 0x554   : > { %v5029_v1 = vpop.f32.mrf.mxu3  ;;  %v5430_v63 = vmax.f32 %v5419_v6, %v5428_v22  ;;  %5817 = vmatpush.bf16.msra.mxu1 %v8001_v26  ;;  %v5296_v18 = vrot.slane %v5294_v25, 4  ;;  %v8000_v26 = vld [vmem:[%s9807_s4 + $0x58] sm:$0xff] }
 0x555   : > { %v5293_v14 = vsel %vm8390_vm7, %v5288_v27, %v5292_v9  ;;  %v5068_v5 = vadd.f32 %v5029_v1, %v4884_v23  ;;  %v5462_v1 = vmax.f32 %v5451_v38, %v5457_v48 }
 0x556   : > { %5386 = vst [vmem:[#allocation6 + $0xc] sm:$0xf] %v5293_v14  ;;  %v5431_v31 = vpack.c.bf16 %v5430_v63, %v5430_v63  ;;  %v5297_v43 = vor.u32 %v5296_v18, %v5292_v9 }
 0x557   : > { %v5093_v54 = vadd.f32 %v9327_v41, %v5068_v5 }
 0x558   : > { %v4585_v8 = vpop.f32.mrf.mxu1  ;;  %v5433_v33 = vshrl.u32 %v5431_v31, 16  ;;  %v5436_v46 = vshll.u32 %v5431_v31, 16  ;;  %v5298_v11 = vrot.slane %v5297_v43, 4  ;;  %5818 = vmatpush.bf16.msra.mxu1 %v8000_v26 }
 0x559   : > { %v5114_v17 = vmax.f32 %v5093_v54, 0.0  ;;  %v4623_v57 = vadd.f32 %v4585_v8, %v9237_v7  ;;  %v9421_v62 = vpop.f32.mrf.mxu2 }
 0x55a   : > { %v5170_v15 = vld [vmem:[#allocation5 + $0x40] ss:$2 sm:$0xff]  ;;  %v5192_v49 = vld [vmem:[#allocation5 + $0x41] ss:$2 sm:$0xff]  ;;  %v5435_v35 = vrot.slane %v5433_v33, 7 }
 0x55b   : > { %v5231_v32 = vmax.f32 %v5170_v15, %v5192_v49  ;;  %5136 = vst [vmem:[#allocation5 + $0x51] sm:$0xff] %v5114_v17  ;;  %v4885_v21 = vadd.f32 %v9399_v20, %v4623_v57  ;;  %v5214_v19 = vld [vmem:[#allocation5 + $0x42] ss:$2 sm:$0xff] }
 0x55c   : > { %5152 = vst [vmem:[#allocation5 + $0x53] sm:$0x3] %v8293_v4  ;;  %v5031_v7 = vpop.f32.mrf.mxu3  ;;  %v5438_v24 = vor.u32 %v5436_v46, %v5435_v35  ;;  %v5446_v46 = vld [vmem:[#allocation6 + $0x8] sm:$0x3] }
 0x55d   : > { %v5242_v2 = vmax.f32 %v5231_v32, %v5214_v19  ;;  %v5069_v55 = vadd.f32 %v5031_v7, %v4885_v21  ;;  %v5449_v12 = vld [vmem:[#allocation6 + $0xc] sm:$0xc]  ;;  %v5448_v23 = vld [vmem:[#allocation6 + $0xc] sm:$0x3]  ;;  %v5452_v43 = vunpack.c.l.bf16 %v5446_v46 }
 0x55e   : > { %v5468_v30 = vunpack.c.l.bf16 %v5449_v12  ;;  %v5443_v28 = vsel %vm9426_vm4, %v5438_v24, %v5442_v56  ;;  %v5454_v5 = vunpack.c.l.bf16 %v5448_v23 }
 0x55f   : > { %v5253_v20 = vpack.c.bf16 %v5242_v2, %v5242_v2  ;;  %v5094_v40 = vadd.f32 %v9327_v41, %v5069_v55  ;;  %5444 = vst [vmem:[#allocation7 + $0x4] sm:$0xf] %v5443_v28 }
 0x560   : > { %v4588_v47 = vpop.f32.mrf.mxu1  ;;  %v5472_v39 = vrot.slane %v5468_v30, 6  ;;  %v5458_v13 = vrot.slane %v5454_v5, 7 }
 0x561   : > { %v5300_v36 = vshll.u32 %v5253_v20, 16  ;;  %v5115_v37 = vmax.f32 %v5094_v40, 0.0  ;;  %v4624_v44 = vadd.f32 %v4588_v47, %v9250_v59  ;;  %v9434_v53 = vpop.f32.mrf.mxu2  ;;  %v5304_v59 = vshrl.u32 %v5253_v20, 16 }
 0x562   : > { %v5477_v63 = vmax.f32 %v5462_v1, %v5472_v39  ;;  %v5459_v56 = vsel %vm2375_vm8, %v5457_v48, %v5458_v13 }
 0x563   : > { %v5302_v27 = vrot.slane %v5300_v36, 5  ;;  %5137 = vst [vmem:[#allocation5 + $0x59] sm:$0xff] %v5115_v37  ;;  %v4886_v9 = vadd.f32 %v9408_v29, %v4624_v44  ;;  %v8008_v29 = vld [vmem:[%s9807_s4 + $0x98] sm:$0xff]  ;;  %v5306_v15 = vrot.slane %v5304_v59, 4  ;;  %v5463_v36 = vmax.f32 %v5452_v43, %v5459_v56 }
 0x564   : > { %v5034_v6 = vpop.f32.mrf.mxu3  ;;  %5996 = vmatpush.bf16.msra.mxu3 %v8008_v29  ;;  %v5479_v18 = vpack.c.bf16 %v5477_v63, %v5477_v63 }
 0x565   : > { %v5303_v22 = vsel %vm8390_vm7, %v5298_v11, %v5302_v27  ;;  %v5070_v14 = vadd.f32 %v5034_v6, %v4886_v9  ;;  %v5307_v24 = vor.u32 %v5306_v15, %v5302_v27  ;;  %v5502_v15 = vld [vmem:[#allocation7 + $0x8] sm:$0xf] }
 0x566   : > { %5387 = vst [vmem:[#allocation6 + $0x10] sm:$0xf] %v5303_v22  ;;  %v9440_v54 = vld [vmem:[#allocation7] sm:$0xff]   ;;  %v5484_v2 = vshrl.u32 %v5479_v18, 16  ;;  %v5487_v55 = vshll.u32 %v5479_v18, 16 }
 0x567   : > { %v5095_v25 = vadd.f32 %v9327_v41, %v5070_v14  ;;  %5900 = vmatmul.bf16.vlgmr.msra.gmra.mxu2 %v9440_v54  ;;  %v5308_v38 = vrot.slane %v5307_v24, 4 }
 0x568   : > { %v4590_v45 = vpop.f32.mrf.mxu1  ;;  %v5486_v48 = vrot.slane %v5484_v2, 6  ;;  %v5489_v44 = vrot.slane %v5487_v55, 7  ;;  %v8006_v2 = vld [vmem:[%s9807_s4 + $0x88] sm:$0xff] }
 0x569   : > { %v5116_v31 = vmax.f32 %v5095_v25, 0.0  ;;  %v4625_v8 = vadd.f32 %v4590_v45, %v9254_v3  ;;  %v9450_v17 = vpop.f32.mrf.mxu2 }
 0x56a   : > { %v5172_v57 = vld [vmem:[#allocation5 + $0x50] ss:$2 sm:$0xff]  ;;  %v5194_v33 = vld [vmem:[#allocation5 + $0x51] ss:$2 sm:$0xff] }
 0x56b   : > { %v5232_v49 = vmax.f32 %v5172_v57, %v5194_v33  ;;  %5138 = vst [vmem:[#allocation5 + $0x61] sm:$0xff] %v5116_v31  ;;  %v4887_v32 = vadd.f32 %v9421_v62, %v4625_v8  ;;  %v5216_v21 = vld [vmem:[#allocation5 + $0x52] ss:$2 sm:$0xff] }
 0x56c   : > { %5153 = vst [vmem:[#allocation5 + $0x61] sm:$0x3] %v8293_v4  ;;  %v5036_v35 = vpop.f32.mrf.mxu3  ;;  %v8007_v31 = vld [vmem:[%s9807_s4 + $0x90] sm:$0xff]  ;;  %v5505_v33 = vld [vmem:[#allocation6 + $0xc] sm:$0xc] }
 0x56d   : > { %v5243_v19 = vmax.f32 %v5232_v49, %v5216_v21  ;;  %v5071_v3 = vadd.f32 %v5036_v35, %v4887_v32  ;;  %v5450_v7 = vld [vmem:[#allocation6 + $0x10] sm:$0x1]  ;;  %v5507_v6 = vld [vmem:[#allocation6 + $0x10] sm:$0xe]  ;;  %5997 = vmatpush.bf16.msra.mxu3 %v8007_v31 }
 0x56e   : > { %v5469_v34 = vunpack.c.l.bf16 %v5450_v7  ;;  %v5512_v59 = vunpack.c.l.bf16 %v5507_v6  ;;  %v7999_v32 = vld [vmem:[%s9807_s4 + $0x50] sm:$0xff] }
 0x56f   : > { %v5254_v12 = vpack.c.bf16 %v5243_v19, %v5243_v19  ;;  %v5096_v30 = vadd.f32 %v9327_v41, %v5071_v3  ;;  %5819 = vmatpush.bf16.msra.mxu1 %v7999_v32 }
 0x570   : > { %v4593_v20 = vpop.f32.mrf.mxu1  ;;  %v5473_v62 = vrot.slane %v5469_v34, 6  ;;  %v5516_v46 = vrot.slane %v5512_v59, 7 }
 0x571   : > { %v5310_v40 = vshll.u32 %v5254_v12, 16  ;;  %v5117_v28 = vmax.f32 %v5096_v30, 0.0  ;;  %v4626_v52 = vadd.f32 %v4593_v20, %v9267_v10  ;;  %v9457_v47 = vpop.f32.mrf.mxu2  ;;  %v5506_v20 = vld [vmem:[#allocation6 + $0x10] sm:$0x1]  ;;  %5998 = vmatpush.bf16.msra.mxu3 %v8006_v2 }
 0x572   : > { %v5474_v37 = vsel %vm2353_vm9, %v5472_v39, %v5473_v62  ;;  %v5490_v39 = vor.u32 %v5489_v44, %v5486_v48 }
 0x573   : > { %v9460_v11 = vrot.slane %v5310_v40, 5  ;;  %5139 = vst [vmem:[#allocation5 + $0x69] sm:$0xff] %v5117_v28  ;;  %v4888_v27 = vadd.f32 %v9434_v53, %v4626_v52  ;;  %v5478_v9 = vmax.f32 %v5463_v36, %v5474_v37  ;;  %v5314_v53 = vshrl.u32 %v5254_v12, 16  ;;  %v7998_v52 = vld [vmem:[%s9807_s4 + $0x48] sm:$0xff] }
 0x574   : > { %5154 = vst [vmem:[#allocation5 + $0x6f] sm:$0x3] %v8293_v4  ;;  %v5039_v23 = vpop.f32.mrf.mxu3  ;;  %v5491_v21 = vrot.slane %v5490_v39, 4  ;;  %v5510_v12 = vunpack.c.l.bf16 %v5505_v33  ;;  %5820 = vmatpush.bf16.msra.mxu1 %v7998_v52 }
 0x575   : > { %v5313_v10 = vsel %vm8390_vm7, %v5308_v38, %v9460_v11  ;;  %v5072_v1 = vadd.f32 %v5039_v23, %v4888_v27  ;;  %v5480_v22 = vpack.c.bf16 %v5478_v9, %v5478_v9  ;;  %v5316_v19 = vrot.slane %v5314_v53, 4 }
 0x576   : > { %5388 = vst [vmem:[#allocation6 + $0x14] sm:$0xf] %v5313_v10  ;;  %v5521_v36 = vmax.f32 %v5510_v12, %v5516_v46  ;;  %v5511_v10 = vunpack.c.l.bf16 %v5506_v20 }
 0x577   : > { %v5097_v14 = vadd.f32 %v9327_v41, %v5072_v1  ;;  %v5493_v5 = vshrl.u32 %v5480_v22, 16  ;;  %v5496_v63 = vshll.u32 %v5480_v22, 16  ;;  %v5317_v37 = vor.u32 %v5316_v19, %v9460_v11  ;;  %v8005_v1 = vld [vmem:[%s9807_s4 + $0x80] sm:$0xff] }
 0x578   : > { %v4595_v25 = vpop.f32.mrf.mxu1  ;;  %5999 = vmatpush.bf16.msra.mxu3 %v8005_v1 }
 0x579   : > { %v5118_v45 = vmax.f32 %v5097_v14, 0.0  ;;  %v4627_v29 = vadd.f32 %v4595_v25, %v9271_v61  ;;  %v9469_v26 = vpop.f32.mrf.mxu2  ;;  %v5495_v8 = vrot.slane %v5493_v5, 6  ;;  %v5498_v57 = vrot.slane %v5496_v63, 7 }
 0x57a   : > { %v5174_v13 = vld [vmem:[#allocation5 + $0x60] ss:$2 sm:$0xff]  ;;  %v5318_v63 = vrot.slane %v5317_v37, 4 }
 0x57b   : > { %v5196_v49 = vld [vmem:[#allocation5 + $0x61] ss:$2 sm:$0xff]  ;;  %5140 = vst [vmem:[#allocation5 + $0x71] sm:$0xff] %v5118_v45  ;;  %v4889_v61 = vadd.f32 %v9450_v17, %v4627_v29  ;;  %v5499_v35 = vor.u32 %v5498_v57, %v5495_v8  ;;  %v5218_v3 = vld [vmem:[#allocation5 + $0x62] ss:$2 sm:$0xff] }
 0x57c   : > { %v5233_v7 = vmax.f32 %v5174_v13, %v5196_v49  ;;  %v5041_v56 = vpop.f32.mrf.mxu3 }
 0x57d   : > { %v5073_v34 = vadd.f32 %v5041_v56, %v4889_v61  ;;  %v5500_v17 = vsel %vm9476_vm5, %v5491_v21, %v5499_v35  ;;  %v5508_v55 = vld [vmem:[#allocation6 + $0x14] sm:$0x1]  ;;  %v5509_v24 = vld [vmem:[#allocation6 + $0x14] sm:$0xe] }
 0x57e   : > { %v5244_v30 = vmax.f32 %v5233_v7, %v5218_v3  ;;  %v5503_v43 = vsel %vm9426_vm4, %v5500_v17, %v5502_v15  ;;  %v5513_v62 = vunpack.c.l.bf16 %v5508_v55  ;;  %v5527_v40 = vunpack.c.l.bf16 %v5509_v24 }
 0x57f   : > { %v5098_v28 = vadd.f32 %v9327_v41, %v5073_v34  ;;  %5504 = vst [vmem:[#allocation7 + $0x8] sm:$0xf] %v5503_v43 }
 0x580   : > { %v5255_v48 = vpack.c.bf16 %v5244_v30, %v5244_v30  ;;  %v4598_v44 = vpop.f32.mrf.mxu1  ;;  %v5517_v38 = vrot.slane %v5513_v62, 7  ;;  %v5529_v27 = vrot.slane %v5527_v40, 6  ;;  %v5557_v40 = vld [vmem:[#allocation7 + $0xc] sm:$0xf] }
 0x581   : > { %v5119_v9 = vmax.f32 %v5098_v28, 0.0  ;;  %v4628_v23 = vadd.f32 %v4598_v44, %v9282_v16  ;;  %v9497_v6 = vpop.f32.mrf.mxu2  ;;  %v7997_v16 = vld [vmem:[%s9807_s4 + $0x40] sm:$0xff] }
 0x582   : > { %v5320_v22 = vshll.u32 %v5255_v48, 16  ;;  %v5518_v39 = vsel %vm2375_vm8, %v5516_v46, %v5517_v38  ;;  %v5531_v14 = vmax.f32 %v5521_v36, %v5529_v27  ;;  %5821 = vmatpush.bf16.msra.mxu1 %v7997_v16  ;;  %v5324_v57 = vshrl.u32 %v5255_v48, 16 }
 0x583   : > { %5141 = vst [vmem:[#allocation5 + $0x79] sm:$0xff] %v5119_v9  ;;  %v4890_v11 = vadd.f32 %v9457_v47, %v4628_v23  ;;  %v5522_v5 = vmax.f32 %v5511_v10, %v5518_v39  ;;  %v8154_v10 = vld [vmem:[#allocation7] sm:$0xe] }
 0x584   : > { %v5322_v59 = vrot.slane %v5320_v22, 5  ;;  %5155 = vst [vmem:[#allocation5 + $0x7d] sm:$0x3] %v8293_v4  ;;  %v5044_v53 = vpop.f32.mrf.mxu3  ;;  %v5533_v25 = vpack.c.bf16 %v5531_v14, %v5531_v14  ;;  %v5326_v7 = vrot.slane %v5324_v57, 4  ;;  %v8153_v14 = vld [vmem:[#allocation7] sm:$0xf0] }
 0x585   : > { %v5074_v45 = vadd.f32 %v5044_v53, %v4890_v11  ;;  %v5532_v29 = vmax.f32 %v5522_v5, %v5529_v27  ;;  %v5741_v57 = vshrl.u32 %v9440_v54, 16 }
 0x586   : > { %v5323_v31 = vsel %vm8390_vm7, %v5318_v63, %v5322_v59  ;;  %v5539_v8 = vshrl.u32 %v5533_v25, 16  ;;  %v5542_v47 = vshll.u32 %v5533_v25, 16  ;;  %v5327_v52 = vor.u32 %v5326_v7, %v5322_v59 }
 0x587   : > { %5389 = vst [vmem:[#allocation6 + $0x18] sm:$0xf] %v5323_v31  ;;  %v5099_v33 = vadd.f32 %v9327_v41, %v5074_v45  ;;  %v5534_v13 = vpack.c.bf16 %v5532_v29, %v5532_v29  ;;  %v8155_v59 = vor.u32 %v8154_v10, %v8153_v14  ;;  %v8036_v10 = vld [vmem:[%s9807_s4 + $0x170] sm:$0xff]  ;;  %v8265_v14 = vld [vmem:[%s9806_s3] ss:$0 sm:$0xff] }
 0x588   : > { %v4600_v15 = vpop.f32.mrf.mxu1  ;;  %v5541_v49 = vrot.slane %v5539_v8, 5  ;;  %v5544_v61 = vrot.slane %v5542_v47, 6  ;;  %v5328_v1 = vrot.slane %v5327_v52, 4 }
 0x589   : > { %v5120_v32 = vmax.f32 %v5099_v33, 0.0  ;;  %v4629_v21 = vadd.f32 %v4600_v15, %v9286_v51  ;;  %v4867_v35 = vpop.f32.mrf.mxu2  ;;  %v5548_v46 = vshrl.u32 %v5534_v13, 16  ;;  %v5551_v19 = vshll.u32 %v5534_v13, 16 }
 0x58a   : > { %v5545_v3 = vor.u32 %v5544_v61, %v5541_v49  ;;  %v5936_v49 = vrot.slane %v8155_v59, 1 }
 0x58b   : > { %v5176_v56 = vld [vmem:[#allocation5 + $0x70] ss:$2 sm:$0xff]  ;;  %v5198_v34 = vld [vmem:[#allocation5 + $0x71] ss:$2 sm:$0xff]  ;;  %v4891_v2 = vadd.f32 %v9469_v26, %v4629_v21  ;;  %5142 = vst [vmem:[#allocation5 + $0x81] sm:$0xff] %v5120_v32  ;;  %v5550_v12 = vrot.slane %v5548_v46, 5 }
 0x58c   : > { %v5234_v17 = vmax.f32 %v5176_v56, %v5198_v34  ;;  %v5046_v55 = vpop.f32.mrf.mxu3  ;;  %v5546_v24 = vrot.slane %v5545_v3, 4  ;;  %v5553_v30 = vrot.slane %v5551_v19, 6  ;;  %v5220_v43 = vld [vmem:[#allocation5 + $0x72] ss:$2 sm:$0xff]  ;;  %v5560_v19 = vld [vmem:[#allocation6 + $0x14] sm:$0xe] }
 0x58d   : > { %v5075_v20 = vadd.f32 %v5046_v55, %v4891_v2 }
 0x58e   : > { %v5245_v51 = vmax.f32 %v5234_v17, %v5220_v43  ;;  %v5554_v62 = vor.u32 %v5553_v30, %v5550_v12  ;;  %v5561_v16 = vld [vmem:[#allocation6 + $0x18] sm:$0xf] }
 0x58f   : > { %v5100_v28 = vadd.f32 %v9327_v41, %v5075_v20  ;;  %v5564_v8 = vunpack.c.l.bf16 %v5561_v16 }
 0x590   : > { %v5256_v36 = vpack.c.bf16 %v5245_v51, %v5245_v51  ;;  %v4603_v37 = vpop.f32.mrf.mxu1  ;;  %v5555_v48 = vsel %vm5537_vm14, %v5546_v24, %v5554_v62  ;;  %v5563_v24 = vunpack.c.l.bf16 %v5560_v19 }
 0x591   : > { %v5121_v26 = vmax.f32 %v5100_v28, 0.0  ;;  %v4630_v44 = vadd.f32 %v4603_v37, %v9297_v50  ;;  %v9516_v38 = vpop.f32.mrf.mxu2  ;;  %v5558_v27 = vsel %vm9426_vm4, %v5555_v48, %v5557_v40  ;;  %v5743_v50 = vshll.u32 %v9440_v54, 16  ;;  %v8037_v48 = vld [vmem:[%s9807_s4 + $0x178] sm:$0xff] }
 0x592   : > { %v5330_v9 = vshll.u32 %v5256_v36, 16  ;;  %5559 = vst [vmem:[#allocation7 + $0xc] sm:$0xf] %v5558_v27  ;;  %v5334_v53 = vshrl.u32 %v5256_v36, 16  ;;  %v5566_v56 = vrot.slane %v5564_v8, 7  ;;  %6340 = vmatpush.bf16.msrb.mxu3 %v8037_v48 }
 0x593   : > { %5143 = vst [vmem:[#allocation5 + $0x89] sm:$0xff] %v5121_v26  ;;  %v4892_v23 = vadd.f32 %v9497_v6, %v4630_v44  ;;  %v5745_v47 = vrot.slane %v5743_v50, 1  ;;  %v8021_v26 = vld [vmem:[%s9807_s4 + $0xf8] sm:$0xff] }
 0x594   : > { %v5332_v22 = vrot.slane %v5330_v9, 5  ;;  %5156 = vst [vmem:[#allocation5 + $0x8b] sm:$0x3] %v8293_v4  ;;  %v5049_v39 = vpop.f32.mrf.mxu3  ;;  %v5336_v61 = vrot.slane %v5334_v53, 4  ;;  %v5568_v28 = vmax.f32 %v5563_v24, %v5566_v56  ;;  %6110 = vmatpush.bf16.msrb.mxu1 %v8021_v26  ;;  %v8027_v53 = vld [vmem:[%s9807_s4 + $0x128] sm:$0xff] }
 0x595   : > { %v5076_v11 = vadd.f32 %v5049_v39, %v4892_v23  ;;  %v5746_v34 = vor.u32 %v5745_v47, %v5741_v57  ;;  %v8020_v39 = vld [vmem:[%s9807_s4 + $0xf0] sm:$0xff]  ;;  %v8019_v26 = vld [vmem:[%s9807_s4 + $0xe8] sm:$0xff] }
 0x596   : > { %v5333_v5 = vsel %vm8390_vm7, %v5328_v1, %v5332_v22  ;;  %v5337_v30 = vor.u32 %v5336_v61, %v5332_v22  ;;  %6341 = vmatpush.bf16.msrb.mxu3 %v8036_v10  ;;  %v8026_v61 = vld [vmem:[%s9807_s4 + $0x120] sm:$0xff] }
 0x597   : > { %5390 = vst [vmem:[#allocation6 + $0x1c] sm:$0xf] %v5333_v5  ;;  %v5101_v63 = vadd.f32 %v9327_v41, %v5076_v11 }
 0x598   : > { %v4605_v6 = vpop.f32.mrf.mxu1  ;;  %v5338_v44 = vrot.slane %v5337_v30, 4  ;;  %6111 = vmatpush.bf16.msrb.mxu1 %v8020_v39 }
 0x599   : > { %v5122_v25 = vmax.f32 %v5101_v63, 0.0  ;;  %v4631_v45 = vadd.f32 %v4605_v6, %v9301_v42  ;;  %v4872_v29 = vpop.f32.mrf.mxu2  ;;  %v9527_v31 = vld [vmem:[#allocation7 + $0x8] sm:$0xff]  ;;  %v8035_v6 = vld [vmem:[%s9807_s4 + $0x168] sm:$0xff] }
 0x59a   : > { %5905 = vmatmul.bf16.gmra.mxu2 %v9527_v31  ;;  %v5937_v46 = vrot.slane %v9527_v31, 1  ;;  %v5748_v42 = vshll.u32 %v9527_v31, 16  ;;  %6342 = vmatpush.bf16.msrb.mxu3 %v8035_v6 }
 0x59b   : > { %v5178_v33 = vld [vmem:[#allocation5 + $0x80] ss:$2 sm:$0xff]  ;;  %v5200_v13 = vld [vmem:[#allocation5 + $0x81] ss:$2 sm:$0xff]  ;;  %v4893_v15 = vadd.f32 %v4867_v35, %v4631_v45  ;;  %5144 = vst [vmem:[#allocation5 + $0x91] sm:$0xff] %v5122_v25 }
 0x59c   : > { %v5235_v32 = vmax.f32 %v5178_v33, %v5200_v13  ;;  %v5051_v21 = vpop.f32.mrf.mxu3  ;;  %v5222_v3 = vld [vmem:[#allocation5 + $0x82] ss:$2 sm:$0xff]  ;;  %v5938_v2 = vsel %vm3520_vm10, %v5936_v49, %v5937_v46  ;;  %v9536_v35 = vrot.slane %v5748_v42, 1  ;;  %6112 = vmatpush.bf16.msrb.mxu1 %v8019_v26 }
 0x59d   : > { %v5077_v7 = vadd.f32 %v5051_v21, %v4893_v15  ;;  %6000 = vmatmul.bf16.vlgmr.msra.gmra.mxu3 %v5938_v2  ;;  %v5587_v15 = vld [vmem:[#allocation7 + $0x10] sm:$0xf]  ;;  %v8016_v26 = vld [vmem:[%s9807_s4 + $0xd0] sm:$0xff] }
 0x59e   : > { %v5246_v54 = vmax.f32 %v5235_v32, %v5222_v3  ;;  %v5562_v17 = vld [vmem:[#allocation6 + $0x1c] sm:$0x7]  ;;  %v5751_v51 = vsel %vm3165_vm11, %v5746_v34, %v9536_v35 }
 0x59f   : > { %v5102_v55 = vadd.f32 %v9327_v41, %v5077_v7  ;;  %v5571_v12 = vunpack.c.l.bf16 %v5562_v17  ;;  %5822 = vmatmul.bf16.vlgmr.msra.gmra.mxu1 %v5751_v51  ;;  %v8029_v41 = vld [vmem:[%s9807_s4 + $0x138] sm:$0xff] }
 0x5a0   : > { %v5257_v43 = vpack.c.bf16 %v5246_v54, %v5246_v54  ;;  %v4608_v20 = vpop.f32.mrf.mxu1  ;;  %6234 = vmatpush.bf16.msrb.mxu2 %v8029_v41  ;;  %v5591_v51 = vld [vmem:[#allocation6 + $0x1c] sm:$0x8]  ;;  %6113 = vmatpush.bf16.msrb.mxu1 %v8018_v58 }
 0x5a1   : > { %v5123_v62 = vmax.f32 %v5102_v55, 0.0  ;;  %v4632_v40 = vadd.f32 %v4608_v20, %v9315_v0  ;;  %v5573_v52 = vrot.slane %v5571_v12, 6 }
 0x5a2   : > { %v5340_v36 = vshll.u32 %v5257_v43, 16  ;;  %v5344_v16 = vshrl.u32 %v5257_v43, 16 }
 0x5a3   : > { %5145 = vst [vmem:[#allocation5 + $0x99] sm:$0xff] %v5123_v62  ;;  %v4894_v37 = vadd.f32 %v9516_v38, %v4632_v40  ;;  %v5575_v0 = vmax.f32 %v5568_v28, %v5573_v52  ;;  %v8028_v38 = vld [vmem:[%s9807_s4 + $0x130] sm:$0xff]  ;;  %v5596_v52 = vunpack.c.l.bf16 %v5591_v51 }
 0x5a4   : > { %v5342_v27 = vrot.slane %v5340_v36, 5  ;;  %5157 = vst [vmem:[#allocation5 + $0x99] sm:$0x3] %v8293_v4  ;;  %v5054_v9 = vpop.f32.mrf.mxu3  ;;  %6235 = vmatpush.bf16.msrb.mxu2 %v8028_v38  ;;  %v5346_v57 = vrot.slane %v5344_v16, 4  ;;  %v8032_v51 = vld [vmem:[%s9807_s4 + $0x150] sm:$0xff] }
 0x5a5   : > { %v5078_v23 = vadd.f32 %v5054_v9, %v4894_v37  ;;  %v5576_v1 = vpack.c.bf16 %v5575_v0, %v5575_v0  ;;  %v8025_v0 = vld [vmem:[%s9807_s4 + $0x118] sm:$0xff]  ;;  %v5600_v38 = vrot.slane %v5596_v52, 7 }
 0x5a6   : > { %v5343_v22 = vsel %vm8390_vm7, %v5338_v44, %v5342_v27  ;;  %v5347_v19 = vor.u32 %v5346_v57, %v5342_v27  ;;  %v8023_v57 = vld [vmem:[%s9807_s4 + $0x108] sm:$0xff] }
 0x5a7   : > { %5391 = vst [vmem:[#allocation6 + $0x20] sm:$0xf] %v5343_v22  ;;  %v5103_v11 = vadd.f32 %v8265_v14, %v5078_v23  ;;  %v5578_v50 = vshrl.u32 %v5576_v1, 16  ;;  %v5581_v5 = vshll.u32 %v5576_v1, 16  ;;  %v5590_v23 = vld [vmem:[#allocation6 + $0x1c] sm:$0x7] }
 0x5a8   : > { %v4610_v63 = vpop.f32.mrf.mxu1  ;;  %6236 = vmatpush.bf16.msrb.mxu2 %v8027_v53  ;;  %v5348_v2 = vrot.slane %v5347_v19, 4  ;;  %v8034_v53 = vld [vmem:[%s9807_s4 + $0x160] sm:$0xff] }
 0x5a9   : > { %v5124_v59 = vmax.f32 %v5103_v11, 0.0  ;;  %v5580_v25 = vrot.slane %v5578_v50, 4  ;;  %v5583_v45 = vrot.slane %v5581_v5, 5  ;;  %v5394_v11 = vld [vmem:[#allocation6 + $0x2c] sm:$0x3]  ;;  %v5595_v63 = vunpack.c.l.bf16 %v5590_v23  ;;  %6343 = vmatpush.bf16.msrb.mxu3 %v8034_v53 }
 0x5ab   : > { %v5180_v29 = vld [vmem:[#allocation5 + $0x90] ss:$2 sm:$0xff]  ;;  %v5202_v8 = vld [vmem:[#allocation5 + $0x91] ss:$2 sm:$0xff]  ;;  %v5584_v47 = vor.u32 %v5583_v45, %v5580_v25  ;;  %5146 = vst [vmem:[#allocation5 + $0xa1] sm:$0x3f] %v5124_v59 }
 0x5ac   : > { %v5236_v33 = vmax.f32 %v5180_v29, %v5202_v8  ;;  %v5056_v13 = vpop.f32.mrf.mxu3  ;;  %v5224_v49 = vld [vmem:[#allocation5 + $0x92] ss:$2 sm:$0xff]  ;;  %6237 = vmatpush.bf16.msrb.mxu2 %v8026_v61 }
 0x5ad   : > { %v5585_v32 = vrot.slane %v5584_v47, 4  ;;  %v8024_v59 = vld [vmem:[%s9807_s4 + $0x110] sm:$0xff] }
 0x5ae   : > { %v5247_v21 = vmax.f32 %v5236_v33, %v5224_v49  ;;  %v5592_v12 = vld [vmem:[#allocation6 + $0x20] sm:$0x7]  ;;  %v5593_v41 = vld [vmem:[#allocation6 + $0x20] sm:$0x8]  ;;  %v8033_v33 = vld [vmem:[%s9807_s4 + $0x158] sm:$0xff] }
 0x5af   : > { %v5588_v42 = vsel %vm9426_vm4, %v5585_v32, %v5587_v15  ;;  %v5597_v62 = vunpack.c.l.bf16 %v5592_v12  ;;  %v5607_v10 = vunpack.c.l.bf16 %v5593_v41  ;;  %v8017_v15 = vld [vmem:[%s9807_s4 + $0xd8] sm:$0xff]  ;;  %v5628_v61 = vld [vmem:[#allocation6 + $0x20] sm:$0x8]  ;;  %6344 = vmatpush.bf16.msrb.mxu3 %v8033_v33 }
 0x5b0   : > { %v5258_v3 = vpack.c.bf16 %v5247_v21, %v5247_v21  ;;  %5589 = vst [vmem:[#allocation7 + $0x10] sm:$0xf] %v5588_v42  ;;  %6238 = vmatpush.bf16.msrb.mxu2 %v8025_v0  ;;  %v8022_v42 = vld [vmem:[%s9807_s4 + $0x100] sm:$0xff]  ;;  %6114 = vmatpush.bf16.msrb.mxu1 %v8017_v15 }
 0x5b1   : > { %v5601_v48 = vrot.slane %v5597_v62, 7  ;;  %v5611_v6 = vrot.slane %v5607_v10, 6 }
 0x5b2   : > { %v5350_v7 = vshll.u32 %v5258_v3, 16  ;;  %v5354_v56 = vshrl.u32 %v5258_v3, 16  ;;  %v5182_v34 = vld [vmem:[#allocation5 + $0xa0] ss:$2 sm:$0xf] }
 0x5b3   : > { %v5204_v54 = vld [vmem:[#allocation5 + $0xa1] ss:$2 sm:$0xf]  ;;  %v5226_v30 = vld [vmem:[#allocation5 + $0xa2] ss:$2 sm:$0xf]  ;;  %v5602_v50 = vsel %vm2375_vm8, %v5600_v38, %v5601_v48  ;;  %6345 = vmatpush.bf16.msrb.mxu3 %v8032_v51 }
 0x5b4   : > { %v5352_v17 = vrot.slane %v5350_v7, 5  ;;  %v5356_v55 = vrot.slane %v5354_v56, 4  ;;  %v5237_v24 = vmax.f32 %v5182_v34, %v5204_v54  ;;  %v5604_v47 = vmax.f32 %v5595_v63, %v5602_v50  ;;  %6239 = vmatpush.bf16.msrb.mxu2 %v8024_v59  ;;  %6115 = vmatpush.bf16.msrb.mxu1 %v8016_v26  ;;  %v8030_v63 = vld [vmem:[%s9807_s4 + $0x140] sm:$0xff] }
 0x5b5   : > { %v5634_v7 = vunpack.c.l.bf16 %v5628_v61  ;;  %v8014_v59 = vld [vmem:[%s9807_s4 + $0xc0] sm:$0xff] }
 0x5b6   : > { %v5353_v43 = vsel %vm8390_vm7, %v5348_v2, %v5352_v17  ;;  %v5248_v20 = vmax.f32 %v5237_v24, %v5226_v30  ;;  %v5357_v40 = vor.u32 %v5356_v55, %v5352_v17 }
 0x5b7   : > { %5392 = vst [vmem:[#allocation6 + $0x24] sm:$0xf] %v5353_v43  ;;  %v8268_v58 = vld [vmem:[#allocation7 + $0x10] sm:$0xf]  }
 0x5b8   : > { %v5259_v28 = vpack.c.bf16 %v5248_v20, %v5248_v20  ;;  %v5358_v44 = vrot.slane %v5357_v40, 4  ;;  %6240 = vmatpush.bf16.msrb.mxu2 %v8023_v57  ;;  %v5625_v20 = vld [vmem:[#allocation7 + $0x14] sm:$0xf]  ;;  %v5683_v57 = vld [vmem:[#allocation7 + $0x18] sm:$0xf] }
 0x5ba   : > { %v5360_v36 = vshll.u32 %v5259_v28, 16  ;;  %v5364_v37 = vshrl.u32 %v5259_v28, 16 }
 0x5bc   : > { %v5362_v27 = vrot.slane %v5360_v36, 5  ;;  %v5366_v9 = vrot.slane %v5364_v37, 4  ;;  %6241 = vmatpush.bf16.msrb.mxu2 %v8022_v42 }
 0x5be   : > { %v5363_v1 = vsel %vm8390_vm7, %v5358_v44, %v5362_v27  ;;  %v5367_v22 = vor.u32 %v5366_v9, %v5362_v27  ;;  %v5594_v39 = vld [vmem:[#allocation6 + $0x24] sm:$0x3]  ;;  %v5630_v14 = vld [vmem:[#allocation6 + $0x24] sm:$0xc]  ;;  %vm6777_vm7 = vcmask 1045508  }
 0x5bf   : > { %5393 = vst [vmem:[#allocation6 + $0x28] sm:$0xf] %v5363_v1  ;;  %v5608_v5 = vunpack.c.l.bf16 %v5594_v39  ;;  %v5636_v45 = vunpack.c.l.bf16 %v5630_v14  ;;  %v5629_v2 = vld [vmem:[#allocation6 + $0x24] sm:$0x3]  ;;  %v8015_v39 = vld [vmem:[%s9807_s4 + $0xc8] sm:$0xff] }
 0x5c0   : > { %v5368_v16 = vrot.slane %v5367_v22, 4  ;;  %v5635_v36 = vunpack.c.l.bf16 %v5629_v2  ;;  %v8031_v22 = vld [vmem:[%s9807_s4 + $0x148] sm:$0xff]  ;;  %6116 = vmatpush.bf16.msrb.mxu1 %v8015_v39  ;;  %v8045_v2 = vld [vmem:[%s9807_s4 + $0x1b0] sm:$0xff] }
 0x5c1   : > { %v5612_v25 = vrot.slane %v5608_v5, 6  ;;  %v5640_v32 = vrot.slane %v5636_v45, 7  ;;  %v9629_v5 = vld [vmem:[#allocation7 + $0x4] sm:$0xff]   ;;  %6346 = vmatpush.bf16.msrb.mxu3 %v8031_v22 }
 0x5c2   : > { %v5395_v8 = vsel %vm8640_vm13, %v5368_v16, %v5394_v11  ;;  %v9631_v16 = vld [vmem:[#allocation7 + $0x4] sm:$0xf0] }
 0x5c3   : > { %5396 = vst [vmem:[#allocation6 + $0x2c] sm:$0x3] %v5395_v8  ;;  %v5613_v13 = vsel %vm2353_vm9, %v5611_v6, %v5612_v25  ;;  %v5645_v55 = vmax.f32 %v5634_v7, %v5640_v32 }
 0x5c4   : > { %v5615_v49 = vmax.f32 %v5604_v47, %v5613_v13  ;;  %6117 = vmatpush.bf16.msrb.mxu1 %v8014_v59  ;;  %v8056_v59 = vld [vmem:[%s9807_s4 + $0x208] sm:$0xff] }
 0x5c5   : > { %6347 = vmatpush.bf16.msrb.mxu3 %v8030_v63 }
 0x5c6   : > { %v5616_v21 = vpack.c.bf16 %v5615_v49, %v5615_v49  ;;  %v5631_v19 = vld [vmem:[#allocation6 + $0x28] sm:$0x3]  ;;  %v5632_v3 = vld [vmem:[#allocation6 + $0x28] sm:$0xc]  ;;  %v5752_v49 = vshrl.u32 %v9527_v31, 16  ;;  %v8046_v31 = vld [vmem:[%s9807_s4 + $0x1b8] sm:$0xff] }
 0x5c7   : > { %v5637_v56 = vunpack.c.l.bf16 %v5631_v19  ;;  %v5651_v34 = vunpack.c.l.bf16 %v5632_v3  ;;  %v9651_v3 = vld [vmem:[#allocation7 + $0xc] sm:$0xff] }
 0x5c8   : > { %v5618_v54 = vshrl.u32 %v5616_v21, 16  ;;  %v5621_v30 = vshll.u32 %v5616_v21, 16  ;;  %v8054_v21 = vld [vmem:[%s9807_s4 + $0x1f8] sm:$0xff]  ;;  %v5754_v18 = vor.u32 %v5752_v49, %v9536_v35  ;;  %v8061_v35 = vld [vmem:[%s9807_s4 + $0x230] sm:$0xff]  ;;  %6458 = vmatpush.bf16.msra.mxu1 %v8046_v31  ;;  %v6285_v39 = vrot.slane %v9651_v3, 1 }
 0x5c9   : > { %v5641_v17 = vrot.slane %v5637_v56, 7  ;;  %v5655_v24 = vrot.slane %v5651_v34, 6  ;;  %6582 = vmatpush.bf16.msra.mxu2 %v8054_v21  ;;  %v6163_v56 = vshll.u32 %v9629_v5, 16  ;;  %6688 = vmatpush.bf16.msra.mxu3 %v8062_v60  ;;  %v6168_v34 = vshll.u32 %v9651_v3, 16 }
 0x5ca   : > { %v5620_v12 = vrot.slane %v5618_v54, 7  ;;  %v5633_v43 = vld [vmem:[#allocation6 + $0x2c] sm:$0x1] }
 0x5cb   : > { %v5642_v62 = vsel %vm2375_vm8, %v5640_v32, %v5641_v17  ;;  %v5652_v40 = vunpack.c.l.bf16 %v5633_v43  ;;  %v5660_v28 = vmax.f32 %v5645_v55, %v5655_v24  ;;  %v8052_v54 = vld [vmem:[%s9807_s4 + $0x1e8] sm:$0xff]  ;;  %v6165_v17 = vrot.slane %v6163_v56, 1 }
 0x5cc   : > { %v5623_v52 = vor.u32 %v5621_v30, %v5620_v12  ;;  %v5646_v0 = vmax.f32 %v5635_v36, %v5642_v62  ;;  %v8060_v55 = vld [vmem:[%s9807_s4 + $0x228] sm:$0xff]  ;;  %v6170_v12 = vrot.slane %v6168_v34, 1  ;;  %6459 = vmatpush.bf16.msra.mxu1 %v8045_v2  ;;  %v8051_v30 = vld [vmem:[%s9807_s4 + $0x1e0] sm:$0xff]  ;;  %v8157_v34 = vld [vmem:[#allocation7 + $0x8] sm:$0xf0] }
 0x5cd   : > { %v5656_v37 = vrot.slane %v5652_v40, 6  ;;  %v5662_v41 = vpack.c.bf16 %v5660_v28, %v5660_v28  ;;  %6689 = vmatpush.bf16.msra.mxu3 %v8061_v35  ;;  %v8044_v40 = vld [vmem:[%s9807_s4 + $0x1a8] sm:$0xff]  ;;  %v8050_v28 = vld [vmem:[%s9807_s4 + $0x1d8] sm:$0xff] }
 0x5ce   : > { %v5626_v48 = vsel %vm9426_vm4, %v5623_v52, %v5625_v20 }
 0x5cf   : > { %5627 = vst [vmem:[#allocation7 + $0x14] sm:$0xf] %v5626_v48  ;;  %v5657_v44 = vsel %vm2353_vm9, %v5655_v24, %v5656_v37  ;;  %v5665_v27 = vshrl.u32 %v5662_v41, 16  ;;  %v5668_v9 = vshll.u32 %v5662_v41, 16  ;;  %v6161_v24 = vshrl.u32 %v9629_v5, 16  ;;  %v8049_v37 = vld [vmem:[%s9807_s4 + $0x1d0] sm:$0xff] }
 0x5d0   : > { %v5661_v23 = vmax.f32 %v5646_v0, %v5657_v44  ;;  %6460 = vmatpush.bf16.msra.mxu1 %v8044_v40  ;;  %v8059_v41 = vld [vmem:[%s9807_s4 + $0x220] sm:$0xff]  ;;  %v8271_v0 = vld [vmem:[#allocation7 + $0x4] sm:$0xe]  ;;  %v8048_v44 = vld [vmem:[%s9807_s4 + $0x1c8] sm:$0xff] }
 0x5d1   : > { %v5667_v38 = vrot.slane %v5665_v27, 6  ;;  %v5670_v10 = vrot.slane %v5668_v9, 7  ;;  %v6166_v51 = vor.u32 %v6165_v17, %v6161_v24  ;;  %6690 = vmatpush.bf16.msra.mxu3 %v8060_v55  ;;  %v8043_v48 = vld [vmem:[%s9807_s4 + $0x1a0] sm:$0xff]  ;;  %v8058_v27 = vld [vmem:[%s9807_s4 + $0x218] sm:$0xff] }
 0x5d2   : > { %v5663_v1 = vpack.c.bf16 %v5661_v23, %v5661_v23  ;;  %v8042_v9 = vld [vmem:[%s9807_s4 + $0x198] sm:$0xff]  ;;  %v6172_v23 = vshrl.u32 %v9651_v3, 16 }
 0x5d3   : > { %v5671_v14 = vor.u32 %v5670_v10, %v5667_v38  ;;  %v6171_v62 = vsel %vm3165_vm11, %v6166_v51, %v6170_v12  ;;  %v8047_v10 = vld [vmem:[%s9807_s4 + $0x1c0] sm:$0xff]  ;;  %v8158_v24 = vld [vmem:[#allocation7 + $0x8] sm:$0xe] }
 0x5d4   : > { %v5674_v11 = vshrl.u32 %v5663_v1, 16  ;;  %v5677_v50 = vshll.u32 %v5663_v1, 16  ;;  %6461 = vmatpush.bf16.msra.mxu1 %v8043_v48  ;;  %v8272_v1 = vor.u32 %v8271_v0, %v9631_v16  ;;  %v6174_v22 = vor.u32 %v6172_v23, %v6170_v12  ;;  %v8041_v16 = vld [vmem:[%s9807_s4 + $0x190] sm:$0xff] }
 0x5d5   : > { %v5672_v8 = vrot.slane %v5671_v14, 4  ;;  %6691 = vmatpush.bf16.msra.mxu3 %v8059_v41 }
 0x5d6   : > { %v5690_v53 = vld [vmem:[#allocation7 + $0x10] sm:$0xff]   ;;  %v5676_v25 = vrot.slane %v5674_v11, 6  ;;  %v5679_v45 = vrot.slane %v5677_v50, 7  ;;  %v6284_v11 = vrot.slane %v8272_v1, 1  ;;  %v8057_v50 = vld [vmem:[%s9807_s4 + $0x210] sm:$0xff] }
 0x5d7   : > { %v8285_v6 = vld [vmem:[#allocation7 + $0x10] sm:$0x70]  ;;  %v5939_v15 = vrot.slane %v5690_v53, 1  ;;  %v5756_v61 = vshll.u32 %v5690_v53, 16  ;;  %v5760_v52 = vshrl.u32 %v5690_v53, 16  ;;  %v8040_v53 = vld [vmem:[%s9807_s4 + $0x188] sm:$0xff] }
 0x5d8   : > { %v5680_v47 = vor.u32 %v5679_v45, %v5676_v25  ;;  %v8269_v33 = vor.u32 %v8285_v6, %v8268_v58  ;;  %v9683_v20 = vld [vmem:[#allocation7 + $0x14] sm:$0xf]   ;;  %6462 = vmatpush.bf16.msra.mxu1 %v8042_v9  ;;  %v6286_v63 = vsel %vm3520_vm10, %v6284_v11, %v6285_v39 }
 0x5d9   : > { %v5940_v42 = vsel %vm3520_vm10, %v5937_v46, %v5939_v15  ;;  %v5758_v19 = vrot.slane %v5756_v61, 1  ;;  %v8053_v46 = vld [vmem:[%s9807_s4 + $0x1f0] sm:$0xff]  ;;  %6692 = vmatpush.bf16.msra.mxu3 %v8058_v27  ;;  %v8055_v6 = vld [vmem:[%s9807_s4 + $0x200] sm:$0xff] }
 0x5da   : > { %v5681_v13 = vsel %vm9476_vm5, %v5672_v8, %v5680_v47  ;;  %5910 = vmatmul.bf16.gmra.mxu2 %v8269_v33  ;;  %6005 = vmatmul.bf16.gmra.mxu3 %v5940_v42  ;;  %v8039_v45 = vld [vmem:[%s9807_s4 + $0x180] sm:$0xff]  ;;  %v8156_v47 = vld [vmem:[#allocation7 + $0x8] sm:$0xff]  }
 0x5db   : > { %v5684_v32 = vsel %vm9426_vm4, %v5681_v13, %v5683_v57  ;;  %v5759_v7 = vsel %vm3165_vm11, %v5754_v18, %v5758_v19  ;;  %6583 = vmatpush.bf16.msra.mxu2 %v8053_v46  ;;  %v5762_v36 = vor.u32 %v5760_v52, %v5758_v19  ;;  %v8038_v57 = vld [vmem:[#allocation7 + $0x10] sm:$0xff]  ;;  %v6511_v33 = vshll.u32 %v8156_v47, 16 }
 0x5dc   : > { %5685 = vst [vmem:[#allocation7 + $0x18] sm:$0xf] %v5684_v32  ;;  %5827 = vmatmul.bf16.gmra.mxu1 %v5759_v7  ;;  %v6516_v13 = vshll.u32 %v8038_v57, 16  ;;  %v6509_v49 = vshrl.u32 %v8156_v47, 16  ;;  %v6520_v17 = vshrl.u32 %v8038_v57, 16  ;;  %v6633_v51 = vrot.slane %v8038_v57, 1 }
 0x5dd   : > { %6693 = vmatpush.bf16.msra.mxu3 %v8057_v50  ;;  %6463 = vmatpush.bf16.msra.mxu1 %v8041_v16 }
 0x5de   : > { %v6518_v61 = vrot.slane %v6516_v13, 1 }
 0x5df   : > { %6584 = vmatpush.bf16.msra.mxu2 %v8052_v54 }
 0x5e1   : > { %6694 = vmatpush.bf16.msra.mxu3 %v8056_v59  ;;  %6464 = vmatpush.bf16.msra.mxu1 %v8040_v53 }
 0x5e3   : > { %v9681_v43 = vld [vmem:[#allocation7 + $0x14] sm:$0xff]   ;;  %6585 = vmatpush.bf16.msra.mxu2 %v8051_v30  ;;  %v8159_v30 = vor.u32 %v8158_v24, %v8157_v34 }
 0x5e4   : > { %v6176_v26 = vshll.u32 %v9681_v43, 16  ;;  %v6180_v58 = vshrl.u32 %v9681_v43, 16  ;;  %v8286_v32 = vld [vmem:[#allocation7 + $0x14] sm:$0x70] }
 0x5e5   : > { %6695 = vmatpush.bf16.msra.mxu3 %v8055_v6  ;;  %6465 = vmatpush.bf16.msra.mxu1 %v8039_v45  ;;  %v6374_v21 = vld [vmem:[#allocation7 + $0x18] sm:$0xff]   ;;  %v8276_v56 = vor.u32 %v8286_v32, %v9683_v20 }
 0x5e6   : > { %v6178_v38 = vrot.slane %v6176_v26, 1  ;;  %v8279_v42 = vld [vmem:[#allocation7 + $0x18] sm:$0xf]   ;;  %v6524_v46 = vshll.u32 %v6374_v21, 16  ;;  %v6635_v41 = vrot.slane %v6374_v21, 1 }
 0x5e7   : > { %6586 = vmatpush.bf16.msra.mxu2 %v8050_v28  ;;  %v6632_v28 = vrot.slane %v8159_v30, 1  ;;  %v8287_v26 = vld [vmem:[#allocation7 + $0x18] sm:$0x70] }
 0x5e8   : > { %v6179_v14 = vsel %vm3165_vm11, %v6174_v22, %v6178_v38  ;;  %v6182_v25 = vor.u32 %v6180_v58, %v6178_v38  ;;  %v6526_v55 = vrot.slane %v6524_v46, 1  ;;  %v6636_v48 = vsel %vm3520_vm10, %v6633_v51, %v6635_v41 }
 0x5e9   : > { %v6634_v52 = vsel %vm3520_vm10, %v6632_v28, %v6633_v51 }
 0x5ea   : > { %6242 = vmatmul.bf16.vlgmr.msrb.gmra.mxu2 %v6171_v62  ;;  %6010 = vmatmul.bf16.gmra.mxu3 %v5939_v15  ;;  %v6513_v15 = vrot.slane %v6511_v33, 1  ;;  %v5901_v60 = vpop.f32.mrf.mxu2 }
 0x5eb   : > { %6587 = vmatpush.bf16.msra.mxu2 %v8049_v37 }
 0x5ec   : > { %5832 = vmatmul.bf16.gmra.mxu1 %v5762_v36  ;;  %v6514_v18 = vor.u32 %v6513_v15, %v6509_v49  ;;  %v6528_v36 = vshrl.u32 %v6374_v21, 16 }
 0x5ee   : > { %v6519_v19 = vsel %vm3165_vm11, %v6514_v18, %v6518_v61  ;;  %v6530_v37 = vor.u32 %v6528_v36, %v6526_v55 }
 0x5ef   : > { %6588 = vmatpush.bf16.msra.mxu2 %v8048_v44  ;;  %v8280_v44 = vor.u32 %v8287_v26, %v8279_v42 }
 0x5f2   : > { %v5903_v54 = vpop.f32.mrf.mxu2 }
 0x5f3   : > { %6589 = vmatpush.bf16.msra.mxu2 %v8047_v10 }
 0x5fa   : > { %6247 = vmatmul.bf16.gmra.mxu2 %v6179_v14  ;;  %6348 = vmatmul.bf16.vlgmr.msrb.gmra.mxu3 %v6286_v63 }
 0x5fc   : > { %6118 = vmatmul.bf16.vlgmr.msrb.gmra.mxu1 %v9629_v5  ;;  %v6287_v5 = vrot.slane %v9681_v43, 1  ;;  %v6522_v43 = vor.u32 %v6520_v17, %v6518_v61 }
 0x5fe   : > { %v6288_v8 = vsel %vm3520_vm10, %v6285_v39, %v6287_v5  ;;  %v6527_v40 = vsel %vm3165_vm11, %v6522_v43, %v6526_v55  ;;  %v9759_v43 = vld [vmem:[%s9808_s5] ss:$0 sm:$0xff]  ;;  %vm9776_vm10 = vmor %vm2353_vm9, %vm6777_vm7  ;;  %vm6835_vm9 = vcmask 1042433   ;;  %vm6836_vm11 = vsmask.f32 7942 }
 0x5ff   : > { %vm6837_vm15 = vmand %vm6835_vm9, %vm6836_vm11 }
 0x60a   : > { %6252 = vmatmul.bf16.gmra.mxu2 %v6182_v25  ;;  %6353 = vmatmul.bf16.gmra.mxu3 %v6288_v8 }
 0x60c   : > { %6123 = vmatmul.bf16.gmra.mxu1 %v9651_v3 }
 0x61a   : > { %6590 = vmatmul.bf16.vlgmr.msra.gmra.mxu2 %v6519_v19  ;;  %6358 = vmatmul.bf16.gmra.mxu3 %v6287_v5 }
 0x61c   : > { %v5823_v7 = vpop.f32.mrf.mxu1  ;;  %6128 = vmatmul.bf16.gmra.mxu1 %v8276_v56 }
 0x61d   : > { %v5902_v31 = vadd.f32 %v5901_v60, %v5823_v7  ;;  %v5906_v0 = vpop.f32.mrf.mxu2 }
 0x620   : > { %v6001_v3 = vpop.f32.mrf.mxu3 }
 0x621   : > { %v9744_v35 = vadd.f32 %v6001_v3, %v5902_v31 }
 0x624   : > { %v5825_v2 = vpop.f32.mrf.mxu1 }
 0x625   : > { %v5904_v12 = vadd.f32 %v5903_v54, %v5825_v2  ;;  %v5908_v27 = vpop.f32.mrf.mxu2 }
 0x628   : > { %v6003_v62 = vpop.f32.mrf.mxu3 }
 0x629   : > { %v6017_v20 = vadd.f32 %v6003_v62, %v5904_v12 }
 0x62a   : > { %6595 = vmatmul.bf16.gmra.mxu2 %v6527_v40  ;;  %6696 = vmatmul.bf16.vlgmr.msra.gmra.mxu3 %v6634_v52 }
 0x62c   : > { %6466 = vmatmul.bf16.vlgmr.msra.gmra.mxu1 %v8156_v47 }
 0x63a   : > { %6600 = vmatmul.bf16.gmra.mxu2 %v6530_v37  ;;  %6701 = vmatmul.bf16.gmra.mxu3 %v6636_v48 }
 0x63c   : > { %6471 = vmatmul.bf16.gmra.mxu1 %v8038_v57 }
 0x64a   : > { %6706 = vmatmul.bf16.gmra.mxu3 %v6635_v41 }
 0x64c   : > { %6476 = vmatmul.bf16.gmra.mxu1 %v8280_v44 }
 0x659   : > { %v5828_v9 = vpop.f32.mrf.mxu1 }
 0x65a   : > { %v5907_v23 = vadd.f32 %v5906_v0, %v5828_v9 }
 0x65d   : > { %v5911_v38 = vpop.f32.mrf.mxu2  ;;  %v6006_v10 = vpop.f32.mrf.mxu3 }
 0x65e   : > { %v6018_v1 = vadd.f32 %v6006_v10, %v5907_v23 }
 0x661   : > { %v5830_v22 = vpop.f32.mrf.mxu1 }
 0x662   : > { %v5909_v39 = vadd.f32 %v5908_v27, %v5830_v22 }
 0x665   : > { %v5913_v14 = vpop.f32.mrf.mxu2  ;;  %v6008_v11 = vpop.f32.mrf.mxu3 }
 0x666   : > { %v6019_v50 = vadd.f32 %v6008_v11, %v5909_v39 }
 0x669   : > { %v5833_v63 = vpop.f32.mrf.mxu1 }
 0x66a   : > { %v5912_v16 = vadd.f32 %v5911_v38, %v5833_v63 }
 0x66d   : > { %v6243_v59 = vpop.f32.mrf.mxu2  ;;  %v6011_v53 = vpop.f32.mrf.mxu3 }
 0x66e   : > { %v6020_v58 = vadd.f32 %v6011_v53, %v5912_v16 }
 0x671   : > { %v5835_v6 = vpop.f32.mrf.mxu1 }
 0x672   : > { %v5914_v25 = vadd.f32 %v5913_v14, %v5835_v6 }
 0x675   : > { %v6245_v5 = vpop.f32.mrf.mxu2  ;;  %v6013_v45 = vpop.f32.mrf.mxu3 }
 0x676   : > { %v9749_v8 = vadd.f32 %v6013_v45, %v5914_v25 }
 0x679   : > { %v6119_v47 = vpop.f32.mrf.mxu1 }
 0x67a   : > { %v6134_v56 = vadd.f32 %v6119_v47, %v9744_v35 }
 0x67c   : > { %v6258_v46 = vadd.f32 %v6243_v59, %v6134_v56 }
 0x67d   : > { %v6248_v57 = vpop.f32.mrf.mxu2  ;;  %v6349_v33 = vpop.f32.mrf.mxu3 }
 0x67e   : > { %v6364_v54 = vadd.f32 %v6349_v33, %v6258_v46 }
 0x681   : > { %v6121_v13 = vpop.f32.mrf.mxu1 }
 0x682   : > { %v6135_v2 = vadd.f32 %v6121_v13, %v6017_v20 }
 0x684   : > { %v6259_v12 = vadd.f32 %v6245_v5, %v6135_v2 }
 0x685   : > { %v6250_v15 = vpop.f32.mrf.mxu2  ;;  %v6351_v49 = vpop.f32.mrf.mxu3 }
 0x686   : > { %v6365_v35 = vadd.f32 %v6351_v49, %v6259_v12 }
 0x689   : > { %v6124_v61 = vpop.f32.mrf.mxu1 }
 0x68a   : > { %v6136_v40 = vadd.f32 %v6124_v61, %v6018_v1 }
 0x68c   : > { %v6260_v20 = vadd.f32 %v6248_v57, %v6136_v40 }
 0x68d   : > { %v6253_v32 = vpop.f32.mrf.mxu2  ;;  %v6354_v21 = vpop.f32.mrf.mxu3 }
 0x68e   : > { %v6366_v44 = vadd.f32 %v6354_v21, %v6260_v20 }
 0x691   : > { %v6126_v42 = vpop.f32.mrf.mxu1 }
 0x692   : > { %v6137_v27 = vadd.f32 %v6126_v42, %v6019_v50 }
 0x694   : > { %v6261_v1 = vadd.f32 %v6250_v15, %v6137_v27 }
 0x695   : > { %v6356_v18 = vpop.f32.mrf.mxu3  ;;  %v9751_v19 = vpop.f32.mrf.mxu2 }
 0x696   : > { %v6367_v63 = vadd.f32 %v6356_v18, %v6261_v1 }
 0x699   : > { %v6129_v60 = vpop.f32.mrf.mxu1 }
 0x69a   : > { %v6138_v16 = vadd.f32 %v6129_v60, %v6020_v58 }
 0x69c   : > { %v6262_v5 = vadd.f32 %v6253_v32, %v6138_v16 }
 0x69d   : > { %v6359_v7 = vpop.f32.mrf.mxu3  ;;  %v6591_v31 = vpop.f32.mrf.mxu2 }
 0x69e   : > { %v6368_v61 = vadd.f32 %v6359_v7, %v6262_v5 }
 0x6a1   : > { %v6131_v3 = vpop.f32.mrf.mxu1 }
 0x6a2   : > { %v6139_v58 = vadd.f32 %v6131_v3, %v9749_v8 }
 0x6a4   : > { %v6263_v46 = vadd.f32 %v9751_v19, %v6139_v58 }
 0x6a5   : > { %v9754_v34 = vpop.f32.mrf.mxu3  ;;  %v6593_v24 = vpop.f32.mrf.mxu2 }
 0x6a6   : > { %v6369_v7 = vadd.f32 %v9754_v34, %v6263_v46 }
 0x6a9   : > { %v6467_v17 = vpop.f32.mrf.mxu1 }
 0x6aa   : > { %v6482_v55 = vadd.f32 %v6467_v17, %v6364_v54 }
 0x6ac   : > { %v6606_v30 = vadd.f32 %v6591_v31, %v6482_v55 }
 0x6ad   : > { %v6697_v51 = vpop.f32.mrf.mxu3  ;;  %v6596_v48 = vpop.f32.mrf.mxu2 }
 0x6ae   : > { %v6712_v62 = vadd.f32 %v6697_v51, %v6606_v30 }
 0x6b0   : > { %v6722_v28 = vadd.f32 %v9759_v43, %v6712_v62 }
 0x6b1   : > { %v6469_v52 = vpop.f32.mrf.mxu1 }
 0x6b2   : > { %v6728_v36 = vmax.f32 %v6722_v28, 0.0  ;;  %v6483_v37 = vadd.f32 %v6469_v52, %v6365_v35 }
 0x6b4   : > { %6735 = vst [vmem:[#allocation8 + $0x1] sm:$0xff] %v6728_v36  ;;  %v6607_v41 = vadd.f32 %v6593_v24, %v6483_v37 }
 0x6b5   : > { %6741 = vst [vmem:[#allocation8 + $0x7] sm:$0x3] %v8293_v4  ;;  %v6699_v26 = vpop.f32.mrf.mxu3  ;;  %v6598_v11 = vpop.f32.mrf.mxu2 }
 0x6b6   : > { %v6713_v0 = vadd.f32 %v6699_v26, %v6607_v41 }
 0x6b8   : > { %v6723_v9 = vadd.f32 %v9759_v43, %v6713_v0 }
 0x6b9   : > { %v6472_v23 = vpop.f32.mrf.mxu1 }
 0x6ba   : > { %v6729_v38 = vmax.f32 %v6723_v9, 0.0  ;;  %v6484_v10 = vadd.f32 %v6472_v23, %v6366_v44  ;;  %v6795_v44 = vld [vmem:[#allocation9] sm:$0x3] }
 0x6bb   : > { %v6798_v27 = vunpack.c.l.bf16 %v6795_v44 }
 0x6bc   : > { %6736 = vst [vmem:[#allocation8 + $0x9] sm:$0xff] %v6729_v38  ;;  %v6608_v22 = vadd.f32 %v6596_v48, %v6484_v10 }
 0x6bd   : > { %6742 = vst [vmem:[#allocation8 + $0xf] sm:$0x3] %v8293_v4  ;;  %v6702_v39 = vpop.f32.mrf.mxu3  ;;  %v6601_v18 = vpop.f32.mrf.mxu2 }
 0x6be   : > { %v6714_v14 = vadd.f32 %v6702_v39, %v6608_v22 }
 0x6c0   : > { %v6724_v59 = vadd.f32 %v9759_v43, %v6714_v14 }
 0x6c1   : > { %v6474_v53 = vpop.f32.mrf.mxu1 }
 0x6c2   : > { %v6730_v6 = vmax.f32 %v6724_v59, 0.0  ;;  %v6485_v50 = vadd.f32 %v6474_v53, %v6367_v63  ;;  %v6809_v59 = vld [vmem:[%s9786_s9] sm:$0x3] }
 0x6c3   : > { %v6748_v25 = vld [vmem:[#allocation8] ss:$2 sm:$0xff] }
 0x6c4   : > { %v6754_v45 = vld [vmem:[#allocation8 + $0x1] ss:$2 sm:$0xff]  ;;  %6737 = vst [vmem:[#allocation8 + $0x11] sm:$0xff] %v6730_v6  ;;  %v6609_v47 = vadd.f32 %v6598_v11, %v6485_v50  ;;  %v6760_v13 = vld [vmem:[#allocation8 + $0x2] ss:$2 sm:$0xff] }
 0x6c5   : > { %v6765_v57 = vmax.f32 %v6748_v25, %v6754_v45  ;;  %6743 = vst [vmem:[#allocation8 + $0x17] sm:$0x3] %v8293_v4  ;;  %v6704_v33 = vpop.f32.mrf.mxu3  ;;  %v6603_v12 = vpop.f32.mrf.mxu2 }
 0x6c6   : > { %v6715_v15 = vadd.f32 %v6704_v33, %v6609_v47 }
 0x6c7   : > { %v6768_v49 = vmax.f32 %v6765_v57, %v6760_v13 }
 0x6c8   : > { %v6725_v21 = vadd.f32 %v9759_v43, %v6715_v15 }
 0x6c9   : > { %v6771_v42 = vpack.c.bf16 %v6768_v49, %v6768_v49  ;;  %v6477_v60 = vpop.f32.mrf.mxu1 }
 0x6ca   : > { %v6731_v56 = vmax.f32 %v6725_v21, 0.0  ;;  %v6486_v32 = vadd.f32 %v6477_v60, %v6368_v61 }
 0x6cb   : > { %v6779_v31 = vrot.slane %v6771_v42, 6 }
 0x6cc   : > { %6738 = vst [vmem:[#allocation8 + $0x19] sm:$0xff] %v6731_v56  ;;  %v6610_v54 = vadd.f32 %v6601_v18, %v6486_v32 }
 0x6cd   : > { %6791 = vst [vmem:[#allocation9] sm:$0xc] %v6779_v31  ;;  %v6707_v2 = vpop.f32.mrf.mxu3  ;;  %v6780_v41 = vrot.slane %v6779_v31, 4 }
 0x6ce   : > { %6744 = vst [vmem:[#allocation8 + $0x1f] sm:$0x3] %v8293_v4  ;;  %v6716_v17 = vadd.f32 %v6707_v2, %v6610_v54 }
 0x6d0   : > { %v6726_v8 = vadd.f32 %v9759_v43, %v6716_v17 }
 0x6d1   : > { %v6479_v3 = vpop.f32.mrf.mxu1 }
 0x6d2   : > { %v6732_v55 = vmax.f32 %v6726_v8, 0.0  ;;  %v6487_v24 = vadd.f32 %v6479_v3, %v6369_v7 }
 0x6d3   : > { %v6750_v30 = vld [vmem:[#allocation8 + $0x10] ss:$2 sm:$0xff] }
 0x6d4   : > { %6739 = vst [vmem:[#allocation8 + $0x21] sm:$0xff] %v6732_v55  ;;  %v6611_v51 = vadd.f32 %v6603_v12, %v6487_v24  ;;  %v6796_v48 = vld [vmem:[#allocation9] sm:$0xc] }
 0x6d5   : > { %v6756_v62 = vld [vmem:[#allocation8 + $0x11] ss:$2 sm:$0xff]  ;;  %6745 = vst [vmem:[#allocation8 + $0x27] sm:$0x3] %v8293_v4  ;;  %v6709_v19 = vpop.f32.mrf.mxu3  ;;  %v6762_v28 = vld [vmem:[#allocation8 + $0x12] ss:$2 sm:$0xff]  ;;  %v6799_v0 = vunpack.c.l.bf16 %v6796_v48 }
 0x6d6   : > { %v6766_v35 = vmax.f32 %v6750_v30, %v6756_v62  ;;  %v6717_v40 = vadd.f32 %v6709_v19, %v6611_v51  ;;  %v6864_v30 = vld [vmem:[%s9786_s9 + $0x4] sm:$0x1] }
 0x6d8   : > { %v6769_v52 = vmax.f32 %v6766_v35, %v6762_v28  ;;  %v6727_v34 = vadd.f32 %v9759_v43, %v6717_v40  ;;  %v6801_v43 = vrot.slane %v6799_v0, 4 }
 0x6da   : > { %v6772_v36 = vpack.c.bf16 %v6769_v52, %v6769_v52  ;;  %v6733_v37 = vmax.f32 %v6727_v34, 0.0  ;;  %v6803_v39 = vmax.f32 %v6798_v27, %v6801_v43 }
 0x6dc   : > { %v6781_v26 = vrot.slane %v6772_v36, 6  ;;  %6740 = vst [vmem:[#allocation8 + $0x29] sm:$0x3f] %v6733_v37 }
 0x6de   : > { %v6782_v4 = vsel %vm9776_vm10, %v6780_v41, %v6781_v26  ;;  %v6783_v16 = vrot.slane %v6781_v26, 4 }
 0x6df   : > { %6792 = vst [vmem:[#allocation9 + $0x4] sm:$0xf] %v6782_v4 }
 0x6e3   : > { %v6752_v9 = vld [vmem:[#allocation8 + $0x20] ss:$2 sm:$0xff]  ;;  %v6758_v23 = vld [vmem:[#allocation8 + $0x21] ss:$2 sm:$0xff] }
 0x6e4   : > { %v6767_v38 = vmax.f32 %v6752_v9, %v6758_v23  ;;  %v6764_v10 = vld [vmem:[#allocation8 + $0x22] ss:$2 sm:$0xff] }
 0x6e6   : > { %v6797_v1 = vld [vmem:[#allocation9 + $0x4] sm:$0x3]  ;;  %v6770_v22 = vmax.f32 %v6767_v38, %v6764_v10  ;;  %v6813_v53 = vld [vmem:[#allocation9 + $0x4] sm:$0xc] }
 0x6e7   : > { %v6806_v14 = vunpack.c.l.bf16 %v6797_v1  ;;  %v6816_v47 = vunpack.c.l.bf16 %v6813_v53  ;;  %v6812_v57 = vld [vmem:[#allocation9 + $0x4] sm:$0x3] }
 0x6e8   : > { %v6773_v11 = vpack.c.bf16 %v6770_v22, %v6770_v22  ;;  %v6815_v13 = vunpack.c.l.bf16 %v6812_v57 }
 0x6e9   : > { %v6807_v63 = vmax.f32 %v6803_v39, %v6806_v14  ;;  %v6818_v33 = vrot.slane %v6816_v47, 4 }
 0x6ea   : > { %v6784_v6 = vrot.slane %v6773_v11, 6 }
 0x6eb   : > { %v6808_v50 = vpack.c.bf16 %v6807_v63, %v6807_v63  ;;  %v6820_v58 = vmax.f32 %v6815_v13, %v6818_v33 }
 0x6ec   : > { %v6785_v25 = vsel %vm9776_vm10, %v6783_v16, %v6784_v6  ;;  %v6786_v5 = vrot.slane %v6784_v6, 4 }
 0x6ed   : > { %v6810_v45 = vsel %vm8640_vm13, %v6808_v50, %v6809_v59  ;;  %6793 = vst [vmem:[#allocation9 + $0x8] sm:$0xf] %v6785_v25  ;;  %vm6862_vm13 = vsmask.f32 256 }
 0x6ee   : > { %6811 = vst [vmem:[%s9786_s9] sm:$0x3] %v6810_v45  ;;  %vm6863_vm1 = vmand %vm2375_vm8, %vm6862_vm13 }
 0x6ef   : > { %6794 = vst [vmem:[#allocation9 + $0xc] sm:$0x3] %v6786_v5 }
 0x6f4   : > { %v6814_v15 = vld [vmem:[#allocation9 + $0x8] sm:$0x3]  ;;  %v6842_v61 = vld [vmem:[#allocation9 + $0x8] sm:$0xc] }
 0x6f5   : > { %v6841_v49 = vld [vmem:[#allocation9 + $0x8] sm:$0x3]  ;;  %v6823_v21 = vunpack.c.l.bf16 %v6814_v15  ;;  %v6845_v42 = vunpack.c.l.bf16 %v6842_v61  ;;  %v6838_v12 = vld [vmem:[%s9786_s9] sm:$0x6] }
 0x6f6   : > { %v6843_v18 = vld [vmem:[#allocation9 + $0xc] sm:$0x3]  ;;  %v6844_v56 = vunpack.c.l.bf16 %v6841_v49 }
 0x6f7   : > { %v6824_v60 = vmax.f32 %v6820_v58, %v6823_v21  ;;  %v6847_v32 = vrot.slane %v6845_v42, 4  ;;  %v6852_v46 = vunpack.c.l.bf16 %v6843_v18 }
 0x6f9   : > { %v6825_v29 = vpack.c.bf16 %v6824_v60, %v6824_v60  ;;  %v6849_v31 = vmax.f32 %v6844_v56, %v6847_v32 }
 0x6fb   : > { %v6827_v54 = vshrl.u32 %v6825_v29, 16  ;;  %v6830_v2 = vshll.u32 %v6825_v29, 16  ;;  %v6853_v17 = vmax.f32 %v6849_v31, %v6852_v46 }
 0x6fd   : > { %v6829_v7 = vrot.slane %v6827_v54, 6  ;;  %v6832_v8 = vrot.slane %v6830_v2, 7  ;;  %v6854_v3 = vpack.c.bf16 %v6853_v17, %v6853_v17 }
 0x6ff   : > { %v6833_v55 = vor.u32 %v6832_v8, %v6829_v7  ;;  %v6856_v24 = vrot.slane %v6854_v3, 5 }
 0x701   : > { %v6839_v51 = vsel %vm6837_vm15, %v6833_v55, %v6838_v12  ;;  %v6857_v62 = vrot.slane %v6856_v24, 4  ;;  %6860 = vst [vmem:[%s9786_s9] sm:$0x8] %v6856_v24 }
 0x702   : > { %6840 = vst [vmem:[%s9786_s9] sm:$0x6] %v6839_v51 }
 0x703   : > { %v6865_v19 = vsel %vm6863_vm1, %v6857_v62, %v6864_v30 }
 0x704   : > { %6866 = vst [vmem:[%s9786_s9 + $0x4] sm:$0x1] %v6865_v19 }
 0x705 PF: > { %s16_s21 = sadd.s32 1, %s8290_s21  }
 0x706   : > { %p13_p4 = scmp.ge.s32.totalorder %s16_s21, 4  }
 0x708   :  { %15 = sbr.rel (!%p13_p4) target bundleno = 1 (0x1), region = 272 }

</bundles_post_ra>
